<compile_context>
chip_gen: v7x
topology: tpu7x:2x2x1
jax: 0.10.0
libtpu: 0.0.40
codegen_flags: <defaults>
</compile_context>

<pallas_src>
import functools

import jax
import jax.numpy as jnp
from jax.experimental import pallas as pl
from jax.experimental.pallas import tpu as pltpu


# ----------------------------------------------------------------------------
# Pallas GEMM kernel with fused bias + (optional) ReLU epilogue
# ----------------------------------------------------------------------------
def _gemm_kernel(a_ref, b_ref, bias_ref, o_ref, *, relu):
    acc = jnp.dot(a_ref[...], b_ref[...], preferred_element_type=jnp.float32)
    acc = acc + bias_ref[...]          # (1, BN) broadcast over (BM, BN)
    if relu:
        acc = jnp.maximum(acc, 0.0)
    o_ref[...] = acc


def _round_up(x, m):
    return (x + m - 1) // m * m


def pallas_gemm(a, b, bias=None, relu=False):
    """(M, K) @ (K, N) + bias, optional ReLU.  bf16 inputs, f32 accumulate."""
    M, K = a.shape
    _, N = b.shape

    # Shape-aware tiling: M only padded to a 16-multiple block (<=128),
    # K as a single full block (16-multiple), N padded to the 128 lane width.
    BM = 128 if M >= 128 else _round_up(M, 16)
    Mp = _round_up(M, BM)
    Kp = _round_up(K, 16)
    BN = 128
    Np = _round_up(N, BN)

    a_p = jnp.pad(a.astype(jnp.bfloat16), ((0, Mp - M), (0, Kp - K)))
    b_p = jnp.pad(b.astype(jnp.bfloat16), ((0, Kp - K), (0, Np - N)))
    if bias is None:
        bias = jnp.zeros((N,), jnp.float32)
    bias_p = jnp.pad(bias.astype(jnp.float32), (0, Np - N)).reshape(1, Np)

    grid = (Mp // BM, Np // BN)
    cost = pl.CostEstimate(
        flops=2 * M * N * K,
        transcendentals=0,
        bytes_accessed=(Mp * Kp + Kp * Np) * 2 + Mp * Np * 4 + Np * 4)

    out = pl.pallas_call(
        functools.partial(_gemm_kernel, relu=relu),
        out_shape=jax.ShapeDtypeStruct((Mp, Np), jnp.float32),
        grid_spec=pltpu.PrefetchScalarGridSpec(
            num_scalar_prefetch=0,
            grid=grid,
            in_specs=[pl.BlockSpec((BM, Kp), lambda i, j: (i, 0)),
                      pl.BlockSpec((Kp, BN), lambda i, j: (0, j)),
                      pl.BlockSpec((1, BN), lambda i, j: (0, j))],
            out_specs=pl.BlockSpec((BM, BN), lambda i, j: (i, j))),
        compiler_params=pltpu.CompilerParams(
            dimension_semantics=("parallel", "parallel")),
        cost_estimate=cost,
    )(a_p, b_p, bias_p)
    return out[:M, :N]


# ----------------------------------------------------------------------------
# Conv / ConvTranspose wrappers (im2col / col2im in JAX, GEMM in Pallas)
# ----------------------------------------------------------------------------
def conv2d(x, p, stride=1, padding=0, relu=False):
    """x: (N, C, H, W); p['wm']: (kh, kw, C, O) bf16 (GEMM layout, from init)."""
    N, C, H, W = x.shape
    kh, kw, _, O = p['wm'].shape
    xp = jnp.pad(x, ((0, 0), (0, 0), (padding, padding), (padding, padding)))
    Ho = (H + 2 * padding - kh) // stride + 1
    Wo = (W + 2 * padding - kw) // stride + 1
    cols = []
    for dy in range(kh):
        for dx in range(kw):
            cols.append(xp[:, :, dy:dy + stride * Ho:stride,
                           dx:dx + stride * Wo:stride])
    patches = jnp.stack(cols, axis=0)                   # (k2, N, C, Ho, Wo)
    patches = patches.transpose(1, 3, 4, 0, 2)          # (N, Ho, Wo, k2, C)
    patches = patches.reshape(N * Ho * Wo, kh * kw * C)
    wm = p['wm'].reshape(kh * kw * C, O)
    y = pallas_gemm(patches, wm, p['b'], relu=relu)     # fused bias(+ReLU)
    return y.reshape(N, Ho, Wo, O).transpose(0, 3, 1, 2)


def conv_transpose2d(x, p, stride=2, padding=1, output_padding=1):
    """GEMM + col2im transposed conv.  p['wm']: (Cin, Cout, kh, kw) bf16."""
    N, C, H, W = x.shape
    Cin, O, kh, kw = p['wm'].shape
    xf = x.transpose(0, 2, 3, 1).reshape(N * H * W, C)
    wm = p['wm'].reshape(Cin, O * kh * kw)
    col = pallas_gemm(xf, wm, None)                     # (N*H*W, O*kh*kw)
    col = col.reshape(N, H, W, O, kh, kw)

    Hf = (H - 1) * stride + kh
    Wf = (W - 1) * stride + kw
    buf = jnp.zeros((N, O, Hf + output_padding, Wf + output_padding),
                    jnp.float32)
    for ky in range(kh):
        for kx in range(kw):
            buf = buf.at[:, :,
                         ky:ky + (H - 1) * stride + 1:stride,
                         kx:kx + (W - 1) * stride + 1:stride].add(
                col[:, :, :, :, ky, kx].transpose(0, 3, 1, 2))
    Ho = (H - 1) * stride - 2 * padding + kh + output_padding
    Wo = (W - 1) * stride - 2 * padding + kw + output_padding
    out = buf[:, :, padding:padding + Ho, padding:padding + Wo]
    return out + p['b'][None, :, None, None]


# ----------------------------------------------------------------------------
# Deterministic parameter construction (GEMM layouts built once at init)
# ----------------------------------------------------------------------------
class ParamGen:
    def __init__(self, seed=0):
        self._key = jax.random.PRNGKey(seed)

    def _next(self):
        self._key, k = jax.random.split(self._key)
        return k

    def conv(self, in_c, out_c, k):
        w = 0.02 * jax.random.normal(self._next(), (out_c, in_c, k, k),
                                     jnp.float32)
        wm = w.transpose(2, 3, 1, 0).astype(jnp.bfloat16)   # (kh, kw, C, O)
        return {'wm': wm, 'b': jnp.zeros((out_c,), jnp.float32)}

    def convT(self, in_c, out_c, k):
        w = 0.02 * jax.random.normal(self._next(), (in_c, out_c, k, k),
                                     jnp.float32)
        return {'wm': w.astype(jnp.bfloat16),                # (Cin, Cout, k, k)
                'b': jnp.zeros((out_c,), jnp.float32)}

    def dense(self, in_c, out_c):            # channel-attention 1x1, no bias
        w = 0.02 * jax.random.normal(self._next(), (out_c, in_c, 1, 1),
                                     jnp.float32)
        return {'wm': w[:, :, 0, 0].T}                       # (in_c, out_c)

    def conv_plain(self, in_c, out_c, k):    # spatial-attention 7x7, no bias
        w = 0.02 * jax.random.normal(self._next(), (out_c, in_c, k, k),
                                     jnp.float32)
        return {'w': w}


def init_rdb(pg, in_c, growth, num_layer):
    c = in_c
    layers = []
    for _ in range(num_layer):
        layers.append(pg.conv(c, growth, 3))
        c += growth
    return {'layers': layers, 'conv1x1': pg.conv(c, in_c, 1)}


def init_rdnet(pg, in_c, growth, num_layer, num_blocks):
    return {'rdbs': [init_rdb(pg, in_c, growth, num_layer)
                     for _ in range(num_blocks)],
            'conv1x1': pg.conv(num_blocks * in_c, in_c, 1),
            'conv3x3': pg.conv(in_c, in_c, 3)}


def init_rnncell(pg, n_blocks, n_feats):
    nf = n_feats
    return {
        'F_B0': pg.conv(3, nf, 5),
        'F_B1': {'rdb': init_rdb(pg, nf, nf, 3), 'conv': pg.conv(nf, 2 * nf, 5)},
        'F_B2': {'rdb': init_rdb(pg, 2 * nf, 2 * nf, 3),
                 'conv': pg.conv(2 * nf, 4 * nf, 5)},
        'F_R': init_rdnet(pg, 5 * nf, 2 * nf, 3, n_blocks),
        'F_h': {'c0': pg.conv(5 * nf, nf, 3),
                'rdb': init_rdb(pg, nf, nf, 3),
                'c1': pg.conv(nf, nf, 3)},
    }


def init_recons(pg, ff, fb, n_feats):
    nf = n_feats
    rf = ff + 1 + fb
    return {'t0': pg.convT(5 * nf * rf, 2 * nf, 3),
            'rdb0': init_rdb(pg, 2 * nf, nf, 3),
            't1': pg.convT(2 * nf, nf, 3),
            'rdb1': init_rdb(pg, nf, nf, 3),
            'c': pg.conv(nf, 3, 5)}


def init_fusion(pg, ff, fb, n_feats):
    return {'ta': {'fc1': pg.dense(160, 160 // 5),
                   'fc2': pg.dense(160 // 5, 160)},
            'sa': {'conv1': pg.conv_plain(2, 1, 7)},
            'conv1': pg.conv(160, 80, 1),
            'conv2': pg.conv(5 * n_feats * (ff * 2 + 1),
                             5 * n_feats * (ff * 2 + 1), 1)}


def init_model(pg, ff, fb, n_blocks, n_feats):
    return {'cell': init_rnncell(pg, n_blocks, n_feats),
            'cell1': init_rnncell(pg, n_blocks, n_feats),
            'recons': init_recons(pg, ff, fb, n_feats),
            'fusion': init_fusion(pg, ff, fb, n_feats),
            'y_Merge': pg.conv(10 * n_feats, 5 * n_feats, 1)}


# ----------------------------------------------------------------------------
# Forward functions (mirror the PyTorch module semantics)
# ----------------------------------------------------------------------------
def rdb_fwd(p, x):
    h = x
    for lp in p['layers']:
        out = conv2d(h, lp, 1, 1, relu=True)        # ReLU fused in GEMM
        h = jnp.concatenate([h, out], axis=1)
    out = conv2d(h, p['conv1x1'], 1, 0)
    return out + x


def rdnet_fwd(p, x):
    outs = []
    h = x
    for rp in p['rdbs']:
        h = rdb_fwd(rp, h)
        outs.append(h)
    out = jnp.concatenate(outs, axis=1)
    out = conv2d(out, p['conv1x1'], 1, 0)
    out = conv2d(out, p['conv3x3'], 1, 1)
    return out


def rnncell_fwd(p, x, s_last):
    out = conv2d(x, p['F_B0'], 1, 2)
    out = rdb_fwd(p['F_B1']['rdb'], out)
    out = conv2d(out, p['F_B1']['conv'], 2, 2)
    out = rdb_fwd(p['F_B2']['rdb'], out)
    out = conv2d(out, p['F_B2']['conv'], 2, 2)
    out = jnp.concatenate([out, s_last], axis=1)
    out = rdnet_fwd(p['F_R'], out)
    s = conv2d(out, p['F_h']['c0'], 1, 1)
    s = rdb_fwd(p['F_h']['rdb'], s)
    s = conv2d(s, p['F_h']['c1'], 1, 1)
    return out, s


def recons_fwd(p, x):
    out = conv_transpose2d(x, p['t0'])
    out = rdb_fwd(p['rdb0'], out)
    out = conv_transpose2d(out, p['t1'])
    out = rdb_fwd(p['rdb1'], out)
    out = conv2d(out, p['c'], 1, 2)
    return out


def channel_attention_fwd(p, x):
    # Adaptive avg/max pool to 1x1 + 1x1 convs == tiny (B, C) MLP; keep in JAX
    # (routing M=1 GEMMs through Pallas is pure dispatch/padding overhead).
    avg = jnp.mean(x, axis=(2, 3))
    mx = jnp.max(x, axis=(2, 3))
    w1, w2 = p['fc1']['wm'], p['fc2']['wm']

    def mlp(v):
        return jax.nn.relu(v @ w1) @ w2

    out = jax.nn.sigmoid(mlp(avg) + mlp(mx))
    return out[:, :, None, None]


def spatial_attention_fwd(p, x):
    # 2->1 channel 7x7 conv (N=1 output channel): plain lax conv.
    avg = jnp.mean(x, axis=1, keepdims=True)
    mx = jnp.max(x, axis=1, keepdims=True)
    h = jnp.concatenate([avg, mx], axis=1)
    y = jax.lax.conv_general_dilated(
        h, p['conv1']['w'], window_strides=(1, 1),
        padding=[(3, 3), (3, 3)],
        dimension_numbers=('NCHW', 'OIHW', 'NCHW'))
    return jax.nn.sigmoid(y)


def fusion_fwd(p, fm, center):
    nframes = len(fm)
    f_ref = fm[center]
    others = [fm[i] for i in range(nframes) if i != center]
    B = f_ref.shape[0]
    # Batch all non-center branches along the batch axis -> one GEMM each op.
    cated = jnp.concatenate(
        [jnp.concatenate([f_ref, o], axis=1) for o in others], axis=0)
    cated = channel_attention_fwd(p['ta'], cated) * cated
    cated = spatial_attention_fwd(p['sa'], cated) * cated
    cated = conv2d(cated, p['conv1'], 1, 0)
    out = list(jnp.split(cated, len(others), axis=0)) + [f_ref]
    out = jnp.concatenate(out, axis=1)
    return conv2d(out, p['conv2'], 1, 0)


def model_fwd(params, x, ff, fb, n_feats):
    # prepare(False, True, x): x / 255
    x = x / 255.0
    B, frames, C, H, W = x.shape
    sH, sW = H // 4, W // 4
    hs0, hs1, outputs = [], [], []

    s = jnp.zeros((B, n_feats, sH, sW), jnp.float32)
    for i in range(frames):
        h, s = rnncell_fwd(params['cell'], x[:, i], s)
        hs0.append(h)

    s = jnp.zeros((B, n_feats, sH, sW), jnp.float32)
    for i in range(frames - 1, -1, -1):
        h, s = rnncell_fwd(params['cell1'], x[:, i], s)
        hs1.append(h)

    # y_Merge applied to all frames at once (batched along the batch axis).
    merged_in = jnp.concatenate(
        [jnp.concatenate([hs1[frames - 1 - i], hs0[i]], axis=1)
         for i in range(frames)], axis=0)
    merged = conv2d(merged_in, params['y_Merge'], 1, 0)
    hs = list(jnp.split(merged, frames, axis=0))

    for i in range(fb, frames - ff):
        out = fusion_fwd(params['fusion'], hs[i - fb:i + ff + 1], ff)
        out = recons_fwd(params['recons'], out)
        out = out + x[:, i]
        outputs.append(out[:, None])

    # prepare_reverse(False, True, .): * 255
    return jnp.concatenate(outputs, axis=1) * 255.0


# ----------------------------------------------------------------------------
if __name__ == "__main__":
    # Small but structurally faithful configuration.
    # n_feats must stay 16 (fusion hard-codes ChannelAttention(160) = 2*5*16).
    FF, FB, N_BLOCKS, N_FEATS = 1, 1, 2, 16
    B, FRAMES, C, H, W = 1, 3, 3, 16, 16

    pg = ParamGen(seed=0)
    params = init_model(pg, FF, FB, N_BLOCKS, N_FEATS)

    key = jax.random.PRNGKey(0)
    x = jax.random.uniform(key, (B, FRAMES, C, H, W), jnp.float32) * 255.0

    fwd = jax.jit(model_fwd, static_argnums=(2, 3, 4))
    y = fwd(params, x, FF, FB, N_FEATS)
    jax.block_until_ready(y)
    assert y.shape == (B, FRAMES - FF - FB, C, H, W), y.shape
    assert bool(jnp.isfinite(y).all())
    print("KERNEL_OK")
</pallas_src>

<mosaic_0001>
module attributes {stable_mosaic.version = 11 : i64} {
  func.func @_gemm_kernel(%arg0: i32, %arg1: i32, %arg2: memref<128x80xbf16, #tpu.memory_space<vmem>>, %arg3: memref<80x128xbf16, #tpu.memory_space<vmem>>, %arg4: memref<1x128xf32, #tpu.memory_space<vmem>>, %arg5: memref<128x128xf32, #tpu.memory_space<vmem>>) attributes {dimension_semantics = [#tpu.dimension_semantics<parallel>, #tpu.dimension_semantics<parallel>], iteration_bounds = array<i64: 2, 1>, scalar_prefetch = 0 : i64, scratch_operands = 0 : i64, tpu.core_type = #tpu.core_type<tc>, window_params = [{transform_indices = @transform_0, window_bounds = array<i64: 128, 80>}, {transform_indices = @transform_1, window_bounds = array<i64: 80, 128>}, {transform_indices = @transform_2, window_bounds = array<i64: 1, 128>}, {transform_indices = @transform_3, window_bounds = array<i64: 128, 128>}]} {
    %c0 = arith.constant 0 : index
    %c0_0 = arith.constant 0 : index
    %0 = vector.load %arg2[%c0, %c0_0] : memref<128x80xbf16, #tpu.memory_space<vmem>>, vector<128x80xbf16>
    %c0_1 = arith.constant 0 : index
    %c0_2 = arith.constant 0 : index
    %1 = vector.load %arg3[%c0_1, %c0_2] : memref<80x128xbf16, #tpu.memory_space<vmem>>, vector<80x128xbf16>
    %cst = arith.constant dense<0.000000e+00> : vector<128x128xf32>
    %2 = tpu.matmul %0, %1, %cst {dimension_numbers = #tpu.dot_dimension_numbers<[1], [0], [0], [1], [0, 0, 1, 1], [], []>} : vector<128x80xbf16>, vector<80x128xbf16>, vector<128x128xf32> -> vector<128x128xf32>
    %c0_3 = arith.constant 0 : index
    %c0_4 = arith.constant 0 : index
    %3 = vector.load %arg4[%c0_3, %c0_4] : memref<1x128xf32, #tpu.memory_space<vmem>>, vector<1x128xf32>
    %4 = vector.broadcast %3 : vector<1x128xf32> to vector<128x128xf32>
    %5 = arith.addf %2, %4 : vector<128x128xf32>
    %c0_5 = arith.constant 0 : index
    %c0_6 = arith.constant 0 : index
    %6 = vector.load %arg5[%c0_5, %c0_6] : memref<128x128xf32, #tpu.memory_space<vmem>>, vector<128x128xf32>
    tpu.vector_store %arg5[%c0_5, %c0_6], %5 {strides = array<i32>} : memref<128x128xf32, #tpu.memory_space<vmem>>, vector<128x128xf32>,
    return
  }
  func.func @transform_0(%arg0: i32, %arg1: i32) -> (i32, i32) {
    %c0_i32 = arith.constant 0 : i32
    %c0_i32_0 = arith.constant 0 : i32
    return %arg0, %c0_i32 : i32, i32
  }
  func.func @transform_1(%arg0: i32, %arg1: i32) -> (i32, i32) {
    %c0_i32 = arith.constant 0 : i32
    %c0_i32_0 = arith.constant 0 : i32
    return %c0_i32, %arg1 : i32, i32
  }
  func.func @transform_2(%arg0: i32, %arg1: i32) -> (i32, i32) {
    %c0_i32 = arith.constant 0 : i32
    %c0_i32_0 = arith.constant 0 : i32
    return %c0_i32, %arg1 : i32, i32
  }
  func.func @transform_3(%arg0: i32, %arg1: i32) -> (i32, i32) {
    %c0_i32 = arith.constant 0 : i32
    return %arg0, %arg1 : i32, i32
  }
}

module attributes {stable_mosaic.version = 11 : i64} {
  func.func @_gemm_kernel(%arg0: i32, %arg1: i32, %arg2: memref<128x144xbf16, #tpu.memory_space<vmem>>, %arg3: memref<144x128xbf16, #tpu.memory_space<vmem>>, %arg4: memref<1x128xf32, #tpu.memory_space<vmem>>, %arg5: memref<128x128xf32, #tpu.memory_space<vmem>>) attributes {dimension_semantics = [#tpu.dimension_semantics<parallel>, #tpu.dimension_semantics<parallel>], iteration_bounds = array<i64: 2, 1>, scalar_prefetch = 0 : i64, scratch_operands = 0 : i64, tpu.core_type = #tpu.core_type<tc>, window_params = [{transform_indices = @transform_0, window_bounds = array<i64: 128, 144>}, {transform_indices = @transform_1, window_bounds = array<i64: 144, 128>}, {transform_indices = @transform_2, window_bounds = array<i64: 1, 128>}, {transform_indices = @transform_3, window_bounds = array<i64: 128, 128>}]} {
    %c0 = arith.constant 0 : index
    %c0_0 = arith.constant 0 : index
    %0 = vector.load %arg2[%c0, %c0_0] : memref<128x144xbf16, #tpu.memory_space<vmem>>, vector<128x144xbf16>
    %c0_1 = arith.constant 0 : index
    %c0_2 = arith.constant 0 : index
    %1 = vector.load %arg3[%c0_1, %c0_2] : memref<144x128xbf16, #tpu.memory_space<vmem>>, vector<144x128xbf16>
    %cst = arith.constant dense<0.000000e+00> : vector<128x128xf32>
    %2 = tpu.matmul %0, %1, %cst {dimension_numbers = #tpu.dot_dimension_numbers<[1], [0], [0], [1], [0, 0, 1, 1], [], []>} : vector<128x144xbf16>, vector<144x128xbf16>, vector<128x128xf32> -> vector<128x128xf32>
    %c0_3 = arith.constant 0 : index
    %c0_4 = arith.constant 0 : index
    %3 = vector.load %arg4[%c0_3, %c0_4] : memref<1x128xf32, #tpu.memory_space<vmem>>, vector<1x128xf32>
    %4 = vector.broadcast %3 : vector<1x128xf32> to vector<128x128xf32>
    %5 = arith.addf %2, %4 : vector<128x128xf32>
    %cst_5 = arith.constant 0.000000e+00 : f32
    %6 = vector.broadcast %cst_5 : f32 to vector<128x128xf32>
    %7 = arith.maximumf %5, %6 : vector<128x128xf32>
    %c0_6 = arith.constant 0 : index
    %c0_7 = arith.constant 0 : index
    %8 = vector.load %arg5[%c0_6, %c0_7] : memref<128x128xf32, #tpu.memory_space<vmem>>, vector<128x128xf32>
    tpu.vector_store %arg5[%c0_6, %c0_7], %7 {strides = array<i32>} : memref<128x128xf32, #tpu.memory_space<vmem>>, vector<128x128xf32>,
    return
  }
  func.func @transform_0(%arg0: i32, %arg1: i32) -> (i32, i32) {
    %c0_i32 = arith.constant 0 : i32
    %c0_i32_0 = arith.constant 0 : i32
    return %arg0, %c0_i32 : i32, i32
  }
  func.func @transform_1(%arg0: i32, %arg1: i32) -> (i32, i32) {
    %c0_i32 = arith.constant 0 : i32
    %c0_i32_0 = arith.constant 0 : i32
    return %c0_i32, %arg1 : i32, i32
  }
  func.func @transform_2(%arg0: i32, %arg1: i32) -> (i32, i32) {
    %c0_i32 = arith.constant 0 : i32
    %c0_i32_0 = arith.constant 0 : i32
    return %c0_i32, %arg1 : i32, i32
  }
  func.func @transform_3(%arg0: i32, %arg1: i32) -> (i32, i32) {
    %c0_i32 = arith.constant 0 : i32
    return %arg0, %arg1 : i32, i32
  }
}

module attributes {stable_mosaic.version = 11 : i64} {
  func.func @_gemm_kernel(%arg0: i32, %arg1: i32, %arg2: memref<128x288xbf16, #tpu.memory_space<vmem>>, %arg3: memref<288x128xbf16, #tpu.memory_space<vmem>>, %arg4: memref<1x128xf32, #tpu.memory_space<vmem>>, %arg5: memref<128x128xf32, #tpu.memory_space<vmem>>) attributes {dimension_semantics = [#tpu.dimension_semantics<parallel>, #tpu.dimension_semantics<parallel>], iteration_bounds = array<i64: 2, 1>, scalar_prefetch = 0 : i64, scratch_operands = 0 : i64, tpu.core_type = #tpu.core_type<tc>, window_params = [{transform_indices = @transform_0, window_bounds = array<i64: 128, 288>}, {transform_indices = @transform_1, window_bounds = array<i64: 288, 128>}, {transform_indices = @transform_2, window_bounds = array<i64: 1, 128>}, {transform_indices = @transform_3, window_bounds = array<i64: 128, 128>}]} {
    %c0 = arith.constant 0 : index
    %c0_0 = arith.constant 0 : index
    %0 = vector.load %arg2[%c0, %c0_0] : memref<128x288xbf16, #tpu.memory_space<vmem>>, vector<128x288xbf16>
    %c0_1 = arith.constant 0 : index
    %c0_2 = arith.constant 0 : index
    %1 = vector.load %arg3[%c0_1, %c0_2] : memref<288x128xbf16, #tpu.memory_space<vmem>>, vector<288x128xbf16>
    %cst = arith.constant dense<0.000000e+00> : vector<128x128xf32>
    %2 = tpu.matmul %0, %1, %cst {dimension_numbers = #tpu.dot_dimension_numbers<[1], [0], [0], [1], [0, 0, 1, 1], [], []>} : vector<128x288xbf16>, vector<288x128xbf16>, vector<128x128xf32> -> vector<128x128xf32>
    %c0_3 = arith.constant 0 : index
    %c0_4 = arith.constant 0 : index
    %3 = vector.load %arg4[%c0_3, %c0_4] : memref<1x128xf32, #tpu.memory_space<vmem>>, vector<1x128xf32>
    %4 = vector.broadcast %3 : vector<1x128xf32> to vector<128x128xf32>
    %5 = arith.addf %2, %4 : vector<128x128xf32>
    %cst_5 = arith.constant 0.000000e+00 : f32
    %6 = vector.broadcast %cst_5 : f32 to vector<128x128xf32>
    %7 = arith.maximumf %5, %6 : vector<128x128xf32>
    %c0_6 = arith.constant 0 : index
    %c0_7 = arith.constant 0 : index
    %8 = vector.load %arg5[%c0_6, %c0_7] : memref<128x128xf32, #tpu.memory_space<vmem>>, vector<128x128xf32>
    tpu.vector_store %arg5[%c0_6, %c0_7], %7 {strides = array<i32>} : memref<128x128xf32, #tpu.memory_space<vmem>>, vector<128x128xf32>,
    return
  }
  func.func @transform_0(%arg0: i32, %arg1: i32) -> (i32, i32) {
    %c0_i32 = arith.constant 0 : i32
    %c0_i32_0 = arith.constant 0 : i32
    return %arg0, %c0_i32 : i32, i32
  }
  func.func @transform_1(%arg0: i32, %arg1: i32) -> (i32, i32) {
    %c0_i32 = arith.constant 0 : i32
    %c0_i32_0 = arith.constant 0 : i32
    return %c0_i32, %arg1 : i32, i32
  }
  func.func @transform_2(%arg0: i32, %arg1: i32) -> (i32, i32) {
    %c0_i32 = arith.constant 0 : i32
    %c0_i32_0 = arith.constant 0 : i32
    return %c0_i32, %arg1 : i32, i32
  }
  func.func @transform_3(%arg0: i32, %arg1: i32) -> (i32, i32) {
    %c0_i32 = arith.constant 0 : i32
    return %arg0, %arg1 : i32, i32
  }
}

module attributes {stable_mosaic.version = 11 : i64} {
  func.func @_gemm_kernel(%arg0: i32, %arg1: i32, %arg2: memref<128x432xbf16, #tpu.memory_space<vmem>>, %arg3: memref<432x128xbf16, #tpu.memory_space<vmem>>, %arg4: memref<1x128xf32, #tpu.memory_space<vmem>>, %arg5: memref<128x128xf32, #tpu.memory_space<vmem>>) attributes {dimension_semantics = [#tpu.dimension_semantics<parallel>, #tpu.dimension_semantics<parallel>], iteration_bounds = array<i64: 2, 1>, scalar_prefetch = 0 : i64, scratch_operands = 0 : i64, tpu.core_type = #tpu.core_type<tc>, window_params = [{transform_indices = @transform_0, window_bounds = array<i64: 128, 432>}, {transform_indices = @transform_1, window_bounds = array<i64: 432, 128>}, {transform_indices = @transform_2, window_bounds = array<i64: 1, 128>}, {transform_indices = @transform_3, window_bounds = array<i64: 128, 128>}]} {
    %c0 = arith.constant 0 : index
    %c0_0 = arith.constant 0 : index
    %0 = vector.load %arg2[%c0, %c0_0] : memref<128x432xbf16, #tpu.memory_space<vmem>>, vector<128x432xbf16>
    %c0_1 = arith.constant 0 : index
    %c0_2 = arith.constant 0 : index
    %1 = vector.load %arg3[%c0_1, %c0_2] : memref<432x128xbf16, #tpu.memory_space<vmem>>, vector<432x128xbf16>
    %cst = arith.constant dense<0.000000e+00> : vector<128x128xf32>
    %2 = tpu.matmul %0, %1, %cst {dimension_numbers = #tpu.dot_dimension_numbers<[1], [0], [0], [1], [0, 0, 1, 1], [], []>} : vector<128x432xbf16>, vector<432x128xbf16>, vector<128x128xf32> -> vector<128x128xf32>
    %c0_3 = arith.constant 0 : index
    %c0_4 = arith.constant 0 : index
    %3 = vector.load %arg4[%c0_3, %c0_4] : memref<1x128xf32, #tpu.memory_space<vmem>>, vector<1x128xf32>
    %4 = vector.broadcast %3 : vector<1x128xf32> to vector<128x128xf32>
    %5 = arith.addf %2, %4 : vector<128x128xf32>
    %cst_5 = arith.constant 0.000000e+00 : f32
    %6 = vector.broadcast %cst_5 : f32 to vector<128x128xf32>
    %7 = arith.maximumf %5, %6 : vector<128x128xf32>
    %c0_6 = arith.constant 0 : index
    %c0_7 = arith.constant 0 : index
    %8 = vector.load %arg5[%c0_6, %c0_7] : memref<128x128xf32, #tpu.memory_space<vmem>>, vector<128x128xf32>
    tpu.vector_store %arg5[%c0_6, %c0_7], %7 {strides = array<i32>} : memref<128x128xf32, #tpu.memory_space<vmem>>, vector<128x128xf32>,
    return
  }
  func.func @transform_0(%arg0: i32, %arg1: i32) -> (i32, i32) {
    %c0_i32 = arith.constant 0 : i32
    %c0_i32_0 = arith.constant 0 : i32
    return %arg0, %c0_i32 : i32, i32
  }
  func.func @transform_1(%arg0: i32, %arg1: i32) -> (i32, i32) {
    %c0_i32 = arith.constant 0 : i32
    %c0_i32_0 = arith.constant 0 : i32
    return %c0_i32, %arg1 : i32, i32
  }
  func.func @transform_2(%arg0: i32, %arg1: i32) -> (i32, i32) {
    %c0_i32 = arith.constant 0 : i32
    %c0_i32_0 = arith.constant 0 : i32
    return %c0_i32, %arg1 : i32, i32
  }
  func.func @transform_3(%arg0: i32, %arg1: i32) -> (i32, i32) {
    %c0_i32 = arith.constant 0 : i32
    return %arg0, %arg1 : i32, i32
  }
}

module attributes {stable_mosaic.version = 11 : i64} {
  func.func @_gemm_kernel(%arg0: i32, %arg1: i32, %arg2: memref<128x64xbf16, #tpu.memory_space<vmem>>, %arg3: memref<64x128xbf16, #tpu.memory_space<vmem>>, %arg4: memref<1x128xf32, #tpu.memory_space<vmem>>, %arg5: memref<128x128xf32, #tpu.memory_space<vmem>>) attributes {dimension_semantics = [#tpu.dimension_semantics<parallel>, #tpu.dimension_semantics<parallel>], iteration_bounds = array<i64: 2, 1>, scalar_prefetch = 0 : i64, scratch_operands = 0 : i64, tpu.core_type = #tpu.core_type<tc>, window_params = [{transform_indices = @transform_0, window_bounds = array<i64: 128, 64>}, {transform_indices = @transform_1, window_bounds = array<i64: 64, 128>}, {transform_indices = @transform_2, window_bounds = array<i64: 1, 128>}, {transform_indices = @transform_3, window_bounds = array<i64: 128, 128>}]} {
    %c0 = arith.constant 0 : index
    %c0_0 = arith.constant 0 : index
    %0 = vector.load %arg2[%c0, %c0_0] : memref<128x64xbf16, #tpu.memory_space<vmem>>, vector<128x64xbf16>
    %c0_1 = arith.constant 0 : index
    %c0_2 = arith.constant 0 : index
    %1 = vector.load %arg3[%c0_1, %c0_2] : memref<64x128xbf16, #tpu.memory_space<vmem>>, vector<64x128xbf16>
    %cst = arith.constant dense<0.000000e+00> : vector<128x128xf32>
    %2 = tpu.matmul %0, %1, %cst {dimension_numbers = #tpu.dot_dimension_numbers<[1], [0], [0], [1], [0, 0, 1, 1], [], []>} : vector<128x64xbf16>, vector<64x128xbf16>, vector<128x128xf32> -> vector<128x128xf32>
    %c0_3 = arith.constant 0 : index
    %c0_4 = arith.constant 0 : index
    %3 = vector.load %arg4[%c0_3, %c0_4] : memref<1x128xf32, #tpu.memory_space<vmem>>, vector<1x128xf32>
    %4 = vector.broadcast %3 : vector<1x128xf32> to vector<128x128xf32>
    %5 = arith.addf %2, %4 : vector<128x128xf32>
    %c0_5 = arith.constant 0 : index
    %c0_6 = arith.constant 0 : index
    %6 = vector.load %arg5[%c0_5, %c0_6] : memref<128x128xf32, #tpu.memory_space<vmem>>, vector<128x128xf32>
    tpu.vector_store %arg5[%c0_5, %c0_6], %5 {strides = array<i32>} : memref<128x128xf32, #tpu.memory_space<vmem>>, vector<128x128xf32>,
    return
  }
  func.func @transform_0(%arg0: i32, %arg1: i32) -> (i32, i32) {
    %c0_i32 = arith.constant 0 : i32
    %c0_i32_0 = arith.constant 0 : i32
    return %arg0, %c0_i32 : i32, i32
  }
  func.func @transform_1(%arg0: i32, %arg1: i32) -> (i32, i32) {
    %c0_i32 = arith.constant 0 : i32
    %c0_i32_0 = arith.constant 0 : i32
    return %c0_i32, %arg1 : i32, i32
  }
  func.func @transform_2(%arg0: i32, %arg1: i32) -> (i32, i32) {
    %c0_i32 = arith.constant 0 : i32
    %c0_i32_0 = arith.constant 0 : i32
    return %c0_i32, %arg1 : i32, i32
  }
  func.func @transform_3(%arg0: i32, %arg1: i32) -> (i32, i32) {
    %c0_i32 = arith.constant 0 : i32
    return %arg0, %arg1 : i32, i32
  }
}

module attributes {stable_mosaic.version = 11 : i64} {
  func.func @_gemm_kernel(%arg0: i32, %arg1: i32, %arg2: memref<64x400xbf16, #tpu.memory_space<vmem>>, %arg3: memref<400x128xbf16, #tpu.memory_space<vmem>>, %arg4: memref<1x128xf32, #tpu.memory_space<vmem>>, %arg5: memref<64x128xf32, #tpu.memory_space<vmem>>) attributes {dimension_semantics = [#tpu.dimension_semantics<parallel>, #tpu.dimension_semantics<parallel>], iteration_bounds = array<i64: 1, 1>, scalar_prefetch = 0 : i64, scratch_operands = 0 : i64, tpu.core_type = #tpu.core_type<tc>, window_params = [{transform_indices = @transform_0, window_bounds = array<i64: 64, 400>}, {transform_indices = @transform_1, window_bounds = array<i64: 400, 128>}, {transform_indices = @transform_2, window_bounds = array<i64: 1, 128>}, {transform_indices = @transform_3, window_bounds = array<i64: 64, 128>}]} {
    %c0 = arith.constant 0 : index
    %c0_0 = arith.constant 0 : index
    %0 = vector.load %arg2[%c0, %c0_0] : memref<64x400xbf16, #tpu.memory_space<vmem>>, vector<64x400xbf16>
    %c0_1 = arith.constant 0 : index
    %c0_2 = arith.constant 0 : index
    %1 = vector.load %arg3[%c0_1, %c0_2] : memref<400x128xbf16, #tpu.memory_space<vmem>>, vector<400x128xbf16>
    %cst = arith.constant dense<0.000000e+00> : vector<64x128xf32>
    %2 = tpu.matmul %0, %1, %cst {dimension_numbers = #tpu.dot_dimension_numbers<[1], [0], [0], [1], [0, 0, 1, 1], [], []>} : vector<64x400xbf16>, vector<400x128xbf16>, vector<64x128xf32> -> vector<64x128xf32>
    %c0_3 = arith.constant 0 : index
    %c0_4 = arith.constant 0 : index
    %3 = vector.load %arg4[%c0_3, %c0_4] : memref<1x128xf32, #tpu.memory_space<vmem>>, vector<1x128xf32>
    %4 = vector.broadcast %3 : vector<1x128xf32> to vector<64x128xf32>
    %5 = arith.addf %2, %4 : vector<64x128xf32>
    %c0_5 = arith.constant 0 : index
    %c0_6 = arith.constant 0 : index
    %6 = vector.load %arg5[%c0_5, %c0_6] : memref<64x128xf32, #tpu.memory_space<vmem>>, vector<64x128xf32>
    tpu.vector_store %arg5[%c0_5, %c0_6], %5 {strides = array<i32>} : memref<64x128xf32, #tpu.memory_space<vmem>>, vector<64x128xf32>,
    return
  }
  func.func @transform_0(%arg0: i32, %arg1: i32) -> (i32, i32) {
    %c0_i32 = arith.constant 0 : i32
    %c0_i32_0 = arith.constant 0 : i32
    return %arg0, %c0_i32 : i32, i32
  }
  func.func @transform_1(%arg0: i32, %arg1: i32) -> (i32, i32) {
    %c0_i32 = arith.constant 0 : i32
    %c0_i32_0 = arith.constant 0 : i32
    return %c0_i32, %arg1 : i32, i32
  }
  func.func @transform_2(%arg0: i32, %arg1: i32) -> (i32, i32) {
    %c0_i32 = arith.constant 0 : i32
    %c0_i32_0 = arith.constant 0 : i32
    return %c0_i32, %arg1 : i32, i32
  }
  func.func @transform_3(%arg0: i32, %arg1: i32) -> (i32, i32) {
    %c0_i32 = arith.constant 0 : i32
    return %arg0, %arg1 : i32, i32
  }
}

module attributes {stable_mosaic.version = 11 : i64} {
  func.func @_gemm_kernel(%arg0: i32, %arg1: i32, %arg2: memref<64x288xbf16, #tpu.memory_space<vmem>>, %arg3: memref<288x128xbf16, #tpu.memory_space<vmem>>, %arg4: memref<1x128xf32, #tpu.memory_space<vmem>>, %arg5: memref<64x128xf32, #tpu.memory_space<vmem>>) attributes {dimension_semantics = [#tpu.dimension_semantics<parallel>, #tpu.dimension_semantics<parallel>], iteration_bounds = array<i64: 1, 1>, scalar_prefetch = 0 : i64, scratch_operands = 0 : i64, tpu.core_type = #tpu.core_type<tc>, window_params = [{transform_indices = @transform_0, window_bounds = array<i64: 64, 288>}, {transform_indices = @transform_1, window_bounds = array<i64: 288, 128>}, {transform_indices = @transform_2, window_bounds = array<i64: 1, 128>}, {transform_indices = @transform_3, window_bounds = array<i64: 64, 128>}]} {
    %c0 = arith.constant 0 : index
    %c0_0 = arith.constant 0 : index
    %0 = vector.load %arg2[%c0, %c0_0] : memref<64x288xbf16, #tpu.memory_space<vmem>>, vector<64x288xbf16>
    %c0_1 = arith.constant 0 : index
    %c0_2 = arith.constant 0 : index
    %1 = vector.load %arg3[%c0_1, %c0_2] : memref<288x128xbf16, #tpu.memory_space<vmem>>, vector<288x128xbf16>
    %cst = arith.constant dense<0.000000e+00> : vector<64x128xf32>
    %2 = tpu.matmul %0, %1, %cst {dimension_numbers = #tpu.dot_dimension_numbers<[1], [0], [0], [1], [0, 0, 1, 1], [], []>} : vector<64x288xbf16>, vector<288x128xbf16>, vector<64x128xf32> -> vector<64x128xf32>
    %c0_3 = arith.constant 0 : index
    %c0_4 = arith.constant 0 : index
    %3 = vector.load %arg4[%c0_3, %c0_4] : memref<1x128xf32, #tpu.memory_space<vmem>>, vector<1x128xf32>
    %4 = vector.broadcast %3 : vector<1x128xf32> to vector<64x128xf32>
    %5 = arith.addf %2, %4 : vector<64x128xf32>
    %cst_5 = arith.constant 0.000000e+00 : f32
    %6 = vector.broadcast %cst_5 : f32 to vector<64x128xf32>
    %7 = arith.maximumf %5, %6 : vector<64x128xf32>
    %c0_6 = arith.constant 0 : index
    %c0_7 = arith.constant 0 : index
    %8 = vector.load %arg5[%c0_6, %c0_7] : memref<64x128xf32, #tpu.memory_space<vmem>>, vector<64x128xf32>
    tpu.vector_store %arg5[%c0_6, %c0_7], %7 {strides = array<i32>} : memref<64x128xf32, #tpu.memory_space<vmem>>, vector<64x128xf32>,
    return
  }
  func.func @transform_0(%arg0: i32, %arg1: i32) -> (i32, i32) {
    %c0_i32 = arith.constant 0 : i32
    %c0_i32_0 = arith.constant 0 : i32
    return %arg0, %c0_i32 : i32, i32
  }
  func.func @transform_1(%arg0: i32, %arg1: i32) -> (i32, i32) {
    %c0_i32 = arith.constant 0 : i32
    %c0_i32_0 = arith.constant 0 : i32
    return %c0_i32, %arg1 : i32, i32
  }
  func.func @transform_2(%arg0: i32, %arg1: i32) -> (i32, i32) {
    %c0_i32 = arith.constant 0 : i32
    %c0_i32_0 = arith.constant 0 : i32
    return %c0_i32, %arg1 : i32, i32
  }
  func.func @transform_3(%arg0: i32, %arg1: i32) -> (i32, i32) {
    %c0_i32 = arith.constant 0 : i32
    return %arg0, %arg1 : i32, i32
  }
}

module attributes {stable_mosaic.version = 11 : i64} {
  func.func @_gemm_kernel(%arg0: i32, %arg1: i32, %arg2: memref<64x576xbf16, #tpu.memory_space<vmem>>, %arg3: memref<576x128xbf16, #tpu.memory_space<vmem>>, %arg4: memref<1x128xf32, #tpu.memory_space<vmem>>, %arg5: memref<64x128xf32, #tpu.memory_space<vmem>>) attributes {dimension_semantics = [#tpu.dimension_semantics<parallel>, #tpu.dimension_semantics<parallel>], iteration_bounds = array<i64: 1, 1>, scalar_prefetch = 0 : i64, scratch_operands = 0 : i64, tpu.core_type = #tpu.core_type<tc>, window_params = [{transform_indices = @transform_0, window_bounds = array<i64: 64, 576>}, {transform_indices = @transform_1, window_bounds = array<i64: 576, 128>}, {transform_indices = @transform_2, window_bounds = array<i64: 1, 128>}, {transform_indices = @transform_3, window_bounds = array<i64: 64, 128>}]} {
    %c0 = arith.constant 0 : index
    %c0_0 = arith.constant 0 : index
    %0 = vector.load %arg2[%c0, %c0_0] : memref<64x576xbf16, #tpu.memory_space<vmem>>, vector<64x576xbf16>
    %c0_1 = arith.constant 0 : index
    %c0_2 = arith.constant 0 : index
    %1 = vector.load %arg3[%c0_1, %c0_2] : memref<576x128xbf16, #tpu.memory_space<vmem>>, vector<576x128xbf16>
    %cst = arith.constant dense<0.000000e+00> : vector<64x128xf32>
    %2 = tpu.matmul %0, %1, %cst {dimension_numbers = #tpu.dot_dimension_numbers<[1], [0], [0], [1], [0, 0, 1, 1], [], []>} : vector<64x576xbf16>, vector<576x128xbf16>, vector<64x128xf32> -> vector<64x128xf32>
    %c0_3 = arith.constant 0 : index
    %c0_4 = arith.constant 0 : index
    %3 = vector.load %arg4[%c0_3, %c0_4] : memref<1x128xf32, #tpu.memory_space<vmem>>, vector<1x128xf32>
    %4 = vector.broadcast %3 : vector<1x128xf32> to vector<64x128xf32>
    %5 = arith.addf %2, %4 : vector<64x128xf32>
    %cst_5 = arith.constant 0.000000e+00 : f32
    %6 = vector.broadcast %cst_5 : f32 to vector<64x128xf32>
    %7 = arith.maximumf %5, %6 : vector<64x128xf32>
    %c0_6 = arith.constant 0 : index
    %c0_7 = arith.constant 0 : index
    %8 = vector.load %arg5[%c0_6, %c0_7] : memref<64x128xf32, #tpu.memory_space<vmem>>, vector<64x128xf32>
    tpu.vector_store %arg5[%c0_6, %c0_7], %7 {strides = array<i32>} : memref<64x128xf32, #tpu.memory_space<vmem>>, vector<64x128xf32>,
    return
  }
  func.func @transform_0(%arg0: i32, %arg1: i32) -> (i32, i32) {
    %c0_i32 = arith.constant 0 : i32
    %c0_i32_0 = arith.constant 0 : i32
    return %arg0, %c0_i32 : i32, i32
  }
  func.func @transform_1(%arg0: i32, %arg1: i32) -> (i32, i32) {
    %c0_i32 = arith.constant 0 : i32
    %c0_i32_0 = arith.constant 0 : i32
    return %c0_i32, %arg1 : i32, i32
  }
  func.func @transform_2(%arg0: i32, %arg1: i32) -> (i32, i32) {
    %c0_i32 = arith.constant 0 : i32
    %c0_i32_0 = arith.constant 0 : i32
    return %c0_i32, %arg1 : i32, i32
  }
  func.func @transform_3(%arg0: i32, %arg1: i32) -> (i32, i32) {
    %c0_i32 = arith.constant 0 : i32
    return %arg0, %arg1 : i32, i32
  }
}

module attributes {stable_mosaic.version = 11 : i64} {
  func.func @_gemm_kernel(%arg0: i32, %arg1: i32, %arg2: memref<64x864xbf16, #tpu.memory_space<vmem>>, %arg3: memref<864x128xbf16, #tpu.memory_space<vmem>>, %arg4: memref<1x128xf32, #tpu.memory_space<vmem>>, %arg5: memref<64x128xf32, #tpu.memory_space<vmem>>) attributes {dimension_semantics = [#tpu.dimension_semantics<parallel>, #tpu.dimension_semantics<parallel>], iteration_bounds = array<i64: 1, 1>, scalar_prefetch = 0 : i64, scratch_operands = 0 : i64, tpu.core_type = #tpu.core_type<tc>, window_params = [{transform_indices = @transform_0, window_bounds = array<i64: 64, 864>}, {transform_indices = @transform_1, window_bounds = array<i64: 864, 128>}, {transform_indices = @transform_2, window_bounds = array<i64: 1, 128>}, {transform_indices = @transform_3, window_bounds = array<i64: 64, 128>}]} {
    %c0 = arith.constant 0 : index
    %c0_0 = arith.constant 0 : index
    %0 = vector.load %arg2[%c0, %c0_0] : memref<64x864xbf16, #tpu.memory_space<vmem>>, vector<64x864xbf16>
    %c0_1 = arith.constant 0 : index
    %c0_2 = arith.constant 0 : index
    %1 = vector.load %arg3[%c0_1, %c0_2] : memref<864x128xbf16, #tpu.memory_space<vmem>>, vector<864x128xbf16>
    %cst = arith.constant dense<0.000000e+00> : vector<64x128xf32>
    %2 = tpu.matmul %0, %1, %cst {dimension_numbers = #tpu.dot_dimension_numbers<[1], [0], [0], [1], [0, 0, 1, 1], [], []>} : vector<64x864xbf16>, vector<864x128xbf16>, vector<64x128xf32> -> vector<64x128xf32>
    %c0_3 = arith.constant 0 : index
    %c0_4 = arith.constant 0 : index
    %3 = vector.load %arg4[%c0_3, %c0_4] : memref<1x128xf32, #tpu.memory_space<vmem>>, vector<1x128xf32>
    %4 = vector.broadcast %3 : vector<1x128xf32> to vector<64x128xf32>
    %5 = arith.addf %2, %4 : vector<64x128xf32>
    %cst_5 = arith.constant 0.000000e+00 : f32
    %6 = vector.broadcast %cst_5 : f32 to vector<64x128xf32>
    %7 = arith.maximumf %5, %6 : vector<64x128xf32>
    %c0_6 = arith.constant 0 : index
    %c0_7 = arith.constant 0 : index
    %8 = vector.load %arg5[%c0_6, %c0_7] : memref<64x128xf32, #tpu.memory_space<vmem>>, vector<64x128xf32>
    tpu.vector_store %arg5[%c0_6, %c0_7], %7 {strides = array<i32>} : memref<64x128xf32, #tpu.memory_space<vmem>>, vector<64x128xf32>,
    return
  }
  func.func @transform_0(%arg0: i32, %arg1: i32) -> (i32, i32) {
    %c0_i32 = arith.constant 0 : i32
    %c0_i32_0 = arith.constant 0 : i32
    return %arg0, %c0_i32 : i32, i32
  }
  func.func @transform_1(%arg0: i32, %arg1: i32) -> (i32, i32) {
    %c0_i32 = arith.constant 0 : i32
    %c0_i32_0 = arith.constant 0 : i32
    return %c0_i32, %arg1 : i32, i32
  }
  func.func @transform_2(%arg0: i32, %arg1: i32) -> (i32, i32) {
    %c0_i32 = arith.constant 0 : i32
    %c0_i32_0 = arith.constant 0 : i32
    return %c0_i32, %arg1 : i32, i32
  }
  func.func @transform_3(%arg0: i32, %arg1: i32) -> (i32, i32) {
    %c0_i32 = arith.constant 0 : i32
    return %arg0, %arg1 : i32, i32
  }
}

module attributes {stable_mosaic.version = 11 : i64} {
  func.func @_gemm_kernel(%arg0: i32, %arg1: i32, %arg2: memref<64x128xbf16, #tpu.memory_space<vmem>>, %arg3: memref<128x128xbf16, #tpu.memory_space<vmem>>, %arg4: memref<1x128xf32, #tpu.memory_space<vmem>>, %arg5: memref<64x128xf32, #tpu.memory_space<vmem>>) attributes {dimension_semantics = [#tpu.dimension_semantics<parallel>, #tpu.dimension_semantics<parallel>], iteration_bounds = array<i64: 1, 1>, scalar_prefetch = 0 : i64, scratch_operands = 0 : i64, tpu.core_type = #tpu.core_type<tc>, window_params = [{transform_indices = @transform_0, window_bounds = array<i64: 64, 128>}, {transform_indices = @transform_1, window_bounds = array<i64: 128, 128>}, {transform_indices = @transform_2, window_bounds = array<i64: 1, 128>}, {transform_indices = @transform_3, window_bounds = array<i64: 64, 128>}]} {
    %c0 = arith.constant 0 : index
    %c0_0 = arith.constant 0 : index
    %0 = vector.load %arg2[%c0, %c0_0] : memref<64x128xbf16, #tpu.memory_space<vmem>>, vector<64x128xbf16>
    %c0_1 = arith.constant 0 : index
    %c0_2 = arith.constant 0 : index
    %1 = vector.load %arg3[%c0_1, %c0_2] : memref<128x128xbf16, #tpu.memory_space<vmem>>, vector<128x128xbf16>
    %cst = arith.constant dense<0.000000e+00> : vector<64x128xf32>
    %2 = tpu.matmul %0, %1, %cst {dimension_numbers = #tpu.dot_dimension_numbers<[1], [0], [0], [1], [0, 0, 1, 1], [], []>} : vector<64x128xbf16>, vector<128x128xbf16>, vector<64x128xf32> -> vector<64x128xf32>
    %c0_3 = arith.constant 0 : index
    %c0_4 = arith.constant 0 : index
    %3 = vector.load %arg4[%c0_3, %c0_4] : memref<1x128xf32, #tpu.memory_space<vmem>>, vector<1x128xf32>
    %4 = vector.broadcast %3 : vector<1x128xf32> to vector<64x128xf32>
    %5 = arith.addf %2, %4 : vector<64x128xf32>
    %c0_5 = arith.constant 0 : index
    %c0_6 = arith.constant 0 : index
    %6 = vector.load %arg5[%c0_5, %c0_6] : memref<64x128xf32, #tpu.memory_space<vmem>>, vector<64x128xf32>
    tpu.vector_store %arg5[%c0_5, %c0_6], %5 {strides = array<i32>} : memref<64x128xf32, #tpu.memory_space<vmem>>, vector<64x128xf32>,
    return
  }
  func.func @transform_0(%arg0: i32, %arg1: i32) -> (i32, i32) {
    %c0_i32 = arith.constant 0 : i32
    %c0_i32_0 = arith.constant 0 : i32
    return %arg0, %c0_i32 : i32, i32
  }
  func.func @transform_1(%arg0: i32, %arg1: i32) -> (i32, i32) {
    %c0_i32 = arith.constant 0 : i32
    %c0_i32_0 = arith.constant 0 : i32
    return %c0_i32, %arg1 : i32, i32
  }
  func.func @transform_2(%arg0: i32, %arg1: i32) -> (i32, i32) {
    %c0_i32 = arith.constant 0 : i32
    %c0_i32_0 = arith.constant 0 : i32
    return %c0_i32, %arg1 : i32, i32
  }
  func.func @transform_3(%arg0: i32, %arg1: i32) -> (i32, i32) {
    %c0_i32 = arith.constant 0 : i32
    return %arg0, %arg1 : i32, i32
  }
}

module attributes {stable_mosaic.version = 11 : i64} {
  func.func @_gemm_kernel(%arg0: i32, %arg1: i32, %arg2: memref<16x800xbf16, #tpu.memory_space<vmem>>, %arg3: memref<800x128xbf16, #tpu.memory_space<vmem>>, %arg4: memref<1x128xf32, #tpu.memory_space<vmem>>, %arg5: memref<16x128xf32, #tpu.memory_space<vmem>>) attributes {dimension_semantics = [#tpu.dimension_semantics<parallel>, #tpu.dimension_semantics<parallel>], iteration_bounds = array<i64: 1, 1>, scalar_prefetch = 0 : i64, scratch_operands = 0 : i64, tpu.core_type = #tpu.core_type<tc>, window_params = [{transform_indices = @transform_0, window_bounds = array<i64: 16, 800>}, {transform_indices = @transform_1, window_bounds = array<i64: 800, 128>}, {transform_indices = @transform_2, window_bounds = array<i64: 1, 128>}, {transform_indices = @transform_3, window_bounds = array<i64: 16, 128>}]} {
    %c0 = arith.constant 0 : index
    %c0_0 = arith.constant 0 : index
    %0 = vector.load %arg2[%c0, %c0_0] : memref<16x800xbf16, #tpu.memory_space<vmem>>, vector<16x800xbf16>
    %c0_1 = arith.constant 0 : index
    %c0_2 = arith.constant 0 : index
    %1 = vector.load %arg3[%c0_1, %c0_2] : memref<800x128xbf16, #tpu.memory_space<vmem>>, vector<800x128xbf16>
    %cst = arith.constant dense<0.000000e+00> : vector<16x128xf32>
    %2 = tpu.matmul %0, %1, %cst {dimension_numbers = #tpu.dot_dimension_numbers<[1], [0], [0], [1], [0, 0, 1, 1], [], []>} : vector<16x800xbf16>, vector<800x128xbf16>, vector<16x128xf32> -> vector<16x128xf32>
    %c0_3 = arith.constant 0 : index
    %c0_4 = arith.constant 0 : index
    %3 = vector.load %arg4[%c0_3, %c0_4] : memref<1x128xf32, #tpu.memory_space<vmem>>, vector<1x128xf32>
    %4 = vector.broadcast %3 : vector<1x128xf32> to vector<16x128xf32>
    %5 = arith.addf %2, %4 : vector<16x128xf32>
    %c0_5 = arith.constant 0 : index
    %c0_6 = arith.constant 0 : index
    %6 = vector.load %arg5[%c0_5, %c0_6] : memref<16x128xf32, #tpu.memory_space<vmem>>, vector<16x128xf32>
    tpu.vector_store %arg5[%c0_5, %c0_6], %5 {strides = array<i32>} : memref<16x128xf32, #tpu.memory_space<vmem>>, vector<16x128xf32>,
    return
  }
  func.func @transform_0(%arg0: i32, %arg1: i32) -> (i32, i32) {
    %c0_i32 = arith.constant 0 : i32
    %c0_i32_0 = arith.constant 0 : i32
    return %arg0, %c0_i32 : i32, i32
  }
  func.func @transform_1(%arg0: i32, %arg1: i32) -> (i32, i32) {
    %c0_i32 = arith.constant 0 : i32
    %c0_i32_0 = arith.constant 0 : i32
    return %c0_i32, %arg1 : i32, i32
  }
  func.func @transform_2(%arg0: i32, %arg1: i32) -> (i32, i32) {
    %c0_i32 = arith.constant 0 : i32
    %c0_i32_0 = arith.constant 0 : i32
    return %c0_i32, %arg1 : i32, i32
  }
  func.func @transform_3(%arg0: i32, %arg1: i32) -> (i32, i32) {
    %c0_i32 = arith.constant 0 : i32
    return %arg0, %arg1 : i32, i32
  }
}

module attributes {stable_mosaic.version = 11 : i64} {
  func.func @_gemm_kernel(%arg0: i32, %arg1: i32, %arg2: memref<16x720xbf16, #tpu.memory_space<vmem>>, %arg3: memref<720x128xbf16, #tpu.memory_space<vmem>>, %arg4: memref<1x128xf32, #tpu.memory_space<vmem>>, %arg5: memref<16x128xf32, #tpu.memory_space<vmem>>) attributes {dimension_semantics = [#tpu.dimension_semantics<parallel>, #tpu.dimension_semantics<parallel>], iteration_bounds = array<i64: 1, 1>, scalar_prefetch = 0 : i64, scratch_operands = 0 : i64, tpu.core_type = #tpu.core_type<tc>, window_params = [{transform_indices = @transform_0, window_bounds = array<i64: 16, 720>}, {transform_indices = @transform_1, window_bounds = array<i64: 720, 128>}, {transform_indices = @transform_2, window_bounds = array<i64: 1, 128>}, {transform_indices = @transform_3, window_bounds = array<i64: 16, 128>}]} {
    %c0 = arith.constant 0 : index
    %c0_0 = arith.constant 0 : index
    %0 = vector.load %arg2[%c0, %c0_0] : memref<16x720xbf16, #tpu.memory_space<vmem>>, vector<16x720xbf16>
    %c0_1 = arith.constant 0 : index
    %c0_2 = arith.constant 0 : index
    %1 = vector.load %arg3[%c0_1, %c0_2] : memref<720x128xbf16, #tpu.memory_space<vmem>>, vector<720x128xbf16>
    %cst = arith.constant dense<0.000000e+00> : vector<16x128xf32>
    %2 = tpu.matmul %0, %1, %cst {dimension_numbers = #tpu.dot_dimension_numbers<[1], [0], [0], [1], [0, 0, 1, 1], [], []>} : vector<16x720xbf16>, vector<720x128xbf16>, vector<16x128xf32> -> vector<16x128xf32>
    %c0_3 = arith.constant 0 : index
    %c0_4 = arith.constant 0 : index
    %3 = vector.load %arg4[%c0_3, %c0_4] : memref<1x128xf32, #tpu.memory_space<vmem>>, vector<1x128xf32>
    %4 = vector.broadcast %3 : vector<1x128xf32> to vector<16x128xf32>
    %5 = arith.addf %2, %4 : vector<16x128xf32>
    %cst_5 = arith.constant 0.000000e+00 : f32
    %6 = vector.broadcast %cst_5 : f32 to vector<16x128xf32>
    %7 = arith.maximumf %5, %6 : vector<16x128xf32>
    %c0_6 = arith.constant 0 : index
    %c0_7 = arith.constant 0 : index
    %8 = vector.load %arg5[%c0_6, %c0_7] : memref<16x128xf32, #tpu.memory_space<vmem>>, vector<16x128xf32>
    tpu.vector_store %arg5[%c0_6, %c0_7], %7 {strides = array<i32>} : memref<16x128xf32, #tpu.memory_space<vmem>>, vector<16x128xf32>,
    return
  }
  func.func @transform_0(%arg0: i32, %arg1: i32) -> (i32, i32) {
    %c0_i32 = arith.constant 0 : i32
    %c0_i32_0 = arith.constant 0 : i32
    return %arg0, %c0_i32 : i32, i32
  }
  func.func @transform_1(%arg0: i32, %arg1: i32) -> (i32, i32) {
    %c0_i32 = arith.constant 0 : i32
    %c0_i32_0 = arith.constant 0 : i32
    return %c0_i32, %arg1 : i32, i32
  }
  func.func @transform_2(%arg0: i32, %arg1: i32) -> (i32, i32) {
    %c0_i32 = arith.constant 0 : i32
    %c0_i32_0 = arith.constant 0 : i32
    return %c0_i32, %arg1 : i32, i32
  }
  func.func @transform_3(%arg0: i32, %arg1: i32) -> (i32, i32) {
    %c0_i32 = arith.constant 0 : i32
    return %arg0, %arg1 : i32, i32
  }
}

module attributes {stable_mosaic.version = 11 : i64} {
  func.func @_gemm_kernel(%arg0: i32, %arg1: i32, %arg2: memref<16x1008xbf16, #tpu.memory_space<vmem>>, %arg3: memref<1008x128xbf16, #tpu.memory_space<vmem>>, %arg4: memref<1x128xf32, #tpu.memory_space<vmem>>, %arg5: memref<16x128xf32, #tpu.memory_space<vmem>>) attributes {dimension_semantics = [#tpu.dimension_semantics<parallel>, #tpu.dimension_semantics<parallel>], iteration_bounds = array<i64: 1, 1>, scalar_prefetch = 0 : i64, scratch_operands = 0 : i64, tpu.core_type = #tpu.core_type<tc>, window_params = [{transform_indices = @transform_0, window_bounds = array<i64: 16, 1008>}, {transform_indices = @transform_1, window_bounds = array<i64: 1008, 128>}, {transform_indices = @transform_2, window_bounds = array<i64: 1, 128>}, {transform_indices = @transform_3, window_bounds = array<i64: 16, 128>}]} {
    %c0 = arith.constant 0 : index
    %c0_0 = arith.constant 0 : index
    %0 = vector.load %arg2[%c0, %c0_0] : memref<16x1008xbf16, #tpu.memory_space<vmem>>, vector<16x1008xbf16>
    %c0_1 = arith.constant 0 : index
    %c0_2 = arith.constant 0 : index
    %1 = vector.load %arg3[%c0_1, %c0_2] : memref<1008x128xbf16, #tpu.memory_space<vmem>>, vector<1008x128xbf16>
    %cst = arith.constant dense<0.000000e+00> : vector<16x128xf32>
    %2 = tpu.matmul %0, %1, %cst {dimension_numbers = #tpu.dot_dimension_numbers<[1], [0], [0], [1], [0, 0, 1, 1], [], []>} : vector<16x1008xbf16>, vector<1008x128xbf16>, vector<16x128xf32> -> vector<16x128xf32>
    %c0_3 = arith.constant 0 : index
    %c0_4 = arith.constant 0 : index
    %3 = vector.load %arg4[%c0_3, %c0_4] : memref<1x128xf32, #tpu.memory_space<vmem>>, vector<1x128xf32>
    %4 = vector.broadcast %3 : vector<1x128xf32> to vector<16x128xf32>
    %5 = arith.addf %2, %4 : vector<16x128xf32>
    %cst_5 = arith.constant 0.000000e+00 : f32
    %6 = vector.broadcast %cst_5 : f32 to vector<16x128xf32>
    %7 = arith.maximumf %5, %6 : vector<16x128xf32>
    %c0_6 = arith.constant 0 : index
    %c0_7 = arith.constant 0 : index
    %8 = vector.load %arg5[%c0_6, %c0_7] : memref<16x128xf32, #tpu.memory_space<vmem>>, vector<16x128xf32>
    tpu.vector_store %arg5[%c0_6, %c0_7], %7 {strides = array<i32>} : memref<16x128xf32, #tpu.memory_space<vmem>>, vector<16x128xf32>,
    return
  }
  func.func @transform_0(%arg0: i32, %arg1: i32) -> (i32, i32) {
    %c0_i32 = arith.constant 0 : i32
    %c0_i32_0 = arith.constant 0 : i32
    return %arg0, %c0_i32 : i32, i32
  }
  func.func @transform_1(%arg0: i32, %arg1: i32) -> (i32, i32) {
    %c0_i32 = arith.constant 0 : i32
    %c0_i32_0 = arith.constant 0 : i32
    return %c0_i32, %arg1 : i32, i32
  }
  func.func @transform_2(%arg0: i32, %arg1: i32) -> (i32, i32) {
    %c0_i32 = arith.constant 0 : i32
    %c0_i32_0 = arith.constant 0 : i32
    return %c0_i32, %arg1 : i32, i32
  }
  func.func @transform_3(%arg0: i32, %arg1: i32) -> (i32, i32) {
    %c0_i32 = arith.constant 0 : i32
    return %arg0, %arg1 : i32, i32
  }
}

module attributes {stable_mosaic.version = 11 : i64} {
  func.func @_gemm_kernel(%arg0: i32, %arg1: i32, %arg2: memref<16x1296xbf16, #tpu.memory_space<vmem>>, %arg3: memref<1296x128xbf16, #tpu.memory_space<vmem>>, %arg4: memref<1x128xf32, #tpu.memory_space<vmem>>, %arg5: memref<16x128xf32, #tpu.memory_space<vmem>>) attributes {dimension_semantics = [#tpu.dimension_semantics<parallel>, #tpu.dimension_semantics<parallel>], iteration_bounds = array<i64: 1, 1>, scalar_prefetch = 0 : i64, scratch_operands = 0 : i64, tpu.core_type = #tpu.core_type<tc>, window_params = [{transform_indices = @transform_0, window_bounds = array<i64: 16, 1296>}, {transform_indices = @transform_1, window_bounds = array<i64: 1296, 128>}, {transform_indices = @transform_2, window_bounds = array<i64: 1, 128>}, {transform_indices = @transform_3, window_bounds = array<i64: 16, 128>}]} {
    %c0 = arith.constant 0 : index
    %c0_0 = arith.constant 0 : index
    %0 = vector.load %arg2[%c0, %c0_0] : memref<16x1296xbf16, #tpu.memory_space<vmem>>, vector<16x1296xbf16>
    %c0_1 = arith.constant 0 : index
    %c0_2 = arith.constant 0 : index
    %1 = vector.load %arg3[%c0_1, %c0_2] : memref<1296x128xbf16, #tpu.memory_space<vmem>>, vector<1296x128xbf16>
    %cst = arith.constant dense<0.000000e+00> : vector<16x128xf32>
    %2 = tpu.matmul %0, %1, %cst {dimension_numbers = #tpu.dot_dimension_numbers<[1], [0], [0], [1], [0, 0, 1, 1], [], []>} : vector<16x1296xbf16>, vector<1296x128xbf16>, vector<16x128xf32> -> vector<16x128xf32>
    %c0_3 = arith.constant 0 : index
    %c0_4 = arith.constant 0 : index
    %3 = vector.load %arg4[%c0_3, %c0_4] : memref<1x128xf32, #tpu.memory_space<vmem>>, vector<1x128xf32>
    %4 = vector.broadcast %3 : vector<1x128xf32> to vector<16x128xf32>
    %5 = arith.addf %2, %4 : vector<16x128xf32>
    %cst_5 = arith.constant 0.000000e+00 : f32
    %6 = vector.broadcast %cst_5 : f32 to vector<16x128xf32>
    %7 = arith.maximumf %5, %6 : vector<16x128xf32>
    %c0_6 = arith.constant 0 : index
    %c0_7 = arith.constant 0 : index
    %8 = vector.load %arg5[%c0_6, %c0_7] : memref<16x128xf32, #tpu.memory_space<vmem>>, vector<16x128xf32>
    tpu.vector_store %arg5[%c0_6, %c0_7], %7 {strides = array<i32>} : memref<16x128xf32, #tpu.memory_space<vmem>>, vector<16x128xf32>,
    return
  }
  func.func @transform_0(%arg0: i32, %arg1: i32) -> (i32, i32) {
    %c0_i32 = arith.constant 0 : i32
    %c0_i32_0 = arith.constant 0 : i32
    return %arg0, %c0_i32 : i32, i32
  }
  func.func @transform_1(%arg0: i32, %arg1: i32) -> (i32, i32) {
    %c0_i32 = arith.constant 0 : i32
    %c0_i32_0 = arith.constant 0 : i32
    return %c0_i32, %arg1 : i32, i32
  }
  func.func @transform_2(%arg0: i32, %arg1: i32) -> (i32, i32) {
    %c0_i32 = arith.constant 0 : i32
    %c0_i32_0 = arith.constant 0 : i32
    return %c0_i32, %arg1 : i32, i32
  }
  func.func @transform_3(%arg0: i32, %arg1: i32) -> (i32, i32) {
    %c0_i32 = arith.constant 0 : i32
    return %arg0, %arg1 : i32, i32
  }
}

module attributes {stable_mosaic.version = 11 : i64} {
  func.func @_gemm_kernel(%arg0: i32, %arg1: i32, %arg2: memref<16x176xbf16, #tpu.memory_space<vmem>>, %arg3: memref<176x128xbf16, #tpu.memory_space<vmem>>, %arg4: memref<1x128xf32, #tpu.memory_space<vmem>>, %arg5: memref<16x128xf32, #tpu.memory_space<vmem>>) attributes {dimension_semantics = [#tpu.dimension_semantics<parallel>, #tpu.dimension_semantics<parallel>], iteration_bounds = array<i64: 1, 1>, scalar_prefetch = 0 : i64, scratch_operands = 0 : i64, tpu.core_type = #tpu.core_type<tc>, window_params = [{transform_indices = @transform_0, window_bounds = array<i64: 16, 176>}, {transform_indices = @transform_1, window_bounds = array<i64: 176, 128>}, {transform_indices = @transform_2, window_bounds = array<i64: 1, 128>}, {transform_indices = @transform_3, window_bounds = array<i64: 16, 128>}]} {
    %c0 = arith.constant 0 : index
    %c0_0 = arith.constant 0 : index
    %0 = vector.load %arg2[%c0, %c0_0] : memref<16x176xbf16, #tpu.memory_space<vmem>>, vector<16x176xbf16>
    %c0_1 = arith.constant 0 : index
    %c0_2 = arith.constant 0 : index
    %1 = vector.load %arg3[%c0_1, %c0_2] : memref<176x128xbf16, #tpu.memory_space<vmem>>, vector<176x128xbf16>
    %cst = arith.constant dense<0.000000e+00> : vector<16x128xf32>
    %2 = tpu.matmul %0, %1, %cst {dimension_numbers = #tpu.dot_dimension_numbers<[1], [0], [0], [1], [0, 0, 1, 1], [], []>} : vector<16x176xbf16>, vector<176x128xbf16>, vector<16x128xf32> -> vector<16x128xf32>
    %c0_3 = arith.constant 0 : index
    %c0_4 = arith.constant 0 : index
    %3 = vector.load %arg4[%c0_3, %c0_4] : memref<1x128xf32, #tpu.memory_space<vmem>>, vector<1x128xf32>
    %4 = vector.broadcast %3 : vector<1x128xf32> to vector<16x128xf32>
    %5 = arith.addf %2, %4 : vector<16x128xf32>
    %c0_5 = arith.constant 0 : index
    %c0_6 = arith.constant 0 : index
    %6 = vector.load %arg5[%c0_5, %c0_6] : memref<16x128xf32, #tpu.memory_space<vmem>>, vector<16x128xf32>
    tpu.vector_store %arg5[%c0_5, %c0_6], %5 {strides = array<i32>} : memref<16x128xf32, #tpu.memory_space<vmem>>, vector<16x128xf32>,
    return
  }
  func.func @transform_0(%arg0: i32, %arg1: i32) -> (i32, i32) {
    %c0_i32 = arith.constant 0 : i32
    %c0_i32_0 = arith.constant 0 : i32
    return %arg0, %c0_i32 : i32, i32
  }
  func.func @transform_1(%arg0: i32, %arg1: i32) -> (i32, i32) {
    %c0_i32 = arith.constant 0 : i32
    %c0_i32_0 = arith.constant 0 : i32
    return %c0_i32, %arg1 : i32, i32
  }
  func.func @transform_2(%arg0: i32, %arg1: i32) -> (i32, i32) {
    %c0_i32 = arith.constant 0 : i32
    %c0_i32_0 = arith.constant 0 : i32
    return %c0_i32, %arg1 : i32, i32
  }
  func.func @transform_3(%arg0: i32, %arg1: i32) -> (i32, i32) {
    %c0_i32 = arith.constant 0 : i32
    return %arg0, %arg1 : i32, i32
  }
}

module attributes {stable_mosaic.version = 11 : i64} {
  func.func @_gemm_kernel(%arg0: i32, %arg1: i32, %arg2: memref<16x720xbf16, #tpu.memory_space<vmem>>, %arg3: memref<720x128xbf16, #tpu.memory_space<vmem>>, %arg4: memref<1x128xf32, #tpu.memory_space<vmem>>, %arg5: memref<16x128xf32, #tpu.memory_space<vmem>>) attributes {dimension_semantics = [#tpu.dimension_semantics<parallel>, #tpu.dimension_semantics<parallel>], iteration_bounds = array<i64: 1, 1>, scalar_prefetch = 0 : i64, scratch_operands = 0 : i64, tpu.core_type = #tpu.core_type<tc>, window_params = [{transform_indices = @transform_0, window_bounds = array<i64: 16, 720>}, {transform_indices = @transform_1, window_bounds = array<i64: 720, 128>}, {transform_indices = @transform_2, window_bounds = array<i64: 1, 128>}, {transform_indices = @transform_3, window_bounds = array<i64: 16, 128>}]} {
    %c0 = arith.constant 0 : index
    %c0_0 = arith.constant 0 : index
    %0 = vector.load %arg2[%c0, %c0_0] : memref<16x720xbf16, #tpu.memory_space<vmem>>, vector<16x720xbf16>
    %c0_1 = arith.constant 0 : index
    %c0_2 = arith.constant 0 : index
    %1 = vector.load %arg3[%c0_1, %c0_2] : memref<720x128xbf16, #tpu.memory_space<vmem>>, vector<720x128xbf16>
    %cst = arith.constant dense<0.000000e+00> : vector<16x128xf32>
    %2 = tpu.matmul %0, %1, %cst {dimension_numbers = #tpu.dot_dimension_numbers<[1], [0], [0], [1], [0, 0, 1, 1], [], []>} : vector<16x720xbf16>, vector<720x128xbf16>, vector<16x128xf32> -> vector<16x128xf32>
    %c0_3 = arith.constant 0 : index
    %c0_4 = arith.constant 0 : index
    %3 = vector.load %arg4[%c0_3, %c0_4] : memref<1x128xf32, #tpu.memory_space<vmem>>, vector<1x128xf32>
    %4 = vector.broadcast %3 : vector<1x128xf32> to vector<16x128xf32>
    %5 = arith.addf %2, %4 : vector<16x128xf32>
    %c0_5 = arith.constant 0 : index
    %c0_6 = arith.constant 0 : index
    %6 = vector.load %arg5[%c0_5, %c0_6] : memref<16x128xf32, #tpu.memory_space<vmem>>, vector<16x128xf32>
    tpu.vector_store %arg5[%c0_5, %c0_6], %5 {strides = array<i32>} : memref<16x128xf32, #tpu.memory_space<vmem>>, vector<16x128xf32>,
    return
  }
  func.func @transform_0(%arg0: i32, %arg1: i32) -> (i32, i32) {
    %c0_i32 = arith.constant 0 : i32
    %c0_i32_0 = arith.constant 0 : i32
    return %arg0, %c0_i32 : i32, i32
  }
  func.func @transform_1(%arg0: i32, %arg1: i32) -> (i32, i32) {
    %c0_i32 = arith.constant 0 : i32
    %c0_i32_0 = arith.constant 0 : i32
    return %c0_i32, %arg1 : i32, i32
  }
  func.func @transform_2(%arg0: i32, %arg1: i32) -> (i32, i32) {
    %c0_i32 = arith.constant 0 : i32
    %c0_i32_0 = arith.constant 0 : i32
    return %c0_i32, %arg1 : i32, i32
  }
  func.func @transform_3(%arg0: i32, %arg1: i32) -> (i32, i32) {
    %c0_i32 = arith.constant 0 : i32
    return %arg0, %arg1 : i32, i32
  }
}

module attributes {stable_mosaic.version = 11 : i64} {
  func.func @_gemm_kernel(%arg0: i32, %arg1: i32, %arg2: memref<16x160xbf16, #tpu.memory_space<vmem>>, %arg3: memref<160x128xbf16, #tpu.memory_space<vmem>>, %arg4: memref<1x128xf32, #tpu.memory_space<vmem>>, %arg5: memref<16x128xf32, #tpu.memory_space<vmem>>) attributes {dimension_semantics = [#tpu.dimension_semantics<parallel>, #tpu.dimension_semantics<parallel>], iteration_bounds = array<i64: 1, 1>, scalar_prefetch = 0 : i64, scratch_operands = 0 : i64, tpu.core_type = #tpu.core_type<tc>, window_params = [{transform_indices = @transform_0, window_bounds = array<i64: 16, 160>}, {transform_indices = @transform_1, window_bounds = array<i64: 160, 128>}, {transform_indices = @transform_2, window_bounds = array<i64: 1, 128>}, {transform_indices = @transform_3, window_bounds = array<i64: 16, 128>}]} {
    %c0 = arith.constant 0 : index
    %c0_0 = arith.constant 0 : index
    %0 = vector.load %arg2[%c0, %c0_0] : memref<16x160xbf16, #tpu.memory_space<vmem>>, vector<16x160xbf16>
    %c0_1 = arith.constant 0 : index
    %c0_2 = arith.constant 0 : index
    %1 = vector.load %arg3[%c0_1, %c0_2] : memref<160x128xbf16, #tpu.memory_space<vmem>>, vector<160x128xbf16>
    %cst = arith.constant dense<0.000000e+00> : vector<16x128xf32>
    %2 = tpu.matmul %0, %1, %cst {dimension_numbers = #tpu.dot_dimension_numbers<[1], [0], [0], [1], [0, 0, 1, 1], [], []>} : vector<16x160xbf16>, vector<160x128xbf16>, vector<16x128xf32> -> vector<16x128xf32>
    %c0_3 = arith.constant 0 : index
    %c0_4 = arith.constant 0 : index
    %3 = vector.load %arg4[%c0_3, %c0_4] : memref<1x128xf32, #tpu.memory_space<vmem>>, vector<1x128xf32>
    %4 = vector.broadcast %3 : vector<1x128xf32> to vector<16x128xf32>
    %5 = arith.addf %2, %4 : vector<16x128xf32>
    %c0_5 = arith.constant 0 : index
    %c0_6 = arith.constant 0 : index
    %6 = vector.load %arg5[%c0_5, %c0_6] : memref<16x128xf32, #tpu.memory_space<vmem>>, vector<16x128xf32>
    tpu.vector_store %arg5[%c0_5, %c0_6], %5 {strides = array<i32>} : memref<16x128xf32, #tpu.memory_space<vmem>>, vector<16x128xf32>,
    return
  }
  func.func @transform_0(%arg0: i32, %arg1: i32) -> (i32, i32) {
    %c0_i32 = arith.constant 0 : i32
    %c0_i32_0 = arith.constant 0 : i32
    return %arg0, %c0_i32 : i32, i32
  }
  func.func @transform_1(%arg0: i32, %arg1: i32) -> (i32, i32) {
    %c0_i32 = arith.constant 0 : i32
    %c0_i32_0 = arith.constant 0 : i32
    return %c0_i32, %arg1 : i32, i32
  }
  func.func @transform_2(%arg0: i32, %arg1: i32) -> (i32, i32) {
    %c0_i32 = arith.constant 0 : i32
    %c0_i32_0 = arith.constant 0 : i32
    return %c0_i32, %arg1 : i32, i32
  }
  func.func @transform_3(%arg0: i32, %arg1: i32) -> (i32, i32) {
    %c0_i32 = arith.constant 0 : i32
    return %arg0, %arg1 : i32, i32
  }
}

module attributes {stable_mosaic.version = 11 : i64} {
  func.func @_gemm_kernel(%arg0: i32, %arg1: i32, %arg2: memref<16x720xbf16, #tpu.memory_space<vmem>>, %arg3: memref<720x128xbf16, #tpu.memory_space<vmem>>, %arg4: memref<1x128xf32, #tpu.memory_space<vmem>>, %arg5: memref<16x128xf32, #tpu.memory_space<vmem>>) attributes {dimension_semantics = [#tpu.dimension_semantics<parallel>, #tpu.dimension_semantics<parallel>], iteration_bounds = array<i64: 1, 1>, scalar_prefetch = 0 : i64, scratch_operands = 0 : i64, tpu.core_type = #tpu.core_type<tc>, window_params = [{transform_indices = @transform_0, window_bounds = array<i64: 16, 720>}, {transform_indices = @transform_1, window_bounds = array<i64: 720, 128>}, {transform_indices = @transform_2, window_bounds = array<i64: 1, 128>}, {transform_indices = @transform_3, window_bounds = array<i64: 16, 128>}]} {
    %c0 = arith.constant 0 : index
    %c0_0 = arith.constant 0 : index
    %0 = vector.load %arg2[%c0, %c0_0] : memref<16x720xbf16, #tpu.memory_space<vmem>>, vector<16x720xbf16>
    %c0_1 = arith.constant 0 : index
    %c0_2 = arith.constant 0 : index
    %1 = vector.load %arg3[%c0_1, %c0_2] : memref<720x128xbf16, #tpu.memory_space<vmem>>, vector<720x128xbf16>
    %cst = arith.constant dense<0.000000e+00> : vector<16x128xf32>
    %2 = tpu.matmul %0, %1, %cst {dimension_numbers = #tpu.dot_dimension_numbers<[1], [0], [0], [1], [0, 0, 1, 1], [], []>} : vector<16x720xbf16>, vector<720x128xbf16>, vector<16x128xf32> -> vector<16x128xf32>
    %c0_3 = arith.constant 0 : index
    %c0_4 = arith.constant 0 : index
    %3 = vector.load %arg4[%c0_3, %c0_4] : memref<1x128xf32, #tpu.memory_space<vmem>>, vector<1x128xf32>
    %4 = vector.broadcast %3 : vector<1x128xf32> to vector<16x128xf32>
    %5 = arith.addf %2, %4 : vector<16x128xf32>
    %c0_5 = arith.constant 0 : index
    %c0_6 = arith.constant 0 : index
    %6 = vector.load %arg5[%c0_5, %c0_6] : memref<16x128xf32, #tpu.memory_space<vmem>>, vector<16x128xf32>
    tpu.vector_store %arg5[%c0_5, %c0_6], %5 {strides = array<i32>} : memref<16x128xf32, #tpu.memory_space<vmem>>, vector<16x128xf32>,
    return
  }
  func.func @transform_0(%arg0: i32, %arg1: i32) -> (i32, i32) {
    %c0_i32 = arith.constant 0 : i32
    %c0_i32_0 = arith.constant 0 : i32
    return %arg0, %c0_i32 : i32, i32
  }
  func.func @transform_1(%arg0: i32, %arg1: i32) -> (i32, i32) {
    %c0_i32 = arith.constant 0 : i32
    %c0_i32_0 = arith.constant 0 : i32
    return %c0_i32, %arg1 : i32, i32
  }
  func.func @transform_2(%arg0: i32, %arg1: i32) -> (i32, i32) {
    %c0_i32 = arith.constant 0 : i32
    %c0_i32_0 = arith.constant 0 : i32
    return %c0_i32, %arg1 : i32, i32
  }
  func.func @transform_3(%arg0: i32, %arg1: i32) -> (i32, i32) {
    %c0_i32 = arith.constant 0 : i32
    return %arg0, %arg1 : i32, i32
  }
}

module attributes {stable_mosaic.version = 11 : i64} {
  func.func @_gemm_kernel(%arg0: i32, %arg1: i32, %arg2: memref<16x144xbf16, #tpu.memory_space<vmem>>, %arg3: memref<144x128xbf16, #tpu.memory_space<vmem>>, %arg4: memref<1x128xf32, #tpu.memory_space<vmem>>, %arg5: memref<16x128xf32, #tpu.memory_space<vmem>>) attributes {dimension_semantics = [#tpu.dimension_semantics<parallel>, #tpu.dimension_semantics<parallel>], iteration_bounds = array<i64: 1, 1>, scalar_prefetch = 0 : i64, scratch_operands = 0 : i64, tpu.core_type = #tpu.core_type<tc>, window_params = [{transform_indices = @transform_0, window_bounds = array<i64: 16, 144>}, {transform_indices = @transform_1, window_bounds = array<i64: 144, 128>}, {transform_indices = @transform_2, window_bounds = array<i64: 1, 128>}, {transform_indices = @transform_3, window_bounds = array<i64: 16, 128>}]} {
    %c0 = arith.constant 0 : index
    %c0_0 = arith.constant 0 : index
    %0 = vector.load %arg2[%c0, %c0_0] : memref<16x144xbf16, #tpu.memory_space<vmem>>, vector<16x144xbf16>
    %c0_1 = arith.constant 0 : index
    %c0_2 = arith.constant 0 : index
    %1 = vector.load %arg3[%c0_1, %c0_2] : memref<144x128xbf16, #tpu.memory_space<vmem>>, vector<144x128xbf16>
    %cst = arith.constant dense<0.000000e+00> : vector<16x128xf32>
    %2 = tpu.matmul %0, %1, %cst {dimension_numbers = #tpu.dot_dimension_numbers<[1], [0], [0], [1], [0, 0, 1, 1], [], []>} : vector<16x144xbf16>, vector<144x128xbf16>, vector<16x128xf32> -> vector<16x128xf32>
    %c0_3 = arith.constant 0 : index
    %c0_4 = arith.constant 0 : index
    %3 = vector.load %arg4[%c0_3, %c0_4] : memref<1x128xf32, #tpu.memory_space<vmem>>, vector<1x128xf32>
    %4 = vector.broadcast %3 : vector<1x128xf32> to vector<16x128xf32>
    %5 = arith.addf %2, %4 : vector<16x128xf32>
    %cst_5 = arith.constant 0.000000e+00 : f32
    %6 = vector.broadcast %cst_5 : f32 to vector<16x128xf32>
    %7 = arith.maximumf %5, %6 : vector<16x128xf32>
    %c0_6 = arith.constant 0 : index
    %c0_7 = arith.constant 0 : index
    %8 = vector.load %arg5[%c0_6, %c0_7] : memref<16x128xf32, #tpu.memory_space<vmem>>, vector<16x128xf32>
    tpu.vector_store %arg5[%c0_6, %c0_7], %7 {strides = array<i32>} : memref<16x128xf32, #tpu.memory_space<vmem>>, vector<16x128xf32>,
    return
  }
  func.func @transform_0(%arg0: i32, %arg1: i32) -> (i32, i32) {
    %c0_i32 = arith.constant 0 : i32
    %c0_i32_0 = arith.constant 0 : i32
    return %arg0, %c0_i32 : i32, i32
  }
  func.func @transform_1(%arg0: i32, %arg1: i32) -> (i32, i32) {
    %c0_i32 = arith.constant 0 : i32
    %c0_i32_0 = arith.constant 0 : i32
    return %c0_i32, %arg1 : i32, i32
  }
  func.func @transform_2(%arg0: i32, %arg1: i32) -> (i32, i32) {
    %c0_i32 = arith.constant 0 : i32
    %c0_i32_0 = arith.constant 0 : i32
    return %c0_i32, %arg1 : i32, i32
  }
  func.func @transform_3(%arg0: i32, %arg1: i32) -> (i32, i32) {
    %c0_i32 = arith.constant 0 : i32
    return %arg0, %arg1 : i32, i32
  }
}

module attributes {stable_mosaic.version = 11 : i64} {
  func.func @_gemm_kernel(%arg0: i32, %arg1: i32, %arg2: memref<16x288xbf16, #tpu.memory_space<vmem>>, %arg3: memref<288x128xbf16, #tpu.memory_space<vmem>>, %arg4: memref<1x128xf32, #tpu.memory_space<vmem>>, %arg5: memref<16x128xf32, #tpu.memory_space<vmem>>) attributes {dimension_semantics = [#tpu.dimension_semantics<parallel>, #tpu.dimension_semantics<parallel>], iteration_bounds = array<i64: 1, 1>, scalar_prefetch = 0 : i64, scratch_operands = 0 : i64, tpu.core_type = #tpu.core_type<tc>, window_params = [{transform_indices = @transform_0, window_bounds = array<i64: 16, 288>}, {transform_indices = @transform_1, window_bounds = array<i64: 288, 128>}, {transform_indices = @transform_2, window_bounds = array<i64: 1, 128>}, {transform_indices = @transform_3, window_bounds = array<i64: 16, 128>}]} {
    %c0 = arith.constant 0 : index
    %c0_0 = arith.constant 0 : index
    %0 = vector.load %arg2[%c0, %c0_0] : memref<16x288xbf16, #tpu.memory_space<vmem>>, vector<16x288xbf16>
    %c0_1 = arith.constant 0 : index
    %c0_2 = arith.constant 0 : index
    %1 = vector.load %arg3[%c0_1, %c0_2] : memref<288x128xbf16, #tpu.memory_space<vmem>>, vector<288x128xbf16>
    %cst = arith.constant dense<0.000000e+00> : vector<16x128xf32>
    %2 = tpu.matmul %0, %1, %cst {dimension_numbers = #tpu.dot_dimension_numbers<[1], [0], [0], [1], [0, 0, 1, 1], [], []>} : vector<16x288xbf16>, vector<288x128xbf16>, vector<16x128xf32> -> vector<16x128xf32>
    %c0_3 = arith.constant 0 : index
    %c0_4 = arith.constant 0 : index
    %3 = vector.load %arg4[%c0_3, %c0_4] : memref<1x128xf32, #tpu.memory_space<vmem>>, vector<1x128xf32>
    %4 = vector.broadcast %3 : vector<1x128xf32> to vector<16x128xf32>
    %5 = arith.addf %2, %4 : vector<16x128xf32>
    %cst_5 = arith.constant 0.000000e+00 : f32
    %6 = vector.broadcast %cst_5 : f32 to vector<16x128xf32>
    %7 = arith.maximumf %5, %6 : vector<16x128xf32>
    %c0_6 = arith.constant 0 : index
    %c0_7 = arith.constant 0 : index
    %8 = vector.load %arg5[%c0_6, %c0_7] : memref<16x128xf32, #tpu.memory_space<vmem>>, vector<16x128xf32>
    tpu.vector_store %arg5[%c0_6, %c0_7], %7 {strides = array<i32>} : memref<16x128xf32, #tpu.memory_space<vmem>>, vector<16x128xf32>,
    return
  }
  func.func @transform_0(%arg0: i32, %arg1: i32) -> (i32, i32) {
    %c0_i32 = arith.constant 0 : i32
    %c0_i32_0 = arith.constant 0 : i32
    return %arg0, %c0_i32 : i32, i32
  }
  func.func @transform_1(%arg0: i32, %arg1: i32) -> (i32, i32) {
    %c0_i32 = arith.constant 0 : i32
    %c0_i32_0 = arith.constant 0 : i32
    return %c0_i32, %arg1 : i32, i32
  }
  func.func @transform_2(%arg0: i32, %arg1: i32) -> (i32, i32) {
    %c0_i32 = arith.constant 0 : i32
    %c0_i32_0 = arith.constant 0 : i32
    return %c0_i32, %arg1 : i32, i32
  }
  func.func @transform_3(%arg0: i32, %arg1: i32) -> (i32, i32) {
    %c0_i32 = arith.constant 0 : i32
    return %arg0, %arg1 : i32, i32
  }
}

module attributes {stable_mosaic.version = 11 : i64} {
  func.func @_gemm_kernel(%arg0: i32, %arg1: i32, %arg2: memref<16x432xbf16, #tpu.memory_space<vmem>>, %arg3: memref<432x128xbf16, #tpu.memory_space<vmem>>, %arg4: memref<1x128xf32, #tpu.memory_space<vmem>>, %arg5: memref<16x128xf32, #tpu.memory_space<vmem>>) attributes {dimension_semantics = [#tpu.dimension_semantics<parallel>, #tpu.dimension_semantics<parallel>], iteration_bounds = array<i64: 1, 1>, scalar_prefetch = 0 : i64, scratch_operands = 0 : i64, tpu.core_type = #tpu.core_type<tc>, window_params = [{transform_indices = @transform_0, window_bounds = array<i64: 16, 432>}, {transform_indices = @transform_1, window_bounds = array<i64: 432, 128>}, {transform_indices = @transform_2, window_bounds = array<i64: 1, 128>}, {transform_indices = @transform_3, window_bounds = array<i64: 16, 128>}]} {
    %c0 = arith.constant 0 : index
    %c0_0 = arith.constant 0 : index
    %0 = vector.load %arg2[%c0, %c0_0] : memref<16x432xbf16, #tpu.memory_space<vmem>>, vector<16x432xbf16>
    %c0_1 = arith.constant 0 : index
    %c0_2 = arith.constant 0 : index
    %1 = vector.load %arg3[%c0_1, %c0_2] : memref<432x128xbf16, #tpu.memory_space<vmem>>, vector<432x128xbf16>
    %cst = arith.constant dense<0.000000e+00> : vector<16x128xf32>
    %2 = tpu.matmul %0, %1, %cst {dimension_numbers = #tpu.dot_dimension_numbers<[1], [0], [0], [1], [0, 0, 1, 1], [], []>} : vector<16x432xbf16>, vector<432x128xbf16>, vector<16x128xf32> -> vector<16x128xf32>
    %c0_3 = arith.constant 0 : index
    %c0_4 = arith.constant 0 : index
    %3 = vector.load %arg4[%c0_3, %c0_4] : memref<1x128xf32, #tpu.memory_space<vmem>>, vector<1x128xf32>
    %4 = vector.broadcast %3 : vector<1x128xf32> to vector<16x128xf32>
    %5 = arith.addf %2, %4 : vector<16x128xf32>
    %cst_5 = arith.constant 0.000000e+00 : f32
    %6 = vector.broadcast %cst_5 : f32 to vector<16x128xf32>
    %7 = arith.maximumf %5, %6 : vector<16x128xf32>
    %c0_6 = arith.constant 0 : index
    %c0_7 = arith.constant 0 : index
    %8 = vector.load %arg5[%c0_6, %c0_7] : memref<16x128xf32, #tpu.memory_space<vmem>>, vector<16x128xf32>
    tpu.vector_store %arg5[%c0_6, %c0_7], %7 {strides = array<i32>} : memref<16x128xf32, #tpu.memory_space<vmem>>, vector<16x128xf32>,
    return
  }
  func.func @transform_0(%arg0: i32, %arg1: i32) -> (i32, i32) {
    %c0_i32 = arith.constant 0 : i32
    %c0_i32_0 = arith.constant 0 : i32
    return %arg0, %c0_i32 : i32, i32
  }
  func.func @transform_1(%arg0: i32, %arg1: i32) -> (i32, i32) {
    %c0_i32 = arith.constant 0 : i32
    %c0_i32_0 = arith.constant 0 : i32
    return %c0_i32, %arg1 : i32, i32
  }
  func.func @transform_2(%arg0: i32, %arg1: i32) -> (i32, i32) {
    %c0_i32 = arith.constant 0 : i32
    %c0_i32_0 = arith.constant 0 : i32
    return %c0_i32, %arg1 : i32, i32
  }
  func.func @transform_3(%arg0: i32, %arg1: i32) -> (i32, i32) {
    %c0_i32 = arith.constant 0 : i32
    return %arg0, %arg1 : i32, i32
  }
}

module attributes {stable_mosaic.version = 11 : i64} {
  func.func @_gemm_kernel(%arg0: i32, %arg1: i32, %arg2: memref<16x64xbf16, #tpu.memory_space<vmem>>, %arg3: memref<64x128xbf16, #tpu.memory_space<vmem>>, %arg4: memref<1x128xf32, #tpu.memory_space<vmem>>, %arg5: memref<16x128xf32, #tpu.memory_space<vmem>>) attributes {dimension_semantics = [#tpu.dimension_semantics<parallel>, #tpu.dimension_semantics<parallel>], iteration_bounds = array<i64: 1, 1>, scalar_prefetch = 0 : i64, scratch_operands = 0 : i64, tpu.core_type = #tpu.core_type<tc>, window_params = [{transform_indices = @transform_0, window_bounds = array<i64: 16, 64>}, {transform_indices = @transform_1, window_bounds = array<i64: 64, 128>}, {transform_indices = @transform_2, window_bounds = array<i64: 1, 128>}, {transform_indices = @transform_3, window_bounds = array<i64: 16, 128>}]} {
    %c0 = arith.constant 0 : index
    %c0_0 = arith.constant 0 : index
    %0 = vector.load %arg2[%c0, %c0_0] : memref<16x64xbf16, #tpu.memory_space<vmem>>, vector<16x64xbf16>
    %c0_1 = arith.constant 0 : index
    %c0_2 = arith.constant 0 : index
    %1 = vector.load %arg3[%c0_1, %c0_2] : memref<64x128xbf16, #tpu.memory_space<vmem>>, vector<64x128xbf16>
    %cst = arith.constant dense<0.000000e+00> : vector<16x128xf32>
    %2 = tpu.matmul %0, %1, %cst {dimension_numbers = #tpu.dot_dimension_numbers<[1], [0], [0], [1], [0, 0, 1, 1], [], []>} : vector<16x64xbf16>, vector<64x128xbf16>, vector<16x128xf32> -> vector<16x128xf32>
    %c0_3 = arith.constant 0 : index
    %c0_4 = arith.constant 0 : index
    %3 = vector.load %arg4[%c0_3, %c0_4] : memref<1x128xf32, #tpu.memory_space<vmem>>, vector<1x128xf32>
    %4 = vector.broadcast %3 : vector<1x128xf32> to vector<16x128xf32>
    %5 = arith.addf %2, %4 : vector<16x128xf32>
    %c0_5 = arith.constant 0 : index
    %c0_6 = arith.constant 0 : index
    %6 = vector.load %arg5[%c0_5, %c0_6] : memref<16x128xf32, #tpu.memory_space<vmem>>, vector<16x128xf32>
    tpu.vector_store %arg5[%c0_5, %c0_6], %5 {strides = array<i32>} : memref<16x128xf32, #tpu.memory_space<vmem>>, vector<16x128xf32>,
    return
  }
  func.func @transform_0(%arg0: i32, %arg1: i32) -> (i32, i32) {
    %c0_i32 = arith.constant 0 : i32
    %c0_i32_0 = arith.constant 0 : i32
    return %arg0, %c0_i32 : i32, i32
  }
  func.func @transform_1(%arg0: i32, %arg1: i32) -> (i32, i32) {
    %c0_i32 = arith.constant 0 : i32
    %c0_i32_0 = arith.constant 0 : i32
    return %c0_i32, %arg1 : i32, i32
  }
  func.func @transform_2(%arg0: i32, %arg1: i32) -> (i32, i32) {
    %c0_i32 = arith.constant 0 : i32
    %c0_i32_0 = arith.constant 0 : i32
    return %c0_i32, %arg1 : i32, i32
  }
  func.func @transform_3(%arg0: i32, %arg1: i32) -> (i32, i32) {
    %c0_i32 = arith.constant 0 : i32
    return %arg0, %arg1 : i32, i32
  }
}

module attributes {stable_mosaic.version = 11 : i64} {
  func.func @_gemm_kernel(%arg0: i32, %arg1: i32, %arg2: memref<16x144xbf16, #tpu.memory_space<vmem>>, %arg3: memref<144x128xbf16, #tpu.memory_space<vmem>>, %arg4: memref<1x128xf32, #tpu.memory_space<vmem>>, %arg5: memref<16x128xf32, #tpu.memory_space<vmem>>) attributes {dimension_semantics = [#tpu.dimension_semantics<parallel>, #tpu.dimension_semantics<parallel>], iteration_bounds = array<i64: 1, 1>, scalar_prefetch = 0 : i64, scratch_operands = 0 : i64, tpu.core_type = #tpu.core_type<tc>, window_params = [{transform_indices = @transform_0, window_bounds = array<i64: 16, 144>}, {transform_indices = @transform_1, window_bounds = array<i64: 144, 128>}, {transform_indices = @transform_2, window_bounds = array<i64: 1, 128>}, {transform_indices = @transform_3, window_bounds = array<i64: 16, 128>}]} {
    %c0 = arith.constant 0 : index
    %c0_0 = arith.constant 0 : index
    %0 = vector.load %arg2[%c0, %c0_0] : memref<16x144xbf16, #tpu.memory_space<vmem>>, vector<16x144xbf16>
    %c0_1 = arith.constant 0 : index
    %c0_2 = arith.constant 0 : index
    %1 = vector.load %arg3[%c0_1, %c0_2] : memref<144x128xbf16, #tpu.memory_space<vmem>>, vector<144x128xbf16>
    %cst = arith.constant dense<0.000000e+00> : vector<16x128xf32>
    %2 = tpu.matmul %0, %1, %cst {dimension_numbers = #tpu.dot_dimension_numbers<[1], [0], [0], [1], [0, 0, 1, 1], [], []>} : vector<16x144xbf16>, vector<144x128xbf16>, vector<16x128xf32> -> vector<16x128xf32>
    %c0_3 = arith.constant 0 : index
    %c0_4 = arith.constant 0 : index
    %3 = vector.load %arg4[%c0_3, %c0_4] : memref<1x128xf32, #tpu.memory_space<vmem>>, vector<1x128xf32>
    %4 = vector.broadcast %3 : vector<1x128xf32> to vector<16x128xf32>
    %5 = arith.addf %2, %4 : vector<16x128xf32>
    %c0_5 = arith.constant 0 : index
    %c0_6 = arith.constant 0 : index
    %6 = vector.load %arg5[%c0_5, %c0_6] : memref<16x128xf32, #tpu.memory_space<vmem>>, vector<16x128xf32>
    tpu.vector_store %arg5[%c0_5, %c0_6], %5 {strides = array<i32>} : memref<16x128xf32, #tpu.memory_space<vmem>>, vector<16x128xf32>,
    return
  }
  func.func @transform_0(%arg0: i32, %arg1: i32) -> (i32, i32) {
    %c0_i32 = arith.constant 0 : i32
    %c0_i32_0 = arith.constant 0 : i32
    return %arg0, %c0_i32 : i32, i32
  }
  func.func @transform_1(%arg0: i32, %arg1: i32) -> (i32, i32) {
    %c0_i32 = arith.constant 0 : i32
    %c0_i32_0 = arith.constant 0 : i32
    return %c0_i32, %arg1 : i32, i32
  }
  func.func @transform_2(%arg0: i32, %arg1: i32) -> (i32, i32) {
    %c0_i32 = arith.constant 0 : i32
    %c0_i32_0 = arith.constant 0 : i32
    return %c0_i32, %arg1 : i32, i32
  }
  func.func @transform_3(%arg0: i32, %arg1: i32) -> (i32, i32) {
    %c0_i32 = arith.constant 0 : i32
    return %arg0, %arg1 : i32, i32
  }
}

module attributes {stable_mosaic.version = 11 : i64} {
  func.func @_gemm_kernel(%arg0: i32, %arg1: i32, %arg2: memref<48x160xbf16, #tpu.memory_space<vmem>>, %arg3: memref<160x128xbf16, #tpu.memory_space<vmem>>, %arg4: memref<1x128xf32, #tpu.memory_space<vmem>>, %arg5: memref<48x128xf32, #tpu.memory_space<vmem>>) attributes {dimension_semantics = [#tpu.dimension_semantics<parallel>, #tpu.dimension_semantics<parallel>], iteration_bounds = array<i64: 1, 1>, scalar_prefetch = 0 : i64, scratch_operands = 0 : i64, tpu.core_type = #tpu.core_type<tc>, window_params = [{transform_indices = @transform_0, window_bounds = array<i64: 48, 160>}, {transform_indices = @transform_1, window_bounds = array<i64: 160, 128>}, {transform_indices = @transform_2, window_bounds = array<i64: 1, 128>}, {transform_indices = @transform_3, window_bounds = array<i64: 48, 128>}]} {
    %c0 = arith.constant 0 : index
    %c0_0 = arith.constant 0 : index
    %0 = vector.load %arg2[%c0, %c0_0] : memref<48x160xbf16, #tpu.memory_space<vmem>>, vector<48x160xbf16>
    %c0_1 = arith.constant 0 : index
    %c0_2 = arith.constant 0 : index
    %1 = vector.load %arg3[%c0_1, %c0_2] : memref<160x128xbf16, #tpu.memory_space<vmem>>, vector<160x128xbf16>
    %cst = arith.constant dense<0.000000e+00> : vector<48x128xf32>
    %2 = tpu.matmul %0, %1, %cst {dimension_numbers = #tpu.dot_dimension_numbers<[1], [0], [0], [1], [0, 0, 1, 1], [], []>} : vector<48x160xbf16>, vector<160x128xbf16>, vector<48x128xf32> -> vector<48x128xf32>
    %c0_3 = arith.constant 0 : index
    %c0_4 = arith.constant 0 : index
    %3 = vector.load %arg4[%c0_3, %c0_4] : memref<1x128xf32, #tpu.memory_space<vmem>>, vector<1x128xf32>
    %4 = vector.broadcast %3 : vector<1x128xf32> to vector<48x128xf32>
    %5 = arith.addf %2, %4 : vector<48x128xf32>
    %c0_5 = arith.constant 0 : index
    %c0_6 = arith.constant 0 : index
    %6 = vector.load %arg5[%c0_5, %c0_6] : memref<48x128xf32, #tpu.memory_space<vmem>>, vector<48x128xf32>
    tpu.vector_store %arg5[%c0_5, %c0_6], %5 {strides = array<i32>} : memref<48x128xf32, #tpu.memory_space<vmem>>, vector<48x128xf32>,
    return
  }
  func.func @transform_0(%arg0: i32, %arg1: i32) -> (i32, i32) {
    %c0_i32 = arith.constant 0 : i32
    %c0_i32_0 = arith.constant 0 : i32
    return %arg0, %c0_i32 : i32, i32
  }
  func.func @transform_1(%arg0: i32, %arg1: i32) -> (i32, i32) {
    %c0_i32 = arith.constant 0 : i32
    %c0_i32_0 = arith.constant 0 : i32
    return %c0_i32, %arg1 : i32, i32
  }
  func.func @transform_2(%arg0: i32, %arg1: i32) -> (i32, i32) {
    %c0_i32 = arith.constant 0 : i32
    %c0_i32_0 = arith.constant 0 : i32
    return %c0_i32, %arg1 : i32, i32
  }
  func.func @transform_3(%arg0: i32, %arg1: i32) -> (i32, i32) {
    %c0_i32 = arith.constant 0 : i32
    return %arg0, %arg1 : i32, i32
  }
}

module attributes {stable_mosaic.version = 11 : i64} {
  func.func @_gemm_kernel(%arg0: i32, %arg1: i32, %arg2: memref<32x160xbf16, #tpu.memory_space<vmem>>, %arg3: memref<160x128xbf16, #tpu.memory_space<vmem>>, %arg4: memref<1x128xf32, #tpu.memory_space<vmem>>, %arg5: memref<32x128xf32, #tpu.memory_space<vmem>>) attributes {dimension_semantics = [#tpu.dimension_semantics<parallel>, #tpu.dimension_semantics<parallel>], iteration_bounds = array<i64: 1, 1>, scalar_prefetch = 0 : i64, scratch_operands = 0 : i64, tpu.core_type = #tpu.core_type<tc>, window_params = [{transform_indices = @transform_0, window_bounds = array<i64: 32, 160>}, {transform_indices = @transform_1, window_bounds = array<i64: 160, 128>}, {transform_indices = @transform_2, window_bounds = array<i64: 1, 128>}, {transform_indices = @transform_3, window_bounds = array<i64: 32, 128>}]} {
    %c0 = arith.constant 0 : index
    %c0_0 = arith.constant 0 : index
    %0 = vector.load %arg2[%c0, %c0_0] : memref<32x160xbf16, #tpu.memory_space<vmem>>, vector<32x160xbf16>
    %c0_1 = arith.constant 0 : index
    %c0_2 = arith.constant 0 : index
    %1 = vector.load %arg3[%c0_1, %c0_2] : memref<160x128xbf16, #tpu.memory_space<vmem>>, vector<160x128xbf16>
    %cst = arith.constant dense<0.000000e+00> : vector<32x128xf32>
    %2 = tpu.matmul %0, %1, %cst {dimension_numbers = #tpu.dot_dimension_numbers<[1], [0], [0], [1], [0, 0, 1, 1], [], []>} : vector<32x160xbf16>, vector<160x128xbf16>, vector<32x128xf32> -> vector<32x128xf32>
    %c0_3 = arith.constant 0 : index
    %c0_4 = arith.constant 0 : index
    %3 = vector.load %arg4[%c0_3, %c0_4] : memref<1x128xf32, #tpu.memory_space<vmem>>, vector<1x128xf32>
    %4 = vector.broadcast %3 : vector<1x128xf32> to vector<32x128xf32>
    %5 = arith.addf %2, %4 : vector<32x128xf32>
    %c0_5 = arith.constant 0 : index
    %c0_6 = arith.constant 0 : index
    %6 = vector.load %arg5[%c0_5, %c0_6] : memref<32x128xf32, #tpu.memory_space<vmem>>, vector<32x128xf32>
    tpu.vector_store %arg5[%c0_5, %c0_6], %5 {strides = array<i32>} : memref<32x128xf32, #tpu.memory_space<vmem>>, vector<32x128xf32>,
    return
  }
  func.func @transform_0(%arg0: i32, %arg1: i32) -> (i32, i32) {
    %c0_i32 = arith.constant 0 : i32
    %c0_i32_0 = arith.constant 0 : i32
    return %arg0, %c0_i32 : i32, i32
  }
  func.func @transform_1(%arg0: i32, %arg1: i32) -> (i32, i32) {
    %c0_i32 = arith.constant 0 : i32
    %c0_i32_0 = arith.constant 0 : i32
    return %c0_i32, %arg1 : i32, i32
  }
  func.func @transform_2(%arg0: i32, %arg1: i32) -> (i32, i32) {
    %c0_i32 = arith.constant 0 : i32
    %c0_i32_0 = arith.constant 0 : i32
    return %c0_i32, %arg1 : i32, i32
  }
  func.func @transform_3(%arg0: i32, %arg1: i32) -> (i32, i32) {
    %c0_i32 = arith.constant 0 : i32
    return %arg0, %arg1 : i32, i32
  }
}

module attributes {stable_mosaic.version = 11 : i64} {
  func.func @_gemm_kernel(%arg0: i32, %arg1: i32, %arg2: memref<16x240xbf16, #tpu.memory_space<vmem>>, %arg3: memref<240x128xbf16, #tpu.memory_space<vmem>>, %arg4: memref<1x128xf32, #tpu.memory_space<vmem>>, %arg5: memref<16x128xf32, #tpu.memory_space<vmem>>) attributes {dimension_semantics = [#tpu.dimension_semantics<parallel>, #tpu.dimension_semantics<parallel>], iteration_bounds = array<i64: 1, 2>, scalar_prefetch = 0 : i64, scratch_operands = 0 : i64, tpu.core_type = #tpu.core_type<tc>, window_params = [{transform_indices = @transform_0, window_bounds = array<i64: 16, 240>}, {transform_indices = @transform_1, window_bounds = array<i64: 240, 128>}, {transform_indices = @transform_2, window_bounds = array<i64: 1, 128>}, {transform_indices = @transform_3, window_bounds = array<i64: 16, 128>}]} {
    %c0 = arith.constant 0 : index
    %c0_0 = arith.constant 0 : index
    %0 = vector.load %arg2[%c0, %c0_0] : memref<16x240xbf16, #tpu.memory_space<vmem>>, vector<16x240xbf16>
    %c0_1 = arith.constant 0 : index
    %c0_2 = arith.constant 0 : index
    %1 = vector.load %arg3[%c0_1, %c0_2] : memref<240x128xbf16, #tpu.memory_space<vmem>>, vector<240x128xbf16>
    %cst = arith.constant dense<0.000000e+00> : vector<16x128xf32>
    %2 = tpu.matmul %0, %1, %cst {dimension_numbers = #tpu.dot_dimension_numbers<[1], [0], [0], [1], [0, 0, 1, 1], [], []>} : vector<16x240xbf16>, vector<240x128xbf16>, vector<16x128xf32> -> vector<16x128xf32>
    %c0_3 = arith.constant 0 : index
    %c0_4 = arith.constant 0 : index
    %3 = vector.load %arg4[%c0_3, %c0_4] : memref<1x128xf32, #tpu.memory_space<vmem>>, vector<1x128xf32>
    %4 = vector.broadcast %3 : vector<1x128xf32> to vector<16x128xf32>
    %5 = arith.addf %2, %4 : vector<16x128xf32>
    %c0_5 = arith.constant 0 : index
    %c0_6 = arith.constant 0 : index
    %6 = vector.load %arg5[%c0_5, %c0_6] : memref<16x128xf32, #tpu.memory_space<vmem>>, vector<16x128xf32>
    tpu.vector_store %arg5[%c0_5, %c0_6], %5 {strides = array<i32>} : memref<16x128xf32, #tpu.memory_space<vmem>>, vector<16x128xf32>,
    return
  }
  func.func @transform_0(%arg0: i32, %arg1: i32) -> (i32, i32) {
    %c0_i32 = arith.constant 0 : i32
    %c0_i32_0 = arith.constant 0 : i32
    return %arg0, %c0_i32 : i32, i32
  }
  func.func @transform_1(%arg0: i32, %arg1: i32) -> (i32, i32) {
    %c0_i32 = arith.constant 0 : i32
    %c0_i32_0 = arith.constant 0 : i32
    return %c0_i32, %arg1 : i32, i32
  }
  func.func @transform_2(%arg0: i32, %arg1: i32) -> (i32, i32) {
    %c0_i32 = arith.constant 0 : i32
    %c0_i32_0 = arith.constant 0 : i32
    return %c0_i32, %arg1 : i32, i32
  }
  func.func @transform_3(%arg0: i32, %arg1: i32) -> (i32, i32) {
    %c0_i32 = arith.constant 0 : i32
    return %arg0, %arg1 : i32, i32
  }
}

module attributes {stable_mosaic.version = 11 : i64} {
  func.func @_gemm_kernel(%arg0: i32, %arg1: i32, %arg2: memref<16x240xbf16, #tpu.memory_space<vmem>>, %arg3: memref<240x128xbf16, #tpu.memory_space<vmem>>, %arg4: memref<1x128xf32, #tpu.memory_space<vmem>>, %arg5: memref<16x128xf32, #tpu.memory_space<vmem>>) attributes {dimension_semantics = [#tpu.dimension_semantics<parallel>, #tpu.dimension_semantics<parallel>], iteration_bounds = array<i64: 1, 3>, scalar_prefetch = 0 : i64, scratch_operands = 0 : i64, tpu.core_type = #tpu.core_type<tc>, window_params = [{transform_indices = @transform_0, window_bounds = array<i64: 16, 240>}, {transform_indices = @transform_1, window_bounds = array<i64: 240, 128>}, {transform_indices = @transform_2, window_bounds = array<i64: 1, 128>}, {transform_indices = @transform_3, window_bounds = array<i64: 16, 128>}]} {
    %c0 = arith.constant 0 : index
    %c0_0 = arith.constant 0 : index
    %0 = vector.load %arg2[%c0, %c0_0] : memref<16x240xbf16, #tpu.memory_space<vmem>>, vector<16x240xbf16>
    %c0_1 = arith.constant 0 : index
    %c0_2 = arith.constant 0 : index
    %1 = vector.load %arg3[%c0_1, %c0_2] : memref<240x128xbf16, #tpu.memory_space<vmem>>, vector<240x128xbf16>
    %cst = arith.constant dense<0.000000e+00> : vector<16x128xf32>
    %2 = tpu.matmul %0, %1, %cst {dimension_numbers = #tpu.dot_dimension_numbers<[1], [0], [0], [1], [0, 0, 1, 1], [], []>} : vector<16x240xbf16>, vector<240x128xbf16>, vector<16x128xf32> -> vector<16x128xf32>
    %c0_3 = arith.constant 0 : index
    %c0_4 = arith.constant 0 : index
    %3 = vector.load %arg4[%c0_3, %c0_4] : memref<1x128xf32, #tpu.memory_space<vmem>>, vector<1x128xf32>
    %4 = vector.broadcast %3 : vector<1x128xf32> to vector<16x128xf32>
    %5 = arith.addf %2, %4 : vector<16x128xf32>
    %c0_5 = arith.constant 0 : index
    %c0_6 = arith.constant 0 : index
    %6 = vector.load %arg5[%c0_5, %c0_6] : memref<16x128xf32, #tpu.memory_space<vmem>>, vector<16x128xf32>
    tpu.vector_store %arg5[%c0_5, %c0_6], %5 {strides = array<i32>} : memref<16x128xf32, #tpu.memory_space<vmem>>, vector<16x128xf32>,
    return
  }
  func.func @transform_0(%arg0: i32, %arg1: i32) -> (i32, i32) {
    %c0_i32 = arith.constant 0 : i32
    %c0_i32_0 = arith.constant 0 : i32
    return %arg0, %c0_i32 : i32, i32
  }
  func.func @transform_1(%arg0: i32, %arg1: i32) -> (i32, i32) {
    %c0_i32 = arith.constant 0 : i32
    %c0_i32_0 = arith.constant 0 : i32
    return %c0_i32, %arg1 : i32, i32
  }
  func.func @transform_2(%arg0: i32, %arg1: i32) -> (i32, i32) {
    %c0_i32 = arith.constant 0 : i32
    %c0_i32_0 = arith.constant 0 : i32
    return %c0_i32, %arg1 : i32, i32
  }
  func.func @transform_3(%arg0: i32, %arg1: i32) -> (i32, i32) {
    %c0_i32 = arith.constant 0 : i32
    return %arg0, %arg1 : i32, i32
  }
}

module attributes {stable_mosaic.version = 11 : i64} {
  func.func @_gemm_kernel(%arg0: i32, %arg1: i32, %arg2: memref<64x288xbf16, #tpu.memory_space<vmem>>, %arg3: memref<288x128xbf16, #tpu.memory_space<vmem>>, %arg4: memref<1x128xf32, #tpu.memory_space<vmem>>, %arg5: memref<64x128xf32, #tpu.memory_space<vmem>>) attributes {dimension_semantics = [#tpu.dimension_semantics<parallel>, #tpu.dimension_semantics<parallel>], iteration_bounds = array<i64: 1, 1>, scalar_prefetch = 0 : i64, scratch_operands = 0 : i64, tpu.core_type = #tpu.core_type<tc>, window_params = [{transform_indices = @transform_0, window_bounds = array<i64: 64, 288>}, {transform_indices = @transform_1, window_bounds = array<i64: 288, 128>}, {transform_indices = @transform_2, window_bounds = array<i64: 1, 128>}, {transform_indices = @transform_3, window_bounds = array<i64: 64, 128>}]} {
    %c0 = arith.constant 0 : index
    %c0_0 = arith.constant 0 : index
    %0 = vector.load %arg2[%c0, %c0_0] : memref<64x288xbf16, #tpu.memory_space<vmem>>, vector<64x288xbf16>
    %c0_1 = arith.constant 0 : index
    %c0_2 = arith.constant 0 : index
    %1 = vector.load %arg3[%c0_1, %c0_2] : memref<288x128xbf16, #tpu.memory_space<vmem>>, vector<288x128xbf16>
    %cst = arith.constant dense<0.000000e+00> : vector<64x128xf32>
    %2 = tpu.matmul %0, %1, %cst {dimension_numbers = #tpu.dot_dimension_numbers<[1], [0], [0], [1], [0, 0, 1, 1], [], []>} : vector<64x288xbf16>, vector<288x128xbf16>, vector<64x128xf32> -> vector<64x128xf32>
    %c0_3 = arith.constant 0 : index
    %c0_4 = arith.constant 0 : index
    %3 = vector.load %arg4[%c0_3, %c0_4] : memref<1x128xf32, #tpu.memory_space<vmem>>, vector<1x128xf32>
    %4 = vector.broadcast %3 : vector<1x128xf32> to vector<64x128xf32>
    %5 = arith.addf %2, %4 : vector<64x128xf32>
    %cst_5 = arith.constant 0.000000e+00 : f32
    %6 = vector.broadcast %cst_5 : f32 to vector<64x128xf32>
    %7 = arith.maximumf %5, %6 : vector<64x128xf32>
    %c0_6 = arith.constant 0 : index
    %c0_7 = arith.constant 0 : index
    %8 = vector.load %arg5[%c0_6, %c0_7] : memref<64x128xf32, #tpu.memory_space<vmem>>, vector<64x128xf32>
    tpu.vector_store %arg5[%c0_6, %c0_7], %7 {strides = array<i32>} : memref<64x128xf32, #tpu.memory_space<vmem>>, vector<64x128xf32>,
    return
  }
  func.func @transform_0(%arg0: i32, %arg1: i32) -> (i32, i32) {
    %c0_i32 = arith.constant 0 : i32
    %c0_i32_0 = arith.constant 0 : i32
    return %arg0, %c0_i32 : i32, i32
  }
  func.func @transform_1(%arg0: i32, %arg1: i32) -> (i32, i32) {
    %c0_i32 = arith.constant 0 : i32
    %c0_i32_0 = arith.constant 0 : i32
    return %c0_i32, %arg1 : i32, i32
  }
  func.func @transform_2(%arg0: i32, %arg1: i32) -> (i32, i32) {
    %c0_i32 = arith.constant 0 : i32
    %c0_i32_0 = arith.constant 0 : i32
    return %c0_i32, %arg1 : i32, i32
  }
  func.func @transform_3(%arg0: i32, %arg1: i32) -> (i32, i32) {
    %c0_i32 = arith.constant 0 : i32
    return %arg0, %arg1 : i32, i32
  }
}

module attributes {stable_mosaic.version = 11 : i64} {
  func.func @_gemm_kernel(%arg0: i32, %arg1: i32, %arg2: memref<64x432xbf16, #tpu.memory_space<vmem>>, %arg3: memref<432x128xbf16, #tpu.memory_space<vmem>>, %arg4: memref<1x128xf32, #tpu.memory_space<vmem>>, %arg5: memref<64x128xf32, #tpu.memory_space<vmem>>) attributes {dimension_semantics = [#tpu.dimension_semantics<parallel>, #tpu.dimension_semantics<parallel>], iteration_bounds = array<i64: 1, 1>, scalar_prefetch = 0 : i64, scratch_operands = 0 : i64, tpu.core_type = #tpu.core_type<tc>, window_params = [{transform_indices = @transform_0, window_bounds = array<i64: 64, 432>}, {transform_indices = @transform_1, window_bounds = array<i64: 432, 128>}, {transform_indices = @transform_2, window_bounds = array<i64: 1, 128>}, {transform_indices = @transform_3, window_bounds = array<i64: 64, 128>}]} {
    %c0 = arith.constant 0 : index
    %c0_0 = arith.constant 0 : index
    %0 = vector.load %arg2[%c0, %c0_0] : memref<64x432xbf16, #tpu.memory_space<vmem>>, vector<64x432xbf16>
    %c0_1 = arith.constant 0 : index
    %c0_2 = arith.constant 0 : index
    %1 = vector.load %arg3[%c0_1, %c0_2] : memref<432x128xbf16, #tpu.memory_space<vmem>>, vector<432x128xbf16>
    %cst = arith.constant dense<0.000000e+00> : vector<64x128xf32>
    %2 = tpu.matmul %0, %1, %cst {dimension_numbers = #tpu.dot_dimension_numbers<[1], [0], [0], [1], [0, 0, 1, 1], [], []>} : vector<64x432xbf16>, vector<432x128xbf16>, vector<64x128xf32> -> vector<64x128xf32>
    %c0_3 = arith.constant 0 : index
    %c0_4 = arith.constant 0 : index
    %3 = vector.load %arg4[%c0_3, %c0_4] : memref<1x128xf32, #tpu.memory_space<vmem>>, vector<1x128xf32>
    %4 = vector.broadcast %3 : vector<1x128xf32> to vector<64x128xf32>
    %5 = arith.addf %2, %4 : vector<64x128xf32>
    %cst_5 = arith.constant 0.000000e+00 : f32
    %6 = vector.broadcast %cst_5 : f32 to vector<64x128xf32>
    %7 = arith.maximumf %5, %6 : vector<64x128xf32>
    %c0_6 = arith.constant 0 : index
    %c0_7 = arith.constant 0 : index
    %8 = vector.load %arg5[%c0_6, %c0_7] : memref<64x128xf32, #tpu.memory_space<vmem>>, vector<64x128xf32>
    tpu.vector_store %arg5[%c0_6, %c0_7], %7 {strides = array<i32>} : memref<64x128xf32, #tpu.memory_space<vmem>>, vector<64x128xf32>,
    return
  }
  func.func @transform_0(%arg0: i32, %arg1: i32) -> (i32, i32) {
    %c0_i32 = arith.constant 0 : i32
    %c0_i32_0 = arith.constant 0 : i32
    return %arg0, %c0_i32 : i32, i32
  }
  func.func @transform_1(%arg0: i32, %arg1: i32) -> (i32, i32) {
    %c0_i32 = arith.constant 0 : i32
    %c0_i32_0 = arith.constant 0 : i32
    return %c0_i32, %arg1 : i32, i32
  }
  func.func @transform_2(%arg0: i32, %arg1: i32) -> (i32, i32) {
    %c0_i32 = arith.constant 0 : i32
    %c0_i32_0 = arith.constant 0 : i32
    return %c0_i32, %arg1 : i32, i32
  }
  func.func @transform_3(%arg0: i32, %arg1: i32) -> (i32, i32) {
    %c0_i32 = arith.constant 0 : i32
    return %arg0, %arg1 : i32, i32
  }
}

module attributes {stable_mosaic.version = 11 : i64} {
  func.func @_gemm_kernel(%arg0: i32, %arg1: i32, %arg2: memref<64x576xbf16, #tpu.memory_space<vmem>>, %arg3: memref<576x128xbf16, #tpu.memory_space<vmem>>, %arg4: memref<1x128xf32, #tpu.memory_space<vmem>>, %arg5: memref<64x128xf32, #tpu.memory_space<vmem>>) attributes {dimension_semantics = [#tpu.dimension_semantics<parallel>, #tpu.dimension_semantics<parallel>], iteration_bounds = array<i64: 1, 1>, scalar_prefetch = 0 : i64, scratch_operands = 0 : i64, tpu.core_type = #tpu.core_type<tc>, window_params = [{transform_indices = @transform_0, window_bounds = array<i64: 64, 576>}, {transform_indices = @transform_1, window_bounds = array<i64: 576, 128>}, {transform_indices = @transform_2, window_bounds = array<i64: 1, 128>}, {transform_indices = @transform_3, window_bounds = array<i64: 64, 128>}]} {
    %c0 = arith.constant 0 : index
    %c0_0 = arith.constant 0 : index
    %0 = vector.load %arg2[%c0, %c0_0] : memref<64x576xbf16, #tpu.memory_space<vmem>>, vector<64x576xbf16>
    %c0_1 = arith.constant 0 : index
    %c0_2 = arith.constant 0 : index
    %1 = vector.load %arg3[%c0_1, %c0_2] : memref<576x128xbf16, #tpu.memory_space<vmem>>, vector<576x128xbf16>
    %cst = arith.constant dense<0.000000e+00> : vector<64x128xf32>
    %2 = tpu.matmul %0, %1, %cst {dimension_numbers = #tpu.dot_dimension_numbers<[1], [0], [0], [1], [0, 0, 1, 1], [], []>} : vector<64x576xbf16>, vector<576x128xbf16>, vector<64x128xf32> -> vector<64x128xf32>
    %c0_3 = arith.constant 0 : index
    %c0_4 = arith.constant 0 : index
    %3 = vector.load %arg4[%c0_3, %c0_4] : memref<1x128xf32, #tpu.memory_space<vmem>>, vector<1x128xf32>
    %4 = vector.broadcast %3 : vector<1x128xf32> to vector<64x128xf32>
    %5 = arith.addf %2, %4 : vector<64x128xf32>
    %cst_5 = arith.constant 0.000000e+00 : f32
    %6 = vector.broadcast %cst_5 : f32 to vector<64x128xf32>
    %7 = arith.maximumf %5, %6 : vector<64x128xf32>
    %c0_6 = arith.constant 0 : index
    %c0_7 = arith.constant 0 : index
    %8 = vector.load %arg5[%c0_6, %c0_7] : memref<64x128xf32, #tpu.memory_space<vmem>>, vector<64x128xf32>
    tpu.vector_store %arg5[%c0_6, %c0_7], %7 {strides = array<i32>} : memref<64x128xf32, #tpu.memory_space<vmem>>, vector<64x128xf32>,
    return
  }
  func.func @transform_0(%arg0: i32, %arg1: i32) -> (i32, i32) {
    %c0_i32 = arith.constant 0 : i32
    %c0_i32_0 = arith.constant 0 : i32
    return %arg0, %c0_i32 : i32, i32
  }
  func.func @transform_1(%arg0: i32, %arg1: i32) -> (i32, i32) {
    %c0_i32 = arith.constant 0 : i32
    %c0_i32_0 = arith.constant 0 : i32
    return %c0_i32, %arg1 : i32, i32
  }
  func.func @transform_2(%arg0: i32, %arg1: i32) -> (i32, i32) {
    %c0_i32 = arith.constant 0 : i32
    %c0_i32_0 = arith.constant 0 : i32
    return %c0_i32, %arg1 : i32, i32
  }
  func.func @transform_3(%arg0: i32, %arg1: i32) -> (i32, i32) {
    %c0_i32 = arith.constant 0 : i32
    return %arg0, %arg1 : i32, i32
  }
}

module attributes {stable_mosaic.version = 11 : i64} {
  func.func @_gemm_kernel(%arg0: i32, %arg1: i32, %arg2: memref<64x80xbf16, #tpu.memory_space<vmem>>, %arg3: memref<80x128xbf16, #tpu.memory_space<vmem>>, %arg4: memref<1x128xf32, #tpu.memory_space<vmem>>, %arg5: memref<64x128xf32, #tpu.memory_space<vmem>>) attributes {dimension_semantics = [#tpu.dimension_semantics<parallel>, #tpu.dimension_semantics<parallel>], iteration_bounds = array<i64: 1, 1>, scalar_prefetch = 0 : i64, scratch_operands = 0 : i64, tpu.core_type = #tpu.core_type<tc>, window_params = [{transform_indices = @transform_0, window_bounds = array<i64: 64, 80>}, {transform_indices = @transform_1, window_bounds = array<i64: 80, 128>}, {transform_indices = @transform_2, window_bounds = array<i64: 1, 128>}, {transform_indices = @transform_3, window_bounds = array<i64: 64, 128>}]} {
    %c0 = arith.constant 0 : index
    %c0_0 = arith.constant 0 : index
    %0 = vector.load %arg2[%c0, %c0_0] : memref<64x80xbf16, #tpu.memory_space<vmem>>, vector<64x80xbf16>
    %c0_1 = arith.constant 0 : index
    %c0_2 = arith.constant 0 : index
    %1 = vector.load %arg3[%c0_1, %c0_2] : memref<80x128xbf16, #tpu.memory_space<vmem>>, vector<80x128xbf16>
    %cst = arith.constant dense<0.000000e+00> : vector<64x128xf32>
    %2 = tpu.matmul %0, %1, %cst {dimension_numbers = #tpu.dot_dimension_numbers<[1], [0], [0], [1], [0, 0, 1, 1], [], []>} : vector<64x80xbf16>, vector<80x128xbf16>, vector<64x128xf32> -> vector<64x128xf32>
    %c0_3 = arith.constant 0 : index
    %c0_4 = arith.constant 0 : index
    %3 = vector.load %arg4[%c0_3, %c0_4] : memref<1x128xf32, #tpu.memory_space<vmem>>, vector<1x128xf32>
    %4 = vector.broadcast %3 : vector<1x128xf32> to vector<64x128xf32>
    %5 = arith.addf %2, %4 : vector<64x128xf32>
    %c0_5 = arith.constant 0 : index
    %c0_6 = arith.constant 0 : index
    %6 = vector.load %arg5[%c0_5, %c0_6] : memref<64x128xf32, #tpu.memory_space<vmem>>, vector<64x128xf32>
    tpu.vector_store %arg5[%c0_5, %c0_6], %5 {strides = array<i32>} : memref<64x128xf32, #tpu.memory_space<vmem>>, vector<64x128xf32>,
    return
  }
  func.func @transform_0(%arg0: i32, %arg1: i32) -> (i32, i32) {
    %c0_i32 = arith.constant 0 : i32
    %c0_i32_0 = arith.constant 0 : i32
    return %arg0, %c0_i32 : i32, i32
  }
  func.func @transform_1(%arg0: i32, %arg1: i32) -> (i32, i32) {
    %c0_i32 = arith.constant 0 : i32
    %c0_i32_0 = arith.constant 0 : i32
    return %c0_i32, %arg1 : i32, i32
  }
  func.func @transform_2(%arg0: i32, %arg1: i32) -> (i32, i32) {
    %c0_i32 = arith.constant 0 : i32
    %c0_i32_0 = arith.constant 0 : i32
    return %c0_i32, %arg1 : i32, i32
  }
  func.func @transform_3(%arg0: i32, %arg1: i32) -> (i32, i32) {
    %c0_i32 = arith.constant 0 : i32
    return %arg0, %arg1 : i32, i32
  }
}

module attributes {stable_mosaic.version = 11 : i64} {
  func.func @_gemm_kernel(%arg0: i32, %arg1: i32, %arg2: memref<64x32xbf16, #tpu.memory_space<vmem>>, %arg3: memref<32x128xbf16, #tpu.memory_space<vmem>>, %arg4: memref<1x128xf32, #tpu.memory_space<vmem>>, %arg5: memref<64x128xf32, #tpu.memory_space<vmem>>) attributes {dimension_semantics = [#tpu.dimension_semantics<parallel>, #tpu.dimension_semantics<parallel>], iteration_bounds = array<i64: 1, 2>, scalar_prefetch = 0 : i64, scratch_operands = 0 : i64, tpu.core_type = #tpu.core_type<tc>, window_params = [{transform_indices = @transform_0, window_bounds = array<i64: 64, 32>}, {transform_indices = @transform_1, window_bounds = array<i64: 32, 128>}, {transform_indices = @transform_2, window_bounds = array<i64: 1, 128>}, {transform_indices = @transform_3, window_bounds = array<i64: 64, 128>}]} {
    %c0 = arith.constant 0 : index
    %c0_0 = arith.constant 0 : index
    %0 = vector.load %arg2[%c0, %c0_0] : memref<64x32xbf16, #tpu.memory_space<vmem>>, vector<64x32xbf16>
    %c0_1 = arith.constant 0 : index
    %c0_2 = arith.constant 0 : index
    %1 = vector.load %arg3[%c0_1, %c0_2] : memref<32x128xbf16, #tpu.memory_space<vmem>>, vector<32x128xbf16>
    %cst = arith.constant dense<0.000000e+00> : vector<64x128xf32>
    %2 = tpu.matmul %0, %1, %cst {dimension_numbers = #tpu.dot_dimension_numbers<[1], [0], [0], [1], [0, 0, 1, 1], [], []>} : vector<64x32xbf16>, vector<32x128xbf16>, vector<64x128xf32> -> vector<64x128xf32>
    %c0_3 = arith.constant 0 : index
    %c0_4 = arith.constant 0 : index
    %3 = vector.load %arg4[%c0_3, %c0_4] : memref<1x128xf32, #tpu.memory_space<vmem>>, vector<1x128xf32>
    %4 = vector.broadcast %3 : vector<1x128xf32> to vector<64x128xf32>
    %5 = arith.addf %2, %4 : vector<64x128xf32>
    %c0_5 = arith.constant 0 : index
    %c0_6 = arith.constant 0 : index
    %6 = vector.load %arg5[%c0_5, %c0_6] : memref<64x128xf32, #tpu.memory_space<vmem>>, vector<64x128xf32>
    tpu.vector_store %arg5[%c0_5, %c0_6], %5 {strides = array<i32>} : memref<64x128xf32, #tpu.memory_space<vmem>>, vector<64x128xf32>,
    return
  }
  func.func @transform_0(%arg0: i32, %arg1: i32) -> (i32, i32) {
    %c0_i32 = arith.constant 0 : i32
    %c0_i32_0 = arith.constant 0 : i32
    return %arg0, %c0_i32 : i32, i32
  }
  func.func @transform_1(%arg0: i32, %arg1: i32) -> (i32, i32) {
    %c0_i32 = arith.constant 0 : i32
    %c0_i32_0 = arith.constant 0 : i32
    return %c0_i32, %arg1 : i32, i32
  }
  func.func @transform_2(%arg0: i32, %arg1: i32) -> (i32, i32) {
    %c0_i32 = arith.constant 0 : i32
    %c0_i32_0 = arith.constant 0 : i32
    return %c0_i32, %arg1 : i32, i32
  }
  func.func @transform_3(%arg0: i32, %arg1: i32) -> (i32, i32) {
    %c0_i32 = arith.constant 0 : i32
    return %arg0, %arg1 : i32, i32
  }
}

module attributes {stable_mosaic.version = 11 : i64} {
  func.func @_gemm_kernel(%arg0: i32, %arg1: i32, %arg2: memref<128x400xbf16, #tpu.memory_space<vmem>>, %arg3: memref<400x128xbf16, #tpu.memory_space<vmem>>, %arg4: memref<1x128xf32, #tpu.memory_space<vmem>>, %arg5: memref<128x128xf32, #tpu.memory_space<vmem>>) attributes {dimension_semantics = [#tpu.dimension_semantics<parallel>, #tpu.dimension_semantics<parallel>], iteration_bounds = array<i64: 2, 1>, scalar_prefetch = 0 : i64, scratch_operands = 0 : i64, tpu.core_type = #tpu.core_type<tc>, window_params = [{transform_indices = @transform_0, window_bounds = array<i64: 128, 400>}, {transform_indices = @transform_1, window_bounds = array<i64: 400, 128>}, {transform_indices = @transform_2, window_bounds = array<i64: 1, 128>}, {transform_indices = @transform_3, window_bounds = array<i64: 128, 128>}]} {
    %c0 = arith.constant 0 : index
    %c0_0 = arith.constant 0 : index
    %0 = vector.load %arg2[%c0, %c0_0] : memref<128x400xbf16, #tpu.memory_space<vmem>>, vector<128x400xbf16>
    %c0_1 = arith.constant 0 : index
    %c0_2 = arith.constant 0 : index
    %1 = vector.load %arg3[%c0_1, %c0_2] : memref<400x128xbf16, #tpu.memory_space<vmem>>, vector<400x128xbf16>
    %cst = arith.constant dense<0.000000e+00> : vector<128x128xf32>
    %2 = tpu.matmul %0, %1, %cst {dimension_numbers = #tpu.dot_dimension_numbers<[1], [0], [0], [1], [0, 0, 1, 1], [], []>} : vector<128x400xbf16>, vector<400x128xbf16>, vector<128x128xf32> -> vector<128x128xf32>
    %c0_3 = arith.constant 0 : index
    %c0_4 = arith.constant 0 : index
    %3 = vector.load %arg4[%c0_3, %c0_4] : memref<1x128xf32, #tpu.memory_space<vmem>>, vector<1x128xf32>
    %4 = vector.broadcast %3 : vector<1x128xf32> to vector<128x128xf32>
    %5 = arith.addf %2, %4 : vector<128x128xf32>
    %c0_5 = arith.constant 0 : index
    %c0_6 = arith.constant 0 : index
    %6 = vector.load %arg5[%c0_5, %c0_6] : memref<128x128xf32, #tpu.memory_space<vmem>>, vector<128x128xf32>
    tpu.vector_store %arg5[%c0_5, %c0_6], %5 {strides = array<i32>} : memref<128x128xf32, #tpu.memory_space<vmem>>, vector<128x128xf32>,
    return
  }
  func.func @transform_0(%arg0: i32, %arg1: i32) -> (i32, i32) {
    %c0_i32 = arith.constant 0 : i32
    %c0_i32_0 = arith.constant 0 : i32
    return %arg0, %c0_i32 : i32, i32
  }
  func.func @transform_1(%arg0: i32, %arg1: i32) -> (i32, i32) {
    %c0_i32 = arith.constant 0 : i32
    %c0_i32_0 = arith.constant 0 : i32
    return %c0_i32, %arg1 : i32, i32
  }
  func.func @transform_2(%arg0: i32, %arg1: i32) -> (i32, i32) {
    %c0_i32 = arith.constant 0 : i32
    %c0_i32_0 = arith.constant 0 : i32
    return %c0_i32, %arg1 : i32, i32
  }
  func.func @transform_3(%arg0: i32, %arg1: i32) -> (i32, i32) {
    %c0_i32 = arith.constant 0 : i32
    return %arg0, %arg1 : i32, i32
  }
}

</mosaic_0001>

<bundles_post_ra>
// kernel: model_fwd.218
= control target key start
LH: loop header
LB: loop body
LE: loop exit
PB: predicated region body
PF: predicated region fallthrough
CT: control target
= control target key end

     0   :  { %s734_s12 = smov 0   ;;  %s736_s13 = smov 0   ;;  %s815_s0 = inlined_call_operand.vmem [shape: bf16[256,80], index: 0, kind: input, shape index: {}]   ;;  %s816_s1 = inlined_call_operand.vmem [shape: bf16[80,128], index: 1, kind: input, shape index: {}]   ;;  %s817_s2 = inlined_call_operand.vmem [shape: f32[1,128], index: 2, kind: input, shape index: {}]   ;;  %s818_s3 = inlined_call_operand.vmem [shape: f32[256,128], index: 3, kind: output, shape index: {}]  }
   0x1   :  { %s738_s14 = smov 0  }
   0x2 LB: > { %s25_s15 = sadd.s32 1, %s708_s13  ;;  %p575_p0 = scmp.ge.s32.totalorder %s712_s14, 1  ;;  %s712_s14 = sphi %s738_s14, %s13_s14   ;;  %s708_s13 = sphi %s736_s13, %s820_s13   ;;  %s704_s12 = sphi %s734_s12, %s819_s12  }
   0x3   : > { %p27_p1 = scmp.ge.s32.totalorder %s25_s15, 2  ;;  %p169_p2 = scmp.lt.s32.totalorder %s712_s14, 3 }
   0x5   : > { %s822_s15 = smov (%p27_p1, %s25_s15), 0  ;;  %p170_p3 = pnand %p575_p0, %p169_p2 }
   0x6   : > { %v677_v0 = vld [vmem:[%s816_s1] sm:$0xff] (!%p170_p3)   ;;  %s576_s18 = sshll.u32 (!%p170_p3), %s704_s12, 4  ;;  %v678_v1 = vld [vmem:[%s816_s1 + $0x8] sm:$0xff] (!%p170_p3)   ;;  %v679_v2 = vld [vmem:[%s816_s1 + $0x10] sm:$0xff] (!%p170_p3)   ;;  %vm329_vm0 = vcmask (!%p170_p3), 654336  }
   0x7   : > { %173 = sbr.rel (%p170_p3) target bundleno = 253 (0xfd), region = 32  ;;  %p204_p4 = scmp.lt.s32.totalorder (!%p170_p3), %s576_s18, 31  ;;  %617 = vmatprep.subr.bf16.mxu0 (!%p170_p3), %v677_v0  ;;  %643 = vmatprep.subr.bf16.mxu1 (!%p170_p3), %v677_v0  ;;  %v680_v3 = vld [vmem:[%s816_s1 + $0x18] sm:$0xff] (!%p170_p3)   ;;  %v681_v6 = vld [vmem:[%s816_s1 + $0x20] sm:$0xff] (!%p170_p3)  }
   0x8   : > { %618 = vmatpush3.bf16.msra.mxu0 (!%p170_p3), %v677_v0  ;;  %648 = vmatpush3.bf16.msra.mxu1 (!%p170_p3), %v677_v0  ;;  %v580_v13 = vld [vmem:[%s817_s2] ss:$0 sm:$0xff] (!%p170_p3) }
   0x9   : > { %619 = vmatprep.subr.bf16.mxu0 (!%p170_p3), %v678_v1  ;;  %644 = vmatprep.subr.bf16.mxu1 (!%p170_p3), %v678_v1 }
   0xc   : > { %620 = vmatpush3.bf16.msra.mxu0 (!%p170_p3), %v678_v1  ;;  %649 = vmatpush3.bf16.msra.mxu1 (!%p170_p3), %v678_v1 }
   0xd   : > { %621 = vmatprep.subr.bf16.mxu0 (!%p170_p3), %v679_v2  ;;  %645 = vmatprep.subr.bf16.mxu1 (!%p170_p3), %v679_v2 }
   0xe   : > { %s824_s18 = smov (!%p204_p4, %s576_s18), 31 }
   0xf   : > { %s577_s23 = sshll.u32 %s824_s18, 2  ;;  %s579_s4 = sshll.u32 %s824_s18, 3 }
  0x10   : > { %s207_s28 = scalar_lea.vmem %s815_s0, %s577_s23  ;;  %622 = vmatpush3.bf16.msra.mxu0 %v679_v2  ;;  %650 = vmatpush3.bf16.msra.mxu1 %v679_v2  ;;  %s788_s9 = scalar_lea.vmem %s818_s3, %s579_s4 }
  0x11   : > { %v682_v4 = vld [vmem:[%s207_s28] sm:$0xff]   ;;  %623 = vmatprep.subr.bf16.mxu0 %v680_v3  ;;  %646 = vmatprep.subr.bf16.mxu1 %v680_v3  ;;  %v684_v7 = vld [vmem:[%s207_s28 + $0x8] sm:$0xff]   ;;  %v686_v9 = vld [vmem:[%s207_s28 + $0x10] sm:$0xff]  }
  0x12   : > { %v683_v5 = vld [vmem:[%s207_s28 + $0x20] sm:$0xff]   ;;  %627 = vmatprep.mubr.msk.bf16.mxu0 %vm329_vm0, %v682_v4  ;;  %v685_v8 = vld [vmem:[%s207_s28 + $0x28] sm:$0xff]   ;;  %v687_v10 = vld [vmem:[%s207_s28 + $0x30] sm:$0xff]  }
  0x13   : > { %635 = vmatprep.mubr.msk.bf16.mxu1 %vm329_vm0, %v683_v5  ;;  %v688_v11 = vld [vmem:[%s207_s28 + $0x18] sm:$0xff]  }
  0x14   : > { %624 = vmatpush3.bf16.msra.mxu0 %v680_v3  ;;  %651 = vmatpush3.bf16.msra.mxu1 %v680_v3  ;;  %v689_v12 = vld [vmem:[%s207_s28 + $0x38] sm:$0xff]  }
  0x15   : > { %625 = vmatprep.subr.bf16.mxu0 %v681_v6  ;;  %647 = vmatprep.subr.bf16.mxu1 %v681_v6 }
  0x18   : > { %626 = vmatpush3.bf16.msra.mxu0 %v681_v6  ;;  %652 = vmatpush3.bf16.msra.mxu1 %v681_v6 }
  0x1b   : > { %628 = vmatmul.mubr.msk.bf16.vlgmr.msra.gmra.mrb[0].mxu0 %vm329_vm0, %v684_v7  ;;  %636 = vmatmul.mubr.msk.bf16.vlgmr.msra.gmra.mrb[0].mxu1 %vm329_vm0, %v685_v8 }
  0x1c   : > { %631 = vmatprep.mubr.msk.bf16.mxu0 %vm329_vm0, %v686_v9  ;;  %639 = vmatprep.mubr.msk.bf16.mxu1 %vm329_vm0, %v687_v10 }
  0x23   : > { %632 = vmatmul.mubr.msk.bf16.gmra.mrb[4].mxu0 %vm329_vm0, %v688_v11  ;;  %640 = vmatmul.mubr.msk.bf16.gmra.mrb[4].mxu1 %vm329_vm0, %v689_v12 }
  0xee   : > { %v629_v14 = vpop.f32.mrb[0].mxu0  ;;  %v637_v15 = vpop.f32.mrb[0].mxu1 }
  0xef   : > { %v397_v16 = vadd.f32 %v629_v14, %v580_v13  ;;  %v429_v17 = vadd.f32 %v637_v15, %v580_v13  ;;  %v388_v18 = vpop.f32.mrb[1].mxu0  ;;  %v420_v19 = vpop.f32.mrb[1].mxu1 }
  0xf0   : > { %v389_v20 = vadd.f32 %v580_v13, %v388_v18  ;;  %v421_v21 = vadd.f32 %v580_v13, %v420_v19  ;;  %v630_v22 = vpop.f32.mrb[2].mxu0  ;;  %v638_v23 = vpop.f32.mrb[2].mxu1 }
  0xf1   : > { %453 = vst [vmem:[%s788_s9 + $0x10] sm:$0xff] %v397_v16  ;;  %461 = vst [vmem:[%s788_s9 + $0x50] sm:$0xff] %v429_v17  ;;  %v400_v24 = vadd.f32 %v630_v22, %v580_v13  ;;  %v432_v25 = vadd.f32 %v638_v23, %v580_v13  ;;  %v391_v26 = vpop.f32.mrb[3].mxu0  ;;  %v423_v27 = vpop.f32.mrb[3].mxu1 }
  0xf2   : > { %451 = vst [vmem:[%s788_s9] sm:$0xff] %v389_v20  ;;  %459 = vst [vmem:[%s788_s9 + $0x40] sm:$0xff] %v421_v21  ;;  %v392_v28 = vadd.f32 %v580_v13, %v391_v26  ;;  %v424_v29 = vadd.f32 %v580_v13, %v423_v27 }
  0xf3   : > { %454 = vst [vmem:[%s788_s9 + $0x18] sm:$0xff] %v400_v24  ;;  %462 = vst [vmem:[%s788_s9 + $0x58] sm:$0xff] %v432_v25 }
  0xf4   : > { %452 = vst [vmem:[%s788_s9 + $0x8] sm:$0xff] %v392_v28  ;;  %460 = vst [vmem:[%s788_s9 + $0x48] sm:$0xff] %v424_v29 }
  0xf6   : > { %v633_v30 = vpop.f32.mrb[4].mxu0  ;;  %v641_v31 = vpop.f32.mrb[4].mxu1 }
  0xf7   : > { %v413_v32 = vadd.f32 %v633_v30, %v580_v13  ;;  %v445_v33 = vadd.f32 %v641_v31, %v580_v13  ;;  %v404_v34 = vpop.f32.mrb[5].mxu0  ;;  %v436_v35 = vpop.f32.mrb[5].mxu1 }
  0xf8   : > { %v405_v36 = vadd.f32 %v580_v13, %v404_v34  ;;  %v437_v37 = vadd.f32 %v580_v13, %v436_v35  ;;  %v634_v38 = vpop.f32.mrb[6].mxu0  ;;  %v642_v39 = vpop.f32.mrb[6].mxu1 }
  0xf9   : > { %457 = vst [vmem:[%s788_s9 + $0x30] sm:$0xff] %v413_v32  ;;  %465 = vst [vmem:[%s788_s9 + $0x70] sm:$0xff] %v445_v33  ;;  %v416_v40 = vadd.f32 %v634_v38, %v580_v13  ;;  %v448_v41 = vadd.f32 %v642_v39, %v580_v13  ;;  %v407_v42 = vpop.f32.mrb[7].mxu0  ;;  %v439_v43 = vpop.f32.mrb[7].mxu1 }
  0xfa   : > { %455 = vst [vmem:[%s788_s9 + $0x20] sm:$0xff] %v405_v36  ;;  %463 = vst [vmem:[%s788_s9 + $0x60] sm:$0xff] %v437_v37  ;;  %v408_v44 = vadd.f32 %v580_v13, %v407_v42  ;;  %v440_v45 = vadd.f32 %v580_v13, %v439_v43 }
  0xfb   : > { %458 = vst [vmem:[%s788_s9 + $0x38] sm:$0xff] %v416_v40  ;;  %466 = vst [vmem:[%s788_s9 + $0x78] sm:$0xff] %v448_v41 }
  0xfc   : > { %456 = vst [vmem:[%s788_s9 + $0x28] sm:$0xff] %v408_v44  ;;  %464 = vst [vmem:[%s788_s9 + $0x68] sm:$0xff] %v440_v45 }
  0xfd PF: > { %s13_s14 = sadd.s32 1, %s712_s14   ;;  %s819_s12 = smov %s708_s13 }
  0xfe   : > { %p10_p5 = scmp.ge.s32.totalorder %s13_s14, 4   ;;  %s820_s13 = smov %s822_s15 }
 0x100   :  { %12 = sbr.rel (!%p10_p5) target bundleno = 2 (0x2), region = 68 }

// kernel: model_fwd.219
= control target key start
LH: loop header
LB: loop body
LE: loop exit
PB: predicated region body
PF: predicated region fallthrough
CT: control target
= control target key end

     0   :  { %s822_s12 = smov 0   ;;  %s824_s13 = smov 0   ;;  %s954_s0 = inlined_call_operand.vmem [shape: bf16[256,144], index: 0, kind: input, shape index: {}]   ;;  %s955_s1 = inlined_call_operand.vmem [shape: bf16[144,128], index: 1, kind: input, shape index: {}]   ;;  %s956_s2 = inlined_call_operand.vmem [shape: f32[1,128], index: 2, kind: input, shape index: {}]   ;;  %s957_s3 = inlined_call_operand.vmem [shape: f32[256,128], index: 3, kind: output, shape index: {}]  }
   0x1   :  { %s826_s14 = smov 0  }
   0x2 LB: > { %s25_s15 = sadd.s32 1, %s795_s13  ;;  %p658_p0 = scmp.ge.s32.totalorder %s799_s14, 1  ;;  %s799_s14 = sphi %s826_s14, %s13_s14   ;;  %s795_s13 = sphi %s824_s13, %s959_s13   ;;  %s791_s12 = sphi %s822_s12, %s958_s12  }
   0x3   : > { %p27_p1 = scmp.ge.s32.totalorder %s25_s15, 2  ;;  %p170_p2 = scmp.lt.s32.totalorder %s799_s14, 3 }
   0x5   : > { %s961_s15 = smov (%p27_p1, %s25_s15), 0  ;;  %p171_p3 = pnand %p658_p0, %p170_p2 }
   0x6   : > { %v744_v0 = vld [vmem:[%s955_s1] sm:$0xff] (!%p171_p3)   ;;  %v801_v1 = vmov (!%p171_p3), 0   ;;  %s659_s18 = sshll.u32 (!%p171_p3), %s791_s12, 4  ;;  %v745_v2 = vld [vmem:[%s955_s1 + $0x8] sm:$0xff] (!%p171_p3)   ;;  %v746_v3 = vld [vmem:[%s955_s1 + $0x10] sm:$0xff] (!%p171_p3)   ;;  %vm396_vm0 = vcmask (!%p171_p3), 130048  }
   0x7   : > { %174 = sbr.rel (%p171_p3) target bundleno = 286 (0x11e), region = 32  ;;  %421 = vmatprep.subr.bf16.mxu0 (!%p171_p3), %v801_v1  ;;  %701 = vmatprep.subr.bf16.mxu1 (!%p171_p3), %v801_v1  ;;  %p206_p4 = scmp.lt.s32.totalorder (!%p171_p3), %s659_s18, 31  ;;  %v747_v4 = vld [vmem:[%s955_s1 + $0x18] sm:$0xff] (!%p171_p3)   ;;  %v748_v7 = vld [vmem:[%s955_s1 + $0x20] sm:$0xff] (!%p171_p3)   ;;  %v749_v8 = vld [vmem:[%s955_s1 + $0x28] sm:$0xff] (!%p171_p3)  }
   0x8   : > { %422 = vmatpush1.bf16.msra.mxu0 (!%p171_p3), %v744_v0  ;;  %710 = vmatpush1.bf16.msra.mxu1 (!%p171_p3), %v744_v0  ;;  %v750_v9 = vld [vmem:[%s955_s1 + $0x30] sm:$0xff] (!%p171_p3)   ;;  %v751_v10 = vld [vmem:[%s955_s1 + $0x38] sm:$0xff] (!%p171_p3)   ;;  %v752_v11 = vld [vmem:[%s955_s1 + $0x40] sm:$0xff] (!%p171_p3)  }
   0x9   : > { %423 = vmatprep.subr.bf16.mxu0 (!%p171_p3), %v801_v1  ;;  %702 = vmatprep.subr.bf16.mxu1 (!%p171_p3), %v801_v1  ;;  %v904_v26 = vld [vmem:[%s956_s2] ss:$0 sm:$0xff] (!%p171_p3) }
   0xc   : > { %424 = vmatpush1.bf16.msra.mxu0 (!%p171_p3), %v745_v2  ;;  %711 = vmatpush1.bf16.msra.mxu1 (!%p171_p3), %v745_v2 }
   0xd   : > { %425 = vmatprep.subr.bf16.mxu0 (!%p171_p3), %v801_v1  ;;  %703 = vmatprep.subr.bf16.mxu1 (!%p171_p3), %v801_v1 }
   0xe   : > { %s963_s18 = smov (!%p206_p4, %s659_s18), 31 }
   0xf   : > { %s700_s23 = sshll.u32 %s963_s18, 3 }
  0x10   : > { %s857_s26 = scalar_lea.vmem %s954_s0, %s700_s23  ;;  %426 = vmatpush1.bf16.msra.mxu0 %v746_v3  ;;  %712 = vmatpush1.bf16.msra.mxu1 %v746_v3  ;;  %s913_s20 = scalar_lea.vmem %s957_s3, %s700_s23 }
  0x11   : > { %v755_v5 = vld [vmem:[%s857_s26 + $0x4] ss:$8 sps:$4 sm:$0xff]   ;;  %427 = vmatprep.subr.bf16.mxu0 %v801_v1  ;;  %704 = vmatprep.subr.bf16.mxu1 %v801_v1  ;;  %v753_v12 = vld [vmem:[%s857_s26] ss:$8 sps:$4 sm:$0xff]   ;;  %v759_v14 = vld [vmem:[%s857_s26 + $0x14] ss:$8 sps:$4 sm:$0xff]  }
  0x12   : > { %v758_v6 = vld [vmem:[%s857_s26 + $0x44] ss:$8 sps:$4 sm:$0xff]   ;;  %690 = vmatprep.mubr.msk.bf16.mxu0 %vm396_vm0, %v755_v5  ;;  %v756_v13 = vld [vmem:[%s857_s26 + $0x40] ss:$8 sps:$4 sm:$0xff]   ;;  %v761_v15 = vld [vmem:[%s857_s26 + $0x54] ss:$8 sps:$4 sm:$0xff]  }
  0x13   : > { %694 = vmatprep.mubr.msk.bf16.mxu1 %vm396_vm0, %v758_v6  ;;  %v763_v16 = vld [vmem:[%s857_s26 + $0x10] ss:$8 sps:$4 sm:$0xff]   ;;  %v765_v18 = vld [vmem:[%s857_s26 + $0x24] ss:$8 sps:$4 sm:$0xff]   ;;  %v769_v20 = vld [vmem:[%s857_s26 + $0x20] ss:$8 sps:$4 sm:$0xff]  }
  0x14   : > { %428 = vmatpush1.bf16.msra.mxu0 %v747_v4  ;;  %713 = vmatpush1.bf16.msra.mxu1 %v747_v4  ;;  %v764_v17 = vld [vmem:[%s857_s26 + $0x50] ss:$8 sps:$4 sm:$0xff]   ;;  %v767_v19 = vld [vmem:[%s857_s26 + $0x64] ss:$8 sps:$4 sm:$0xff]   ;;  %v770_v21 = vld [vmem:[%s857_s26 + $0x60] ss:$8 sps:$4 sm:$0xff]  }
  0x15   : > { %429 = vmatprep.subr.bf16.mxu0 %v801_v1  ;;  %705 = vmatprep.subr.bf16.mxu1 %v801_v1  ;;  %v771_v22 = vld [vmem:[%s857_s26 + $0x34] ss:$8 sps:$4 sm:$0xff]   ;;  %v775_v24 = vld [vmem:[%s857_s26 + $0x30] ss:$8 sps:$4 sm:$0xff]  }
  0x16   : > { %v773_v23 = vld [vmem:[%s857_s26 + $0x74] ss:$8 sps:$4 sm:$0xff]   ;;  %v776_v25 = vld [vmem:[%s857_s26 + $0x70] ss:$8 sps:$4 sm:$0xff]  }
  0x18   : > { %430 = vmatpush1.bf16.msra.mxu0 %v748_v7  ;;  %714 = vmatpush1.bf16.msra.mxu1 %v748_v7 }
  0x19   : > { %431 = vmatprep.subr.bf16.mxu0 %v801_v1  ;;  %706 = vmatprep.subr.bf16.mxu1 %v801_v1 }
  0x1c   : > { %432 = vmatpush1.bf16.msra.mxu0 %v749_v8  ;;  %715 = vmatpush1.bf16.msra.mxu1 %v749_v8 }
  0x1d   : > { %433 = vmatprep.subr.bf16.mxu0 %v801_v1  ;;  %707 = vmatprep.subr.bf16.mxu1 %v801_v1 }
  0x20   : > { %434 = vmatpush1.bf16.msra.mxu0 %v750_v9  ;;  %716 = vmatpush1.bf16.msra.mxu1 %v750_v9 }
  0x21   : > { %435 = vmatprep.subr.bf16.mxu0 %v801_v1  ;;  %708 = vmatprep.subr.bf16.mxu1 %v801_v1 }
  0x24   : > { %436 = vmatpush1.bf16.msra.mxu0 %v751_v10  ;;  %717 = vmatpush1.bf16.msra.mxu1 %v751_v10 }
  0x25   : > { %437 = vmatprep.subr.bf16.mxu0 %v801_v1  ;;  %709 = vmatprep.subr.bf16.mxu1 %v801_v1 }
  0x28   : > { %438 = vmatpush1.bf16.msra.mxu0 %v752_v11  ;;  %718 = vmatpush1.bf16.msra.mxu1 %v752_v11 }
  0x2b   : > { %454 = vmatmul.mubr.bf16.vlgmr.msra.gmra.mrb[0].mxu0 %v753_v12  ;;  %486 = vmatmul.mubr.bf16.vlgmr.msra.gmra.mrb[0].mxu1 %v756_v13 }
  0x2c   : > { %691 = vmatprep.mubr.msk.bf16.mxu0 %vm396_vm0, %v759_v14  ;;  %695 = vmatprep.mubr.msk.bf16.mxu1 %vm396_vm0, %v761_v15 }
  0x33   : > { %462 = vmatmul.mubr.bf16.gmra.mrb[4].mxu0 %v763_v16  ;;  %494 = vmatmul.mubr.bf16.gmra.mrb[4].mxu1 %v764_v17 }
  0x34   : > { %692 = vmatprep.mubr.msk.bf16.mxu0 %vm396_vm0, %v765_v18  ;;  %696 = vmatprep.mubr.msk.bf16.mxu1 %vm396_vm0, %v767_v19 }
  0x3b   : > { %470 = vmatmul.mubr.bf16.gmra.mrb[8].mxu0 %v769_v20  ;;  %502 = vmatmul.mubr.bf16.gmra.mrb[8].mxu1 %v770_v21 }
  0x3c   : > { %693 = vmatprep.mubr.msk.bf16.mxu0 %vm396_vm0, %v771_v22  ;;  %697 = vmatprep.mubr.msk.bf16.mxu1 %vm396_vm0, %v773_v23 }
  0x43   : > { %478 = vmatmul.mubr.bf16.gmra.mrb[12].mxu0 %v775_v24  ;;  %510 = vmatmul.mubr.bf16.gmra.mrb[12].mxu1 %v776_v25 }
  0xfe   : > { %v455_v27 = vpop.f32.mrb[0].mxu0  ;;  %v487_v28 = vpop.f32.mrb[0].mxu1 }
  0xff   : > { %v456_v29 = vadd.f32 %v904_v26, %v455_v27  ;;  %v488_v30 = vadd.f32 %v904_v26, %v487_v28  ;;  %v457_v31 = vpop.f32.mrb[1].mxu0  ;;  %v489_v32 = vpop.f32.mrb[1].mxu1 }
 0x100   : > { %v458_v33 = vpop.f32.mrb[2].mxu0  ;;  %v490_v34 = vpop.f32.mrb[2].mxu1 }
 0x101   : > { %v518_v35 = vmax.f32 %v456_v29, 0.0  ;;  %v526_v36 = vmax.f32 %v488_v30, 0.0  ;;  %v459_v37 = vadd.f32 %v904_v26, %v458_v33  ;;  %v491_v38 = vadd.f32 %v904_v26, %v490_v34  ;;  %v460_v39 = vpop.f32.mrb[3].mxu0  ;;  %v492_v40 = vpop.f32.mrb[3].mxu1 }
 0x103   : > { %534 = vst [vmem:[%s913_s20] sm:$0xff] %v518_v35  ;;  %542 = vst [vmem:[%s913_s20 + $0x40] sm:$0xff] %v526_v36  ;;  %v519_v41 = vmax.f32 %v459_v37, 0.0  ;;  %v527_v42 = vmax.f32 %v491_v38, 0.0 }
 0x105   : > { %535 = vst [vmem:[%s913_s20 + $0x8] sm:$0xff] %v519_v41  ;;  %543 = vst [vmem:[%s913_s20 + $0x48] sm:$0xff] %v527_v42 }
 0x106   : > { %v463_v43 = vpop.f32.mrb[4].mxu0  ;;  %v495_v44 = vpop.f32.mrb[4].mxu1 }
 0x107   : > { %v464_v45 = vadd.f32 %v904_v26, %v463_v43  ;;  %v496_v46 = vadd.f32 %v904_v26, %v495_v44  ;;  %v465_v47 = vpop.f32.mrb[5].mxu0  ;;  %v497_v48 = vpop.f32.mrb[5].mxu1 }
 0x108   : > { %v466_v49 = vpop.f32.mrb[6].mxu0  ;;  %v498_v50 = vpop.f32.mrb[6].mxu1 }
 0x109   : > { %v520_v51 = vmax.f32 %v464_v45, 0.0  ;;  %v528_v52 = vmax.f32 %v496_v46, 0.0  ;;  %v467_v53 = vadd.f32 %v904_v26, %v466_v49  ;;  %v499_v54 = vadd.f32 %v904_v26, %v498_v50  ;;  %v468_v55 = vpop.f32.mrb[7].mxu0  ;;  %v500_v56 = vpop.f32.mrb[7].mxu1 }
 0x10b   : > { %536 = vst [vmem:[%s913_s20 + $0x10] sm:$0xff] %v520_v51  ;;  %544 = vst [vmem:[%s913_s20 + $0x50] sm:$0xff] %v528_v52  ;;  %v521_v57 = vmax.f32 %v467_v53, 0.0  ;;  %v529_v58 = vmax.f32 %v499_v54, 0.0 }
 0x10d   : > { %537 = vst [vmem:[%s913_s20 + $0x18] sm:$0xff] %v521_v57  ;;  %545 = vst [vmem:[%s913_s20 + $0x58] sm:$0xff] %v529_v58 }
 0x10e   : > { %v471_v59 = vpop.f32.mrb[8].mxu0  ;;  %v503_v60 = vpop.f32.mrb[8].mxu1 }
 0x10f   : > { %v472_v61 = vadd.f32 %v904_v26, %v471_v59  ;;  %v504_v62 = vadd.f32 %v904_v26, %v503_v60  ;;  %v473_v63 = vpop.f32.mrb[9].mxu0  ;;  %v505_v0 = vpop.f32.mrb[9].mxu1 }
 0x110   : > { %v474_v1 = vpop.f32.mrb[10].mxu0  ;;  %v506_v2 = vpop.f32.mrb[10].mxu1 }
 0x111   : > { %v522_v3 = vmax.f32 %v472_v61, 0.0  ;;  %v530_v4 = vmax.f32 %v504_v62, 0.0  ;;  %v475_v5 = vadd.f32 %v904_v26, %v474_v1  ;;  %v507_v6 = vadd.f32 %v904_v26, %v506_v2  ;;  %v476_v7 = vpop.f32.mrb[11].mxu0  ;;  %v508_v8 = vpop.f32.mrb[11].mxu1 }
 0x113   : > { %538 = vst [vmem:[%s913_s20 + $0x20] sm:$0xff] %v522_v3  ;;  %546 = vst [vmem:[%s913_s20 + $0x60] sm:$0xff] %v530_v4  ;;  %v523_v9 = vmax.f32 %v475_v5, 0.0  ;;  %v531_v10 = vmax.f32 %v507_v6, 0.0 }
 0x115   : > { %539 = vst [vmem:[%s913_s20 + $0x28] sm:$0xff] %v523_v9  ;;  %547 = vst [vmem:[%s913_s20 + $0x68] sm:$0xff] %v531_v10 }
 0x116   : > { %v479_v11 = vpop.f32.mrb[12].mxu0  ;;  %v511_v12 = vpop.f32.mrb[12].mxu1 }
 0x117   : > { %v480_v13 = vadd.f32 %v904_v26, %v479_v11  ;;  %v512_v14 = vadd.f32 %v904_v26, %v511_v12  ;;  %v481_v15 = vpop.f32.mrb[13].mxu0  ;;  %v513_v16 = vpop.f32.mrb[13].mxu1 }
 0x118   : > { %v482_v17 = vpop.f32.mrb[14].mxu0  ;;  %v514_v18 = vpop.f32.mrb[14].mxu1 }
 0x119   : > { %v524_v19 = vmax.f32 %v480_v13, 0.0  ;;  %v532_v20 = vmax.f32 %v512_v14, 0.0  ;;  %v483_v21 = vadd.f32 %v904_v26, %v482_v17  ;;  %v515_v22 = vadd.f32 %v904_v26, %v514_v18  ;;  %v484_v23 = vpop.f32.mrb[15].mxu0  ;;  %v516_v24 = vpop.f32.mrb[15].mxu1 }
 0x11b   : > { %540 = vst [vmem:[%s913_s20 + $0x30] sm:$0xff] %v524_v19  ;;  %548 = vst [vmem:[%s913_s20 + $0x70] sm:$0xff] %v532_v20  ;;  %v525_v25 = vmax.f32 %v483_v21, 0.0  ;;  %v533_v27 = vmax.f32 %v515_v22, 0.0 }
 0x11d   : > { %541 = vst [vmem:[%s913_s20 + $0x38] sm:$0xff] %v525_v25  ;;  %549 = vst [vmem:[%s913_s20 + $0x78] sm:$0xff] %v533_v27 }
 0x11e PF: > { %s13_s14 = sadd.s32 1, %s799_s14   ;;  %s958_s12 = smov %s795_s13 }
 0x11f   : > { %p10_p5 = scmp.ge.s32.totalorder %s13_s14, 4   ;;  %s959_s13 = smov %s961_s15 }
 0x121   :  { %12 = sbr.rel (!%p10_p5) target bundleno = 2 (0x2), region = 68 }

// kernel: model_fwd.220
= control target key start
LH: loop header
LB: loop body
LE: loop exit
PB: predicated region body
PF: predicated region fallthrough
CT: control target
= control target key end

     0   :  { %s1178_s12 = smov 0   ;;  %s1180_s13 = smov 0   ;;  %s1354_s0 = inlined_call_operand.vmem [shape: bf16[256,288], index: 0, kind: input, shape index: {}]   ;;  %s1355_s1 = inlined_call_operand.vmem [shape: bf16[288,128], index: 1, kind: input, shape index: {}]   ;;  %s1356_s2 = inlined_call_operand.vmem [shape: f32[1,128], index: 2, kind: input, shape index: {}]   ;;  %s1357_s3 = inlined_call_operand.vmem [shape: f32[256,128], index: 3, kind: output, shape index: {}]  }
   0x1   :  { %s1182_s14 = smov 0  }
   0x2 LB: > { %s25_s15 = sadd.s32 1, %s1152_s13  ;;  %p891_p0 = scmp.ge.s32.totalorder %s1156_s14, 1  ;;  %s1156_s14 = sphi %s1182_s14, %s13_s14   ;;  %s1152_s13 = sphi %s1180_s13, %s1359_s13   ;;  %s1148_s12 = sphi %s1178_s12, %s1358_s12  }
   0x3   : > { %p27_p1 = scmp.ge.s32.totalorder %s25_s15, 2  ;;  %p170_p2 = scmp.lt.s32.totalorder %s1156_s14, 3 }
   0x5   : > { %s1361_s15 = smov (%p27_p1, %s25_s15), 0  ;;  %p171_p3 = pnand %p891_p0, %p170_p2 }
   0x6   : > { %v1084_v0 = vld [vmem:[%s1355_s1 + $0x40] sm:$0xff] (!%p171_p3)   ;;  %s892_s18 = sshll.u32 (!%p171_p3), %s1148_s12, 4  ;;  %v1086_v2 = vld [vmem:[%s1355_s1 + $0x48] sm:$0xff] (!%p171_p3)   ;;  %v1088_v4 = vld [vmem:[%s1355_s1 + $0x50] sm:$0xff] (!%p171_p3)   ;;  %vm532_vm0 = vcmask (!%p171_p3), 261120  }
   0x7   : > { %174 = sbr.rel (%p171_p3) target bundleno = 303 (0x12f), region = 32  ;;  %v1085_v1 = vld [vmem:[%s1355_s1] sm:$0xff] (!%p171_p3)   ;;  %949 = vmatprep.subr.bf16.mxu0 (!%p171_p3), %v1084_v0  ;;  %1043 = vmatprep.subr.bf16.mxu1 (!%p171_p3), %v1084_v0  ;;  %p206_p4 = scmp.lt.s32.totalorder (!%p171_p3), %s892_s18, 31  ;;  %v1087_v3 = vld [vmem:[%s1355_s1 + $0x8] sm:$0xff] (!%p171_p3)   ;;  %v1089_v5 = vld [vmem:[%s1355_s1 + $0x10] sm:$0xff] (!%p171_p3)  }
   0x8   : > { %950 = vmatpush3.bf16.msra.mxu0 (!%p171_p3), %v1085_v1  ;;  %1051 = vmatpush3.bf16.msra.mxu1 (!%p171_p3), %v1085_v1  ;;  %v1090_v6 = vld [vmem:[%s1355_s1 + $0x58] sm:$0xff] (!%p171_p3)   ;;  %v1092_v8 = vld [vmem:[%s1355_s1 + $0x60] sm:$0xff] (!%p171_p3)   ;;  %v1094_v10 = vld [vmem:[%s1355_s1 + $0x68] sm:$0xff] (!%p171_p3)  }
   0x9   : > { %951 = vmatprep.subr.bf16.mxu0 (!%p171_p3), %v1086_v2  ;;  %1044 = vmatprep.subr.bf16.mxu1 (!%p171_p3), %v1086_v2  ;;  %v1091_v7 = vld [vmem:[%s1355_s1 + $0x18] sm:$0xff] (!%p171_p3)   ;;  %v1093_v9 = vld [vmem:[%s1355_s1 + $0x20] sm:$0xff] (!%p171_p3)   ;;  %v1095_v13 = vld [vmem:[%s1355_s1 + $0x28] sm:$0xff] (!%p171_p3)  }
   0xa   : > { %v1096_v14 = vld [vmem:[%s1355_s1 + $0x70] sm:$0xff] (!%p171_p3)   ;;  %v1098_v16 = vld [vmem:[%s1355_s1 + $0x78] sm:$0xff] (!%p171_p3)   ;;  %v1106_v19 = vld [vmem:[%s1355_s1 + $0x80] sm:$0xff] (!%p171_p3)  }
   0xb   : > { %v1097_v15 = vld [vmem:[%s1355_s1 + $0x30] sm:$0xff] (!%p171_p3)   ;;  %v1099_v17 = vld [vmem:[%s1355_s1 + $0x38] sm:$0xff] (!%p171_p3)   ;;  %v1113_v23 = vld [vmem:[%s1355_s1 + $0x88] sm:$0xff] (!%p171_p3)  }
   0xc   : > { %952 = vmatpush3.bf16.msra.mxu0 (!%p171_p3), %v1087_v3  ;;  %1052 = vmatpush3.bf16.msra.mxu1 (!%p171_p3), %v1087_v3  ;;  %v1301_v2 = vld [vmem:[%s1356_s2] ss:$0 sm:$0xff] (!%p171_p3) }
   0xd   : > { %953 = vmatprep.subr.bf16.mxu0 (!%p171_p3), %v1088_v4  ;;  %1045 = vmatprep.subr.bf16.mxu1 (!%p171_p3), %v1088_v4 }
   0xe   : > { %s1363_s18 = smov (!%p206_p4, %s892_s18), 31 }
   0xf   : > { %s1059_s4 = smul.u32 12, %s1363_s18  ;;  %s895_s9 = sshll.u32 %s1363_s18, 3 }
  0x10   : > { %954 = vmatpush3.bf16.msra.mxu0 %v1089_v5  ;;  %1053 = vmatpush3.bf16.msra.mxu1 %v1089_v5  ;;  %s1310_s12 = scalar_lea.vmem %s1357_s3, %s895_s9 }
  0x11   : > { %955 = vmatprep.subr.bf16.mxu0 %v1090_v6  ;;  %1046 = vmatprep.subr.bf16.mxu1 %v1090_v6  ;;  %s1229_s11 = scalar_lea.vmem %s1354_s0, %s1059_s4 }
  0x12   : > { %v1102_v11 = vld [vmem:[%s1229_s11 + $0x4] ss:$12 sps:$4 sm:$0xff]   ;;  %v1105_v12 = vld [vmem:[%s1229_s11 + $0x94] ss:$12 sps:$4 sm:$0xff]   ;;  %v1107_v21 = vld [vmem:[%s1229_s11 + $0x1c] ss:$12 sps:$4 sm:$0xff]  }
  0x13   : > { %589 = vmatprep.mubr.bf16.mxu0 %v1102_v11  ;;  %637 = vmatprep.mubr.bf16.mxu1 %v1105_v12  ;;  %v1100_v18 = vld [vmem:[%s1229_s11] ss:$12 sps:$4 sm:$0xff]   ;;  %v1103_v20 = vld [vmem:[%s1229_s11 + $0x90] ss:$12 sps:$4 sm:$0xff]   ;;  %v1111_v24 = vld [vmem:[%s1229_s11 + $0x18] ss:$12 sps:$4 sm:$0xff]  }
  0x14   : > { %956 = vmatpush3.bf16.msra.mxu0 %v1091_v7  ;;  %1054 = vmatpush3.bf16.msra.mxu1 %v1091_v7  ;;  %v1109_v22 = vld [vmem:[%s1229_s11 + $0xac] ss:$12 sps:$4 sm:$0xff]   ;;  %v1112_v25 = vld [vmem:[%s1229_s11 + $0xa8] ss:$12 sps:$4 sm:$0xff]   ;;  %v1117_v28 = vld [vmem:[%s1229_s11 + $0x30] ss:$12 sps:$4 sm:$0xff]  }
  0x15   : > { %957 = vmatprep.subr.bf16.mxu0 %v1092_v8  ;;  %1047 = vmatprep.subr.bf16.mxu1 %v1092_v8  ;;  %v1114_v26 = vld [vmem:[%s1229_s11 + $0x34] ss:$12 sps:$4 sm:$0xff]   ;;  %v1119_v30 = vld [vmem:[%s1229_s11 + $0x4c] ss:$12 sps:$4 sm:$0xff]   ;;  %v1123_v33 = vld [vmem:[%s1229_s11 + $0x50] ss:$12 sps:$4 sm:$0xff]  }
  0x16   : > { %v1116_v27 = vld [vmem:[%s1229_s11 + $0x8] ss:$12 sps:$4 sm:$0xff]   ;;  %v1118_v29 = vld [vmem:[%s1229_s11 + $0x20] ss:$12 sps:$4 sm:$0xff]   ;;  %v1121_v31 = vld [vmem:[%s1229_s11 + $0x38] ss:$12 sps:$4 sm:$0xff]  }
  0x17   : > { %v1122_v32 = vld [vmem:[%s1229_s11 + $0x48] ss:$12 sps:$4 sm:$0xff]   ;;  %v1124_v34 = vld [vmem:[%s1229_s11 + $0x64] ss:$12 sps:$4 sm:$0xff]   ;;  %v1127_v36 = vld [vmem:[%s1229_s11 + $0x60] ss:$12 sps:$4 sm:$0xff]  }
  0x18   : > { %958 = vmatpush3.bf16.msra.mxu0 %v1093_v9  ;;  %1055 = vmatpush3.bf16.msra.mxu1 %v1093_v9  ;;  %v1126_v35 = vld [vmem:[%s1229_s11 + $0x68] ss:$12 sps:$4 sm:$0xff]   ;;  %v1128_v37 = vld [vmem:[%s1229_s11 + $0x80] ss:$12 sps:$4 sm:$0xff]   ;;  %v1131_v39 = vld [vmem:[%s1229_s11 + $0x98] ss:$12 sps:$4 sm:$0xff]  }
  0x19   : > { %959 = vmatprep.subr.bf16.mxu0 %v1094_v10  ;;  %1048 = vmatprep.subr.bf16.mxu1 %v1094_v10  ;;  %v1129_v38 = vld [vmem:[%s1229_s11 + $0x7c] ss:$12 sps:$4 sm:$0xff]   ;;  %v1132_v40 = vld [vmem:[%s1229_s11 + $0x78] ss:$12 sps:$4 sm:$0xff]  }
  0x1a   : > { %v1133_v41 = vld [vmem:[%s1229_s11 + $0xb0] ss:$12 sps:$4 sm:$0xff]  }
  0x1c   : > { %960 = vmatpush3.bf16.msra.mxu0 %v1095_v13  ;;  %1056 = vmatpush3.bf16.msra.mxu1 %v1095_v13 }
  0x1d   : > { %961 = vmatprep.subr.bf16.mxu0 %v1096_v14  ;;  %1049 = vmatprep.subr.bf16.mxu1 %v1096_v14 }
  0x20   : > { %962 = vmatpush3.bf16.msra.mxu0 %v1097_v15  ;;  %1057 = vmatpush3.bf16.msra.mxu1 %v1097_v15 }
  0x21   : > { %963 = vmatprep.subr.bf16.mxu0 %v1098_v16  ;;  %1050 = vmatprep.subr.bf16.mxu1 %v1098_v16 }
  0x24   : > { %964 = vmatpush3.bf16.msra.mxu0 %v1099_v17  ;;  %1058 = vmatpush3.bf16.msra.mxu1 %v1099_v17 }
  0x25   : > { %1023 = vmatprep.subr.bf16.mxu1 %v1106_v19 }
  0x27   : > { %590 = vmatmul.mubr.bf16.vlgmr.msra.gmra.mrb[0].mxu0 %v1100_v18  ;;  %638 = vmatmul.mubr.bf16.vlgmr.msra.gmra.mrb[0].mxu1 %v1103_v20 }
  0x28   : > { %1024 = vmatpush3.bf16.msra.mxu1 %v1106_v19  ;;  %597 = vmatprep.mubr.bf16.mxu0 %v1107_v21 }
  0x29   : > { %645 = vmatprep.mubr.bf16.mxu1 %v1109_v22  ;;  %1025 = vmatprep.subr.bf16.mxu1 %v1113_v23 }
  0x2c   : > { %1026 = vmatpush3.bf16.msra.mxu1 %v1113_v23 }
  0x2f   : > { %598 = vmatmul.mubr.bf16.gmra.mrb[4].mxu0 %v1111_v24  ;;  %646 = vmatmul.mubr.bf16.gmra.mrb[4].mxu1 %v1112_v25 }
  0x30   : > { %605 = vmatprep.mubr.bf16.mxu0 %v1114_v26  ;;  %1027 = vmatprep.mubr.msk.bf16.mxu1 %vm532_vm0, %v1116_v27 }
  0x37   : > { %606 = vmatmul.mubr.bf16.gmra.mrb[8].mxu0 %v1117_v28  ;;  %1028 = vmatmul.mubr.msk.bf16.vlgmr.msra.gmra.mrb[8].mxu1 %vm532_vm0, %v1118_v29 }
  0x38   : > { %613 = vmatprep.mubr.bf16.mxu0 %v1119_v30  ;;  %1031 = vmatprep.mubr.msk.bf16.mxu1 %vm532_vm0, %v1121_v31 }
  0x3f   : > { %614 = vmatmul.mubr.bf16.gmra.mrb[12].mxu0 %v1122_v32  ;;  %1032 = vmatmul.mubr.msk.bf16.gmra.mrb[12].mxu1 %vm532_vm0, %v1123_v33 }
  0x40   : > { %621 = vmatprep.mubr.bf16.mxu0 %v1124_v34  ;;  %1035 = vmatprep.mubr.msk.bf16.mxu1 %vm532_vm0, %v1126_v35 }
  0x47   : > { %622 = vmatmul.mubr.bf16.gmra.mrb[16].mxu0 %v1127_v36  ;;  %1036 = vmatmul.mubr.msk.bf16.gmra.mrb[16].mxu1 %vm532_vm0, %v1128_v37 }
  0x48   : > { %629 = vmatprep.mubr.bf16.mxu0 %v1129_v38  ;;  %1039 = vmatprep.mubr.msk.bf16.mxu1 %vm532_vm0, %v1131_v39 }
  0x4f   : > { %630 = vmatmul.mubr.bf16.gmra.mrb[20].mxu0 %v1132_v40  ;;  %1040 = vmatmul.mubr.msk.bf16.gmra.mrb[20].mxu1 %vm532_vm0, %v1133_v41 }
  0xfa   : > { %v965_v42 = vpop.f32.mrb[0].mxu0  ;;  %v1001_v43 = vpop.f32.mrb[0].mxu1 }
  0xfb   : > { %v966_v44 = vpop.f32.mrb[1].mxu0  ;;  %v1002_v45 = vpop.f32.mrb[1].mxu1 }
  0xfc   : > { %v967_v46 = vadd.f32 %v966_v44, %v965_v42  ;;  %v968_v47 = vpop.f32.mrb[2].mxu0  ;;  %v1290_v48 = vadd.f32 %v1002_v45, %v1001_v43  ;;  %v1004_v49 = vpop.f32.mrb[2].mxu1 }
  0xfd   : > { %v969_v50 = vpop.f32.mrb[3].mxu0  ;;  %v1005_v51 = vpop.f32.mrb[3].mxu1 }
  0xfe   : > { %v970_v52 = vadd.f32 %v969_v50, %v968_v47  ;;  %v1292_v53 = vadd.f32 %v1005_v51, %v1004_v49  ;;  %v592_v6 = vadd.f32 %v967_v46, %v1301_v2 }
 0x100   : > { %v595_v15 = vadd.f32 %v970_v52, %v1301_v2 }
 0x102   : > { %v971_v54 = vpop.f32.mrb[4].mxu0  ;;  %v1007_v55 = vpop.f32.mrb[4].mxu1 }
 0x103   : > { %v972_v56 = vpop.f32.mrb[5].mxu0  ;;  %v1008_v57 = vpop.f32.mrb[5].mxu1 }
 0x104   : > { %v973_v58 = vadd.f32 %v972_v56, %v971_v54  ;;  %v974_v59 = vpop.f32.mrb[6].mxu0  ;;  %v1294_v60 = vadd.f32 %v1008_v57, %v1007_v55  ;;  %v1010_v61 = vpop.f32.mrb[6].mxu1 }
 0x105   : > { %v975_v62 = vpop.f32.mrb[7].mxu0  ;;  %v1011_v63 = vpop.f32.mrb[7].mxu1 }
 0x106   : > { %v976_v0 = vadd.f32 %v975_v62, %v974_v59  ;;  %v1296_v1 = vadd.f32 %v1011_v63, %v1010_v61  ;;  %v600_v3 = vadd.f32 %v973_v58, %v1301_v2  ;;  %v648_v63 = vadd.f32 %v1294_v60, %v1301_v2 }
 0x108   : > { %v603_v10 = vadd.f32 %v976_v0, %v1301_v2 }
 0x10a   : > { %v977_v4 = vpop.f32.mrb[8].mxu0  ;;  %v1029_v5 = vpop.f32.mrb[8].mxu1 }
 0x10b   : > { %v697_v7 = vadd.f32 %v1029_v5, %v600_v3  ;;  %v978_v8 = vpop.f32.mrb[9].mxu0  ;;  %v688_v9 = vpop.f32.mrb[9].mxu1 }
 0x10c   : > { %v979_v11 = vadd.f32 %v978_v8, %v977_v4  ;;  %v689_v12 = vadd.f32 %v688_v9, %v592_v6  ;;  %v980_v13 = vpop.f32.mrb[10].mxu0  ;;  %v1030_v14 = vpop.f32.mrb[10].mxu1  ;;  %v640_v6 = vadd.f32 %v1290_v48, %v1301_v2 }
 0x10d   : > { %v753_v16 = vmax.f32 %v697_v7, 0.0  ;;  %v700_v17 = vadd.f32 %v1030_v14, %v603_v10  ;;  %v981_v18 = vpop.f32.mrb[11].mxu0  ;;  %v691_v19 = vpop.f32.mrb[11].mxu1  ;;  %v651_v10 = vadd.f32 %v1296_v1, %v1301_v2 }
 0x10e   : > { %v751_v20 = vmax.f32 %v689_v12, 0.0  ;;  %v982_v21 = vadd.f32 %v981_v18, %v980_v13  ;;  %v692_v22 = vadd.f32 %v691_v19, %v595_v15  ;;  %v608_v27 = vadd.f32 %v979_v11, %v1301_v2 }
 0x10f   : > { %769 = vst [vmem:[%s1310_s12 + $0x10] sm:$0xff] %v753_v16  ;;  %v754_v23 = vmax.f32 %v700_v17, 0.0  ;;  %v643_v15 = vadd.f32 %v1292_v53, %v1301_v2 }
 0x110   : > { %767 = vst [vmem:[%s1310_s12] sm:$0xff] %v751_v20  ;;  %v752_v24 = vmax.f32 %v692_v22, 0.0  ;;  %v611_v34 = vadd.f32 %v982_v21, %v1301_v2 }
 0x111   : > { %770 = vst [vmem:[%s1310_s12 + $0x18] sm:$0xff] %v754_v23 }
 0x112   : > { %768 = vst [vmem:[%s1310_s12 + $0x8] sm:$0xff] %v752_v24  ;;  %v983_v25 = vpop.f32.mrb[12].mxu0  ;;  %v1033_v26 = vpop.f32.mrb[12].mxu1 }
 0x113   : > { %v984_v28 = vpop.f32.mrb[13].mxu0  ;;  %v704_v29 = vpop.f32.mrb[13].mxu1 }
 0x114   : > { %v985_v30 = vadd.f32 %v984_v28, %v983_v25  ;;  %v705_v31 = vadd.f32 %v704_v29, %v608_v27  ;;  %v986_v32 = vpop.f32.mrb[14].mxu0  ;;  %v1034_v33 = vpop.f32.mrb[14].mxu1 }
 0x115   : > { %v987_v35 = vpop.f32.mrb[15].mxu0  ;;  %v707_v36 = vpop.f32.mrb[15].mxu1 }
 0x116   : > { %v616_v37 = vadd.f32 %v985_v30, %v1301_v2  ;;  %v755_v38 = vmax.f32 %v705_v31, 0.0  ;;  %v988_v39 = vadd.f32 %v987_v35, %v986_v32  ;;  %v708_v40 = vadd.f32 %v707_v36, %v611_v34 }
 0x118   : > { %v713_v41 = vadd.f32 %v1033_v26, %v616_v37  ;;  %771 = vst [vmem:[%s1310_s12 + $0x20] sm:$0xff] %v755_v38  ;;  %v619_v42 = vadd.f32 %v988_v39, %v1301_v2  ;;  %v756_v43 = vmax.f32 %v708_v40, 0.0 }
 0x11a   : > { %v757_v44 = vmax.f32 %v713_v41, 0.0  ;;  %v716_v45 = vadd.f32 %v1034_v33, %v619_v42  ;;  %772 = vst [vmem:[%s1310_s12 + $0x28] sm:$0xff] %v756_v43  ;;  %v989_v46 = vpop.f32.mrb[16].mxu0  ;;  %v1037_v47 = vpop.f32.mrb[16].mxu1 }
 0x11b   : > { %v990_v49 = vpop.f32.mrb[17].mxu0  ;;  %v720_v50 = vpop.f32.mrb[17].mxu1 }
 0x11c   : > { %773 = vst [vmem:[%s1310_s12 + $0x30] sm:$0xff] %v757_v44  ;;  %v758_v51 = vmax.f32 %v716_v45, 0.0  ;;  %v991_v52 = vadd.f32 %v990_v49, %v989_v46  ;;  %v992_v54 = vpop.f32.mrb[18].mxu0  ;;  %v1038_v55 = vpop.f32.mrb[18].mxu1 }
 0x11d   : > { %v993_v56 = vpop.f32.mrb[19].mxu0  ;;  %v723_v57 = vpop.f32.mrb[19].mxu1 }
 0x11e   : > { %774 = vst [vmem:[%s1310_s12 + $0x38] sm:$0xff] %v758_v51  ;;  %v624_v58 = vadd.f32 %v991_v52, %v1301_v2  ;;  %v994_v59 = vadd.f32 %v993_v56, %v992_v54 }
 0x120   : > { %v721_v61 = vadd.f32 %v720_v50, %v624_v58  ;;  %v627_v62 = vadd.f32 %v994_v59, %v1301_v2 }
 0x122   : > { %v759_v0 = vmax.f32 %v721_v61, 0.0  ;;  %v724_v3 = vadd.f32 %v723_v57, %v627_v62  ;;  %v995_v4 = vpop.f32.mrb[20].mxu0  ;;  %v1041_v5 = vpop.f32.mrb[20].mxu1 }
 0x123   : > { %v745_v7 = vadd.f32 %v1041_v5, %v648_v63  ;;  %v996_v8 = vpop.f32.mrb[21].mxu0  ;;  %v736_v9 = vpop.f32.mrb[21].mxu1 }
 0x124   : > { %775 = vst [vmem:[%s1310_s12 + $0x40] sm:$0xff] %v759_v0  ;;  %v760_v11 = vmax.f32 %v724_v3, 0.0  ;;  %v997_v12 = vadd.f32 %v996_v8, %v995_v4  ;;  %v737_v13 = vadd.f32 %v736_v9, %v640_v6  ;;  %v998_v60 = vpop.f32.mrb[22].mxu0  ;;  %v1042_v14 = vpop.f32.mrb[22].mxu1 }
 0x125   : > { %v765_v48 = vmax.f32 %v745_v7, 0.0  ;;  %v748_v16 = vadd.f32 %v1042_v14, %v651_v10  ;;  %v999_v17 = vpop.f32.mrb[23].mxu0  ;;  %v739_v18 = vpop.f32.mrb[23].mxu1 }
 0x126   : > { %776 = vst [vmem:[%s1310_s12 + $0x48] sm:$0xff] %v760_v11  ;;  %v632_v1 = vadd.f32 %v997_v12, %v1301_v2  ;;  %v763_v19 = vmax.f32 %v737_v13, 0.0  ;;  %v1000_v20 = vadd.f32 %v999_v17, %v998_v60  ;;  %v740_v21 = vadd.f32 %v739_v18, %v643_v15 }
 0x127   : > { %781 = vst [vmem:[%s1310_s12 + $0x70] sm:$0xff] %v765_v48  ;;  %v766_v22 = vmax.f32 %v748_v16, 0.0 }
 0x128   : > { %v729_v23 = vadd.f32 %v1037_v47, %v632_v1  ;;  %779 = vst [vmem:[%s1310_s12 + $0x60] sm:$0xff] %v763_v19  ;;  %v635_v53 = vadd.f32 %v1000_v20, %v1301_v2  ;;  %v764_v24 = vmax.f32 %v740_v21, 0.0 }
 0x129   : > { %782 = vst [vmem:[%s1310_s12 + $0x78] sm:$0xff] %v766_v22 }
 0x12a   : > { %v761_v25 = vmax.f32 %v729_v23, 0.0  ;;  %v732_v26 = vadd.f32 %v1038_v55, %v635_v53  ;;  %780 = vst [vmem:[%s1310_s12 + $0x68] sm:$0xff] %v764_v24 }
 0x12c   : > { %777 = vst [vmem:[%s1310_s12 + $0x50] sm:$0xff] %v761_v25  ;;  %v762_v27 = vmax.f32 %v732_v26, 0.0 }
 0x12e   : > { %778 = vst [vmem:[%s1310_s12 + $0x58] sm:$0xff] %v762_v27 }
 0x12f PF: > { %s13_s14 = sadd.s32 1, %s1156_s14   ;;  %s1358_s12 = smov %s1152_s13 }
 0x130   : > { %p10_p5 = scmp.ge.s32.totalorder %s13_s14, 4   ;;  %s1359_s13 = smov %s1361_s15 }
 0x132   :  { %12 = sbr.rel (!%p10_p5) target bundleno = 2 (0x2), region = 68 }

// kernel: model_fwd.221
= control target key start
LH: loop header
LB: loop body
LE: loop exit
PB: predicated region body
PF: predicated region fallthrough
CT: control target
= control target key end

     0   :  { %s1281_s12 = smov 0   ;;  %s1283_s13 = smov 0   ;;  %s1494_s0 = inlined_call_operand.vmem [shape: bf16[256,432], index: 0, kind: input, shape index: {}]   ;;  %s1495_s1 = inlined_call_operand.vmem [shape: bf16[432,128], index: 1, kind: input, shape index: {}]   ;;  %s1496_s2 = inlined_call_operand.vmem [shape: f32[1,128], index: 2, kind: input, shape index: {}]   ;;  %s1497_s3 = inlined_call_operand.vmem [shape: f32[256,128], index: 3, kind: output, shape index: {}]  }
   0x1   :  { %s1285_s14 = smov 0  }
   0x2 LB: > { %s25_s15 = sadd.s32 1, %s1254_s13  ;;  %p995_p0 = scmp.ge.s32.totalorder %s1258_s14, 1  ;;  %s1258_s14 = sphi %s1285_s14, %s13_s14   ;;  %s1254_s13 = sphi %s1283_s13, %s1499_s13   ;;  %s1250_s12 = sphi %s1281_s12, %s1498_s12  }
   0x3   : > { %p27_p1 = scmp.ge.s32.totalorder %s25_s15, 2  ;;  %p170_p2 = scmp.lt.s32.totalorder %s1258_s14, 3 }
   0x5   : > { %s1501_s15 = smov (%p27_p1, %s25_s15), 0  ;;  %p171_p3 = pnand %p995_p0, %p170_p2 }
   0x6   : > { %v1161_v0 = vld [vmem:[%s1495_s1 + $0x80] sm:$0xff] (!%p171_p3)   ;;  %v1260_v1 = vmov (!%p171_p3), 0   ;;  %v1164_v4 = vld [vmem:[%s1495_s1 + $0x88] sm:$0xff] (!%p171_p3)   ;;  %v1167_v7 = vld [vmem:[%s1495_s1 + $0x90] sm:$0xff] (!%p171_p3)   ;;  %s996_s9 = sshll.u32 (!%p171_p3), %s1250_s12, 4  ;;  %vm636_vm0 = vcmask (!%p171_p3), 392192  }
   0x7   : > { %174 = sbr.rel (%p171_p3) target bundleno = 326 (0x146), region = 32  ;;  %758 = vmatprep.subr.bf16.mxu1 (!%p171_p3), %v1260_v1  ;;  %v1162_v2 = vld [vmem:[%s1495_s1 + $0x40] sm:$0xff] (!%p171_p3)   ;;  %v1165_v5 = vld [vmem:[%s1495_s1 + $0x48] sm:$0xff] (!%p171_p3)   ;;  %v1168_v8 = vld [vmem:[%s1495_s1 + $0x50] sm:$0xff] (!%p171_p3)   ;;  %p206_p4 = scmp.lt.s32.totalorder (!%p171_p3), %s996_s9, 31 }
   0x8   : > { %759 = vmatpush1.bf16.msra.mxu1 (!%p171_p3), %v1161_v0  ;;  %v1163_v3 = vld [vmem:[%s1495_s1] sm:$0xff] (!%p171_p3)   ;;  %1072 = vmatprep.subr.bf16.mxu0 (!%p171_p3), %v1162_v2  ;;  %v1166_v6 = vld [vmem:[%s1495_s1 + $0x8] sm:$0xff] (!%p171_p3)   ;;  %v1169_v9 = vld [vmem:[%s1495_s1 + $0x10] sm:$0xff] (!%p171_p3)  }
   0x9   : > { %760 = vmatprep.subr.bf16.mxu1 (!%p171_p3), %v1260_v1  ;;  %1073 = vmatpush3.bf16.msra.mxu0 (!%p171_p3), %v1163_v3  ;;  %v1170_v10 = vld [vmem:[%s1495_s1 + $0x98] sm:$0xff] (!%p171_p3)   ;;  %v1174_v13 = vld [vmem:[%s1495_s1 + $0x60] sm:$0xff] (!%p171_p3)   ;;  %v1177_v16 = vld [vmem:[%s1495_s1 + $0x68] sm:$0xff] (!%p171_p3)  }
   0xa   : > { %1074 = vmatprep.subr.bf16.mxu0 (!%p171_p3), %v1165_v5  ;;  %v1171_v11 = vld [vmem:[%s1495_s1 + $0x58] sm:$0xff] (!%p171_p3)   ;;  %v1173_v14 = vld [vmem:[%s1495_s1 + $0xa0] sm:$0xff] (!%p171_p3)   ;;  %v1176_v17 = vld [vmem:[%s1495_s1 + $0xa8] sm:$0xff] (!%p171_p3)  }
   0xb   : > { %v1172_v12 = vld [vmem:[%s1495_s1 + $0x18] sm:$0xff] (!%p171_p3)   ;;  %v1175_v15 = vld [vmem:[%s1495_s1 + $0x20] sm:$0xff] (!%p171_p3)   ;;  %v1178_v18 = vld [vmem:[%s1495_s1 + $0x28] sm:$0xff] (!%p171_p3)  }
   0xc   : > { %761 = vmatpush1.bf16.msra.mxu1 (!%p171_p3), %v1164_v4  ;;  %v1180_v19 = vld [vmem:[%s1495_s1 + $0x70] sm:$0xff] (!%p171_p3)   ;;  %v1182_v22 = vld [vmem:[%s1495_s1 + $0xb8] sm:$0xff] (!%p171_p3)   ;;  %v1185_v26 = vld [vmem:[%s1495_s1 + $0xc0] sm:$0xff] (!%p171_p3)  }
   0xd   : > { %762 = vmatprep.subr.bf16.mxu1 (!%p171_p3), %v1260_v1  ;;  %1075 = vmatpush3.bf16.msra.mxu0 (!%p171_p3), %v1166_v6  ;;  %v1179_v20 = vld [vmem:[%s1495_s1 + $0xb0] sm:$0xff] (!%p171_p3)   ;;  %v1183_v23 = vld [vmem:[%s1495_s1 + $0x78] sm:$0xff] (!%p171_p3)   ;;  %v1189_v30 = vld [vmem:[%s1495_s1 + $0xc8] sm:$0xff] (!%p171_p3)  }
   0xe   : > { %1076 = vmatprep.subr.bf16.mxu0 %v1168_v8  ;;  %s1503_s9 = smov (!%p206_p4, %s996_s9), 31  ;;  %v1181_v21 = vld [vmem:[%s1495_s1 + $0x30] sm:$0xff]   ;;  %v1184_v25 = vld [vmem:[%s1495_s1 + $0x38] sm:$0xff]   ;;  %v1445_v2 = vld [vmem:[%s1496_s2] ss:$0 sm:$0xff] }
   0xf   : > { %s1071_s29 = sshll.u32 %s1503_s9, 4  ;;  %v1190_v31 = vld [vmem:[%s1495_s1 + $0xd0] sm:$0xff]   ;;  %s1000_s30 = sshll.u32 %s1503_s9, 3 }
  0x10   : > { %763 = vmatpush1.bf16.msra.mxu1 %v1167_v7  ;;  %s1378_s16 = scalar_lea.vmem %s1494_s0, %s1071_s29  ;;  %s1453_s6 = scalar_lea.vmem %s1497_s3, %s1000_s30 }
  0x11   : > { %764 = vmatprep.subr.bf16.mxu1 %v1260_v1  ;;  %1077 = vmatpush3.bf16.msra.mxu0 %v1169_v9  ;;  %v1188_v24 = vld [vmem:[%s1378_s16 + $0x4] ss:$16 sps:$4 sm:$0xff]   ;;  %v1195_v27 = vld [vmem:[%s1378_s16 + $0xc] ss:$16 sps:$4 sm:$0xff]   ;;  %v1186_v28 = vld [vmem:[%s1378_s16] ss:$16 sps:$4 sm:$0xff]  }
  0x12   : > { %1078 = vmatprep.subr.bf16.mxu0 %v1171_v11  ;;  %693 = vmatprep.mubr.bf16.mxu0 %v1188_v24  ;;  %v1191_v29 = vld [vmem:[%s1378_s16 + $0x24] ss:$16 sps:$4 sm:$0xff]   ;;  %v1196_v32 = vld [vmem:[%s1378_s16 + $0x20] ss:$16 sps:$4 sm:$0xff]   ;;  %v1193_v34 = vld [vmem:[%s1378_s16 + $0x8] ss:$16 sps:$4 sm:$0xff]  }
  0x13   : > { %1061 = vmatprep.mubr.msk.bf16.mxu1 %vm636_vm0, %v1195_v27  ;;  %v1197_v33 = vld [vmem:[%s1378_s16 + $0x44] ss:$16 sps:$4 sm:$0xff]   ;;  %v1199_v35 = vld [vmem:[%s1378_s16 + $0x2c] ss:$16 sps:$4 sm:$0xff]   ;;  %v1201_v36 = vld [vmem:[%s1378_s16 + $0x40] ss:$16 sps:$4 sm:$0xff]  }
  0x14   : > { %765 = vmatpush1.bf16.msra.mxu1 %v1170_v10  ;;  %v1203_v37 = vld [vmem:[%s1378_s16 + $0x64] ss:$16 sps:$4 sm:$0xff]   ;;  %v1202_v38 = vld [vmem:[%s1378_s16 + $0x28] ss:$16 sps:$4 sm:$0xff]   ;;  %v1205_v39 = vld [vmem:[%s1378_s16 + $0x4c] ss:$16 sps:$4 sm:$0xff]  }
  0x15   : > { %766 = vmatprep.subr.bf16.mxu1 %v1260_v1  ;;  %1079 = vmatpush3.bf16.msra.mxu0 %v1172_v12  ;;  %v1207_v40 = vld [vmem:[%s1378_s16 + $0x60] ss:$16 sps:$4 sm:$0xff]   ;;  %v1209_v41 = vld [vmem:[%s1378_s16 + $0x84] ss:$16 sps:$4 sm:$0xff]   ;;  %v1208_v42 = vld [vmem:[%s1378_s16 + $0x48] ss:$16 sps:$4 sm:$0xff]  }
  0x16   : > { %1080 = vmatprep.subr.bf16.mxu0 %v1174_v13  ;;  %v1211_v43 = vld [vmem:[%s1378_s16 + $0x6c] ss:$16 sps:$4 sm:$0xff]   ;;  %v1213_v44 = vld [vmem:[%s1378_s16 + $0x80] ss:$16 sps:$4 sm:$0xff]   ;;  %v1215_v45 = vld [vmem:[%s1378_s16 + $0xa4] ss:$16 sps:$4 sm:$0xff]  }
  0x17   : > { %v1214_v46 = vld [vmem:[%s1378_s16 + $0x68] ss:$16 sps:$4 sm:$0xff]   ;;  %v1217_v47 = vld [vmem:[%s1378_s16 + $0x8c] ss:$16 sps:$4 sm:$0xff]   ;;  %v1219_v48 = vld [vmem:[%s1378_s16 + $0xa0] ss:$16 sps:$4 sm:$0xff]  }
  0x18   : > { %767 = vmatpush1.bf16.msra.mxu1 %v1173_v14  ;;  %v1221_v49 = vld [vmem:[%s1378_s16 + $0xc4] ss:$16 sps:$4 sm:$0xff]   ;;  %v1220_v50 = vld [vmem:[%s1378_s16 + $0x88] ss:$16 sps:$4 sm:$0xff]   ;;  %v1223_v51 = vld [vmem:[%s1378_s16 + $0xac] ss:$16 sps:$4 sm:$0xff]  }
  0x19   : > { %768 = vmatprep.subr.bf16.mxu1 %v1260_v1  ;;  %1081 = vmatpush3.bf16.msra.mxu0 %v1175_v15  ;;  %v1225_v52 = vld [vmem:[%s1378_s16 + $0xc0] ss:$16 sps:$4 sm:$0xff]   ;;  %v1227_v53 = vld [vmem:[%s1378_s16 + $0xe4] ss:$16 sps:$4 sm:$0xff]   ;;  %v1226_v54 = vld [vmem:[%s1378_s16 + $0xa8] ss:$16 sps:$4 sm:$0xff]  }
  0x1a   : > { %1082 = vmatprep.subr.bf16.mxu0 %v1177_v16  ;;  %v1229_v55 = vld [vmem:[%s1378_s16 + $0xcc] ss:$16 sps:$4 sm:$0xff]   ;;  %v1231_v56 = vld [vmem:[%s1378_s16 + $0xe0] ss:$16 sps:$4 sm:$0xff]   ;;  %v1232_v57 = vld [vmem:[%s1378_s16 + $0xc8] ss:$16 sps:$4 sm:$0xff]  }
  0x1b   : > { %v1233_v58 = vld [vmem:[%s1378_s16 + $0xec] ss:$16 sps:$4 sm:$0xff]   ;;  %v1235_v59 = vld [vmem:[%s1378_s16 + $0xe8] ss:$16 sps:$4 sm:$0xff]  }
  0x1c   : > { %769 = vmatpush1.bf16.msra.mxu1 %v1176_v17 }
  0x1d   : > { %770 = vmatprep.subr.bf16.mxu1 %v1260_v1  ;;  %1083 = vmatpush3.bf16.msra.mxu0 %v1178_v18 }
  0x1e   : > { %1084 = vmatprep.subr.bf16.mxu0 %v1180_v19 }
  0x20   : > { %771 = vmatpush1.bf16.msra.mxu1 %v1179_v20 }
  0x21   : > { %772 = vmatprep.subr.bf16.mxu1 %v1260_v1  ;;  %1085 = vmatpush3.bf16.msra.mxu0 %v1181_v21 }
  0x22   : > { %1086 = vmatprep.subr.bf16.mxu0 %v1183_v23 }
  0x24   : > { %773 = vmatpush1.bf16.msra.mxu1 %v1182_v22 }
  0x25   : > { %774 = vmatprep.subr.bf16.mxu1 %v1260_v1  ;;  %1087 = vmatpush3.bf16.msra.mxu0 %v1184_v25 }
  0x28   : > { %775 = vmatpush1.bf16.msra.mxu1 %v1185_v26  ;;  %694 = vmatmul.mubr.bf16.vlgmr.msra.gmra.mrb[0].mxu0 %v1186_v28 }
  0x29   : > { %776 = vmatprep.subr.bf16.mxu1 %v1260_v1  ;;  %701 = vmatprep.mubr.bf16.mxu0 %v1191_v29 }
  0x2c   : > { %777 = vmatpush1.bf16.msra.mxu1 %v1189_v30 }
  0x2d   : > { %778 = vmatprep.subr.bf16.mxu1 %v1260_v1 }
  0x30   : > { %779 = vmatpush1.bf16.msra.mxu1 %v1190_v31  ;;  %702 = vmatmul.mubr.bf16.gmra.mrb[4].mxu0 %v1196_v32 }
  0x31   : > { %709 = vmatprep.mubr.bf16.mxu0 %v1197_v33 }
  0x33   : > { %791 = vmatmul.mubr.bf16.vlgmr.msra.gmra.mrb[0].mxu1 %v1193_v34 }
  0x34   : > { %1062 = vmatprep.mubr.msk.bf16.mxu1 %vm636_vm0, %v1199_v35 }
  0x38   : > { %710 = vmatmul.mubr.bf16.gmra.mrb[8].mxu0 %v1201_v36 }
  0x39   : > { %717 = vmatprep.mubr.bf16.mxu0 %v1203_v37 }
  0x3b   : > { %799 = vmatmul.mubr.bf16.gmra.mrb[4].mxu1 %v1202_v38 }
  0x3c   : > { %1063 = vmatprep.mubr.msk.bf16.mxu1 %vm636_vm0, %v1205_v39 }
  0x40   : > { %718 = vmatmul.mubr.bf16.gmra.mrb[12].mxu0 %v1207_v40 }
  0x41   : > { %725 = vmatprep.mubr.bf16.mxu0 %v1209_v41 }
  0x43   : > { %807 = vmatmul.mubr.bf16.gmra.mrb[8].mxu1 %v1208_v42 }
  0x44   : > { %1064 = vmatprep.mubr.msk.bf16.mxu1 %vm636_vm0, %v1211_v43 }
  0x48   : > { %726 = vmatmul.mubr.bf16.gmra.mrb[16].mxu0 %v1213_v44 }
  0x49   : > { %733 = vmatprep.mubr.bf16.mxu0 %v1215_v45 }
  0x4b   : > { %815 = vmatmul.mubr.bf16.gmra.mrb[12].mxu1 %v1214_v46 }
  0x4c   : > { %1065 = vmatprep.mubr.msk.bf16.mxu1 %vm636_vm0, %v1217_v47 }
  0x50   : > { %734 = vmatmul.mubr.bf16.gmra.mrb[20].mxu0 %v1219_v48 }
  0x51   : > { %741 = vmatprep.mubr.bf16.mxu0 %v1221_v49 }
  0x53   : > { %823 = vmatmul.mubr.bf16.gmra.mrb[16].mxu1 %v1220_v50 }
  0x54   : > { %1066 = vmatprep.mubr.msk.bf16.mxu1 %vm636_vm0, %v1223_v51 }
  0x58   : > { %742 = vmatmul.mubr.bf16.gmra.mrb[24].mxu0 %v1225_v52 }
  0x59   : > { %749 = vmatprep.mubr.bf16.mxu0 %v1227_v53 }
  0x5b   : > { %831 = vmatmul.mubr.bf16.gmra.mrb[20].mxu1 %v1226_v54 }
  0x5c   : > { %1067 = vmatprep.mubr.msk.bf16.mxu1 %vm636_vm0, %v1229_v55 }
  0x60   : > { %750 = vmatmul.mubr.bf16.gmra.mrb[28].mxu0 %v1231_v56 }
  0x63   : > { %839 = vmatmul.mubr.bf16.gmra.mrb[24].mxu1 %v1232_v57 }
  0x64   : > { %1068 = vmatprep.mubr.msk.bf16.mxu1 %vm636_vm0, %v1233_v58 }
  0x6b   : > { %847 = vmatmul.mubr.bf16.gmra.mrb[28].mxu1 %v1235_v59 }
  0xfb   : > { %v1088_v60 = vpop.f32.mrb[0].mxu0 }
  0xfc   : > { %v1089_v61 = vpop.f32.mrb[1].mxu0 }
  0xfd   : > { %v1090_v62 = vadd.f32 %v1089_v61, %v1088_v60  ;;  %v1091_v63 = vpop.f32.mrb[2].mxu0 }
  0xfe   : > { %v1092_v0 = vpop.f32.mrb[3].mxu0 }
  0xff   : > { %v1093_v1 = vadd.f32 %v1092_v0, %v1091_v63  ;;  %v696_v3 = vadd.f32 %v1090_v62, %v1445_v2 }
 0x101   : > { %v699_v11 = vadd.f32 %v1093_v1, %v1445_v2 }
 0x103   : > { %v1094_v4 = vpop.f32.mrb[4].mxu0 }
 0x104   : > { %v1095_v5 = vpop.f32.mrb[5].mxu0 }
 0x105   : > { %v1096_v7 = vadd.f32 %v1095_v5, %v1094_v4  ;;  %v1097_v8 = vpop.f32.mrb[6].mxu0 }
 0x106   : > { %v792_v6 = vpop.f32.mrb[0].mxu1  ;;  %v1098_v12 = vpop.f32.mrb[7].mxu0 }
 0x107   : > { %v793_v9 = vadd.f32 %v792_v6, %v696_v3  ;;  %v794_v10 = vpop.f32.mrb[1].mxu1  ;;  %v1099_v14 = vadd.f32 %v1098_v12, %v1097_v8  ;;  %v704_v19 = vadd.f32 %v1096_v7, %v1445_v2 }
 0x108   : > { %v795_v13 = vpop.f32.mrb[2].mxu1 }
 0x109   : > { %v855_v15 = vmax.f32 %v793_v9, 0.0  ;;  %v796_v16 = vadd.f32 %v795_v13, %v699_v11  ;;  %v797_v17 = vpop.f32.mrb[3].mxu1  ;;  %v707_v27 = vadd.f32 %v1099_v14, %v1445_v2 }
 0x10b   : > { %871 = vst [vmem:[%s1453_s6] sm:$0xff] %v855_v15  ;;  %v856_v18 = vmax.f32 %v796_v16, 0.0  ;;  %v1100_v20 = vpop.f32.mrb[8].mxu0 }
 0x10c   : > { %v1101_v21 = vpop.f32.mrb[9].mxu0 }
 0x10d   : > { %872 = vst [vmem:[%s1453_s6 + $0x8] sm:$0xff] %v856_v18  ;;  %v1102_v23 = vadd.f32 %v1101_v21, %v1100_v20  ;;  %v1103_v24 = vpop.f32.mrb[10].mxu0 }
 0x10e   : > { %v800_v22 = vpop.f32.mrb[4].mxu1  ;;  %v1104_v28 = vpop.f32.mrb[11].mxu0 }
 0x10f   : > { %v801_v25 = vadd.f32 %v800_v22, %v704_v19  ;;  %v802_v26 = vpop.f32.mrb[5].mxu1  ;;  %v1105_v30 = vadd.f32 %v1104_v28, %v1103_v24  ;;  %v712_v35 = vadd.f32 %v1102_v23, %v1445_v2 }
 0x110   : > { %v803_v29 = vpop.f32.mrb[6].mxu1 }
 0x111   : > { %v857_v31 = vmax.f32 %v801_v25, 0.0  ;;  %v804_v32 = vadd.f32 %v803_v29, %v707_v27  ;;  %v805_v33 = vpop.f32.mrb[7].mxu1  ;;  %v715_v43 = vadd.f32 %v1105_v30, %v1445_v2 }
 0x113   : > { %873 = vst [vmem:[%s1453_s6 + $0x10] sm:$0xff] %v857_v31  ;;  %v858_v34 = vmax.f32 %v804_v32, 0.0  ;;  %v1106_v36 = vpop.f32.mrb[12].mxu0 }
 0x114   : > { %v1107_v37 = vpop.f32.mrb[13].mxu0 }
 0x115   : > { %874 = vst [vmem:[%s1453_s6 + $0x18] sm:$0xff] %v858_v34  ;;  %v1108_v39 = vadd.f32 %v1107_v37, %v1106_v36  ;;  %v1109_v40 = vpop.f32.mrb[14].mxu0 }
 0x116   : > { %v808_v38 = vpop.f32.mrb[8].mxu1  ;;  %v1110_v44 = vpop.f32.mrb[15].mxu0 }
 0x117   : > { %v809_v41 = vadd.f32 %v808_v38, %v712_v35  ;;  %v810_v42 = vpop.f32.mrb[9].mxu1  ;;  %v1111_v46 = vadd.f32 %v1110_v44, %v1109_v40  ;;  %v720_v51 = vadd.f32 %v1108_v39, %v1445_v2 }
 0x118   : > { %v811_v45 = vpop.f32.mrb[10].mxu1 }
 0x119   : > { %v859_v47 = vmax.f32 %v809_v41, 0.0  ;;  %v812_v48 = vadd.f32 %v811_v45, %v715_v43  ;;  %v813_v49 = vpop.f32.mrb[11].mxu1  ;;  %v723_v59 = vadd.f32 %v1111_v46, %v1445_v2 }
 0x11b   : > { %875 = vst [vmem:[%s1453_s6 + $0x20] sm:$0xff] %v859_v47  ;;  %v860_v50 = vmax.f32 %v812_v48, 0.0  ;;  %v1112_v52 = vpop.f32.mrb[16].mxu0 }
 0x11c   : > { %v1113_v53 = vpop.f32.mrb[17].mxu0 }
 0x11d   : > { %876 = vst [vmem:[%s1453_s6 + $0x28] sm:$0xff] %v860_v50  ;;  %v1114_v55 = vadd.f32 %v1113_v53, %v1112_v52  ;;  %v1115_v56 = vpop.f32.mrb[18].mxu0 }
 0x11e   : > { %v816_v54 = vpop.f32.mrb[12].mxu1  ;;  %v1116_v60 = vpop.f32.mrb[19].mxu0 }
 0x11f   : > { %v817_v57 = vadd.f32 %v816_v54, %v720_v51  ;;  %v818_v58 = vpop.f32.mrb[13].mxu1  ;;  %v1117_v62 = vadd.f32 %v1116_v60, %v1115_v56  ;;  %v728_v4 = vadd.f32 %v1114_v55, %v1445_v2 }
 0x120   : > { %v819_v61 = vpop.f32.mrb[14].mxu1 }
 0x121   : > { %v861_v63 = vmax.f32 %v817_v57, 0.0  ;;  %v820_v0 = vadd.f32 %v819_v61, %v723_v59  ;;  %v821_v1 = vpop.f32.mrb[15].mxu1  ;;  %v731_v12 = vadd.f32 %v1117_v62, %v1445_v2 }
 0x123   : > { %877 = vst [vmem:[%s1453_s6 + $0x30] sm:$0xff] %v861_v63  ;;  %v862_v3 = vmax.f32 %v820_v0, 0.0  ;;  %v1118_v5 = vpop.f32.mrb[20].mxu0 }
 0x124   : > { %v1119_v6 = vpop.f32.mrb[21].mxu0 }
 0x125   : > { %878 = vst [vmem:[%s1453_s6 + $0x38] sm:$0xff] %v862_v3  ;;  %v1120_v8 = vadd.f32 %v1119_v6, %v1118_v5  ;;  %v1121_v9 = vpop.f32.mrb[22].mxu0 }
 0x126   : > { %v824_v7 = vpop.f32.mrb[16].mxu1  ;;  %v1122_v13 = vpop.f32.mrb[23].mxu0 }
 0x127   : > { %v825_v10 = vadd.f32 %v824_v7, %v728_v4  ;;  %v826_v11 = vpop.f32.mrb[17].mxu1  ;;  %v1123_v15 = vadd.f32 %v1122_v13, %v1121_v9  ;;  %v736_v20 = vadd.f32 %v1120_v8, %v1445_v2 }
 0x128   : > { %v827_v14 = vpop.f32.mrb[18].mxu1 }
 0x129   : > { %v863_v16 = vmax.f32 %v825_v10, 0.0  ;;  %v828_v17 = vadd.f32 %v827_v14, %v731_v12  ;;  %v829_v18 = vpop.f32.mrb[19].mxu1  ;;  %v739_v28 = vadd.f32 %v1123_v15, %v1445_v2 }
 0x12b   : > { %879 = vst [vmem:[%s1453_s6 + $0x40] sm:$0xff] %v863_v16  ;;  %v864_v19 = vmax.f32 %v828_v17, 0.0  ;;  %v1124_v21 = vpop.f32.mrb[24].mxu0 }
 0x12c   : > { %v1125_v22 = vpop.f32.mrb[25].mxu0 }
 0x12d   : > { %880 = vst [vmem:[%s1453_s6 + $0x48] sm:$0xff] %v864_v19  ;;  %v1126_v24 = vadd.f32 %v1125_v22, %v1124_v21  ;;  %v1127_v25 = vpop.f32.mrb[26].mxu0 }
 0x12e   : > { %v832_v23 = vpop.f32.mrb[20].mxu1  ;;  %v1128_v29 = vpop.f32.mrb[27].mxu0 }
 0x12f   : > { %v833_v26 = vadd.f32 %v832_v23, %v736_v20  ;;  %v834_v27 = vpop.f32.mrb[21].mxu1  ;;  %v1129_v31 = vadd.f32 %v1128_v29, %v1127_v25  ;;  %v744_v36 = vadd.f32 %v1126_v24, %v1445_v2 }
 0x130   : > { %v835_v30 = vpop.f32.mrb[22].mxu1 }
 0x131   : > { %v865_v32 = vmax.f32 %v833_v26, 0.0  ;;  %v836_v33 = vadd.f32 %v835_v30, %v739_v28  ;;  %v837_v34 = vpop.f32.mrb[23].mxu1  ;;  %v747_v44 = vadd.f32 %v1129_v31, %v1445_v2 }
 0x133   : > { %881 = vst [vmem:[%s1453_s6 + $0x50] sm:$0xff] %v865_v32  ;;  %v866_v35 = vmax.f32 %v836_v33, 0.0  ;;  %v1130_v37 = vpop.f32.mrb[28].mxu0 }
 0x134   : > { %v1131_v38 = vpop.f32.mrb[29].mxu0 }
 0x135   : > { %882 = vst [vmem:[%s1453_s6 + $0x58] sm:$0xff] %v866_v35  ;;  %v1132_v40 = vadd.f32 %v1131_v38, %v1130_v37  ;;  %v1133_v41 = vpop.f32.mrb[30].mxu0 }
 0x136   : > { %v840_v39 = vpop.f32.mrb[24].mxu1  ;;  %v1134_v45 = vpop.f32.mrb[31].mxu0 }
 0x137   : > { %v841_v42 = vadd.f32 %v840_v39, %v744_v36  ;;  %v842_v43 = vpop.f32.mrb[25].mxu1  ;;  %v1135_v47 = vadd.f32 %v1134_v45, %v1133_v41  ;;  %v752_v52 = vadd.f32 %v1132_v40, %v1445_v2 }
 0x138   : > { %v843_v46 = vpop.f32.mrb[26].mxu1 }
 0x139   : > { %v867_v48 = vmax.f32 %v841_v42, 0.0  ;;  %v844_v49 = vadd.f32 %v843_v46, %v747_v44  ;;  %v845_v50 = vpop.f32.mrb[27].mxu1  ;;  %v755_v56 = vadd.f32 %v1135_v47, %v1445_v2 }
 0x13b   : > { %883 = vst [vmem:[%s1453_s6 + $0x60] sm:$0xff] %v867_v48  ;;  %v868_v51 = vmax.f32 %v844_v49, 0.0 }
 0x13d   : > { %884 = vst [vmem:[%s1453_s6 + $0x68] sm:$0xff] %v868_v51 }
 0x13e   : > { %v848_v53 = vpop.f32.mrb[28].mxu1 }
 0x13f   : > { %v849_v54 = vadd.f32 %v848_v53, %v752_v52  ;;  %v850_v55 = vpop.f32.mrb[29].mxu1 }
 0x140   : > { %v851_v57 = vpop.f32.mrb[30].mxu1 }
 0x141   : > { %v869_v58 = vmax.f32 %v849_v54, 0.0  ;;  %v852_v59 = vadd.f32 %v851_v57, %v755_v56  ;;  %v853_v60 = vpop.f32.mrb[31].mxu1 }
 0x143   : > { %885 = vst [vmem:[%s1453_s6 + $0x70] sm:$0xff] %v869_v58  ;;  %v870_v61 = vmax.f32 %v852_v59, 0.0 }
 0x145   : > { %886 = vst [vmem:[%s1453_s6 + $0x78] sm:$0xff] %v870_v61 }
 0x146 PF: > { %s13_s14 = sadd.s32 1, %s1258_s14   ;;  %s1498_s12 = smov %s1254_s13 }
 0x147   : > { %p10_p5 = scmp.ge.s32.totalorder %s13_s14, 4   ;;  %s1499_s13 = smov %s1501_s15 }
 0x149   :  { %12 = sbr.rel (!%p10_p5) target bundleno = 2 (0x2), region = 68 }

// kernel: model_fwd.222
= control target key start
LH: loop header
LB: loop body
LE: loop exit
PB: predicated region body
PF: predicated region fallthrough
CT: control target
= control target key end

     0   :  { %s719_s12 = smov 0   ;;  %s721_s13 = smov 0   ;;  %s797_s0 = inlined_call_operand.vmem [shape: bf16[256,64], index: 0, kind: input, shape index: {}]   ;;  %s798_s1 = inlined_call_operand.vmem [shape: bf16[64,128], index: 1, kind: input, shape index: {}]   ;;  %s799_s2 = inlined_call_operand.vmem [shape: f32[1,128], index: 2, kind: input, shape index: {}]   ;;  %s800_s3 = inlined_call_operand.vmem [shape: f32[256,128], index: 3, kind: output, shape index: {}]  }
   0x1   :  { %s723_s14 = smov 0  }
   0x2 LB: > { %s25_s15 = sadd.s32 1, %s693_s13  ;;  %p567_p0 = scmp.ge.s32.totalorder %s697_s14, 1  ;;  %s697_s14 = sphi %s723_s14, %s13_s14   ;;  %s693_s13 = sphi %s721_s13, %s802_s13   ;;  %s689_s12 = sphi %s719_s12, %s801_s12  }
   0x3   : > { %p27_p1 = scmp.ge.s32.totalorder %s25_s15, 2  ;;  %p169_p2 = scmp.lt.s32.totalorder %s697_s14, 3 }
   0x5   : > { %s804_s15 = smov (%p27_p1, %s25_s15), 0  ;;  %p170_p3 = pnand %p567_p0, %p169_p2 }
   0x6   : > { %v663_v0 = vld [vmem:[%s798_s1] sm:$0xff] (!%p170_p3)   ;;  %s568_s18 = sshll.u32 (!%p170_p3), %s689_s12, 4  ;;  %v664_v1 = vld [vmem:[%s798_s1 + $0x8] sm:$0xff] (!%p170_p3)   ;;  %v665_v2 = vld [vmem:[%s798_s1 + $0x10] sm:$0xff] (!%p170_p3)   ;;  %vm321_vm0 = vcmask (!%p170_p3), 523264  }
   0x7   : > { %173 = sbr.rel (%p170_p3) target bundleno = 249 (0xf9), region = 32  ;;  %p204_p4 = scmp.lt.s32.totalorder (!%p170_p3), %s568_s18, 31  ;;  %607 = vmatprep.subr.bf16.mxu0 (!%p170_p3), %v663_v0  ;;  %631 = vmatprep.subr.bf16.mxu1 (!%p170_p3), %v663_v0  ;;  %v666_v3 = vld [vmem:[%s798_s1 + $0x18] sm:$0xff] (!%p170_p3)   ;;  %v572_v12 = vld [vmem:[%s799_s2] ss:$0 sm:$0xff] (!%p170_p3) }
   0x8   : > { %608 = vmatpush3.bf16.msra.mxu0 (!%p170_p3), %v663_v0  ;;  %635 = vmatpush3.bf16.msra.mxu1 (!%p170_p3), %v663_v0 }
   0x9   : > { %609 = vmatprep.subr.bf16.mxu0 (!%p170_p3), %v664_v1  ;;  %632 = vmatprep.subr.bf16.mxu1 (!%p170_p3), %v664_v1 }
   0xc   : > { %610 = vmatpush3.bf16.msra.mxu0 (!%p170_p3), %v664_v1  ;;  %636 = vmatpush3.bf16.msra.mxu1 (!%p170_p3), %v664_v1 }
   0xd   : > { %611 = vmatprep.subr.bf16.mxu0 (!%p170_p3), %v665_v2  ;;  %633 = vmatprep.subr.bf16.mxu1 (!%p170_p3), %v665_v2 }
   0xe   : > { %s806_s18 = smov (!%p204_p4, %s568_s18), 31 }
   0xf   : > { %s569_s23 = sshll.u32 %s806_s18, 2  ;;  %s571_s29 = sshll.u32 %s806_s18, 3 }
  0x10   : > { %s207_s28 = scalar_lea.vmem %s797_s0, %s569_s23  ;;  %612 = vmatpush3.bf16.msra.mxu0 %v665_v2  ;;  %637 = vmatpush3.bf16.msra.mxu1 %v665_v2  ;;  %s770_s7 = scalar_lea.vmem %s800_s3, %s571_s29 }
  0x11   : > { %v667_v4 = vld [vmem:[%s207_s28] sm:$0xff]   ;;  %613 = vmatprep.subr.bf16.mxu0 %v666_v3  ;;  %634 = vmatprep.subr.bf16.mxu1 %v666_v3  ;;  %v669_v6 = vld [vmem:[%s207_s28 + $0x8] sm:$0xff]   ;;  %v671_v8 = vld [vmem:[%s207_s28 + $0x10] sm:$0xff]  }
  0x12   : > { %v668_v5 = vld [vmem:[%s207_s28 + $0x20] sm:$0xff]   ;;  %615 = vmatprep.mubr.msk.bf16.mxu0 %vm321_vm0, %v667_v4  ;;  %v670_v7 = vld [vmem:[%s207_s28 + $0x28] sm:$0xff]   ;;  %v672_v9 = vld [vmem:[%s207_s28 + $0x30] sm:$0xff]  }
  0x13   : > { %623 = vmatprep.mubr.msk.bf16.mxu1 %vm321_vm0, %v668_v5  ;;  %v673_v10 = vld [vmem:[%s207_s28 + $0x18] sm:$0xff]  }
  0x14   : > { %614 = vmatpush3.bf16.msra.mxu0 %v666_v3  ;;  %638 = vmatpush3.bf16.msra.mxu1 %v666_v3  ;;  %v674_v11 = vld [vmem:[%s207_s28 + $0x38] sm:$0xff]  }
  0x17   : > { %616 = vmatmul.mubr.msk.bf16.vlgmr.msra.gmra.mrb[0].mxu0 %vm321_vm0, %v669_v6  ;;  %624 = vmatmul.mubr.msk.bf16.vlgmr.msra.gmra.mrb[0].mxu1 %vm321_vm0, %v670_v7 }
  0x18   : > { %619 = vmatprep.mubr.msk.bf16.mxu0 %vm321_vm0, %v671_v8  ;;  %627 = vmatprep.mubr.msk.bf16.mxu1 %vm321_vm0, %v672_v9 }
  0x1f   : > { %620 = vmatmul.mubr.msk.bf16.gmra.mrb[4].mxu0 %vm321_vm0, %v673_v10  ;;  %628 = vmatmul.mubr.msk.bf16.gmra.mrb[4].mxu1 %vm321_vm0, %v674_v11 }
  0xea   : > { %v617_v13 = vpop.f32.mrb[0].mxu0  ;;  %v625_v14 = vpop.f32.mrb[0].mxu1 }
  0xeb   : > { %v389_v15 = vadd.f32 %v617_v13, %v572_v12  ;;  %v421_v16 = vadd.f32 %v625_v14, %v572_v12  ;;  %v380_v17 = vpop.f32.mrb[1].mxu0  ;;  %v412_v18 = vpop.f32.mrb[1].mxu1 }
  0xec   : > { %v381_v19 = vadd.f32 %v572_v12, %v380_v17  ;;  %v413_v20 = vadd.f32 %v572_v12, %v412_v18  ;;  %v618_v21 = vpop.f32.mrb[2].mxu0  ;;  %v626_v22 = vpop.f32.mrb[2].mxu1 }
  0xed   : > { %445 = vst [vmem:[%s770_s7 + $0x10] sm:$0xff] %v389_v15  ;;  %453 = vst [vmem:[%s770_s7 + $0x50] sm:$0xff] %v421_v16  ;;  %v392_v23 = vadd.f32 %v618_v21, %v572_v12  ;;  %v424_v24 = vadd.f32 %v626_v22, %v572_v12  ;;  %v383_v25 = vpop.f32.mrb[3].mxu0  ;;  %v415_v26 = vpop.f32.mrb[3].mxu1 }
  0xee   : > { %443 = vst [vmem:[%s770_s7] sm:$0xff] %v381_v19  ;;  %451 = vst [vmem:[%s770_s7 + $0x40] sm:$0xff] %v413_v20  ;;  %v384_v27 = vadd.f32 %v572_v12, %v383_v25  ;;  %v416_v28 = vadd.f32 %v572_v12, %v415_v26 }
  0xef   : > { %446 = vst [vmem:[%s770_s7 + $0x18] sm:$0xff] %v392_v23  ;;  %454 = vst [vmem:[%s770_s7 + $0x58] sm:$0xff] %v424_v24 }
  0xf0   : > { %444 = vst [vmem:[%s770_s7 + $0x8] sm:$0xff] %v384_v27  ;;  %452 = vst [vmem:[%s770_s7 + $0x48] sm:$0xff] %v416_v28 }
  0xf2   : > { %v621_v29 = vpop.f32.mrb[4].mxu0  ;;  %v629_v30 = vpop.f32.mrb[4].mxu1 }
  0xf3   : > { %v405_v31 = vadd.f32 %v621_v29, %v572_v12  ;;  %v437_v32 = vadd.f32 %v629_v30, %v572_v12  ;;  %v396_v33 = vpop.f32.mrb[5].mxu0  ;;  %v428_v34 = vpop.f32.mrb[5].mxu1 }
  0xf4   : > { %v397_v35 = vadd.f32 %v572_v12, %v396_v33  ;;  %v429_v36 = vadd.f32 %v572_v12, %v428_v34  ;;  %v622_v37 = vpop.f32.mrb[6].mxu0  ;;  %v630_v38 = vpop.f32.mrb[6].mxu1 }
  0xf5   : > { %449 = vst [vmem:[%s770_s7 + $0x30] sm:$0xff] %v405_v31  ;;  %457 = vst [vmem:[%s770_s7 + $0x70] sm:$0xff] %v437_v32  ;;  %v408_v39 = vadd.f32 %v622_v37, %v572_v12  ;;  %v440_v40 = vadd.f32 %v630_v38, %v572_v12  ;;  %v399_v41 = vpop.f32.mrb[7].mxu0  ;;  %v431_v42 = vpop.f32.mrb[7].mxu1 }
  0xf6   : > { %447 = vst [vmem:[%s770_s7 + $0x20] sm:$0xff] %v397_v35  ;;  %455 = vst [vmem:[%s770_s7 + $0x60] sm:$0xff] %v429_v36  ;;  %v400_v43 = vadd.f32 %v572_v12, %v399_v41  ;;  %v432_v44 = vadd.f32 %v572_v12, %v431_v42 }
  0xf7   : > { %450 = vst [vmem:[%s770_s7 + $0x38] sm:$0xff] %v408_v39  ;;  %458 = vst [vmem:[%s770_s7 + $0x78] sm:$0xff] %v440_v40 }
  0xf8   : > { %448 = vst [vmem:[%s770_s7 + $0x28] sm:$0xff] %v400_v43  ;;  %456 = vst [vmem:[%s770_s7 + $0x68] sm:$0xff] %v432_v44 }
  0xf9 PF: > { %s13_s14 = sadd.s32 1, %s697_s14   ;;  %s801_s12 = smov %s693_s13 }
  0xfa   : > { %p10_p5 = scmp.ge.s32.totalorder %s13_s14, 4   ;;  %s802_s13 = smov %s804_s15 }
  0xfc   :  { %12 = sbr.rel (!%p10_p5) target bundleno = 2 (0x2), region = 68 }

// kernel: model_fwd.223
= control target key start
LH: loop header
LB: loop body
LE: loop exit
PB: predicated region body
PF: predicated region fallthrough
CT: control target
= control target key end

     0   :  { %v605_v0 = vmov 0   ;;  %vm314_vm0 = vcmask 130048   ;;  %s789_s1 = inlined_call_operand.vmem [shape: bf16[400,128], index: 1, kind: input, shape index: {}]   ;;  %s790_s0 = inlined_call_operand.vmem [shape: bf16[64,400], index: 0, kind: input, shape index: {}]   ;;  %s791_s2 = inlined_call_operand.vmem [shape: f32[1,128], index: 2, kind: input, shape index: {}]   ;;  %s792_s3 = inlined_call_operand.vmem [shape: f32[64,128], index: 3, kind: output, shape index: {}]  }
   0x1   :  { %392 = vmatprep.subr.bf16.mxu1 %v605_v0  ;;  %v556_v1 = vld [vmem:[%s789_s1 + $0x40] sm:$0xff]   ;;  %v559_v4 = vld [vmem:[%s789_s1 + $0x48] sm:$0xff]   ;;  %v562_v7 = vld [vmem:[%s789_s1 + $0x50] sm:$0xff]  }
   0x2   :  { %v557_v2 = vld [vmem:[%s789_s1 + $0x80] sm:$0xff]   ;;  %515 = vmatprep.subr.bf16.mxu0 %v556_v1  ;;  %v560_v5 = vld [vmem:[%s789_s1 + $0x88] sm:$0xff]   ;;  %v563_v8 = vld [vmem:[%s789_s1 + $0x90] sm:$0xff]  }
   0x3   :  { %v558_v3 = vld [vmem:[%s789_s1] sm:$0xff]   ;;  %393 = vmatpush1.bf16.msra.mxu1 %v557_v2  ;;  %v561_v6 = vld [vmem:[%s789_s1 + $0x8] sm:$0xff]   ;;  %v564_v9 = vld [vmem:[%s789_s1 + $0x10] sm:$0xff]  }
   0x4   :  { %516 = vmatpush3.bf16.msra.mxu0 %v558_v3  ;;  %394 = vmatprep.subr.bf16.mxu1 %v605_v0  ;;  %v565_v10 = vld [vmem:[%s789_s1 + $0x58] sm:$0xff]   ;;  %v568_v13 = vld [vmem:[%s789_s1 + $0x60] sm:$0xff]   ;;  %v571_v16 = vld [vmem:[%s789_s1 + $0x68] sm:$0xff]  }
   0x5   :  { %517 = vmatprep.subr.bf16.mxu0 %v559_v4  ;;  %v566_v11 = vld [vmem:[%s789_s1 + $0x98] sm:$0xff]   ;;  %v569_v14 = vld [vmem:[%s789_s1 + $0xa0] sm:$0xff]   ;;  %v572_v17 = vld [vmem:[%s789_s1 + $0xa8] sm:$0xff]  }
   0x6   :  { %v567_v12 = vld [vmem:[%s789_s1 + $0x18] sm:$0xff]   ;;  %v570_v15 = vld [vmem:[%s789_s1 + $0x20] sm:$0xff]   ;;  %v573_v18 = vld [vmem:[%s789_s1 + $0x28] sm:$0xff]  }
   0x7   :  { %395 = vmatpush1.bf16.msra.mxu1 %v560_v5  ;;  %v574_v19 = vld [vmem:[%s789_s1 + $0x70] sm:$0xff]   ;;  %v577_v22 = vld [vmem:[%s789_s1 + $0x78] sm:$0xff]   ;;  %v583_v28 = vld [vmem:[%s789_s1 + $0xc0] sm:$0xff]  }
   0x8   :  { %518 = vmatpush3.bf16.msra.mxu0 %v561_v6  ;;  %396 = vmatprep.subr.bf16.mxu1 %v605_v0  ;;  %v575_v20 = vld [vmem:[%s789_s1 + $0xb0] sm:$0xff]   ;;  %v578_v24 = vld [vmem:[%s789_s1 + $0xb8] sm:$0xff]   ;;  %v469_v44 = vld [vmem:[%s791_s2] ss:$0 sm:$0xff] }
   0x9   :  { %519 = vmatprep.subr.bf16.mxu0 %v562_v7  ;;  %v576_v21 = vld [vmem:[%s789_s1 + $0x30] sm:$0xff]   ;;  %v586_v25 = vld [vmem:[%s790_s0 + $0xc] ss:$16 sps:$4 sm:$0xff]   ;;  %v584_v30 = vld [vmem:[%s790_s0 + $0x8] ss:$16 sps:$4 sm:$0xff]  }
   0xa   :  { %v582_v23 = vld [vmem:[%s790_s0 + $0x4] ss:$16 sps:$4 sm:$0xff]   ;;  %v579_v26 = vld [vmem:[%s789_s1 + $0x38] sm:$0xff]   ;;  %511 = vmatprep.mubr.msk.bf16.mxu1 %vm314_vm0, %v586_v25  ;;  %v580_v27 = vld [vmem:[%s790_s0] ss:$16 sps:$4 sm:$0xff]  }
   0xb   :  { %397 = vmatpush1.bf16.msra.mxu1 %v563_v8  ;;  %359 = vmatprep.mubr.bf16.mxu0 %v582_v23  ;;  %v587_v29 = vld [vmem:[%s790_s0 + $0x24] ss:$16 sps:$4 sm:$0xff]   ;;  %v590_v31 = vld [vmem:[%s790_s0 + $0x2c] ss:$16 sps:$4 sm:$0xff]   ;;  %v589_v32 = vld [vmem:[%s790_s0 + $0x20] ss:$16 sps:$4 sm:$0xff]  }
   0xc   :  { %520 = vmatpush3.bf16.msra.mxu0 %v564_v9  ;;  %398 = vmatprep.subr.bf16.mxu1 %v605_v0  ;;  %v593_v33 = vld [vmem:[%s790_s0 + $0x44] ss:$16 sps:$4 sm:$0xff]   ;;  %v592_v34 = vld [vmem:[%s790_s0 + $0x28] ss:$16 sps:$4 sm:$0xff]   ;;  %v596_v35 = vld [vmem:[%s790_s0 + $0x4c] ss:$16 sps:$4 sm:$0xff]  }
   0xd   :  { %521 = vmatprep.subr.bf16.mxu0 %v565_v10  ;;  %v595_v36 = vld [vmem:[%s790_s0 + $0x40] ss:$16 sps:$4 sm:$0xff]   ;;  %v599_v37 = vld [vmem:[%s790_s0 + $0x64] ss:$16 sps:$4 sm:$0xff]   ;;  %v598_v38 = vld [vmem:[%s790_s0 + $0x48] ss:$16 sps:$4 sm:$0xff]  }
   0xe   :  { %v602_v39 = vld [vmem:[%s790_s0 + $0x6c] ss:$16 sps:$4 sm:$0xff]   ;;  %v601_v40 = vld [vmem:[%s790_s0 + $0x60] ss:$16 sps:$4 sm:$0xff]   ;;  %v604_v41 = vld [vmem:[%s790_s0 + $0x68] ss:$16 sps:$4 sm:$0xff]  }
   0xf   :  { %399 = vmatpush1.bf16.msra.mxu1 %v566_v11 }
  0x10   :  { %522 = vmatpush3.bf16.msra.mxu0 %v567_v12  ;;  %400 = vmatprep.subr.bf16.mxu1 %v605_v0 }
  0x11   :  { %523 = vmatprep.subr.bf16.mxu0 %v568_v13 }
  0x13   :  { %401 = vmatpush1.bf16.msra.mxu1 %v569_v14 }
  0x14   :  { %524 = vmatpush3.bf16.msra.mxu0 %v570_v15  ;;  %402 = vmatprep.subr.bf16.mxu1 %v605_v0 }
  0x15   :  { %525 = vmatprep.subr.bf16.mxu0 %v571_v16 }
  0x17   :  { %403 = vmatpush1.bf16.msra.mxu1 %v572_v17 }
  0x18   :  { %526 = vmatpush3.bf16.msra.mxu0 %v573_v18  ;;  %404 = vmatprep.subr.bf16.mxu1 %v605_v0 }
  0x19   :  { %527 = vmatprep.subr.bf16.mxu0 %v574_v19 }
  0x1b   :  { %405 = vmatpush1.bf16.msra.mxu1 %v575_v20 }
  0x1c   :  { %528 = vmatpush3.bf16.msra.mxu0 %v576_v21  ;;  %406 = vmatprep.subr.bf16.mxu1 %v605_v0 }
  0x1d   :  { %529 = vmatprep.subr.bf16.mxu0 %v577_v22 }
  0x1f   :  { %407 = vmatpush1.bf16.msra.mxu1 %v578_v24 }
  0x20   :  { %530 = vmatpush3.bf16.msra.mxu0 %v579_v26  ;;  %408 = vmatprep.subr.bf16.mxu1 %v605_v0 }
  0x23   :  { %360 = vmatmul.mubr.bf16.vlgmr.msra.gmra.mrb[0].mxu0 %v580_v27  ;;  %409 = vmatpush1.bf16.msra.mxu1 %v583_v28 }
  0x24   :  { %367 = vmatprep.mubr.bf16.mxu0 %v587_v29 }
  0x26   :  { %425 = vmatmul.mubr.bf16.vlgmr.msra.gmra.mrb[0].mxu1 %v584_v30 }
  0x27   :  { %512 = vmatprep.mubr.msk.bf16.mxu1 %vm314_vm0, %v590_v31 }
  0x2b   :  { %368 = vmatmul.mubr.bf16.gmra.mrb[4].mxu0 %v589_v32 }
  0x2c   :  { %375 = vmatprep.mubr.bf16.mxu0 %v593_v33 }
  0x2e   :  { %433 = vmatmul.mubr.bf16.gmra.mrb[4].mxu1 %v592_v34 }
  0x2f   :  { %513 = vmatprep.mubr.msk.bf16.mxu1 %vm314_vm0, %v596_v35 }
  0x33   :  { %376 = vmatmul.mubr.bf16.gmra.mrb[8].mxu0 %v595_v36 }
  0x34   :  { %383 = vmatprep.mubr.bf16.mxu0 %v599_v37 }
  0x36   :  { %441 = vmatmul.mubr.bf16.gmra.mrb[8].mxu1 %v598_v38 }
  0x37   :  { %514 = vmatprep.mubr.msk.bf16.mxu1 %vm314_vm0, %v602_v39 }
  0x3b   :  { %384 = vmatmul.mubr.bf16.gmra.mrb[12].mxu0 %v601_v40 }
  0x3e   :  { %449 = vmatmul.mubr.bf16.gmra.mrb[12].mxu1 %v604_v41 }
  0xf6   :  { %v531_v42 = vpop.f32.mrb[0].mxu0 }
  0xf7   :  { %v532_v43 = vpop.f32.mrb[1].mxu0 }
  0xf8   :  { %v533_v45 = vadd.f32 %v532_v43, %v531_v42  ;;  %v534_v46 = vpop.f32.mrb[2].mxu0 }
  0xf9   :  { %v535_v47 = vpop.f32.mrb[3].mxu0  ;;  %v426_v48 = vpop.f32.mrb[0].mxu1 }
  0xfa   :  { %v536_v49 = vadd.f32 %v535_v47, %v534_v46  ;;  %v362_v50 = vadd.f32 %v533_v45, %v469_v44  ;;  %v428_v51 = vpop.f32.mrb[1].mxu1 }
  0xfb   :  { %v429_v52 = vpop.f32.mrb[2].mxu1 }
  0xfc   :  { %v427_v53 = vadd.f32 %v426_v48, %v362_v50  ;;  %v365_v54 = vadd.f32 %v536_v49, %v469_v44  ;;  %v431_v55 = vpop.f32.mrb[3].mxu1 }
  0xfe   :  { %457 = vst [vmem:[%s792_s3] sm:$0xff] %v427_v53  ;;  %v430_v56 = vadd.f32 %v429_v52, %v365_v54  ;;  %v537_v57 = vpop.f32.mrb[4].mxu0 }
  0xff   :  { %v538_v58 = vpop.f32.mrb[5].mxu0 }
 0x100   :  { %458 = vst [vmem:[%s792_s3 + $0x8] sm:$0xff] %v430_v56  ;;  %v539_v59 = vadd.f32 %v538_v58, %v537_v57  ;;  %v540_v60 = vpop.f32.mrb[6].mxu0 }
 0x101   :  { %v541_v61 = vpop.f32.mrb[7].mxu0  ;;  %v434_v62 = vpop.f32.mrb[4].mxu1 }
 0x102   :  { %v542_v63 = vadd.f32 %v541_v61, %v540_v60  ;;  %v370_v0 = vadd.f32 %v539_v59, %v469_v44  ;;  %v436_v1 = vpop.f32.mrb[5].mxu1 }
 0x103   :  { %v437_v2 = vpop.f32.mrb[6].mxu1 }
 0x104   :  { %v435_v3 = vadd.f32 %v434_v62, %v370_v0  ;;  %v373_v4 = vadd.f32 %v542_v63, %v469_v44  ;;  %v439_v5 = vpop.f32.mrb[7].mxu1 }
 0x106   :  { %459 = vst [vmem:[%s792_s3 + $0x10] sm:$0xff] %v435_v3  ;;  %v438_v6 = vadd.f32 %v437_v2, %v373_v4  ;;  %v543_v7 = vpop.f32.mrb[8].mxu0 }
 0x107   :  { %v544_v8 = vpop.f32.mrb[9].mxu0 }
 0x108   :  { %460 = vst [vmem:[%s792_s3 + $0x18] sm:$0xff] %v438_v6  ;;  %v545_v9 = vadd.f32 %v544_v8, %v543_v7  ;;  %v546_v10 = vpop.f32.mrb[10].mxu0 }
 0x109   :  { %v547_v11 = vpop.f32.mrb[11].mxu0  ;;  %v442_v12 = vpop.f32.mrb[8].mxu1 }
 0x10a   :  { %v548_v13 = vadd.f32 %v547_v11, %v546_v10  ;;  %v378_v14 = vadd.f32 %v545_v9, %v469_v44  ;;  %v444_v15 = vpop.f32.mrb[9].mxu1 }
 0x10b   :  { %v445_v16 = vpop.f32.mrb[10].mxu1 }
 0x10c   :  { %v443_v17 = vadd.f32 %v442_v12, %v378_v14  ;;  %v381_v18 = vadd.f32 %v548_v13, %v469_v44  ;;  %v447_v19 = vpop.f32.mrb[11].mxu1 }
 0x10e   :  { %461 = vst [vmem:[%s792_s3 + $0x20] sm:$0xff] %v443_v17  ;;  %v446_v20 = vadd.f32 %v445_v16, %v381_v18  ;;  %v549_v21 = vpop.f32.mrb[12].mxu0 }
 0x10f   :  { %v550_v22 = vpop.f32.mrb[13].mxu0 }
 0x110   :  { %462 = vst [vmem:[%s792_s3 + $0x28] sm:$0xff] %v446_v20  ;;  %v551_v23 = vadd.f32 %v550_v22, %v549_v21  ;;  %v552_v24 = vpop.f32.mrb[14].mxu0 }
 0x111   :  { %v553_v25 = vpop.f32.mrb[15].mxu0  ;;  %v450_v26 = vpop.f32.mrb[12].mxu1 }
 0x112   :  { %v554_v27 = vadd.f32 %v553_v25, %v552_v24  ;;  %v386_v28 = vadd.f32 %v551_v23, %v469_v44  ;;  %v452_v29 = vpop.f32.mrb[13].mxu1 }
 0x113   :  { %v453_v30 = vpop.f32.mrb[14].mxu1 }
 0x114   :  { %v451_v31 = vadd.f32 %v450_v26, %v386_v28  ;;  %v389_v32 = vadd.f32 %v554_v27, %v469_v44  ;;  %v455_v33 = vpop.f32.mrb[15].mxu1 }
 0x116   :  { %463 = vst [vmem:[%s792_s3 + $0x30] sm:$0xff] %v451_v31  ;;  %v454_v34 = vadd.f32 %v453_v30, %v389_v32 }
 0x118   :  { %464 = vst [vmem:[%s792_s3 + $0x38] sm:$0xff] %v454_v34 }

// kernel: model_fwd.224
= control target key start
LH: loop header
LB: loop body
LE: loop exit
PB: predicated region body
PF: predicated region fallthrough
CT: control target
= control target key end

     0   :  { %vm242_vm0 = vcmask 261120   ;;  %s689_s1 = inlined_call_operand.vmem [shape: bf16[288,128], index: 1, kind: input, shape index: {}]   ;;  %s690_s0 = inlined_call_operand.vmem [shape: bf16[64,288], index: 0, kind: input, shape index: {}]   ;;  %s691_s2 = inlined_call_operand.vmem [shape: f32[1,128], index: 2, kind: input, shape index: {}]   ;;  %s692_s3 = inlined_call_operand.vmem [shape: f32[64,128], index: 3, kind: output, shape index: {}]  }
   0x1   :  { %v514_v0 = vld [vmem:[%s689_s1 + $0x40] sm:$0xff]   ;;  %v516_v2 = vld [vmem:[%s689_s1 + $0x48] sm:$0xff]   ;;  %v518_v4 = vld [vmem:[%s689_s1 + $0x50] sm:$0xff]  }
   0x2   :  { %v515_v1 = vld [vmem:[%s689_s1] sm:$0xff]   ;;  %440 = vmatprep.subr.bf16.mxu0 %v514_v0  ;;  %498 = vmatprep.subr.bf16.mxu1 %v514_v0  ;;  %v517_v3 = vld [vmem:[%s689_s1 + $0x8] sm:$0xff]   ;;  %v519_v5 = vld [vmem:[%s689_s1 + $0x10] sm:$0xff]  }
   0x3   :  { %441 = vmatpush3.bf16.msra.mxu0 %v515_v1  ;;  %506 = vmatpush3.bf16.msra.mxu1 %v515_v1  ;;  %v520_v6 = vld [vmem:[%s689_s1 + $0x58] sm:$0xff]   ;;  %v522_v8 = vld [vmem:[%s689_s1 + $0x60] sm:$0xff]   ;;  %v524_v10 = vld [vmem:[%s689_s1 + $0x68] sm:$0xff]  }
   0x4   :  { %442 = vmatprep.subr.bf16.mxu0 %v516_v2  ;;  %499 = vmatprep.subr.bf16.mxu1 %v516_v2  ;;  %v521_v7 = vld [vmem:[%s689_s1 + $0x18] sm:$0xff]   ;;  %v523_v9 = vld [vmem:[%s689_s1 + $0x20] sm:$0xff]   ;;  %v525_v13 = vld [vmem:[%s689_s1 + $0x28] sm:$0xff]  }
   0x5   :  { %v532_v11 = vld [vmem:[%s690_s0 + $0x4] ss:$12 sps:$4 sm:$0xff]   ;;  %v535_v12 = vld [vmem:[%s690_s0 + $0x4c] ss:$12 sps:$4 sm:$0xff]   ;;  %v533_v20 = vld [vmem:[%s690_s0 + $0x48] ss:$12 sps:$4 sm:$0xff]  }
   0x6   :  { %v526_v14 = vld [vmem:[%s689_s1 + $0x70] sm:$0xff]   ;;  %287 = vmatprep.mubr.bf16.mxu0 %v532_v11  ;;  %311 = vmatprep.mubr.bf16.mxu1 %v535_v12  ;;  %v528_v16 = vld [vmem:[%s689_s1 + $0x78] sm:$0xff]   ;;  %v536_v18 = vld [vmem:[%s689_s1 + $0x80] sm:$0xff]  }
   0x7   :  { %443 = vmatpush3.bf16.msra.mxu0 %v517_v3  ;;  %507 = vmatpush3.bf16.msra.mxu1 %v517_v3  ;;  %v527_v15 = vld [vmem:[%s689_s1 + $0x30] sm:$0xff]   ;;  %v529_v17 = vld [vmem:[%s689_s1 + $0x38] sm:$0xff]   ;;  %v530_v19 = vld [vmem:[%s690_s0] ss:$12 sps:$4 sm:$0xff]  }
   0x8   :  { %444 = vmatprep.subr.bf16.mxu0 %v518_v4  ;;  %500 = vmatprep.subr.bf16.mxu1 %v518_v4  ;;  %v538_v21 = vld [vmem:[%s690_s0 + $0x1c] ss:$12 sps:$4 sm:$0xff]   ;;  %v541_v24 = vld [vmem:[%s690_s0 + $0x18] ss:$12 sps:$4 sm:$0xff]   ;;  %v542_v25 = vld [vmem:[%s690_s0 + $0x20] ss:$12 sps:$4 sm:$0xff]  }
   0x9   :  { %v537_v22 = vld [vmem:[%s689_s1 + $0x88] sm:$0xff]   ;;  %v543_v26 = vld [vmem:[%s690_s0 + $0x34] ss:$12 sps:$4 sm:$0xff]   ;;  %v545_v27 = vld [vmem:[%s690_s0 + $0x38] ss:$12 sps:$4 sm:$0xff]  }
   0xa   :  { %v540_v23 = vld [vmem:[%s690_s0 + $0x8] ss:$12 sps:$4 sm:$0xff]   ;;  %v546_v28 = vld [vmem:[%s690_s0 + $0x30] ss:$12 sps:$4 sm:$0xff]   ;;  %v405_v42 = vld [vmem:[%s691_s2] ss:$0 sm:$0xff] }
   0xb   :  { %445 = vmatpush3.bf16.msra.mxu0 %v519_v5  ;;  %508 = vmatpush3.bf16.msra.mxu1 %v519_v5  ;;  %v547_v29 = vld [vmem:[%s690_s0 + $0x50] ss:$12 sps:$4 sm:$0xff]  }
   0xc   :  { %446 = vmatprep.subr.bf16.mxu0 %v520_v6  ;;  %501 = vmatprep.subr.bf16.mxu1 %v520_v6 }
   0xf   :  { %447 = vmatpush3.bf16.msra.mxu0 %v521_v7  ;;  %509 = vmatpush3.bf16.msra.mxu1 %v521_v7 }
  0x10   :  { %448 = vmatprep.subr.bf16.mxu0 %v522_v8  ;;  %502 = vmatprep.subr.bf16.mxu1 %v522_v8 }
  0x13   :  { %449 = vmatpush3.bf16.msra.mxu0 %v523_v9  ;;  %510 = vmatpush3.bf16.msra.mxu1 %v523_v9 }
  0x14   :  { %450 = vmatprep.subr.bf16.mxu0 %v524_v10  ;;  %503 = vmatprep.subr.bf16.mxu1 %v524_v10 }
  0x17   :  { %451 = vmatpush3.bf16.msra.mxu0 %v525_v13  ;;  %511 = vmatpush3.bf16.msra.mxu1 %v525_v13 }
  0x18   :  { %452 = vmatprep.subr.bf16.mxu0 %v526_v14  ;;  %504 = vmatprep.subr.bf16.mxu1 %v526_v14 }
  0x1b   :  { %453 = vmatpush3.bf16.msra.mxu0 %v527_v15  ;;  %512 = vmatpush3.bf16.msra.mxu1 %v527_v15 }
  0x1c   :  { %454 = vmatprep.subr.bf16.mxu0 %v528_v16  ;;  %505 = vmatprep.subr.bf16.mxu1 %v528_v16 }
  0x1f   :  { %455 = vmatpush3.bf16.msra.mxu0 %v529_v17  ;;  %513 = vmatpush3.bf16.msra.mxu1 %v529_v17 }
  0x20   :  { %486 = vmatprep.subr.bf16.mxu1 %v536_v18 }
  0x22   :  { %288 = vmatmul.mubr.bf16.vlgmr.msra.gmra.mrb[0].mxu0 %v530_v19  ;;  %312 = vmatmul.mubr.bf16.vlgmr.msra.gmra.mrb[0].mxu1 %v533_v20 }
  0x23   :  { %487 = vmatpush3.bf16.msra.mxu1 %v536_v18  ;;  %295 = vmatprep.mubr.bf16.mxu0 %v538_v21 }
  0x24   :  { %488 = vmatprep.subr.bf16.mxu1 %v537_v22  ;;  %490 = vmatprep.mubr.msk.bf16.mxu1 %vm242_vm0, %v540_v23 }
  0x27   :  { %489 = vmatpush3.bf16.msra.mxu1 %v537_v22 }
  0x2a   :  { %296 = vmatmul.mubr.bf16.gmra.mrb[4].mxu0 %v541_v24  ;;  %491 = vmatmul.mubr.msk.bf16.vlgmr.msra.gmra.mrb[4].mxu1 %vm242_vm0, %v542_v25 }
  0x2b   :  { %303 = vmatprep.mubr.bf16.mxu0 %v543_v26  ;;  %494 = vmatprep.mubr.msk.bf16.mxu1 %vm242_vm0, %v545_v27 }
  0x32   :  { %304 = vmatmul.mubr.bf16.gmra.mrb[8].mxu0 %v546_v28  ;;  %495 = vmatmul.mubr.msk.bf16.gmra.mrb[8].mxu1 %vm242_vm0, %v547_v29 }
  0xf5   :  { %v456_v30 = vpop.f32.mrb[0].mxu0  ;;  %v474_v31 = vpop.f32.mrb[0].mxu1 }
  0xf6   :  { %v457_v32 = vpop.f32.mrb[1].mxu0  ;;  %v475_v33 = vpop.f32.mrb[1].mxu1 }
  0xf7   :  { %v458_v34 = vadd.f32 %v457_v32, %v456_v30  ;;  %v459_v35 = vpop.f32.mrb[2].mxu0  ;;  %v476_v36 = vadd.f32 %v475_v33, %v474_v31  ;;  %v477_v37 = vpop.f32.mrb[2].mxu1 }
  0xf8   :  { %v460_v38 = vpop.f32.mrb[3].mxu0  ;;  %v478_v39 = vpop.f32.mrb[3].mxu1 }
  0xf9   :  { %v461_v40 = vadd.f32 %v460_v38, %v459_v35  ;;  %v479_v41 = vadd.f32 %v478_v39, %v477_v37  ;;  %v290_v45 = vadd.f32 %v458_v34, %v405_v42  ;;  %v314_v62 = vadd.f32 %v476_v36, %v405_v42 }
  0xfb   :  { %v293_v52 = vadd.f32 %v461_v40, %v405_v42  ;;  %v317_v6 = vadd.f32 %v479_v41, %v405_v42 }
  0xfd   :  { %v462_v43 = vpop.f32.mrb[4].mxu0  ;;  %v492_v44 = vpop.f32.mrb[4].mxu1 }
  0xfe   :  { %v463_v46 = vpop.f32.mrb[5].mxu0  ;;  %v354_v47 = vpop.f32.mrb[5].mxu1 }
  0xff   :  { %v464_v48 = vadd.f32 %v463_v46, %v462_v43  ;;  %v355_v49 = vadd.f32 %v354_v47, %v290_v45  ;;  %v465_v50 = vpop.f32.mrb[6].mxu0  ;;  %v493_v51 = vpop.f32.mrb[6].mxu1 }
 0x100   :  { %v466_v53 = vpop.f32.mrb[7].mxu0  ;;  %v357_v54 = vpop.f32.mrb[7].mxu1 }
 0x101   :  { %v298_v55 = vadd.f32 %v464_v48, %v405_v42  ;;  %v385_v56 = vmax.f32 %v355_v49, 0.0  ;;  %v467_v57 = vadd.f32 %v466_v53, %v465_v50  ;;  %v358_v58 = vadd.f32 %v357_v54, %v293_v52 }
 0x103   :  { %v363_v59 = vadd.f32 %v492_v44, %v298_v55  ;;  %393 = vst [vmem:[%s692_s3] sm:$0xff] %v385_v56  ;;  %v301_v60 = vadd.f32 %v467_v57, %v405_v42  ;;  %v386_v61 = vmax.f32 %v358_v58, 0.0 }
 0x105   :  { %v387_v63 = vmax.f32 %v363_v59, 0.0  ;;  %v366_v0 = vadd.f32 %v493_v51, %v301_v60  ;;  %394 = vst [vmem:[%s692_s3 + $0x8] sm:$0xff] %v386_v61  ;;  %v468_v1 = vpop.f32.mrb[8].mxu0  ;;  %v496_v2 = vpop.f32.mrb[8].mxu1 }
 0x106   :  { %v379_v3 = vadd.f32 %v496_v2, %v314_v62  ;;  %v469_v4 = vpop.f32.mrb[9].mxu0  ;;  %v370_v5 = vpop.f32.mrb[9].mxu1 }
 0x107   :  { %395 = vst [vmem:[%s692_s3 + $0x10] sm:$0xff] %v387_v63  ;;  %v388_v7 = vmax.f32 %v366_v0, 0.0  ;;  %v470_v8 = vadd.f32 %v469_v4, %v468_v1  ;;  %v471_v9 = vpop.f32.mrb[10].mxu0  ;;  %v497_v10 = vpop.f32.mrb[10].mxu1 }
 0x108   :  { %v391_v11 = vmax.f32 %v379_v3, 0.0  ;;  %v382_v12 = vadd.f32 %v497_v10, %v317_v6  ;;  %v472_v13 = vpop.f32.mrb[11].mxu0  ;;  %v373_v14 = vpop.f32.mrb[11].mxu1 }
 0x109   :  { %396 = vst [vmem:[%s692_s3 + $0x18] sm:$0xff] %v388_v7  ;;  %v306_v15 = vadd.f32 %v470_v8, %v405_v42  ;;  %v473_v16 = vadd.f32 %v472_v13, %v471_v9 }
 0x10a   :  { %399 = vst [vmem:[%s692_s3 + $0x30] sm:$0xff] %v391_v11  ;;  %v392_v17 = vmax.f32 %v382_v12, 0.0 }
 0x10b   :  { %v371_v18 = vadd.f32 %v370_v5, %v306_v15  ;;  %v309_v19 = vadd.f32 %v473_v16, %v405_v42 }
 0x10c   :  { %400 = vst [vmem:[%s692_s3 + $0x38] sm:$0xff] %v392_v17 }
 0x10d   :  { %v389_v20 = vmax.f32 %v371_v18, 0.0  ;;  %v374_v21 = vadd.f32 %v373_v14, %v309_v19 }
 0x10f   :  { %397 = vst [vmem:[%s692_s3 + $0x20] sm:$0xff] %v389_v20  ;;  %v390_v22 = vmax.f32 %v374_v21, 0.0 }
 0x111   :  { %398 = vst [vmem:[%s692_s3 + $0x28] sm:$0xff] %v390_v22 }

// kernel: model_fwd.225
= control target key start
LH: loop header
LB: loop body
LE: loop exit
PB: predicated region body
PF: predicated region fallthrough
CT: control target
= control target key end

     0   :  { %vm434_vm0 = vcmask 523264   ;;  %s1117_s1 = inlined_call_operand.vmem [shape: bf16[576,128], index: 1, kind: input, shape index: {}]   ;;  %s1118_s0 = inlined_call_operand.vmem [shape: bf16[64,576], index: 0, kind: input, shape index: {}]   ;;  %s1119_s2 = inlined_call_operand.vmem [shape: f32[1,128], index: 2, kind: input, shape index: {}]   ;;  %s1120_s3 = inlined_call_operand.vmem [shape: f32[64,128], index: 3, kind: output, shape index: {}]  }
   0x1   :  { %v835_v0 = vld [vmem:[%s1117_s1 + $0x40] sm:$0xff]   ;;  %v839_v4 = vld [vmem:[%s1117_s1 + $0x48] sm:$0xff]   ;;  %v843_v8 = vld [vmem:[%s1117_s1 + $0x50] sm:$0xff]  }
   0x2   :  { %v836_v1 = vld [vmem:[%s1117_s1 + $0xc0] sm:$0xff]   ;;  %723 = vmatprep.subr.bf16.mxu0 %v835_v0  ;;  %v840_v5 = vld [vmem:[%s1117_s1 + $0xc8] sm:$0xff]   ;;  %v844_v9 = vld [vmem:[%s1117_s1 + $0xd0] sm:$0xff]  }
   0x3   :  { %v837_v2 = vld [vmem:[%s1117_s1] sm:$0xff]   ;;  %763 = vmatprep.subr.bf16.mxu1 %v836_v1  ;;  %v841_v6 = vld [vmem:[%s1117_s1 + $0x8] sm:$0xff]   ;;  %v845_v10 = vld [vmem:[%s1117_s1 + $0x10] sm:$0xff]  }
   0x4   :  { %v838_v3 = vld [vmem:[%s1117_s1 + $0x80] sm:$0xff]   ;;  %724 = vmatpush3.bf16.msra.mxu0 %v837_v2  ;;  %v842_v7 = vld [vmem:[%s1117_s1 + $0x88] sm:$0xff]   ;;  %v846_v11 = vld [vmem:[%s1117_s1 + $0x90] sm:$0xff]  }
   0x5   :  { %764 = vmatpush3.bf16.msra.mxu1 %v838_v3  ;;  %725 = vmatprep.subr.bf16.mxu0 %v839_v4  ;;  %v847_v12 = vld [vmem:[%s1117_s1 + $0x58] sm:$0xff]   ;;  %v851_v16 = vld [vmem:[%s1117_s1 + $0x60] sm:$0xff]   ;;  %v855_v20 = vld [vmem:[%s1117_s1 + $0x68] sm:$0xff]  }
   0x6   :  { %765 = vmatprep.subr.bf16.mxu1 %v840_v5  ;;  %v848_v13 = vld [vmem:[%s1117_s1 + $0xd8] sm:$0xff]   ;;  %v852_v17 = vld [vmem:[%s1117_s1 + $0xe0] sm:$0xff]   ;;  %v856_v21 = vld [vmem:[%s1117_s1 + $0xe8] sm:$0xff]  }
   0x7   :  { %v849_v14 = vld [vmem:[%s1117_s1 + $0x18] sm:$0xff]   ;;  %v853_v18 = vld [vmem:[%s1117_s1 + $0x20] sm:$0xff]   ;;  %v857_v22 = vld [vmem:[%s1117_s1 + $0x28] sm:$0xff]  }
   0x8   :  { %726 = vmatpush3.bf16.msra.mxu0 %v841_v6  ;;  %v850_v15 = vld [vmem:[%s1117_s1 + $0x98] sm:$0xff]   ;;  %v854_v19 = vld [vmem:[%s1117_s1 + $0xa0] sm:$0xff]   ;;  %v858_v23 = vld [vmem:[%s1117_s1 + $0xa8] sm:$0xff]  }
   0x9   :  { %766 = vmatpush3.bf16.msra.mxu1 %v842_v7  ;;  %727 = vmatprep.subr.bf16.mxu0 %v843_v8  ;;  %v859_v24 = vld [vmem:[%s1117_s1 + $0x70] sm:$0xff]   ;;  %v863_v28 = vld [vmem:[%s1117_s1 + $0x78] sm:$0xff]   ;;  %v872_v35 = vld [vmem:[%s1118_s0 + $0xc] ss:$20 sps:$4 sm:$0xff]  }
   0xa   :  { %767 = vmatprep.subr.bf16.mxu1 %v844_v9  ;;  %v860_v25 = vld [vmem:[%s1117_s1 + $0xf0] sm:$0xff]   ;;  %v864_v29 = vld [vmem:[%s1117_s1 + $0xf8] sm:$0xff]   ;;  %v873_v36 = vld [vmem:[%s1117_s1 + $0x100] sm:$0xff]   ;;  %544 = vmatprep.mubr.bf16.mxu1 %v872_v35 }
   0xb   :  { %v861_v26 = vld [vmem:[%s1117_s1 + $0x30] sm:$0xff]   ;;  %v865_v30 = vld [vmem:[%s1117_s1 + $0x38] sm:$0xff]   ;;  %v874_v37 = vld [vmem:[%s1118_s0 + $0x2c] ss:$20 sps:$4 sm:$0xff]  }
   0xc   :  { %728 = vmatpush3.bf16.msra.mxu0 %v845_v10  ;;  %v862_v27 = vld [vmem:[%s1117_s1 + $0xb0] sm:$0xff]   ;;  %v866_v31 = vld [vmem:[%s1117_s1 + $0xb8] sm:$0xff]   ;;  %v880_v39 = vld [vmem:[%s1117_s1 + $0x108] sm:$0xff]  }
   0xd   :  { %768 = vmatpush3.bf16.msra.mxu1 %v846_v11  ;;  %729 = vmatprep.subr.bf16.mxu0 %v847_v12  ;;  %v867_v32 = vld [vmem:[%s1118_s0] ss:$20 sps:$4 sm:$0xff]   ;;  %v869_v33 = vld [vmem:[%s1118_s0 + $0x4] ss:$20 sps:$4 sm:$0xff]   ;;  %v870_v34 = vld [vmem:[%s1118_s0 + $0x8] ss:$20 sps:$4 sm:$0xff]  }
   0xe   :  { %769 = vmatprep.subr.bf16.mxu1 %v848_v13  ;;  %479 = vmatprep.mubr.bf16.mxu0 %v869_v33  ;;  %v876_v38 = vld [vmem:[%s1118_s0 + $0x34] ss:$20 sps:$4 sm:$0xff]   ;;  %v879_v41 = vld [vmem:[%s1118_s0 + $0x30] ss:$20 sps:$4 sm:$0xff]   ;;  %v894_v45 = vld [vmem:[%s1117_s1 + $0x118] sm:$0xff]  }
   0xf   :  { %v878_v40 = vld [vmem:[%s1118_s0 + $0x28] ss:$20 sps:$4 sm:$0xff]   ;;  %v887_v44 = vld [vmem:[%s1117_s1 + $0x110] sm:$0xff]   ;;  %v886_v47 = vld [vmem:[%s1118_s0 + $0x58] ss:$20 sps:$4 sm:$0xff]  }
  0x10   :  { %730 = vmatpush3.bf16.msra.mxu0 %v849_v14  ;;  %v881_v42 = vld [vmem:[%s1118_s0 + $0x54] ss:$20 sps:$4 sm:$0xff]   ;;  %v883_v43 = vld [vmem:[%s1118_s0 + $0x5c] ss:$20 sps:$4 sm:$0xff]   ;;  %v890_v49 = vld [vmem:[%s1118_s0 + $0x84] ss:$20 sps:$4 sm:$0xff]  }
  0x11   :  { %770 = vmatpush3.bf16.msra.mxu1 %v850_v15  ;;  %731 = vmatprep.subr.bf16.mxu0 %v851_v16  ;;  %v885_v46 = vld [vmem:[%s1118_s0 + $0x50] ss:$20 sps:$4 sm:$0xff]   ;;  %v892_v50 = vld [vmem:[%s1118_s0 + $0x78] ss:$20 sps:$4 sm:$0xff]   ;;  %v893_v51 = vld [vmem:[%s1118_s0 + $0x80] ss:$20 sps:$4 sm:$0xff]  }
  0x12   :  { %771 = vmatprep.subr.bf16.mxu1 %v852_v17  ;;  %v888_v48 = vld [vmem:[%s1118_s0 + $0x7c] ss:$20 sps:$4 sm:$0xff]   ;;  %v896_v53 = vld [vmem:[%s1118_s0 + $0x60] ss:$20 sps:$4 sm:$0xff]   ;;  %v897_v54 = vld [vmem:[%s1118_s0 + $0x38] ss:$20 sps:$4 sm:$0xff]  }
  0x13   :  { %v895_v52 = vld [vmem:[%s1118_s0 + $0x10] ss:$20 sps:$4 sm:$0xff]   ;;  %v898_v55 = vld [vmem:[%s1118_s0 + $0x88] ss:$20 sps:$4 sm:$0xff]   ;;  %v662_v58 = vld [vmem:[%s1119_s2] ss:$0 sm:$0xff] }
  0x14   :  { %732 = vmatpush3.bf16.msra.mxu0 %v853_v18 }
  0x15   :  { %772 = vmatpush3.bf16.msra.mxu1 %v854_v19  ;;  %733 = vmatprep.subr.bf16.mxu0 %v855_v20 }
  0x16   :  { %773 = vmatprep.subr.bf16.mxu1 %v856_v21 }
  0x18   :  { %734 = vmatpush3.bf16.msra.mxu0 %v857_v22 }
  0x19   :  { %774 = vmatpush3.bf16.msra.mxu1 %v858_v23  ;;  %735 = vmatprep.subr.bf16.mxu0 %v859_v24 }
  0x1a   :  { %775 = vmatprep.subr.bf16.mxu1 %v860_v25 }
  0x1c   :  { %736 = vmatpush3.bf16.msra.mxu0 %v861_v26 }
  0x1d   :  { %776 = vmatpush3.bf16.msra.mxu1 %v862_v27  ;;  %737 = vmatprep.subr.bf16.mxu0 %v863_v28 }
  0x1e   :  { %777 = vmatprep.subr.bf16.mxu1 %v864_v29 }
  0x20   :  { %738 = vmatpush3.bf16.msra.mxu0 %v865_v30 }
  0x21   :  { %778 = vmatpush3.bf16.msra.mxu1 %v866_v31  ;;  %811 = vmatprep.subr.bf16.mxu0 %v873_v36 }
  0x22   :  { %827 = vmatprep.subr.bf16.mxu1 %v873_v36 }
  0x23   :  { %480 = vmatmul.mubr.bf16.vlgmr.msra.gmra.mrb[0].mxu0 %v867_v32 }
  0x24   :  { %545 = vmatmul.mubr.bf16.vlgmr.msra.gmra.mrb[0].mxu1 %v870_v34  ;;  %812 = vmatpush3.bf16.msra.mxu0 %v873_v36 }
  0x25   :  { %831 = vmatpush3.bf16.msra.mxu1 %v873_v36  ;;  %487 = vmatprep.mubr.bf16.mxu0 %v874_v37 }
  0x26   :  { %552 = vmatprep.mubr.bf16.mxu1 %v876_v38  ;;  %813 = vmatprep.subr.bf16.mxu0 %v880_v39 }
  0x27   :  { %828 = vmatprep.subr.bf16.mxu1 %v880_v39 }
  0x28   :  { %814 = vmatpush3.bf16.msra.mxu0 %v880_v39 }
  0x29   :  { %832 = vmatpush3.bf16.msra.mxu1 %v880_v39  ;;  %815 = vmatprep.subr.bf16.mxu0 %v887_v44 }
  0x2a   :  { %829 = vmatprep.subr.bf16.mxu1 %v887_v44 }
  0x2b   :  { %488 = vmatmul.mubr.bf16.gmra.mrb[4].mxu0 %v878_v40 }
  0x2c   :  { %553 = vmatmul.mubr.bf16.gmra.mrb[4].mxu1 %v879_v41  ;;  %495 = vmatprep.mubr.bf16.mxu0 %v881_v42 }
  0x2d   :  { %560 = vmatprep.mubr.bf16.mxu1 %v883_v43  ;;  %816 = vmatpush3.bf16.msra.mxu0 %v887_v44 }
  0x2e   :  { %833 = vmatpush3.bf16.msra.mxu1 %v887_v44  ;;  %817 = vmatprep.subr.bf16.mxu0 %v894_v45 }
  0x2f   :  { %830 = vmatprep.subr.bf16.mxu1 %v894_v45 }
  0x31   :  { %818 = vmatpush3.bf16.msra.mxu0 %v894_v45 }
  0x32   :  { %834 = vmatpush3.bf16.msra.mxu1 %v894_v45 }
  0x33   :  { %496 = vmatmul.mubr.bf16.gmra.mrb[8].mxu0 %v885_v46 }
  0x34   :  { %561 = vmatmul.mubr.bf16.gmra.mrb[8].mxu1 %v886_v47  ;;  %503 = vmatprep.mubr.bf16.mxu0 %v888_v48 }
  0x35   :  { %568 = vmatprep.mubr.bf16.mxu1 %v890_v49 }
  0x3b   :  { %504 = vmatmul.mubr.bf16.gmra.mrb[12].mxu0 %v892_v50 }
  0x3c   :  { %569 = vmatmul.mubr.bf16.gmra.mrb[12].mxu1 %v893_v51  ;;  %819 = vmatprep.mubr.msk.bf16.mxu0 %vm434_vm0, %v895_v52 }
  0x3d   :  { %823 = vmatprep.mubr.msk.bf16.mxu1 %vm434_vm0, %v896_v53 }
  0x43   :  { %820 = vmatmul.mubr.msk.bf16.vlgmr.msra.gmra.mrb[16].mxu0 %vm434_vm0, %v897_v54 }
  0x44   :  { %824 = vmatmul.mubr.msk.bf16.vlgmr.msra.gmra.mrb[16].mxu1 %vm434_vm0, %v898_v55 }
  0xf6   :  { %v739_v56 = vpop.f32.mrb[0].mxu0 }
  0xf7   :  { %v779_v57 = vpop.f32.mrb[0].mxu1  ;;  %v740_v59 = vpop.f32.mrb[1].mxu0 }
  0xf8   :  { %v741_v60 = vadd.f32 %v740_v59, %v739_v56  ;;  %v780_v61 = vpop.f32.mrb[1].mxu1  ;;  %v742_v62 = vpop.f32.mrb[2].mxu0 }
  0xf9   :  { %v781_v63 = vadd.f32 %v780_v61, %v779_v57  ;;  %v782_v0 = vpop.f32.mrb[2].mxu1  ;;  %v743_v1 = vpop.f32.mrb[3].mxu0 }
  0xfa   :  { %v482_v2 = vadd.f32 %v741_v60, %v662_v58  ;;  %v744_v3 = vadd.f32 %v743_v1, %v742_v62  ;;  %v783_v4 = vpop.f32.mrb[3].mxu1 }
  0xfb   :  { %v784_v5 = vadd.f32 %v783_v4, %v782_v0 }
  0xfc   :  { %v485_v6 = vadd.f32 %v744_v3, %v662_v58  ;;  %v547_v7 = vadd.f32 %v781_v63, %v482_v2 }
  0xfe   :  { %v745_v8 = vpop.f32.mrb[4].mxu0  ;;  %v1090_v9 = vadd.f32 %v784_v5, %v485_v6 }
  0xff   :  { %v785_v10 = vpop.f32.mrb[4].mxu1  ;;  %v746_v11 = vpop.f32.mrb[5].mxu0 }
 0x100   :  { %v747_v12 = vadd.f32 %v746_v11, %v745_v8  ;;  %v786_v13 = vpop.f32.mrb[5].mxu1  ;;  %v748_v14 = vpop.f32.mrb[6].mxu0 }
 0x101   :  { %v787_v15 = vadd.f32 %v786_v13, %v785_v10  ;;  %v788_v16 = vpop.f32.mrb[6].mxu1  ;;  %v749_v17 = vpop.f32.mrb[7].mxu0 }
 0x102   :  { %v490_v18 = vadd.f32 %v747_v12, %v662_v58  ;;  %v750_v19 = vadd.f32 %v749_v17, %v748_v14  ;;  %v789_v20 = vpop.f32.mrb[7].mxu1 }
 0x103   :  { %v790_v21 = vadd.f32 %v789_v20, %v788_v16 }
 0x104   :  { %v493_v22 = vadd.f32 %v750_v19, %v662_v58  ;;  %v555_v23 = vadd.f32 %v787_v15, %v490_v18 }
 0x106   :  { %v751_v24 = vpop.f32.mrb[8].mxu0  ;;  %v558_v25 = vadd.f32 %v790_v21, %v493_v22 }
 0x107   :  { %v791_v26 = vpop.f32.mrb[8].mxu1  ;;  %v752_v27 = vpop.f32.mrb[9].mxu0 }
 0x108   :  { %v753_v28 = vadd.f32 %v752_v27, %v751_v24  ;;  %v792_v29 = vpop.f32.mrb[9].mxu1  ;;  %v754_v30 = vpop.f32.mrb[10].mxu0 }
 0x109   :  { %v793_v31 = vadd.f32 %v792_v29, %v791_v26  ;;  %v794_v32 = vpop.f32.mrb[10].mxu1  ;;  %v755_v33 = vpop.f32.mrb[11].mxu0 }
 0x10a   :  { %v498_v34 = vadd.f32 %v753_v28, %v662_v58  ;;  %v756_v35 = vadd.f32 %v755_v33, %v754_v30  ;;  %v795_v36 = vpop.f32.mrb[11].mxu1 }
 0x10b   :  { %v796_v37 = vadd.f32 %v795_v36, %v794_v32 }
 0x10c   :  { %v501_v38 = vadd.f32 %v756_v35, %v662_v58  ;;  %v563_v39 = vadd.f32 %v793_v31, %v498_v34 }
 0x10e   :  { %v757_v40 = vpop.f32.mrb[12].mxu0  ;;  %v566_v41 = vadd.f32 %v796_v37, %v501_v38 }
 0x10f   :  { %v797_v42 = vpop.f32.mrb[12].mxu1  ;;  %v758_v43 = vpop.f32.mrb[13].mxu0 }
 0x110   :  { %v759_v44 = vadd.f32 %v758_v43, %v757_v40  ;;  %v798_v45 = vpop.f32.mrb[13].mxu1  ;;  %v760_v46 = vpop.f32.mrb[14].mxu0 }
 0x111   :  { %v799_v47 = vadd.f32 %v798_v45, %v797_v42  ;;  %v800_v48 = vpop.f32.mrb[14].mxu1  ;;  %v761_v49 = vpop.f32.mrb[15].mxu0 }
 0x112   :  { %v506_v50 = vadd.f32 %v759_v44, %v662_v58  ;;  %v762_v51 = vadd.f32 %v761_v49, %v760_v46  ;;  %v801_v52 = vpop.f32.mrb[15].mxu1 }
 0x113   :  { %v802_v53 = vadd.f32 %v801_v52, %v800_v48 }
 0x114   :  { %v509_v54 = vadd.f32 %v762_v51, %v662_v58  ;;  %v571_v55 = vadd.f32 %v799_v47, %v506_v50 }
 0x116   :  { %v821_v56 = vpop.f32.mrb[16].mxu0  ;;  %v574_v57 = vadd.f32 %v802_v53, %v509_v54 }
 0x117   :  { %v620_v59 = vadd.f32 %v821_v56, %v555_v23  ;;  %v825_v60 = vpop.f32.mrb[16].mxu1  ;;  %v611_v61 = vpop.f32.mrb[17].mxu0 }
 0x118   :  { %v636_v62 = vadd.f32 %v825_v60, %v571_v55  ;;  %v612_v63 = vadd.f32 %v611_v61, %v547_v7  ;;  %v627_v0 = vpop.f32.mrb[17].mxu1  ;;  %v822_v1 = vpop.f32.mrb[18].mxu0 }
 0x119   :  { %v644_v2 = vmax.f32 %v620_v59, 0.0  ;;  %v628_v3 = vadd.f32 %v627_v0, %v563_v39  ;;  %v623_v4 = vadd.f32 %v822_v1, %v558_v25  ;;  %v826_v5 = vpop.f32.mrb[18].mxu1  ;;  %v614_v6 = vpop.f32.mrb[19].mxu0 }
 0x11a   :  { %v648_v8 = vmax.f32 %v636_v62, 0.0  ;;  %v642_v10 = vmax.f32 %v612_v63, 0.0  ;;  %v639_v11 = vadd.f32 %v826_v5, %v574_v57  ;;  %v615_v58 = vadd.f32 %v614_v6, %v1090_v9  ;;  %v630_v12 = vpop.f32.mrb[19].mxu1 }
 0x11b   :  { %652 = vst [vmem:[%s1120_s3 + $0x10] sm:$0xff] %v644_v2  ;;  %v646_v13 = vmax.f32 %v628_v3, 0.0  ;;  %v645_v14 = vmax.f32 %v623_v4, 0.0  ;;  %v631_v7 = vadd.f32 %v630_v12, %v566_v41 }
 0x11c   :  { %656 = vst [vmem:[%s1120_s3 + $0x30] sm:$0xff] %v648_v8  ;;  %650 = vst [vmem:[%s1120_s3] sm:$0xff] %v642_v10  ;;  %v649_v15 = vmax.f32 %v639_v11, 0.0  ;;  %v643_v16 = vmax.f32 %v615_v58, 0.0 }
 0x11d   :  { %654 = vst [vmem:[%s1120_s3 + $0x20] sm:$0xff] %v646_v13  ;;  %653 = vst [vmem:[%s1120_s3 + $0x18] sm:$0xff] %v645_v14  ;;  %v647_v9 = vmax.f32 %v631_v7, 0.0 }
 0x11e   :  { %657 = vst [vmem:[%s1120_s3 + $0x38] sm:$0xff] %v649_v15  ;;  %651 = vst [vmem:[%s1120_s3 + $0x8] sm:$0xff] %v643_v16 }
 0x11f   :  { %655 = vst [vmem:[%s1120_s3 + $0x28] sm:$0xff] %v647_v9 }

// kernel: model_fwd.227
= control target key start
LH: loop header
LB: loop body
LE: loop exit
PB: predicated region body
PF: predicated region fallthrough
CT: control target
= control target key end

     0   :  { %s355_s1 = inlined_call_operand.vmem [shape: bf16[128,128], index: 1, kind: input, shape index: {}]   ;;  %s356_s0 = inlined_call_operand.vmem [shape: bf16[64,128], index: 0, kind: input, shape index: {}]   ;;  %s357_s2 = inlined_call_operand.vmem [shape: f32[1,128], index: 2, kind: input, shape index: {}]   ;;  %s358_s3 = inlined_call_operand.vmem [shape: f32[64,128], index: 3, kind: output, shape index: {}]  }
   0x1   :  { %v260_v0 = vld [vmem:[%s355_s1] sm:$0xff]   ;;  %v261_v1 = vld [vmem:[%s355_s1 + $0x8] sm:$0xff]   ;;  %v262_v2 = vld [vmem:[%s355_s1 + $0x10] sm:$0xff]  }
   0x2   :  { %220 = vmatprep.subr.bf16.mxu0 %v260_v0  ;;  %244 = vmatprep.subr.bf16.mxu1 %v260_v0  ;;  %v263_v3 = vld [vmem:[%s355_s1 + $0x18] sm:$0xff]   ;;  %v268_v4 = vld [vmem:[%s356_s0] sm:$0xff]   ;;  %v269_v5 = vld [vmem:[%s356_s0 + $0x10] sm:$0xff]  }
   0x3   :  { %221 = vmatpush3.bf16.msra.mxu0 %v260_v0  ;;  %252 = vmatpush3.bf16.msra.mxu1 %v260_v0  ;;  %v264_v6 = vld [vmem:[%s355_s1 + $0x20] sm:$0xff]   ;;  %v265_v7 = vld [vmem:[%s355_s1 + $0x28] sm:$0xff]   ;;  %v266_v8 = vld [vmem:[%s355_s1 + $0x30] sm:$0xff]  }
   0x4   :  { %222 = vmatprep.subr.bf16.mxu0 %v261_v1  ;;  %245 = vmatprep.subr.bf16.mxu1 %v261_v1  ;;  %v267_v9 = vld [vmem:[%s355_s1 + $0x38] sm:$0xff]   ;;  %v270_v10 = vld [vmem:[%s356_s0 + $0x8] sm:$0xff]   ;;  %v195_v12 = vld [vmem:[%s357_s2] ss:$0 sm:$0xff] }
   0x5   :  { %236 = vmatprep.mubr.bf16.mxu0 %v268_v4  ;;  %240 = vmatprep.mubr.bf16.mxu1 %v269_v5  ;;  %v271_v11 = vld [vmem:[%s356_s0 + $0x18] sm:$0xff]  }
   0x7   :  { %223 = vmatpush3.bf16.msra.mxu0 %v261_v1  ;;  %253 = vmatpush3.bf16.msra.mxu1 %v261_v1 }
   0x8   :  { %224 = vmatprep.subr.bf16.mxu0 %v262_v2  ;;  %246 = vmatprep.subr.bf16.mxu1 %v262_v2 }
   0xb   :  { %225 = vmatpush3.bf16.msra.mxu0 %v262_v2  ;;  %254 = vmatpush3.bf16.msra.mxu1 %v262_v2 }
   0xc   :  { %226 = vmatprep.subr.bf16.mxu0 %v263_v3  ;;  %247 = vmatprep.subr.bf16.mxu1 %v263_v3 }
   0xf   :  { %227 = vmatpush3.bf16.msra.mxu0 %v263_v3  ;;  %255 = vmatpush3.bf16.msra.mxu1 %v263_v3 }
  0x10   :  { %228 = vmatprep.subr.bf16.mxu0 %v264_v6  ;;  %248 = vmatprep.subr.bf16.mxu1 %v264_v6 }
  0x13   :  { %229 = vmatpush3.bf16.msra.mxu0 %v264_v6  ;;  %256 = vmatpush3.bf16.msra.mxu1 %v264_v6 }
  0x14   :  { %230 = vmatprep.subr.bf16.mxu0 %v265_v7  ;;  %249 = vmatprep.subr.bf16.mxu1 %v265_v7 }
  0x17   :  { %231 = vmatpush3.bf16.msra.mxu0 %v265_v7  ;;  %257 = vmatpush3.bf16.msra.mxu1 %v265_v7 }
  0x18   :  { %232 = vmatprep.subr.bf16.mxu0 %v266_v8  ;;  %250 = vmatprep.subr.bf16.mxu1 %v266_v8 }
  0x1b   :  { %233 = vmatpush3.bf16.msra.mxu0 %v266_v8  ;;  %258 = vmatpush3.bf16.msra.mxu1 %v266_v8 }
  0x1c   :  { %234 = vmatprep.subr.bf16.mxu0 %v267_v9  ;;  %251 = vmatprep.subr.bf16.mxu1 %v267_v9 }
  0x1f   :  { %235 = vmatpush3.bf16.msra.mxu0 %v267_v9  ;;  %259 = vmatpush3.bf16.msra.mxu1 %v267_v9 }
  0x22   :  { %237 = vmatmul.mubr.bf16.vlgmr.msra.gmra.mrb[0].mxu0 %v270_v10  ;;  %241 = vmatmul.mubr.bf16.vlgmr.msra.gmra.mrb[0].mxu1 %v271_v11 }
  0xf5   :  { %v238_v13 = vpop.f32.mrb[0].mxu0  ;;  %v242_v14 = vpop.f32.mrb[0].mxu1 }
  0xf6   :  { %v161_v15 = vadd.f32 %v238_v13, %v195_v12  ;;  %v177_v16 = vadd.f32 %v242_v14, %v195_v12  ;;  %v152_v17 = vpop.f32.mrb[1].mxu0  ;;  %v168_v18 = vpop.f32.mrb[1].mxu1 }
  0xf7   :  { %v153_v19 = vadd.f32 %v195_v12, %v152_v17  ;;  %v169_v20 = vadd.f32 %v195_v12, %v168_v18  ;;  %v239_v21 = vpop.f32.mrb[2].mxu0  ;;  %v243_v22 = vpop.f32.mrb[2].mxu1 }
  0xf8   :  { %185 = vst [vmem:[%s358_s3 + $0x10] sm:$0xff] %v161_v15  ;;  %189 = vst [vmem:[%s358_s3 + $0x30] sm:$0xff] %v177_v16  ;;  %v164_v23 = vadd.f32 %v239_v21, %v195_v12  ;;  %v180_v24 = vadd.f32 %v243_v22, %v195_v12  ;;  %v155_v25 = vpop.f32.mrb[3].mxu0  ;;  %v171_v26 = vpop.f32.mrb[3].mxu1 }
  0xf9   :  { %183 = vst [vmem:[%s358_s3] sm:$0xff] %v153_v19  ;;  %187 = vst [vmem:[%s358_s3 + $0x20] sm:$0xff] %v169_v20  ;;  %v156_v27 = vadd.f32 %v195_v12, %v155_v25  ;;  %v172_v28 = vadd.f32 %v195_v12, %v171_v26 }
  0xfa   :  { %186 = vst [vmem:[%s358_s3 + $0x18] sm:$0xff] %v164_v23  ;;  %190 = vst [vmem:[%s358_s3 + $0x38] sm:$0xff] %v180_v24 }
  0xfb   :  { %184 = vst [vmem:[%s358_s3 + $0x8] sm:$0xff] %v156_v27  ;;  %188 = vst [vmem:[%s358_s3 + $0x28] sm:$0xff] %v172_v28 }

// kernel: model_fwd.226
= control target key start
LH: loop header
LB: loop body
LE: loop exit
PB: predicated region body
PF: predicated region fallthrough
CT: control target
= control target key end

     0   :  { %vm626_vm0 = vcmask 785408   ;;  %s1547_s1 = inlined_call_operand.vmem [shape: bf16[864,128], index: 1, kind: input, shape index: {}]   ;;  %s1548_s0 = inlined_call_operand.vmem [shape: bf16[64,864], index: 0, kind: input, shape index: {}]   ;;  %s1549_s2 = inlined_call_operand.vmem [shape: f32[1,128], index: 2, kind: input, shape index: {}]   ;;  %s1550_s3 = inlined_call_operand.vmem [shape: f32[64,128], index: 3, kind: output, shape index: {}]  }
   0x1   :  { %v1156_v0 = vld [vmem:[%s1547_s1 + $0x40] sm:$0xff]   ;;  %v1160_v4 = vld [vmem:[%s1547_s1 + $0x48] sm:$0xff]   ;;  %v1164_v8 = vld [vmem:[%s1547_s1 + $0x50] sm:$0xff]  }
   0x2   :  { %v1157_v1 = vld [vmem:[%s1547_s1] sm:$0xff]   ;;  %1006 = vmatprep.subr.bf16.mxu0 %v1156_v0  ;;  %v1161_v5 = vld [vmem:[%s1547_s1 + $0x8] sm:$0xff]   ;;  %v1165_v9 = vld [vmem:[%s1547_s1 + $0x10] sm:$0xff]  }
   0x3   :  { %v1158_v2 = vld [vmem:[%s1547_s1 + $0xc0] sm:$0xff]   ;;  %1007 = vmatpush3.bf16.msra.mxu0 %v1157_v1  ;;  %v1162_v6 = vld [vmem:[%s1547_s1 + $0xc8] sm:$0xff]   ;;  %v1166_v10 = vld [vmem:[%s1547_s1 + $0xd0] sm:$0xff]  }
   0x4   :  { %v1159_v3 = vld [vmem:[%s1547_s1 + $0x80] sm:$0xff]   ;;  %1046 = vmatprep.subr.bf16.mxu1 %v1158_v2  ;;  %1008 = vmatprep.subr.bf16.mxu0 %v1160_v4  ;;  %v1163_v7 = vld [vmem:[%s1547_s1 + $0x88] sm:$0xff]   ;;  %v1167_v11 = vld [vmem:[%s1547_s1 + $0x90] sm:$0xff]  }
   0x5   :  { %1047 = vmatpush3.bf16.msra.mxu1 %v1159_v3  ;;  %v1168_v12 = vld [vmem:[%s1547_s1 + $0x58] sm:$0xff]   ;;  %v1172_v16 = vld [vmem:[%s1547_s1 + $0x60] sm:$0xff]   ;;  %v1176_v20 = vld [vmem:[%s1547_s1 + $0x68] sm:$0xff]  }
   0x6   :  { %1048 = vmatprep.subr.bf16.mxu1 %v1162_v6  ;;  %v1169_v13 = vld [vmem:[%s1547_s1 + $0x18] sm:$0xff]   ;;  %v1173_v17 = vld [vmem:[%s1547_s1 + $0x20] sm:$0xff]   ;;  %v1177_v21 = vld [vmem:[%s1547_s1 + $0x28] sm:$0xff]  }
   0x7   :  { %1009 = vmatpush3.bf16.msra.mxu0 %v1161_v5  ;;  %v1170_v14 = vld [vmem:[%s1547_s1 + $0xd8] sm:$0xff]   ;;  %v1174_v18 = vld [vmem:[%s1547_s1 + $0xe0] sm:$0xff]   ;;  %v1178_v22 = vld [vmem:[%s1547_s1 + $0xe8] sm:$0xff]  }
   0x8   :  { %1010 = vmatprep.subr.bf16.mxu0 %v1164_v8  ;;  %v1171_v15 = vld [vmem:[%s1547_s1 + $0x98] sm:$0xff]   ;;  %v1175_v19 = vld [vmem:[%s1547_s1 + $0xa0] sm:$0xff]   ;;  %v1179_v23 = vld [vmem:[%s1547_s1 + $0xa8] sm:$0xff]  }
   0x9   :  { %1049 = vmatpush3.bf16.msra.mxu1 %v1163_v7  ;;  %v1180_v24 = vld [vmem:[%s1547_s1 + $0x70] sm:$0xff]   ;;  %v1184_v28 = vld [vmem:[%s1547_s1 + $0x78] sm:$0xff]   ;;  %v1189_v32 = vld [vmem:[%s1548_s0 + $0x4] ss:$28 sps:$4 sm:$0xff]  }
   0xa   :  { %1050 = vmatprep.subr.bf16.mxu1 %v1166_v10  ;;  %v1181_v25 = vld [vmem:[%s1547_s1 + $0x30] sm:$0xff]   ;;  %v1185_v29 = vld [vmem:[%s1547_s1 + $0x38] sm:$0xff]   ;;  %671 = vmatprep.mubr.bf16.mxu0 %v1189_v32  ;;  %v1191_v34 = vld [vmem:[%s1547_s1 + $0x140] sm:$0xff]  }
   0xb   :  { %1011 = vmatpush3.bf16.msra.mxu0 %v1165_v9  ;;  %v1182_v26 = vld [vmem:[%s1547_s1 + $0xf0] sm:$0xff]   ;;  %v1186_v30 = vld [vmem:[%s1547_s1 + $0xf8] sm:$0xff]   ;;  %v1192_v35 = vld [vmem:[%s1548_s0 + $0x8] ss:$28 sps:$4 sm:$0xff]  }
   0xc   :  { %1012 = vmatprep.subr.bf16.mxu0 %v1168_v12  ;;  %v1183_v27 = vld [vmem:[%s1547_s1 + $0xb0] sm:$0xff]   ;;  %v1187_v31 = vld [vmem:[%s1548_s0] ss:$28 sps:$4 sm:$0xff]   ;;  %v1194_v36 = vld [vmem:[%s1548_s0 + $0xc] ss:$28 sps:$4 sm:$0xff]  }
   0xd   :  { %1051 = vmatpush3.bf16.msra.mxu1 %v1167_v11  ;;  %v1190_v33 = vld [vmem:[%s1547_s1 + $0xb8] sm:$0xff]   ;;  %v1195_v37 = vld [vmem:[%s1547_s1 + $0x100] sm:$0xff]   ;;  %736 = vmatprep.mubr.bf16.mxu1 %v1194_v36  ;;  %v1196_v38 = vld [vmem:[%s1547_s1 + $0x148] sm:$0xff]  }
   0xe   :  { %1052 = vmatprep.subr.bf16.mxu1 %v1170_v14  ;;  %v1197_v39 = vld [vmem:[%s1547_s1 + $0x108] sm:$0xff]   ;;  %v1198_v40 = vld [vmem:[%s1548_s0 + $0x3c] ss:$28 sps:$4 sm:$0xff]   ;;  %v1201_v42 = vld [vmem:[%s1547_s1 + $0x150] sm:$0xff]  }
   0xf   :  { %1013 = vmatpush3.bf16.msra.mxu0 %v1169_v13  ;;  %v1200_v41 = vld [vmem:[%s1548_s0 + $0x38] ss:$28 sps:$4 sm:$0xff]   ;;  %v1202_v43 = vld [vmem:[%s1548_s0 + $0x44] ss:$28 sps:$4 sm:$0xff]   ;;  %v1211_v50 = vld [vmem:[%s1548_s0 + $0x70] ss:$28 sps:$4 sm:$0xff]  }
  0x10   :  { %1014 = vmatprep.subr.bf16.mxu0 %v1172_v16  ;;  %v1204_v44 = vld [vmem:[%s1547_s1 + $0x110] sm:$0xff]   ;;  %v1205_v45 = vld [vmem:[%s1548_s0 + $0x40] ss:$28 sps:$4 sm:$0xff]   ;;  %v1213_v52 = vld [vmem:[%s1547_s1 + $0x188] sm:$0xff]  }
  0x11   :  { %1053 = vmatpush3.bf16.msra.mxu1 %v1171_v15  ;;  %v1206_v46 = vld [vmem:[%s1547_s1 + $0x158] sm:$0xff]   ;;  %v1207_v47 = vld [vmem:[%s1547_s1 + $0x180] sm:$0xff]   ;;  %v1209_v49 = vld [vmem:[%s1548_s0 + $0x74] ss:$28 sps:$4 sm:$0xff]  }
  0x12   :  { %1054 = vmatprep.subr.bf16.mxu1 %v1174_v18  ;;  %v1208_v48 = vld [vmem:[%s1547_s1 + $0x118] sm:$0xff]   ;;  %v1212_v51 = vld [vmem:[%s1547_s1 + $0x160] sm:$0xff]   ;;  %v1218_v56 = vld [vmem:[%s1547_s1 + $0x168] sm:$0xff]  }
  0x13   :  { %1015 = vmatpush3.bf16.msra.mxu0 %v1173_v17  ;;  %v1214_v53 = vld [vmem:[%s1548_s0 + $0x7c] ss:$28 sps:$4 sm:$0xff]   ;;  %v1216_v54 = vld [vmem:[%s1547_s1 + $0x120] sm:$0xff]   ;;  %v1219_v57 = vld [vmem:[%s1547_s1 + $0x190] sm:$0xff]  }
  0x14   :  { %1016 = vmatprep.subr.bf16.mxu0 %v1176_v20  ;;  %v1217_v55 = vld [vmem:[%s1548_s0 + $0x78] ss:$28 sps:$4 sm:$0xff]   ;;  %v1220_v58 = vld [vmem:[%s1547_s1 + $0x128] sm:$0xff]   ;;  %v1231_v3 = vld [vmem:[%s1547_s1 + $0x1a0] sm:$0xff]  }
  0x15   :  { %1055 = vmatpush3.bf16.msra.mxu1 %v1175_v19  ;;  %v1221_v59 = vld [vmem:[%s1548_s0 + $0xac] ss:$28 sps:$4 sm:$0xff]   ;;  %v1224_v61 = vld [vmem:[%s1547_s1 + $0x170] sm:$0xff]   ;;  %v1225_v62 = vld [vmem:[%s1547_s1 + $0x198] sm:$0xff]  }
  0x16   :  { %1056 = vmatprep.subr.bf16.mxu1 %v1178_v22  ;;  %v1223_v60 = vld [vmem:[%s1548_s0 + $0xa8] ss:$28 sps:$4 sm:$0xff]   ;;  %v1226_v63 = vld [vmem:[%s1548_s0 + $0xb4] ss:$28 sps:$4 sm:$0xff]   ;;  %v1230_v2 = vld [vmem:[%s1547_s1 + $0x178] sm:$0xff]  }
  0x17   :  { %1017 = vmatpush3.bf16.msra.mxu0 %v1177_v21  ;;  %v1228_v0 = vld [vmem:[%s1547_s1 + $0x130] sm:$0xff]   ;;  %v1232_v4 = vld [vmem:[%s1547_s1 + $0x138] sm:$0xff]   ;;  %v1236_v7 = vld [vmem:[%s1547_s1 + $0x1a8] sm:$0xff]  }
  0x18   :  { %1018 = vmatprep.subr.bf16.mxu0 %v1180_v24  ;;  %v1229_v1 = vld [vmem:[%s1548_s0 + $0xb0] ss:$28 sps:$4 sm:$0xff]   ;;  %v1237_v8 = vld [vmem:[%s1548_s0 + $0x18] ss:$28 sps:$4 sm:$0xff]   ;;  %v1245_v11 = vld [vmem:[%s1548_s0 + $0x88] ss:$28 sps:$4 sm:$0xff]  }
  0x19   :  { %1057 = vmatpush3.bf16.msra.mxu1 %v1179_v23  ;;  %v1233_v5 = vld [vmem:[%s1548_s0 + $0x10] ss:$28 sps:$4 sm:$0xff]   ;;  %v1241_v12 = vld [vmem:[%s1548_s0 + $0x48] ss:$28 sps:$4 sm:$0xff]   ;;  %v1246_v14 = vld [vmem:[%s1548_s0 + $0xc0] ss:$28 sps:$4 sm:$0xff]  }
  0x1a   :  { %1058 = vmatprep.subr.bf16.mxu1 %v1182_v26  ;;  %v1235_v6 = vld [vmem:[%s1548_s0 + $0x14] ss:$28 sps:$4 sm:$0xff]   ;;  %v1239_v10 = vld [vmem:[%s1548_s0 + $0x4c] ss:$28 sps:$4 sm:$0xff]   ;;  %v1242_v13 = vld [vmem:[%s1548_s0 + $0x84] ss:$28 sps:$4 sm:$0xff]  }
  0x1b   :  { %1019 = vmatpush3.bf16.msra.mxu0 %v1181_v25  ;;  %v1238_v9 = vld [vmem:[%s1548_s0 + $0x50] ss:$28 sps:$4 sm:$0xff]   ;;  %v1244_v15 = vld [vmem:[%s1548_s0 + $0x80] ss:$28 sps:$4 sm:$0xff]   ;;  %v1249_v17 = vld [vmem:[%s1548_s0 + $0xb8] ss:$28 sps:$4 sm:$0xff]  }
  0x1c   :  { %1020 = vmatprep.subr.bf16.mxu0 %v1184_v28  ;;  %v1247_v16 = vld [vmem:[%s1548_s0 + $0xbc] ss:$28 sps:$4 sm:$0xff]   ;;  %v919_v19 = vld [vmem:[%s1549_s2] ss:$0 sm:$0xff] }
  0x1d   :  { %1059 = vmatpush3.bf16.msra.mxu1 %v1183_v27 }
  0x1e   :  { %1060 = vmatprep.subr.bf16.mxu1 %v1186_v30 }
  0x1f   :  { %1021 = vmatpush3.bf16.msra.mxu0 %v1185_v29 }
  0x20   :  { %1086 = vmatprep.subr.bf16.mxu0 %v1191_v34 }
  0x21   :  { %1061 = vmatpush3.bf16.msra.mxu1 %v1190_v33 }
  0x22   :  { %672 = vmatmul.mubr.bf16.vlgmr.msra.gmra.mrb[0].mxu0 %v1187_v31  ;;  %1136 = vmatprep.subr.bf16.mxu1 %v1207_v47 }
  0x23   :  { %1087 = vmatpush3.bf16.msra.mxu0 %v1195_v37  ;;  %679 = vmatprep.mubr.bf16.mxu0 %v1198_v40 }
  0x24   :  { %737 = vmatmul.mubr.bf16.vlgmr.msra.gmra.mrb[0].mxu1 %v1192_v35  ;;  %1088 = vmatprep.subr.bf16.mxu0 %v1196_v38 }
  0x25   :  { %744 = vmatprep.mubr.bf16.mxu1 %v1202_v43  ;;  %1137 = vmatpush3.bf16.msra.mxu1 %v1207_v47 }
  0x26   :  { %1138 = vmatprep.subr.bf16.mxu1 %v1213_v52 }
  0x27   :  { %1089 = vmatpush3.bf16.msra.mxu0 %v1197_v39 }
  0x28   :  { %1090 = vmatprep.subr.bf16.mxu0 %v1201_v42 }
  0x29   :  { %1139 = vmatpush3.bf16.msra.mxu1 %v1213_v52 }
  0x2a   :  { %680 = vmatmul.mubr.bf16.gmra.mrb[4].mxu0 %v1200_v41  ;;  %1140 = vmatprep.subr.bf16.mxu1 %v1219_v57 }
  0x2b   :  { %1091 = vmatpush3.bf16.msra.mxu0 %v1204_v44  ;;  %687 = vmatprep.mubr.bf16.mxu0 %v1209_v49 }
  0x2c   :  { %745 = vmatmul.mubr.bf16.gmra.mrb[4].mxu1 %v1205_v45  ;;  %1092 = vmatprep.subr.bf16.mxu0 %v1206_v46 }
  0x2d   :  { %752 = vmatprep.mubr.bf16.mxu1 %v1214_v53  ;;  %1141 = vmatpush3.bf16.msra.mxu1 %v1219_v57 }
  0x2e   :  { %1142 = vmatprep.subr.bf16.mxu1 %v1225_v62 }
  0x2f   :  { %1093 = vmatpush3.bf16.msra.mxu0 %v1208_v48 }
  0x30   :  { %1094 = vmatprep.subr.bf16.mxu0 %v1212_v51 }
  0x31   :  { %1143 = vmatpush3.bf16.msra.mxu1 %v1225_v62 }
  0x32   :  { %688 = vmatmul.mubr.bf16.gmra.mrb[8].mxu0 %v1211_v50  ;;  %1144 = vmatprep.subr.bf16.mxu1 %v1231_v3 }
  0x33   :  { %1095 = vmatpush3.bf16.msra.mxu0 %v1216_v54  ;;  %695 = vmatprep.mubr.bf16.mxu0 %v1221_v59 }
  0x34   :  { %753 = vmatmul.mubr.bf16.gmra.mrb[8].mxu1 %v1217_v55  ;;  %1096 = vmatprep.subr.bf16.mxu0 %v1218_v56 }
  0x35   :  { %760 = vmatprep.mubr.bf16.mxu1 %v1226_v63  ;;  %1145 = vmatpush3.bf16.msra.mxu1 %v1231_v3 }
  0x36   :  { %1146 = vmatprep.subr.bf16.mxu1 %v1236_v7 }
  0x37   :  { %1097 = vmatpush3.bf16.msra.mxu0 %v1220_v58 }
  0x38   :  { %1098 = vmatprep.subr.bf16.mxu0 %v1224_v61 }
  0x39   :  { %1147 = vmatpush3.bf16.msra.mxu1 %v1236_v7 }
  0x3a   :  { %696 = vmatmul.mubr.bf16.gmra.mrb[12].mxu0 %v1223_v60 }
  0x3b   :  { %1099 = vmatpush3.bf16.msra.mxu0 %v1228_v0  ;;  %801 = vmatprep.mubr.bf16.mxu0 %v1235_v6 }
  0x3c   :  { %761 = vmatmul.mubr.bf16.gmra.mrb[12].mxu1 %v1229_v1  ;;  %1100 = vmatprep.subr.bf16.mxu0 %v1230_v2 }
  0x3d   :  { %1148 = vmatprep.mubr.msk.bf16.mxu1 %vm626_vm0, %v1237_v8 }
  0x3f   :  { %1101 = vmatpush3.bf16.msra.mxu0 %v1232_v4 }
  0x42   :  { %802 = vmatmul.mubr.bf16.vlgmr.msra.gmra.mrb[16].mxu0 %v1233_v5 }
  0x43   :  { %809 = vmatprep.mubr.bf16.mxu0 %v1239_v10 }
  0x44   :  { %1149 = vmatmul.mubr.msk.bf16.vlgmr.msra.gmra.mrb[16].mxu1 %vm626_vm0, %v1238_v9 }
  0x45   :  { %1152 = vmatprep.mubr.msk.bf16.mxu1 %vm626_vm0, %v1245_v11 }
  0x4a   :  { %810 = vmatmul.mubr.bf16.gmra.mrb[20].mxu0 %v1241_v12 }
  0x4b   :  { %817 = vmatprep.mubr.bf16.mxu0 %v1242_v13 }
  0x4c   :  { %1153 = vmatmul.mubr.msk.bf16.gmra.mrb[20].mxu1 %vm626_vm0, %v1246_v14 }
  0x52   :  { %818 = vmatmul.mubr.bf16.gmra.mrb[24].mxu0 %v1244_v15 }
  0x53   :  { %825 = vmatprep.mubr.bf16.mxu0 %v1247_v16 }
  0x5a   :  { %826 = vmatmul.mubr.bf16.gmra.mrb[28].mxu0 %v1249_v17 }
  0xf5   :  { %v1022_v18 = vpop.f32.mrb[0].mxu0 }
  0xf6   :  { %v1023_v20 = vpop.f32.mrb[1].mxu0 }
  0xf7   :  { %v1024_v21 = vadd.f32 %v1023_v20, %v1022_v18  ;;  %v1025_v22 = vpop.f32.mrb[2].mxu0  ;;  %v1062_v23 = vpop.f32.mrb[0].mxu1 }
  0xf8   :  { %v1026_v24 = vpop.f32.mrb[3].mxu0  ;;  %v1063_v27 = vpop.f32.mrb[1].mxu1 }
  0xf9   :  { %v674_v25 = vadd.f32 %v1024_v21, %v919_v19  ;;  %v1027_v26 = vadd.f32 %v1026_v24, %v1025_v22  ;;  %v1064_v28 = vadd.f32 %v1063_v27, %v1062_v23  ;;  %v1065_v29 = vpop.f32.mrb[2].mxu1 }
  0xfa   :  { %v1066_v31 = vpop.f32.mrb[3].mxu1 }
  0xfb   :  { %v677_v30 = vadd.f32 %v1027_v26, %v919_v19  ;;  %v739_v32 = vadd.f32 %v1064_v28, %v674_v25  ;;  %v1067_v33 = vadd.f32 %v1066_v31, %v1065_v29 }
  0xfd   :  { %v1028_v34 = vpop.f32.mrb[4].mxu0  ;;  %v742_v35 = vadd.f32 %v1067_v33, %v677_v30 }
  0xfe   :  { %v1029_v36 = vpop.f32.mrb[5].mxu0 }
  0xff   :  { %v1030_v37 = vadd.f32 %v1029_v36, %v1028_v34  ;;  %v1031_v38 = vpop.f32.mrb[6].mxu0  ;;  %v1068_v39 = vpop.f32.mrb[4].mxu1 }
 0x100   :  { %v1032_v40 = vpop.f32.mrb[7].mxu0  ;;  %v1069_v43 = vpop.f32.mrb[5].mxu1 }
 0x101   :  { %v682_v41 = vadd.f32 %v1030_v37, %v919_v19  ;;  %v1033_v42 = vadd.f32 %v1032_v40, %v1031_v38  ;;  %v1070_v44 = vadd.f32 %v1069_v43, %v1068_v39  ;;  %v1071_v45 = vpop.f32.mrb[6].mxu1 }
 0x102   :  { %v1072_v47 = vpop.f32.mrb[7].mxu1 }
 0x103   :  { %v685_v46 = vadd.f32 %v1033_v42, %v919_v19  ;;  %v747_v48 = vadd.f32 %v1070_v44, %v682_v41  ;;  %v1073_v49 = vadd.f32 %v1072_v47, %v1071_v45 }
 0x105   :  { %v1034_v50 = vpop.f32.mrb[8].mxu0  ;;  %v750_v51 = vadd.f32 %v1073_v49, %v685_v46 }
 0x106   :  { %v1035_v52 = vpop.f32.mrb[9].mxu0 }
 0x107   :  { %v1036_v53 = vadd.f32 %v1035_v52, %v1034_v50  ;;  %v1037_v54 = vpop.f32.mrb[10].mxu0  ;;  %v1074_v55 = vpop.f32.mrb[8].mxu1 }
 0x108   :  { %v1038_v56 = vpop.f32.mrb[11].mxu0  ;;  %v1075_v59 = vpop.f32.mrb[9].mxu1 }
 0x109   :  { %v690_v57 = vadd.f32 %v1036_v53, %v919_v19  ;;  %v1039_v58 = vadd.f32 %v1038_v56, %v1037_v54  ;;  %v1076_v60 = vadd.f32 %v1075_v59, %v1074_v55  ;;  %v1077_v61 = vpop.f32.mrb[10].mxu1 }
 0x10a   :  { %v1078_v63 = vpop.f32.mrb[11].mxu1 }
 0x10b   :  { %v693_v62 = vadd.f32 %v1039_v58, %v919_v19  ;;  %v755_v0 = vadd.f32 %v1076_v60, %v690_v57  ;;  %v1079_v1 = vadd.f32 %v1078_v63, %v1077_v61 }
 0x10d   :  { %v1040_v2 = vpop.f32.mrb[12].mxu0  ;;  %v758_v3 = vadd.f32 %v1079_v1, %v693_v62 }
 0x10e   :  { %v1041_v4 = vpop.f32.mrb[13].mxu0 }
 0x10f   :  { %v1042_v5 = vadd.f32 %v1041_v4, %v1040_v2  ;;  %v1043_v6 = vpop.f32.mrb[14].mxu0  ;;  %v1080_v7 = vpop.f32.mrb[12].mxu1 }
 0x110   :  { %v1044_v8 = vpop.f32.mrb[15].mxu0  ;;  %v1081_v11 = vpop.f32.mrb[13].mxu1 }
 0x111   :  { %v698_v9 = vadd.f32 %v1042_v5, %v919_v19  ;;  %v1045_v10 = vadd.f32 %v1044_v8, %v1043_v6  ;;  %v1082_v12 = vadd.f32 %v1081_v11, %v1080_v7  ;;  %v1083_v13 = vpop.f32.mrb[14].mxu1 }
 0x112   :  { %v1084_v15 = vpop.f32.mrb[15].mxu1 }
 0x113   :  { %v701_v14 = vadd.f32 %v1045_v10, %v919_v19  ;;  %v763_v16 = vadd.f32 %v1082_v12, %v698_v9  ;;  %v1085_v17 = vadd.f32 %v1084_v15, %v1083_v13 }
 0x115   :  { %v766_v18 = vadd.f32 %v1085_v17, %v701_v14  ;;  %v1102_v20 = vpop.f32.mrb[16].mxu0 }
 0x116   :  { %v1103_v21 = vpop.f32.mrb[17].mxu0 }
 0x117   :  { %v1104_v22 = vadd.f32 %v1103_v21, %v1102_v20  ;;  %v1105_v23 = vpop.f32.mrb[18].mxu0  ;;  %v1150_v25 = vpop.f32.mrb[16].mxu1 }
 0x118   :  { %v1106_v24 = vpop.f32.mrb[19].mxu0  ;;  %v868_v28 = vpop.f32.mrb[17].mxu1 }
 0x119   :  { %v1107_v26 = vadd.f32 %v1106_v24, %v1105_v23  ;;  %v804_v27 = vadd.f32 %v1104_v22, %v739_v32  ;;  %v1151_v29 = vpop.f32.mrb[18].mxu1 }
 0x11a   :  { %v871_v33 = vpop.f32.mrb[19].mxu1 }
 0x11b   :  { %v869_v30 = vadd.f32 %v868_v28, %v804_v27  ;;  %v807_v31 = vadd.f32 %v1107_v26, %v742_v35 }
 0x11d   :  { %v899_v34 = vmax.f32 %v869_v30, 0.0  ;;  %v872_v36 = vadd.f32 %v871_v33, %v807_v31  ;;  %v1108_v19 = vpop.f32.mrb[20].mxu0 }
 0x11e   :  { %v1109_v37 = vpop.f32.mrb[21].mxu0 }
 0x11f   :  { %907 = vst [vmem:[%s1550_s3] sm:$0xff] %v899_v34  ;;  %v900_v38 = vmax.f32 %v872_v36, 0.0  ;;  %v1110_v39 = vadd.f32 %v1109_v37, %v1108_v19  ;;  %v1111_v40 = vpop.f32.mrb[22].mxu0  ;;  %v1154_v42 = vpop.f32.mrb[20].mxu1 }
 0x120   :  { %v1112_v41 = vpop.f32.mrb[23].mxu0  ;;  %v884_v43 = vpop.f32.mrb[21].mxu1 }
 0x121   :  { %908 = vst [vmem:[%s1550_s3 + $0x8] sm:$0xff] %v900_v38  ;;  %v812_v32 = vadd.f32 %v1110_v39, %v747_v48  ;;  %v1113_v35 = vadd.f32 %v1112_v41, %v1111_v40  ;;  %v1155_v44 = vpop.f32.mrb[22].mxu1 }
 0x122   :  { %v887_v47 = vpop.f32.mrb[23].mxu1 }
 0x123   :  { %v877_v45 = vadd.f32 %v1150_v25, %v812_v32  ;;  %v815_v46 = vadd.f32 %v1113_v35, %v750_v51 }
 0x125   :  { %v901_v49 = vmax.f32 %v877_v45, 0.0  ;;  %v880_v50 = vadd.f32 %v1151_v29, %v815_v46  ;;  %v1114_v52 = vpop.f32.mrb[24].mxu0 }
 0x126   :  { %v1115_v53 = vpop.f32.mrb[25].mxu0 }
 0x127   :  { %909 = vst [vmem:[%s1550_s3 + $0x10] sm:$0xff] %v901_v49  ;;  %v902_v54 = vmax.f32 %v880_v50, 0.0  ;;  %v1116_v55 = vadd.f32 %v1115_v53, %v1114_v52  ;;  %v1117_v56 = vpop.f32.mrb[26].mxu0 }
 0x128   :  { %v1118_v57 = vpop.f32.mrb[27].mxu0 }
 0x129   :  { %910 = vst [vmem:[%s1550_s3 + $0x18] sm:$0xff] %v902_v54  ;;  %v1119_v48 = vadd.f32 %v1118_v57, %v1117_v56  ;;  %v820_v58 = vadd.f32 %v1116_v55, %v755_v0 }
 0x12b   :  { %v885_v51 = vadd.f32 %v884_v43, %v820_v58  ;;  %v823_v59 = vadd.f32 %v1119_v48, %v758_v3 }
 0x12d   :  { %v903_v60 = vmax.f32 %v885_v51, 0.0  ;;  %v888_v61 = vadd.f32 %v887_v47, %v823_v59  ;;  %v1120_v62 = vpop.f32.mrb[28].mxu0 }
 0x12e   :  { %v1121_v63 = vpop.f32.mrb[29].mxu0 }
 0x12f   :  { %911 = vst [vmem:[%s1550_s3 + $0x20] sm:$0xff] %v903_v60  ;;  %v904_v1 = vmax.f32 %v888_v61, 0.0  ;;  %v1122_v2 = vadd.f32 %v1121_v63, %v1120_v62  ;;  %v1123_v4 = vpop.f32.mrb[30].mxu0 }
 0x130   :  { %v1124_v5 = vpop.f32.mrb[31].mxu0 }
 0x131   :  { %912 = vst [vmem:[%s1550_s3 + $0x28] sm:$0xff] %v904_v1  ;;  %v828_v6 = vadd.f32 %v1122_v2, %v763_v16  ;;  %v1125_v0 = vadd.f32 %v1124_v5, %v1123_v4 }
 0x133   :  { %v893_v7 = vadd.f32 %v1154_v42, %v828_v6  ;;  %v831_v3 = vadd.f32 %v1125_v0, %v766_v18 }
 0x135   :  { %v905_v8 = vmax.f32 %v893_v7, 0.0  ;;  %v896_v9 = vadd.f32 %v1155_v44, %v831_v3 }
 0x137   :  { %913 = vst [vmem:[%s1550_s3 + $0x30] sm:$0xff] %v905_v8  ;;  %v906_v10 = vmax.f32 %v896_v9, 0.0 }
 0x139   :  { %914 = vst [vmem:[%s1550_s3 + $0x38] sm:$0xff] %v906_v10 }

// kernel: model_fwd.228
= control target key start
LH: loop header
LB: loop body
LE: loop exit
PB: predicated region body
PF: predicated region fallthrough
CT: control target
= control target key end

     0   :  { %v837_v38 = vmov 0.0   ;;  %vm838_vm0 = vmmov 0   ;;  %vm465_vm1 = vcmask 261120   ;;  %s1039_s1 = inlined_call_operand.vmem [shape: bf16[800,128], index: 1, kind: input, shape index: {}]   ;;  %s1040_s0 = inlined_call_operand.vmem [shape: bf16[16,800], index: 0, kind: input, shape index: {}]   ;;  %s1041_s2 = inlined_call_operand.vmem [shape: f32[1,128], index: 2, kind: input, shape index: {}]   ;;  %s1042_s3 = inlined_call_operand.vmem [shape: f32[16,128], index: 3, kind: output, shape index: {}]  }
   0x1   :  { %v777_v0 = vld [vmem:[%s1039_s1 + $0x40] sm:$0xff]   ;;  %v781_v4 = vld [vmem:[%s1039_s1 + $0x48] sm:$0xff]   ;;  %v785_v8 = vld [vmem:[%s1039_s1 + $0x50] sm:$0xff]  }
   0x2   :  { %v778_v1 = vld [vmem:[%s1039_s1] sm:$0xff]   ;;  %698 = vmatprep.subr.bf16.mxu0 %v777_v0  ;;  %v782_v5 = vld [vmem:[%s1039_s1 + $0x8] sm:$0xff]   ;;  %v786_v9 = vld [vmem:[%s1039_s1 + $0x10] sm:$0xff]  }
   0x3   :  { %v779_v2 = vld [vmem:[%s1039_s1 + $0xc0] sm:$0xff]   ;;  %699 = vmatpush3.bf16.msra.mxu0 %v778_v1  ;;  %v783_v6 = vld [vmem:[%s1039_s1 + $0xc8] sm:$0xff]   ;;  %v787_v10 = vld [vmem:[%s1039_s1 + $0xd0] sm:$0xff]  }
   0x4   :  { %v780_v3 = vld [vmem:[%s1039_s1 + $0x80] sm:$0xff]   ;;  %720 = vmatprep.subr.bf16.mxu1 %v779_v2  ;;  %700 = vmatprep.subr.bf16.mxu0 %v781_v4  ;;  %v784_v7 = vld [vmem:[%s1039_s1 + $0x88] sm:$0xff]   ;;  %v788_v11 = vld [vmem:[%s1039_s1 + $0x90] sm:$0xff]  }
   0x5   :  { %721 = vmatpush3.bf16.msra.mxu1 %v780_v3  ;;  %v789_v12 = vld [vmem:[%s1039_s1 + $0x58] sm:$0xff]   ;;  %v793_v16 = vld [vmem:[%s1039_s1 + $0x60] sm:$0xff]   ;;  %v797_v20 = vld [vmem:[%s1039_s1 + $0x68] sm:$0xff]  }
   0x6   :  { %722 = vmatprep.subr.bf16.mxu1 %v783_v6  ;;  %v790_v13 = vld [vmem:[%s1039_s1 + $0x18] sm:$0xff]   ;;  %v794_v17 = vld [vmem:[%s1039_s1 + $0x20] sm:$0xff]   ;;  %v798_v21 = vld [vmem:[%s1039_s1 + $0x28] sm:$0xff]  }
   0x7   :  { %701 = vmatpush3.bf16.msra.mxu0 %v782_v5  ;;  %v791_v14 = vld [vmem:[%s1039_s1 + $0xd8] sm:$0xff]   ;;  %v795_v18 = vld [vmem:[%s1039_s1 + $0xe0] sm:$0xff]   ;;  %v799_v22 = vld [vmem:[%s1039_s1 + $0xe8] sm:$0xff]  }
   0x8   :  { %702 = vmatprep.subr.bf16.mxu0 %v785_v8  ;;  %v792_v15 = vld [vmem:[%s1039_s1 + $0x98] sm:$0xff]   ;;  %v796_v19 = vld [vmem:[%s1039_s1 + $0xa0] sm:$0xff]   ;;  %v800_v23 = vld [vmem:[%s1039_s1 + $0xa8] sm:$0xff]  }
   0x9   :  { %723 = vmatpush3.bf16.msra.mxu1 %v784_v7  ;;  %v801_v24 = vld [vmem:[%s1039_s1 + $0x70] sm:$0xff]   ;;  %v805_v28 = vld [vmem:[%s1039_s1 + $0x78] sm:$0xff]   ;;  %v810_v32 = vld [vmem:[%s1040_s0 + $0x4] ss:$28 sps:$4 sm:$0xff]  }
   0xa   :  { %724 = vmatprep.subr.bf16.mxu1 %v787_v10  ;;  %v802_v25 = vld [vmem:[%s1039_s1 + $0x30] sm:$0xff]   ;;  %v806_v29 = vld [vmem:[%s1039_s1 + $0x38] sm:$0xff]   ;;  %501 = vmatprep.mubr.bf16.mxu0 %v810_v32  ;;  %v812_v34 = vld [vmem:[%s1039_s1 + $0x140] sm:$0xff]  }
   0xb   :  { %703 = vmatpush3.bf16.msra.mxu0 %v786_v9  ;;  %v803_v26 = vld [vmem:[%s1039_s1 + $0xf0] sm:$0xff]   ;;  %v807_v30 = vld [vmem:[%s1039_s1 + $0xf8] sm:$0xff]   ;;  %v813_v35 = vld [vmem:[%s1040_s0 + $0x8] ss:$28 sps:$4 sm:$0xff]  }
   0xc   :  { %704 = vmatprep.subr.bf16.mxu0 %v789_v12  ;;  %v804_v27 = vld [vmem:[%s1039_s1 + $0xb0] sm:$0xff]   ;;  %v808_v31 = vld [vmem:[%s1040_s0] ss:$28 sps:$4 sm:$0xff]   ;;  %v815_v36 = vld [vmem:[%s1040_s0 + $0xc] ss:$28 sps:$4 sm:$0xff]  }
   0xd   :  { %725 = vmatpush3.bf16.msra.mxu1 %v788_v11  ;;  %v811_v33 = vld [vmem:[%s1039_s1 + $0xb8] sm:$0xff]   ;;  %v816_v37 = vld [vmem:[%s1039_s1 + $0x100] sm:$0xff]   ;;  %542 = vmatprep.mubr.bf16.mxu1 %v815_v36  ;;  %v817_v39 = vld [vmem:[%s1039_s1 + $0x148] sm:$0xff]  }
   0xe   :  { %726 = vmatprep.subr.bf16.mxu1 %v791_v14  ;;  %v818_v40 = vld [vmem:[%s1039_s1 + $0x108] sm:$0xff]   ;;  %v819_v41 = vld [vmem:[%s1039_s1 + $0x150] sm:$0xff]   ;;  %v821_v43 = vld [vmem:[%s1039_s1 + $0x158] sm:$0xff]  }
   0xf   :  { %705 = vmatpush3.bf16.msra.mxu0 %v790_v13  ;;  %v820_v42 = vld [vmem:[%s1039_s1 + $0x110] sm:$0xff]   ;;  %v822_v44 = vld [vmem:[%s1039_s1 + $0x118] sm:$0xff]   ;;  %v823_v45 = vld [vmem:[%s1039_s1 + $0x160] sm:$0xff]  }
  0x10   :  { %706 = vmatprep.subr.bf16.mxu0 %v793_v16  ;;  %v829_v46 = vld [vmem:[%s1039_s1 + $0x180] sm:$0xff]   ;;  %v825_v48 = vld [vmem:[%s1039_s1 + $0x168] sm:$0xff]   ;;  %v834_v50 = vld [vmem:[%s1040_s0 + $0x14] ss:$28 sps:$4 sm:$0xff]  }
  0x11   :  { %727 = vmatpush3.bf16.msra.mxu1 %v792_v15  ;;  %v824_v47 = vld [vmem:[%s1039_s1 + $0x120] sm:$0xff]   ;;  %v826_v49 = vld [vmem:[%s1039_s1 + $0x128] sm:$0xff]   ;;  %v836_v52 = vld [vmem:[%s1040_s0 + $0x18] ss:$28 sps:$4 sm:$0xff]  }
  0x12   :  { %728 = vmatprep.subr.bf16.mxu1 %v795_v18  ;;  %v835_v51 = vld [vmem:[%s1039_s1 + $0x188] sm:$0xff]   ;;  %v827_v53 = vld [vmem:[%s1039_s1 + $0x170] sm:$0xff]   ;;  %v830_v55 = vld [vmem:[%s1039_s1 + $0x178] sm:$0xff]  }
  0x13   :  { %707 = vmatpush3.bf16.msra.mxu0 %v794_v17  ;;  %v828_v54 = vld [vmem:[%s1039_s1 + $0x130] sm:$0xff]   ;;  %v831_v56 = vld [vmem:[%s1039_s1 + $0x138] sm:$0xff]   ;;  %v639_v59 = vld [vmem:[%s1041_s2] ss:$0 sm:$0xff] }
  0x14   :  { %708 = vmatprep.subr.bf16.mxu0 %v797_v20  ;;  %v832_v57 = vld [vmem:[%s1040_s0 + $0x10] ss:$28 sps:$4 sm:$0xff]  }
  0x15   :  { %729 = vmatpush3.bf16.msra.mxu1 %v796_v19 }
  0x16   :  { %730 = vmatprep.subr.bf16.mxu1 %v799_v22 }
  0x17   :  { %709 = vmatpush3.bf16.msra.mxu0 %v798_v21 }
  0x18   :  { %710 = vmatprep.subr.bf16.mxu0 %v801_v24 }
  0x19   :  { %731 = vmatpush3.bf16.msra.mxu1 %v800_v23 }
  0x1a   :  { %732 = vmatprep.subr.bf16.mxu1 %v803_v26 }
  0x1b   :  { %711 = vmatpush3.bf16.msra.mxu0 %v802_v25 }
  0x1c   :  { %712 = vmatprep.subr.bf16.mxu0 %v805_v28 }
  0x1d   :  { %733 = vmatpush3.bf16.msra.mxu1 %v804_v27 }
  0x1e   :  { %734 = vmatprep.subr.bf16.mxu1 %v807_v30 }
  0x1f   :  { %713 = vmatpush3.bf16.msra.mxu0 %v806_v29 }
  0x20   :  { %742 = vmatprep.subr.bf16.mxu0 %v812_v34 }
  0x21   :  { %735 = vmatpush3.bf16.msra.mxu1 %v811_v33 }
  0x22   :  { %502 = vmatmul.mubr.bf16.vlgmr.msra.gmra.mrb[0].mxu0 %v808_v31  ;;  %767 = vmatprep.subr.bf16.mxu1 %v837_v38 }
  0x23   :  { %743 = vmatpush3.bf16.msra.mxu0 %v816_v37  ;;  %583 = vmatprep.mubr.bf16.mxu0 %v834_v50 }
  0x24   :  { %543 = vmatmul.mubr.bf16.vlgmr.msra.gmra.mrb[0].mxu1 %v813_v35  ;;  %744 = vmatprep.subr.bf16.mxu0 %v817_v39 }
  0x25   :  { %771 = vmatprep.mubr.msk.bf16.mxu1 %vm838_vm0, %v837_v38  ;;  %768 = vmatpush3.bf16.msra.mxu1 %v829_v46 }
  0x26   :  { %769 = vmatprep.subr.bf16.mxu1 %v837_v38 }
  0x27   :  { %745 = vmatpush3.bf16.msra.mxu0 %v818_v40 }
  0x28   :  { %746 = vmatprep.subr.bf16.mxu0 %v819_v41 }
  0x29   :  { %770 = vmatpush3.bf16.msra.mxu1 %v835_v51 }
  0x2b   :  { %747 = vmatpush3.bf16.msra.mxu0 %v820_v42 }
  0x2c   :  { %748 = vmatprep.subr.bf16.mxu0 %v821_v43  ;;  %772 = vmatmul.mubr.msk.bf16.vlgmr.msra.gmra.mrb[4].mxu1 %vm465_vm1, %v836_v52 }
  0x2f   :  { %749 = vmatpush3.bf16.msra.mxu0 %v822_v44 }
  0x30   :  { %750 = vmatprep.subr.bf16.mxu0 %v823_v45 }
  0x33   :  { %751 = vmatpush3.bf16.msra.mxu0 %v824_v47 }
  0x34   :  { %752 = vmatprep.subr.bf16.mxu0 %v825_v48 }
  0x37   :  { %753 = vmatpush3.bf16.msra.mxu0 %v826_v49 }
  0x38   :  { %754 = vmatprep.subr.bf16.mxu0 %v827_v53 }
  0x3b   :  { %755 = vmatpush3.bf16.msra.mxu0 %v828_v54 }
  0x3c   :  { %756 = vmatprep.subr.bf16.mxu0 %v830_v55 }
  0x3f   :  { %757 = vmatpush3.bf16.msra.mxu0 %v831_v56 }
  0x42   :  { %584 = vmatmul.mubr.bf16.vlgmr.msra.gmra.mrb[4].mxu0 %v832_v57 }
  0xf5   :  { %v714_v58 = vpop.f32.mrb[0].mxu0 }
  0xf6   :  { %v715_v60 = vpop.f32.mrb[1].mxu0 }
  0xf7   :  { %v716_v61 = vadd.f32 %v715_v60, %v714_v58  ;;  %v717_v62 = vpop.f32.mrb[2].mxu0  ;;  %v736_v63 = vpop.f32.mrb[0].mxu1 }
  0xf8   :  { %v718_v0 = vpop.f32.mrb[3].mxu0  ;;  %v737_v3 = vpop.f32.mrb[1].mxu1 }
  0xf9   :  { %v504_v1 = vadd.f32 %v716_v61, %v639_v59  ;;  %v719_v2 = vadd.f32 %v718_v0, %v717_v62  ;;  %v738_v4 = vadd.f32 %v737_v3, %v736_v63  ;;  %v739_v5 = vpop.f32.mrb[2].mxu1 }
  0xfa   :  { %v740_v7 = vpop.f32.mrb[3].mxu1 }
  0xfb   :  { %v507_v6 = vadd.f32 %v719_v2, %v639_v59  ;;  %v545_v8 = vadd.f32 %v738_v4, %v504_v1  ;;  %v741_v9 = vadd.f32 %v740_v7, %v739_v5 }
  0xfd   :  { %v548_v10 = vadd.f32 %v741_v9, %v507_v6 }
  0xff   :  { %v626_v11 = vpop.f32.mrb[4].mxu1 }
 0x100   :  { %v773_v12 = vpop.f32.mrb[5].mxu1 }
 0x101   :  { %v629_v13 = vpop.f32.mrb[6].mxu1 }
 0x102   :  { %v774_v14 = vpop.f32.mrb[7].mxu1 }
 0x115   :  { %v758_v15 = vpop.f32.mrb[4].mxu0 }
 0x116   :  { %v759_v16 = vpop.f32.mrb[5].mxu0 }
 0x117   :  { %v760_v17 = vadd.f32 %v759_v16, %v758_v15  ;;  %v761_v18 = vpop.f32.mrb[6].mxu0 }
 0x118   :  { %v762_v19 = vpop.f32.mrb[7].mxu0 }
 0x119   :  { %v586_v20 = vadd.f32 %v760_v17, %v545_v8  ;;  %v763_v21 = vadd.f32 %v762_v19, %v761_v18 }
 0x11b   :  { %v627_v22 = vadd.f32 %v626_v11, %v586_v20  ;;  %v589_v23 = vadd.f32 %v763_v21, %v548_v10 }
 0x11d   :  { %633 = vst [vmem:[%s1042_s3] sm:$0xff] %v627_v22  ;;  %v630_v24 = vadd.f32 %v629_v13, %v589_v23 }
 0x11f   :  { %634 = vst [vmem:[%s1042_s3 + $0x8] sm:$0xff] %v630_v24 }

// kernel: model_fwd.175
= control target key start
LH: loop header
LB: loop body
LE: loop exit
PB: predicated region body
PF: predicated region fallthrough
CT: control target
= control target key end

     0   :  { %v704_v1 = vmov 0   ;;  %vm417_vm0 = vcmask 654336   ;;  %s900_s1 = inlined_call_operand.vmem [shape: bf16[720,128], index: 1, kind: input, shape index: {}]   ;;  %s901_s0 = inlined_call_operand.vmem [shape: bf16[16,720], index: 0, kind: input, shape index: {}]   ;;  %s902_s2 = inlined_call_operand.vmem [shape: f32[1,128], index: 2, kind: input, shape index: {}]   ;;  %s903_s3 = inlined_call_operand.vmem [shape: f32[16,128], index: 3, kind: output, shape index: {}]  }
   0x1   :  { %v650_v0 = vld [vmem:[%s900_s1 + $0x40] sm:$0xff]   ;;  %503 = vmatprep.subr.bf16.mxu0 %v704_v1  ;;  %v652_v3 = vld [vmem:[%s900_s1 + $0x48] sm:$0xff]   ;;  %v654_v5 = vld [vmem:[%s900_s1 + $0x50] sm:$0xff]  }
   0x2   :  { %v651_v2 = vld [vmem:[%s900_s1] sm:$0xff]   ;;  %605 = vmatprep.subr.bf16.mxu1 %v650_v0  ;;  %v653_v4 = vld [vmem:[%s900_s1 + $0x8] sm:$0xff]   ;;  %v655_v6 = vld [vmem:[%s900_s1 + $0x10] sm:$0xff]  }
   0x3   :  { %606 = vmatpush3.bf16.msra.mxu1 %v651_v2  ;;  %v656_v7 = vld [vmem:[%s900_s1 + $0x58] sm:$0xff]   ;;  %v658_v8 = vld [vmem:[%s900_s1 + $0x100] sm:$0xff]   ;;  %v661_v10 = vld [vmem:[%s900_s1 + $0x108] sm:$0xff]  }
   0x4   :  { %607 = vmatprep.subr.bf16.mxu1 %v652_v3  ;;  %v657_v9 = vld [vmem:[%s900_s1 + $0x18] sm:$0xff]   ;;  %504 = vmatpush1.bf16.msra.mxu0 %v658_v8  ;;  %v659_v11 = vld [vmem:[%s900_s1 + $0x60] sm:$0xff]   ;;  %v664_v12 = vld [vmem:[%s900_s1 + $0x110] sm:$0xff]  }
   0x5   :  { %505 = vmatprep.subr.bf16.mxu0 %v704_v1  ;;  %v660_v13 = vld [vmem:[%s900_s1 + $0x20] sm:$0xff]   ;;  %v662_v14 = vld [vmem:[%s900_s1 + $0x68] sm:$0xff]   ;;  %v667_v15 = vld [vmem:[%s900_s1 + $0x118] sm:$0xff]  }
   0x6   :  { %v663_v16 = vld [vmem:[%s900_s1 + $0x28] sm:$0xff]   ;;  %v665_v17 = vld [vmem:[%s900_s1 + $0x70] sm:$0xff]   ;;  %v672_v18 = vld [vmem:[%s901_s0 + $0x4] ss:$24 sps:$4 sm:$0xff]  }
   0x7   :  { %608 = vmatpush3.bf16.msra.mxu1 %v653_v4  ;;  %v673_v19 = vld [vmem:[%s900_s1 + $0x120] sm:$0xff]   ;;  %v666_v20 = vld [vmem:[%s900_s1 + $0x30] sm:$0xff]   ;;  %v668_v21 = vld [vmem:[%s900_s1 + $0x78] sm:$0xff]   ;;  %453 = vmatprep.mubr.bf16.mxu1 %v672_v18 }
   0x8   :  { %609 = vmatprep.subr.bf16.mxu1 %v654_v5  ;;  %506 = vmatpush1.bf16.msra.mxu0 %v661_v10  ;;  %v676_v22 = vld [vmem:[%s900_s1 + $0x128] sm:$0xff]   ;;  %v669_v23 = vld [vmem:[%s900_s1 + $0x38] sm:$0xff]   ;;  %v674_v24 = vld [vmem:[%s900_s1 + $0xc0] sm:$0xff]  }
   0x9   :  { %507 = vmatprep.subr.bf16.mxu0 %v704_v1  ;;  %v670_v25 = vld [vmem:[%s901_s0] ss:$24 sps:$4 sm:$0xff]   ;;  %v679_v26 = vld [vmem:[%s900_s1 + $0x130] sm:$0xff]   ;;  %v677_v28 = vld [vmem:[%s900_s1 + $0xc8] sm:$0xff]  }
   0xa   :  { %v675_v27 = vld [vmem:[%s900_s1 + $0x80] sm:$0xff]   ;;  %v682_v29 = vld [vmem:[%s900_s1 + $0x138] sm:$0xff]   ;;  %v678_v30 = vld [vmem:[%s900_s1 + $0x88] sm:$0xff]  }
   0xb   :  { %610 = vmatpush3.bf16.msra.mxu1 %v655_v6  ;;  %v680_v31 = vld [vmem:[%s900_s1 + $0xd0] sm:$0xff]   ;;  %v685_v32 = vld [vmem:[%s900_s1 + $0x140] sm:$0xff]   ;;  %v683_v34 = vld [vmem:[%s900_s1 + $0xd8] sm:$0xff]  }
   0xc   :  { %611 = vmatprep.subr.bf16.mxu1 %v656_v7  ;;  %508 = vmatpush1.bf16.msra.mxu0 %v664_v12  ;;  %v681_v33 = vld [vmem:[%s900_s1 + $0x90] sm:$0xff]   ;;  %v688_v35 = vld [vmem:[%s900_s1 + $0x148] sm:$0xff]   ;;  %v684_v36 = vld [vmem:[%s900_s1 + $0x98] sm:$0xff]  }
   0xd   :  { %509 = vmatprep.subr.bf16.mxu0 %v704_v1  ;;  %v686_v37 = vld [vmem:[%s900_s1 + $0xe0] sm:$0xff]   ;;  %v691_v38 = vld [vmem:[%s900_s1 + $0x150] sm:$0xff]   ;;  %v689_v41 = vld [vmem:[%s900_s1 + $0xe8] sm:$0xff]  }
   0xe   :  { %v699_v39 = vld [vmem:[%s901_s0 + $0xc] ss:$24 sps:$4 sm:$0xff]   ;;  %v694_v43 = vld [vmem:[%s900_s1 + $0x158] sm:$0xff]   ;;  %v692_v45 = vld [vmem:[%s900_s1 + $0xf0] sm:$0xff]  }
   0xf   :  { %612 = vmatpush3.bf16.msra.mxu1 %v657_v9  ;;  %v687_v40 = vld [vmem:[%s900_s1 + $0xa0] sm:$0xff]   ;;  %v703_v42 = vld [vmem:[%s901_s0 + $0x14] ss:$24 sps:$4 sm:$0xff]   ;;  %v695_v48 = vld [vmem:[%s900_s1 + $0xf8] sm:$0xff]  }
  0x10   :  { %613 = vmatprep.subr.bf16.mxu1 %v659_v11  ;;  %510 = vmatpush1.bf16.msra.mxu0 %v667_v15  ;;  %v690_v44 = vld [vmem:[%s900_s1 + $0xa8] sm:$0xff]   ;;  %v700_v46 = vld [vmem:[%s900_s1 + $0x160] sm:$0xff]   ;;  %v693_v47 = vld [vmem:[%s900_s1 + $0xb0] sm:$0xff]  }
  0x11   :  { %511 = vmatprep.subr.bf16.mxu0 %v704_v1  ;;  %604 = vmatprep.mubr.msk.bf16.mxu0 %vm417_vm0, %v703_v42  ;;  %v701_v49 = vld [vmem:[%s901_s0 + $0x10] ss:$24 sps:$4 sm:$0xff]   ;;  %v696_v50 = vld [vmem:[%s900_s1 + $0xb8] sm:$0xff]   ;;  %v552_v62 = vld [vmem:[%s902_s2] ss:$0 sm:$0xff] }
  0x12   :  { %v697_v51 = vld [vmem:[%s901_s0 + $0x8] ss:$24 sps:$4 sm:$0xff]  }
  0x13   :  { %614 = vmatpush3.bf16.msra.mxu1 %v660_v13 }
  0x14   :  { %615 = vmatprep.subr.bf16.mxu1 %v662_v14  ;;  %512 = vmatpush1.bf16.msra.mxu0 %v673_v19 }
  0x15   :  { %513 = vmatprep.subr.bf16.mxu0 %v704_v1 }
  0x17   :  { %616 = vmatpush3.bf16.msra.mxu1 %v663_v16 }
  0x18   :  { %617 = vmatprep.subr.bf16.mxu1 %v665_v17  ;;  %514 = vmatpush1.bf16.msra.mxu0 %v676_v22 }
  0x19   :  { %515 = vmatprep.subr.bf16.mxu0 %v704_v1 }
  0x1b   :  { %618 = vmatpush3.bf16.msra.mxu1 %v666_v20 }
  0x1c   :  { %619 = vmatprep.subr.bf16.mxu1 %v668_v21  ;;  %516 = vmatpush1.bf16.msra.mxu0 %v679_v26 }
  0x1d   :  { %517 = vmatprep.subr.bf16.mxu0 %v704_v1 }
  0x1f   :  { %620 = vmatpush3.bf16.msra.mxu1 %v669_v23 }
  0x20   :  { %627 = vmatprep.subr.bf16.mxu1 %v674_v24  ;;  %518 = vmatpush1.bf16.msra.mxu0 %v682_v29 }
  0x21   :  { %519 = vmatprep.subr.bf16.mxu0 %v704_v1 }
  0x22   :  { %454 = vmatmul.mubr.bf16.vlgmr.msra.gmra.mrb[0].mxu1 %v670_v25 }
  0x23   :  { %628 = vmatpush3.bf16.msra.mxu1 %v675_v27  ;;  %494 = vmatprep.mubr.bf16.mxu1 %v699_v39 }
  0x24   :  { %629 = vmatprep.subr.bf16.mxu1 %v677_v28  ;;  %520 = vmatpush1.bf16.msra.mxu0 %v685_v32 }
  0x25   :  { %521 = vmatprep.subr.bf16.mxu0 %v704_v1 }
  0x27   :  { %630 = vmatpush3.bf16.msra.mxu1 %v678_v30 }
  0x28   :  { %631 = vmatprep.subr.bf16.mxu1 %v680_v31  ;;  %522 = vmatpush1.bf16.msra.mxu0 %v688_v35 }
  0x29   :  { %523 = vmatprep.subr.bf16.mxu0 %v704_v1 }
  0x2b   :  { %632 = vmatpush3.bf16.msra.mxu1 %v681_v33 }
  0x2c   :  { %633 = vmatprep.subr.bf16.mxu1 %v683_v34  ;;  %524 = vmatpush1.bf16.msra.mxu0 %v691_v38 }
  0x2d   :  { %525 = vmatprep.subr.bf16.mxu0 %v704_v1 }
  0x2f   :  { %634 = vmatpush3.bf16.msra.mxu1 %v684_v36 }
  0x30   :  { %635 = vmatprep.subr.bf16.mxu1 %v686_v37  ;;  %526 = vmatpush1.bf16.msra.mxu0 %v694_v43 }
  0x31   :  { %527 = vmatprep.subr.bf16.mxu0 %v704_v1 }
  0x33   :  { %636 = vmatpush3.bf16.msra.mxu1 %v687_v40 }
  0x34   :  { %637 = vmatprep.subr.bf16.mxu1 %v689_v41  ;;  %528 = vmatpush1.bf16.msra.mxu0 %v700_v46 }
  0x37   :  { %638 = vmatpush3.bf16.msra.mxu1 %v690_v44  ;;  %536 = vmatmul.mubr.bf16.vlgmr.msra.gmra.mrb[0].mxu0 %v701_v49 }
  0x38   :  { %639 = vmatprep.subr.bf16.mxu1 %v692_v45 }
  0x3b   :  { %640 = vmatpush3.bf16.msra.mxu1 %v693_v47 }
  0x3c   :  { %641 = vmatprep.subr.bf16.mxu1 %v695_v48 }
  0x3f   :  { %642 = vmatpush3.bf16.msra.mxu1 %v696_v50 }
  0x42   :  { %495 = vmatmul.mubr.bf16.vlgmr.msra.gmra.mrb[4].mxu1 %v697_v51 }
  0xf5   :  { %v621_v52 = vpop.f32.mrb[0].mxu1 }
  0xf6   :  { %v622_v53 = vpop.f32.mrb[1].mxu1 }
  0xf7   :  { %v623_v54 = vadd.f32 %v622_v53, %v621_v52  ;;  %v624_v55 = vpop.f32.mrb[2].mxu1 }
  0xf8   :  { %v625_v56 = vpop.f32.mrb[3].mxu1 }
  0xf9   :  { %v626_v57 = vadd.f32 %v625_v56, %v624_v55  ;;  %v456_v1 = vadd.f32 %v623_v54, %v552_v62 }
  0xfb   :  { %v459_v5 = vadd.f32 %v626_v57, %v552_v62 }
 0x10a   :  { %v537_v58 = vpop.f32.mrb[0].mxu0 }
 0x10b   :  { %v539_v59 = vpop.f32.mrb[1].mxu0 }
 0x10c   :  { %v540_v60 = vpop.f32.mrb[2].mxu0 }
 0x10d   :  { %v542_v61 = vpop.f32.mrb[3].mxu0 }
 0x115   :  { %v643_v63 = vpop.f32.mrb[4].mxu1 }
 0x116   :  { %v644_v0 = vpop.f32.mrb[5].mxu1 }
 0x117   :  { %v645_v2 = vadd.f32 %v644_v0, %v643_v63  ;;  %v646_v3 = vpop.f32.mrb[6].mxu1 }
 0x118   :  { %v647_v4 = vpop.f32.mrb[7].mxu1 }
 0x119   :  { %v497_v6 = vadd.f32 %v645_v2, %v456_v1  ;;  %v648_v7 = vadd.f32 %v647_v4, %v646_v3 }
 0x11b   :  { %v538_v8 = vadd.f32 %v537_v58, %v497_v6  ;;  %v500_v9 = vadd.f32 %v648_v7, %v459_v5 }
 0x11d   :  { %v544_v10 = vmax.f32 %v538_v8, 0.0  ;;  %v541_v11 = vadd.f32 %v540_v60, %v500_v9 }
 0x11f   :  { %546 = vst [vmem:[%s903_s3] sm:$0xff] %v544_v10  ;;  %v545_v12 = vmax.f32 %v541_v11, 0.0 }
 0x121   :  { %547 = vst [vmem:[%s903_s3 + $0x8] sm:$0xff] %v545_v12 }

// kernel: model_fwd.176
= control target key start
LH: loop header
LB: loop body
LE: loop exit
PB: predicated region body
PF: predicated region fallthrough
CT: control target
= control target key end

     0   :  { %v952_v41 = vmov 0   ;;  %vm573_vm0 = vcmask 916480   ;;  %s1210_s1 = inlined_call_operand.vmem [shape: bf16[1008,128], index: 1, kind: input, shape index: {}]   ;;  %s1211_s0 = inlined_call_operand.vmem [shape: bf16[16,1008], index: 0, kind: input, shape index: {}]   ;;  %s1212_s2 = inlined_call_operand.vmem [shape: f32[1,128], index: 2, kind: input, shape index: {}]   ;;  %s1213_s3 = inlined_call_operand.vmem [shape: f32[16,128], index: 3, kind: output, shape index: {}]  }
   0x1   :  { %v889_v0 = vld [vmem:[%s1210_s1 + $0x40] sm:$0xff]   ;;  %v893_v4 = vld [vmem:[%s1210_s1 + $0x48] sm:$0xff]   ;;  %v897_v8 = vld [vmem:[%s1210_s1 + $0x50] sm:$0xff]  }
   0x2   :  { %v890_v1 = vld [vmem:[%s1210_s1 + $0xc0] sm:$0xff]   ;;  %822 = vmatprep.subr.bf16.mxu0 %v889_v0  ;;  %v894_v5 = vld [vmem:[%s1210_s1 + $0xc8] sm:$0xff]   ;;  %v898_v9 = vld [vmem:[%s1210_s1 + $0xd0] sm:$0xff]  }
   0x3   :  { %v891_v2 = vld [vmem:[%s1210_s1] sm:$0xff]   ;;  %844 = vmatprep.subr.bf16.mxu1 %v890_v1  ;;  %v895_v6 = vld [vmem:[%s1210_s1 + $0x8] sm:$0xff]   ;;  %v899_v10 = vld [vmem:[%s1210_s1 + $0x10] sm:$0xff]  }
   0x4   :  { %v892_v3 = vld [vmem:[%s1210_s1 + $0x80] sm:$0xff]   ;;  %823 = vmatpush3.bf16.msra.mxu0 %v891_v2  ;;  %v896_v7 = vld [vmem:[%s1210_s1 + $0x88] sm:$0xff]   ;;  %v900_v11 = vld [vmem:[%s1210_s1 + $0x90] sm:$0xff]  }
   0x5   :  { %845 = vmatpush3.bf16.msra.mxu1 %v892_v3  ;;  %824 = vmatprep.subr.bf16.mxu0 %v893_v4  ;;  %v901_v12 = vld [vmem:[%s1210_s1 + $0x58] sm:$0xff]   ;;  %v905_v16 = vld [vmem:[%s1210_s1 + $0x60] sm:$0xff]   ;;  %v909_v20 = vld [vmem:[%s1210_s1 + $0x68] sm:$0xff]  }
   0x6   :  { %846 = vmatprep.subr.bf16.mxu1 %v894_v5  ;;  %v902_v13 = vld [vmem:[%s1210_s1 + $0xd8] sm:$0xff]   ;;  %v906_v17 = vld [vmem:[%s1210_s1 + $0xe0] sm:$0xff]   ;;  %v910_v21 = vld [vmem:[%s1210_s1 + $0xe8] sm:$0xff]  }
   0x7   :  { %v903_v14 = vld [vmem:[%s1210_s1 + $0x18] sm:$0xff]   ;;  %v907_v18 = vld [vmem:[%s1210_s1 + $0x20] sm:$0xff]   ;;  %v911_v22 = vld [vmem:[%s1210_s1 + $0x28] sm:$0xff]  }
   0x8   :  { %825 = vmatpush3.bf16.msra.mxu0 %v895_v6  ;;  %v904_v15 = vld [vmem:[%s1210_s1 + $0x98] sm:$0xff]   ;;  %v908_v19 = vld [vmem:[%s1210_s1 + $0xa0] sm:$0xff]   ;;  %v912_v23 = vld [vmem:[%s1210_s1 + $0xa8] sm:$0xff]  }
   0x9   :  { %847 = vmatpush3.bf16.msra.mxu1 %v896_v7  ;;  %826 = vmatprep.subr.bf16.mxu0 %v897_v8  ;;  %v913_v24 = vld [vmem:[%s1210_s1 + $0x70] sm:$0xff]   ;;  %v917_v28 = vld [vmem:[%s1210_s1 + $0x78] sm:$0xff]   ;;  %v15_v32 = vld [vmem:[%s1211_s0] sm:$0xff] }
   0xa   :  { %848 = vmatprep.subr.bf16.mxu1 %v898_v9  ;;  %v914_v25 = vld [vmem:[%s1210_s1 + $0xf0] sm:$0xff]   ;;  %v918_v29 = vld [vmem:[%s1210_s1 + $0xf8] sm:$0xff]   ;;  %v19_v33 = vld [vmem:[%s1211_s0 + $0x20] sm:$0xff] }
   0xb   :  { %v915_v26 = vld [vmem:[%s1210_s1 + $0x30] sm:$0xff]   ;;  %v919_v30 = vld [vmem:[%s1210_s1 + $0x38] sm:$0xff]   ;;  %v16_v34 = vld [vmem:[%s1211_s0 + $0x8] sm:$0xff]  ;;  %v750_v35 = vcombine.low %v15_v32, %v19_v33  ;;  %v751_v36 = vcombine.high %v15_v32, %v19_v33 }
   0xc   :  { %827 = vmatpush3.bf16.msra.mxu0 %v899_v10  ;;  %v916_v27 = vld [vmem:[%s1210_s1 + $0xb0] sm:$0xff]   ;;  %v920_v31 = vld [vmem:[%s1210_s1 + $0xb8] sm:$0xff]   ;;  %v20_v37 = vld [vmem:[%s1211_s0 + $0x28] sm:$0xff] }
   0xd   :  { %849 = vmatpush3.bf16.msra.mxu1 %v900_v11  ;;  %828 = vmatprep.subr.bf16.mxu0 %v901_v12  ;;  %v752_v38 = vcombine.low %v16_v34, %v20_v37  ;;  %v753_v39 = vcombine.high %v16_v34, %v20_v37  ;;  %v921_v40 = vld [vmem:[%s1210_s1 + $0x140] sm:$0xff]   ;;  %v924_v44 = vld [vmem:[%s1210_s1 + $0x148] sm:$0xff]   ;;  %v927_v47 = vld [vmem:[%s1210_s1 + $0x150] sm:$0xff]  }
   0xe   :  { %850 = vmatprep.subr.bf16.mxu1 %v902_v13  ;;  %609 = vmatprep.mubr.bf16.mxu0 %v751_v36  ;;  %v922_v42 = vld [vmem:[%s1210_s1 + $0x100] sm:$0xff]   ;;  %v925_v45 = vld [vmem:[%s1210_s1 + $0x108] sm:$0xff]   ;;  %v928_v48 = vld [vmem:[%s1210_s1 + $0x110] sm:$0xff]  }
   0xf   :  { %650 = vmatprep.mubr.bf16.mxu1 %v753_v39  ;;  %v923_v43 = vld [vmem:[%s1210_s1 + $0x180] sm:$0xff]   ;;  %v926_v46 = vld [vmem:[%s1210_s1 + $0x188] sm:$0xff]   ;;  %v929_v49 = vld [vmem:[%s1210_s1 + $0x190] sm:$0xff]  }
  0x10   :  { %829 = vmatpush3.bf16.msra.mxu0 %v903_v14  ;;  %v930_v50 = vld [vmem:[%s1210_s1 + $0x158] sm:$0xff]   ;;  %v933_v53 = vld [vmem:[%s1210_s1 + $0x160] sm:$0xff]   ;;  %v936_v56 = vld [vmem:[%s1210_s1 + $0x168] sm:$0xff]  }
  0x11   :  { %851 = vmatpush3.bf16.msra.mxu1 %v904_v15  ;;  %830 = vmatprep.subr.bf16.mxu0 %v905_v16  ;;  %v931_v51 = vld [vmem:[%s1210_s1 + $0x118] sm:$0xff]   ;;  %v934_v54 = vld [vmem:[%s1210_s1 + $0x120] sm:$0xff]   ;;  %v937_v57 = vld [vmem:[%s1210_s1 + $0x128] sm:$0xff]  }
  0x12   :  { %852 = vmatprep.subr.bf16.mxu1 %v906_v17  ;;  %v932_v52 = vld [vmem:[%s1210_s1 + $0x198] sm:$0xff]   ;;  %v935_v55 = vld [vmem:[%s1210_s1 + $0x1a0] sm:$0xff]   ;;  %v938_v58 = vld [vmem:[%s1210_s1 + $0x1a8] sm:$0xff]  }
  0x13   :  { %v939_v59 = vld [vmem:[%s1210_s1 + $0x170] sm:$0xff]   ;;  %v942_v1 = vld [vmem:[%s1210_s1 + $0x178] sm:$0xff]   ;;  %v945_v7 = vld [vmem:[%s1210_s1 + $0x1c0] sm:$0xff]  }
  0x14   :  { %831 = vmatpush3.bf16.msra.mxu0 %v907_v18  ;;  %v940_v60 = vld [vmem:[%s1210_s1 + $0x130] sm:$0xff]   ;;  %v943_v2 = vld [vmem:[%s1210_s1 + $0x138] sm:$0xff]   ;;  %v946_v9 = vld [vmem:[%s1210_s1 + $0x1c8] sm:$0xff]  }
  0x15   :  { %853 = vmatpush3.bf16.msra.mxu1 %v908_v19  ;;  %832 = vmatprep.subr.bf16.mxu0 %v909_v20  ;;  %v17_v61 = vld [vmem:[%s1211_s0 + $0x10] sm:$0xff]  ;;  %v944_v3 = vld [vmem:[%s1210_s1 + $0x1b8] sm:$0xff]   ;;  %v949_v12 = vld [vmem:[%s1210_s1 + $0x1e0] sm:$0xff]  }
  0x16   :  { %854 = vmatprep.subr.bf16.mxu1 %v910_v21  ;;  %v21_v62 = vld [vmem:[%s1211_s0 + $0x30] sm:$0xff]  ;;  %v18_v5 = vld [vmem:[%s1211_s0 + $0x18] sm:$0xff]  ;;  %v950_v13 = vld [vmem:[%s1210_s1 + $0x1e8] sm:$0xff]  }
  0x17   :  { %v941_v63 = vld [vmem:[%s1210_s1 + $0x1b0] sm:$0xff]   ;;  %v755_v0 = vcombine.high %v17_v61, %v21_v62  ;;  %v754_v4 = vcombine.low %v17_v61, %v21_v62  ;;  %v22_v6 = vld [vmem:[%s1211_s0 + $0x38] sm:$0xff]  ;;  %v749_v18 = vld [vmem:[%s1212_s2] ss:$0 sm:$0xff] }
  0x18   :  { %833 = vmatpush3.bf16.msra.mxu0 %v911_v22  ;;  %v757_v8 = vcombine.high %v18_v5, %v22_v6  ;;  %v947_v10 = vld [vmem:[%s1210_s1 + $0x1d0] sm:$0xff]   ;;  %v948_v11 = vld [vmem:[%s1210_s1 + $0x1d8] sm:$0xff]   ;;  %v756_v15 = vcombine.low %v18_v5, %v22_v6 }
  0x19   :  { %855 = vmatpush3.bf16.msra.mxu1 %v912_v23  ;;  %834 = vmatprep.subr.bf16.mxu0 %v913_v24  ;;  %v951_v14 = vld [vmem:[%s1210_s1 + $0x1f0] sm:$0xff]  }
  0x1a   :  { %856 = vmatprep.subr.bf16.mxu1 %v914_v25 }
  0x1c   :  { %835 = vmatpush3.bf16.msra.mxu0 %v915_v26 }
  0x1d   :  { %857 = vmatpush3.bf16.msra.mxu1 %v916_v27  ;;  %836 = vmatprep.subr.bf16.mxu0 %v917_v28 }
  0x1e   :  { %858 = vmatprep.subr.bf16.mxu1 %v918_v29 }
  0x20   :  { %837 = vmatpush3.bf16.msra.mxu0 %v919_v30 }
  0x21   :  { %859 = vmatpush3.bf16.msra.mxu1 %v920_v31  ;;  %866 = vmatprep.subr.bf16.mxu0 %v921_v40 }
  0x22   :  { %700 = vmatprep.subr.bf16.mxu1 %v952_v41 }
  0x23   :  { %610 = vmatmul.mubr.bf16.vlgmr.msra.gmra.mrb[0].mxu0 %v750_v35 }
  0x24   :  { %651 = vmatmul.mubr.bf16.vlgmr.msra.gmra.mrb[0].mxu1 %v752_v38  ;;  %867 = vmatpush3.bf16.msra.mxu0 %v922_v42 }
  0x25   :  { %701 = vmatpush1.bf16.msra.mxu1 %v923_v43  ;;  %868 = vmatprep.subr.bf16.mxu0 %v924_v44 }
  0x26   :  { %702 = vmatprep.subr.bf16.mxu1 %v952_v41  ;;  %691 = vmatprep.mubr.bf16.mxu0 %v755_v0 }
  0x27   :  { %821 = vmatprep.mubr.msk.bf16.mxu1 %vm573_vm0, %v757_v8 }
  0x28   :  { %869 = vmatpush3.bf16.msra.mxu0 %v925_v45 }
  0x29   :  { %703 = vmatpush1.bf16.msra.mxu1 %v926_v46  ;;  %870 = vmatprep.subr.bf16.mxu0 %v927_v47 }
  0x2a   :  { %704 = vmatprep.subr.bf16.mxu1 %v952_v41 }
  0x2c   :  { %871 = vmatpush3.bf16.msra.mxu0 %v928_v48 }
  0x2d   :  { %705 = vmatpush1.bf16.msra.mxu1 %v929_v49  ;;  %872 = vmatprep.subr.bf16.mxu0 %v930_v50 }
  0x2e   :  { %706 = vmatprep.subr.bf16.mxu1 %v952_v41 }
  0x30   :  { %873 = vmatpush3.bf16.msra.mxu0 %v931_v51 }
  0x31   :  { %707 = vmatpush1.bf16.msra.mxu1 %v932_v52  ;;  %874 = vmatprep.subr.bf16.mxu0 %v933_v53 }
  0x32   :  { %708 = vmatprep.subr.bf16.mxu1 %v952_v41 }
  0x34   :  { %875 = vmatpush3.bf16.msra.mxu0 %v934_v54 }
  0x35   :  { %709 = vmatpush1.bf16.msra.mxu1 %v935_v55  ;;  %876 = vmatprep.subr.bf16.mxu0 %v936_v56 }
  0x36   :  { %710 = vmatprep.subr.bf16.mxu1 %v952_v41 }
  0x38   :  { %877 = vmatpush3.bf16.msra.mxu0 %v937_v57 }
  0x39   :  { %711 = vmatpush1.bf16.msra.mxu1 %v938_v58  ;;  %878 = vmatprep.subr.bf16.mxu0 %v939_v59 }
  0x3a   :  { %712 = vmatprep.subr.bf16.mxu1 %v952_v41 }
  0x3c   :  { %879 = vmatpush3.bf16.msra.mxu0 %v940_v60 }
  0x3d   :  { %713 = vmatpush1.bf16.msra.mxu1 %v941_v63  ;;  %880 = vmatprep.subr.bf16.mxu0 %v942_v1 }
  0x3e   :  { %714 = vmatprep.subr.bf16.mxu1 %v952_v41 }
  0x40   :  { %881 = vmatpush3.bf16.msra.mxu0 %v943_v2 }
  0x41   :  { %715 = vmatpush1.bf16.msra.mxu1 %v944_v3 }
  0x42   :  { %716 = vmatprep.subr.bf16.mxu1 %v952_v41 }
  0x43   :  { %692 = vmatmul.mubr.bf16.vlgmr.msra.gmra.mrb[4].mxu0 %v754_v4 }
  0x45   :  { %717 = vmatpush1.bf16.msra.mxu1 %v945_v7 }
  0x46   :  { %718 = vmatprep.subr.bf16.mxu1 %v952_v41 }
  0x49   :  { %719 = vmatpush1.bf16.msra.mxu1 %v946_v9 }
  0x4a   :  { %720 = vmatprep.subr.bf16.mxu1 %v952_v41 }
  0x4d   :  { %721 = vmatpush1.bf16.msra.mxu1 %v947_v10 }
  0x4e   :  { %722 = vmatprep.subr.bf16.mxu1 %v952_v41 }
  0x51   :  { %723 = vmatpush1.bf16.msra.mxu1 %v948_v11 }
  0x52   :  { %724 = vmatprep.subr.bf16.mxu1 %v952_v41 }
  0x55   :  { %725 = vmatpush1.bf16.msra.mxu1 %v949_v12 }
  0x56   :  { %726 = vmatprep.subr.bf16.mxu1 %v952_v41 }
  0x59   :  { %727 = vmatpush1.bf16.msra.mxu1 %v950_v13 }
  0x5a   :  { %728 = vmatprep.subr.bf16.mxu1 %v952_v41 }
  0x5d   :  { %729 = vmatpush1.bf16.msra.mxu1 %v951_v14 }
  0x60   :  { %733 = vmatmul.mubr.bf16.vlgmr.msra.gmra.mrb[4].mxu1 %v756_v15 }
  0xf6   :  { %v838_v16 = vpop.f32.mrb[0].mxu0 }
  0xf7   :  { %v860_v17 = vpop.f32.mrb[0].mxu1  ;;  %v839_v19 = vpop.f32.mrb[1].mxu0 }
  0xf8   :  { %v840_v20 = vadd.f32 %v839_v19, %v838_v16  ;;  %v861_v21 = vpop.f32.mrb[1].mxu1  ;;  %v841_v22 = vpop.f32.mrb[2].mxu0 }
  0xf9   :  { %v862_v23 = vadd.f32 %v861_v21, %v860_v17  ;;  %v863_v24 = vpop.f32.mrb[2].mxu1  ;;  %v842_v25 = vpop.f32.mrb[3].mxu0 }
  0xfa   :  { %v612_v26 = vadd.f32 %v840_v20, %v749_v18  ;;  %v843_v27 = vadd.f32 %v842_v25, %v841_v22  ;;  %v864_v28 = vpop.f32.mrb[3].mxu1 }
  0xfb   :  { %v865_v29 = vadd.f32 %v864_v28, %v863_v24 }
  0xfc   :  { %v653_v30 = vadd.f32 %v862_v23, %v612_v26  ;;  %v615_v31 = vadd.f32 %v843_v27, %v749_v18 }
  0xfe   :  { %v656_v32 = vadd.f32 %v865_v29, %v615_v31 }
 0x116   :  { %v882_v33 = vpop.f32.mrb[4].mxu0 }
 0x117   :  { %v883_v34 = vpop.f32.mrb[5].mxu0 }
 0x118   :  { %v884_v35 = vadd.f32 %v883_v34, %v882_v33  ;;  %v885_v36 = vpop.f32.mrb[6].mxu0 }
 0x119   :  { %v886_v37 = vpop.f32.mrb[7].mxu0 }
 0x11a   :  { %v887_v38 = vadd.f32 %v886_v37, %v885_v36  ;;  %v694_v39 = vadd.f32 %v884_v35, %v653_v30 }
 0x11c   :  { %v697_v40 = vadd.f32 %v887_v38, %v656_v32 }
 0x133   :  { %v734_v41 = vpop.f32.mrb[4].mxu1 }
 0x134   :  { %v735_v42 = vadd.f32 %v734_v41, %v694_v39  ;;  %v736_v43 = vpop.f32.mrb[5].mxu1 }
 0x135   :  { %v737_v44 = vpop.f32.mrb[6].mxu1 }
 0x136   :  { %v741_v45 = vmax.f32 %v735_v42, 0.0  ;;  %v738_v46 = vadd.f32 %v737_v44, %v697_v40  ;;  %v739_v47 = vpop.f32.mrb[7].mxu1 }
 0x138   :  { %743 = vst [vmem:[%s1213_s3] sm:$0xff] %v741_v45  ;;  %v742_v48 = vmax.f32 %v738_v46, 0.0 }
 0x13a   :  { %744 = vst [vmem:[%s1213_s3 + $0x8] sm:$0xff] %v742_v48 }

// kernel: model_fwd.178
= control target key start
LH: loop header
LB: loop body
LE: loop exit
PB: predicated region body
PF: predicated region fallthrough
CT: control target
= control target key end

     0   :  { %v202_v0 = vmov 0   ;;  %vm121_vm0 = vcmask 392192   ;;  %s271_s1 = inlined_call_operand.vmem [shape: bf16[176,128], index: 1, kind: input, shape index: {}]   ;;  %s272_s0 = inlined_call_operand.vmem [shape: bf16[16,176], index: 0, kind: input, shape index: {}]   ;;  %s273_s2 = inlined_call_operand.vmem [shape: f32[1,128], index: 2, kind: input, shape index: {}]   ;;  %s274_s3 = inlined_call_operand.vmem [shape: f32[16,128], index: 3, kind: output, shape index: {}]  }
   0x1   :  { %125 = vmatprep.subr.bf16.mxu0 %v202_v0  ;;  %v188_v1 = vld [vmem:[%s271_s1] sm:$0xff]   ;;  %v189_v2 = vld [vmem:[%s271_s1 + $0x8] sm:$0xff]   ;;  %v190_v3 = vld [vmem:[%s271_s1 + $0x10] sm:$0xff]  }
   0x2   :  { %126 = vmatpush1.bf16.msra.mxu0 %v188_v1  ;;  %v191_v4 = vld [vmem:[%s271_s1 + $0x18] sm:$0xff]   ;;  %v201_v5 = vld [vmem:[%s272_s0 + $0x4] ss:$8 sps:$4 sm:$0xff]   ;;  %v194_v8 = vld [vmem:[%s271_s1 + $0x30] sm:$0xff]  }
   0x3   :  { %127 = vmatprep.subr.bf16.mxu0 %v202_v0  ;;  %v192_v6 = vld [vmem:[%s271_s1 + $0x20] sm:$0xff]   ;;  %186 = vmatprep.mubr.msk.bf16.mxu0 %vm121_vm0, %v201_v5  ;;  %v193_v7 = vld [vmem:[%s271_s1 + $0x28] sm:$0xff]   ;;  %v195_v9 = vld [vmem:[%s271_s1 + $0x38] sm:$0xff]  }
   0x4   :  { %v196_v10 = vld [vmem:[%s271_s1 + $0x40] sm:$0xff]   ;;  %v197_v11 = vld [vmem:[%s271_s1 + $0x48] sm:$0xff]   ;;  %v198_v12 = vld [vmem:[%s271_s1 + $0x50] sm:$0xff]  }
   0x5   :  { %v199_v13 = vld [vmem:[%s272_s0] ss:$8 sps:$4 sm:$0xff]  }
   0x6   :  { %128 = vmatpush1.bf16.msra.mxu0 %v189_v2  ;;  %v172_v14 = vld [vmem:[%s273_s2] ss:$0 sm:$0xff] }
   0x7   :  { %129 = vmatprep.subr.bf16.mxu0 %v202_v0 }
   0xa   :  { %130 = vmatpush1.bf16.msra.mxu0 %v190_v3 }
   0xb   :  { %131 = vmatprep.subr.bf16.mxu0 %v202_v0 }
   0xe   :  { %132 = vmatpush1.bf16.msra.mxu0 %v191_v4 }
   0xf   :  { %133 = vmatprep.subr.bf16.mxu0 %v202_v0 }
  0x12   :  { %134 = vmatpush1.bf16.msra.mxu0 %v192_v6 }
  0x13   :  { %135 = vmatprep.subr.bf16.mxu0 %v202_v0 }
  0x16   :  { %136 = vmatpush1.bf16.msra.mxu0 %v193_v7 }
  0x17   :  { %137 = vmatprep.subr.bf16.mxu0 %v202_v0 }
  0x1a   :  { %138 = vmatpush1.bf16.msra.mxu0 %v194_v8 }
  0x1b   :  { %139 = vmatprep.subr.bf16.mxu0 %v202_v0 }
  0x1e   :  { %140 = vmatpush1.bf16.msra.mxu0 %v195_v9 }
  0x1f   :  { %141 = vmatprep.subr.bf16.mxu0 %v202_v0 }
  0x22   :  { %142 = vmatpush1.bf16.msra.mxu0 %v196_v10 }
  0x23   :  { %143 = vmatprep.subr.bf16.mxu0 %v202_v0 }
  0x26   :  { %144 = vmatpush1.bf16.msra.mxu0 %v197_v11 }
  0x27   :  { %145 = vmatprep.subr.bf16.mxu0 %v202_v0 }
  0x2a   :  { %146 = vmatpush1.bf16.msra.mxu0 %v198_v12 }
  0x2d   :  { %158 = vmatmul.mubr.bf16.vlgmr.msra.gmra.mrb[0].mxu0 %v199_v13 }
 0x100   :  { %v159_v15 = vpop.f32.mrb[0].mxu0 }
 0x101   :  { %v160_v16 = vadd.f32 %v172_v14, %v159_v15  ;;  %v161_v17 = vpop.f32.mrb[1].mxu0 }
 0x102   :  { %v162_v18 = vpop.f32.mrb[2].mxu0 }
 0x103   :  { %166 = vst [vmem:[%s274_s3] sm:$0xff] %v160_v16  ;;  %v163_v19 = vadd.f32 %v172_v14, %v162_v18  ;;  %v164_v20 = vpop.f32.mrb[3].mxu0 }
 0x105   :  { %167 = vst [vmem:[%s274_s3 + $0x8] sm:$0xff] %v163_v19 }

// kernel: model_fwd.177
= control target key start
LH: loop header
LB: loop body
LE: loop exit
PB: predicated region body
PF: predicated region fallthrough
CT: control target
= control target key end

     0   :  { %vm1307_vm0 = vmmov 0   ;;  %vm737_vm1 = vcmask 130048   ;;  %s1613_s1 = inlined_call_operand.vmem [shape: bf16[1296,128], index: 1, kind: input, shape index: {}]   ;;  %s1614_s0 = inlined_call_operand.vmem [shape: bf16[16,1296], index: 0, kind: input, shape index: {}]   ;;  %s1615_s2 = inlined_call_operand.vmem [shape: f32[1,128], index: 2, kind: input, shape index: {}]   ;;  %s1616_s3 = inlined_call_operand.vmem [shape: f32[16,128], index: 3, kind: output, shape index: {}]  }
   0x1   :  { %v1209_v0 = vld [vmem:[%s1613_s1 + $0x40] sm:$0xff]   ;;  %v1213_v4 = vld [vmem:[%s1613_s1 + $0x48] sm:$0xff]   ;;  %v1217_v8 = vld [vmem:[%s1613_s1 + $0x50] sm:$0xff]  }
   0x2   :  { %v1210_v1 = vld [vmem:[%s1613_s1] sm:$0xff]   ;;  %1089 = vmatprep.subr.bf16.mxu0 %v1209_v0  ;;  %v1214_v5 = vld [vmem:[%s1613_s1 + $0x8] sm:$0xff]   ;;  %v1218_v9 = vld [vmem:[%s1613_s1 + $0x10] sm:$0xff]  }
   0x3   :  { %v1211_v2 = vld [vmem:[%s1613_s1 + $0xc0] sm:$0xff]   ;;  %1090 = vmatpush3.bf16.msra.mxu0 %v1210_v1  ;;  %v1215_v6 = vld [vmem:[%s1613_s1 + $0xc8] sm:$0xff]   ;;  %v1219_v10 = vld [vmem:[%s1613_s1 + $0xd0] sm:$0xff]  }
   0x4   :  { %v1212_v3 = vld [vmem:[%s1613_s1 + $0x80] sm:$0xff]   ;;  %1111 = vmatprep.subr.bf16.mxu1 %v1211_v2  ;;  %1091 = vmatprep.subr.bf16.mxu0 %v1213_v4  ;;  %v1216_v7 = vld [vmem:[%s1613_s1 + $0x88] sm:$0xff]   ;;  %v1220_v11 = vld [vmem:[%s1613_s1 + $0x90] sm:$0xff]  }
   0x5   :  { %1112 = vmatpush3.bf16.msra.mxu1 %v1212_v3  ;;  %v1221_v12 = vld [vmem:[%s1613_s1 + $0x58] sm:$0xff]   ;;  %v1225_v16 = vld [vmem:[%s1613_s1 + $0x60] sm:$0xff]   ;;  %v1229_v20 = vld [vmem:[%s1613_s1 + $0x68] sm:$0xff]  }
   0x6   :  { %1113 = vmatprep.subr.bf16.mxu1 %v1215_v6  ;;  %v1222_v13 = vld [vmem:[%s1613_s1 + $0x18] sm:$0xff]   ;;  %v1226_v17 = vld [vmem:[%s1613_s1 + $0x20] sm:$0xff]   ;;  %v1230_v21 = vld [vmem:[%s1613_s1 + $0x28] sm:$0xff]  }
   0x7   :  { %1092 = vmatpush3.bf16.msra.mxu0 %v1214_v5  ;;  %v1223_v14 = vld [vmem:[%s1613_s1 + $0xd8] sm:$0xff]   ;;  %v1227_v18 = vld [vmem:[%s1613_s1 + $0xe0] sm:$0xff]   ;;  %v1231_v22 = vld [vmem:[%s1613_s1 + $0xe8] sm:$0xff]  }
   0x8   :  { %1093 = vmatprep.subr.bf16.mxu0 %v1217_v8  ;;  %v1224_v15 = vld [vmem:[%s1613_s1 + $0x98] sm:$0xff]   ;;  %v1228_v19 = vld [vmem:[%s1613_s1 + $0xa0] sm:$0xff]   ;;  %v1232_v23 = vld [vmem:[%s1613_s1 + $0xa8] sm:$0xff]  }
   0x9   :  { %1114 = vmatpush3.bf16.msra.mxu1 %v1216_v7  ;;  %v1233_v24 = vld [vmem:[%s1613_s1 + $0x70] sm:$0xff]   ;;  %v1237_v28 = vld [vmem:[%s1613_s1 + $0x78] sm:$0xff]   ;;  %v1240_v31 = vld [vmem:[%s1614_s0] ss:$44 sps:$4 sm:$0xff]  }
   0xa   :  { %1115 = vmatprep.subr.bf16.mxu1 %v1219_v10  ;;  %v1234_v25 = vld [vmem:[%s1613_s1 + $0x30] sm:$0xff]   ;;  %v1238_v29 = vld [vmem:[%s1613_s1 + $0x38] sm:$0xff]   ;;  %v1244_v34 = vld [vmem:[%s1613_s1 + $0x140] sm:$0xff]  }
   0xb   :  { %1094 = vmatpush3.bf16.msra.mxu0 %v1218_v9  ;;  %v1235_v26 = vld [vmem:[%s1613_s1 + $0xf0] sm:$0xff]   ;;  %v1239_v30 = vld [vmem:[%s1613_s1 + $0xf8] sm:$0xff]   ;;  %v1248_v37 = vld [vmem:[%s1613_s1 + $0x100] sm:$0xff]   ;;  %v1306_v9 = vmov 0.0  }
   0xc   :  { %1095 = vmatprep.subr.bf16.mxu0 %v1221_v12  ;;  %v1236_v27 = vld [vmem:[%s1613_s1 + $0xb0] sm:$0xff]   ;;  %v1243_v33 = vld [vmem:[%s1613_s1 + $0xb8] sm:$0xff]   ;;  %v1249_v38 = vld [vmem:[%s1613_s1 + $0x1c0] sm:$0xff]  }
   0xd   :  { %1116 = vmatpush3.bf16.msra.mxu1 %v1220_v11  ;;  %v1242_v32 = vld [vmem:[%s1614_s0 + $0x4] ss:$44 sps:$4 sm:$0xff]   ;;  %v1245_v35 = vld [vmem:[%s1614_s0 + $0x8] ss:$44 sps:$4 sm:$0xff]   ;;  %v1247_v36 = vld [vmem:[%s1614_s0 + $0xc] ss:$44 sps:$4 sm:$0xff]  }
   0xe   :  { %1117 = vmatprep.subr.bf16.mxu1 %v1223_v14  ;;  %773 = vmatprep.mubr.bf16.mxu0 %v1242_v32  ;;  %v1250_v39 = vld [vmem:[%s1613_s1 + $0x180] sm:$0xff]   ;;  %v1251_v40 = vld [vmem:[%s1613_s1 + $0x148] sm:$0xff]   ;;  %v1255_v44 = vld [vmem:[%s1613_s1 + $0x150] sm:$0xff]  }
   0xf   :  { %1096 = vmatpush3.bf16.msra.mxu0 %v1222_v13  ;;  %814 = vmatprep.mubr.bf16.mxu1 %v1247_v36  ;;  %v1252_v41 = vld [vmem:[%s1613_s1 + $0x108] sm:$0xff]   ;;  %v1256_v45 = vld [vmem:[%s1613_s1 + $0x110] sm:$0xff]   ;;  %v1259_v48 = vld [vmem:[%s1613_s1 + $0x158] sm:$0xff]  }
  0x10   :  { %1097 = vmatprep.subr.bf16.mxu0 %v1225_v16  ;;  %v1253_v42 = vld [vmem:[%s1613_s1 + $0x1c8] sm:$0xff]   ;;  %v1257_v46 = vld [vmem:[%s1613_s1 + $0x1d0] sm:$0xff]   ;;  %v1260_v49 = vld [vmem:[%s1613_s1 + $0x118] sm:$0xff]  }
  0x11   :  { %1118 = vmatpush3.bf16.msra.mxu1 %v1224_v15  ;;  %v1254_v43 = vld [vmem:[%s1613_s1 + $0x188] sm:$0xff]   ;;  %v1258_v47 = vld [vmem:[%s1613_s1 + $0x190] sm:$0xff]   ;;  %v1261_v50 = vld [vmem:[%s1613_s1 + $0x1d8] sm:$0xff]  }
  0x12   :  { %1119 = vmatprep.subr.bf16.mxu1 %v1227_v18  ;;  %v1262_v51 = vld [vmem:[%s1613_s1 + $0x198] sm:$0xff]   ;;  %v1263_v52 = vld [vmem:[%s1613_s1 + $0x160] sm:$0xff]   ;;  %v1267_v56 = vld [vmem:[%s1613_s1 + $0x168] sm:$0xff]  }
  0x13   :  { %1098 = vmatpush3.bf16.msra.mxu0 %v1226_v17  ;;  %v1264_v53 = vld [vmem:[%s1613_s1 + $0x120] sm:$0xff]   ;;  %v1268_v57 = vld [vmem:[%s1613_s1 + $0x128] sm:$0xff]   ;;  %v1271_v60 = vld [vmem:[%s1613_s1 + $0x170] sm:$0xff]  }
  0x14   :  { %1099 = vmatprep.subr.bf16.mxu0 %v1229_v20  ;;  %v1265_v54 = vld [vmem:[%s1613_s1 + $0x1e0] sm:$0xff]   ;;  %v1269_v58 = vld [vmem:[%s1613_s1 + $0x1e8] sm:$0xff]   ;;  %v1272_v61 = vld [vmem:[%s1613_s1 + $0x130] sm:$0xff]  }
  0x15   :  { %1120 = vmatpush3.bf16.msra.mxu1 %v1228_v19  ;;  %v1266_v55 = vld [vmem:[%s1613_s1 + $0x1a0] sm:$0xff]   ;;  %v1270_v59 = vld [vmem:[%s1613_s1 + $0x1a8] sm:$0xff]   ;;  %v1273_v62 = vld [vmem:[%s1613_s1 + $0x1f0] sm:$0xff]  }
  0x16   :  { %1121 = vmatprep.subr.bf16.mxu1 %v1231_v22  ;;  %v1274_v63 = vld [vmem:[%s1613_s1 + $0x1b0] sm:$0xff]   ;;  %v1275_v0 = vld [vmem:[%s1613_s1 + $0x178] sm:$0xff]   ;;  %v1282_v6 = vld [vmem:[%s1613_s1 + $0x240] sm:$0xff]  }
  0x17   :  { %1100 = vmatpush3.bf16.msra.mxu0 %v1230_v21  ;;  %v1276_v1 = vld [vmem:[%s1613_s1 + $0x138] sm:$0xff]   ;;  %v1280_v4 = vld [vmem:[%s1614_s0 + $0x14] ss:$44 sps:$4 sm:$0xff]   ;;  %v1287_v11 = vld [vmem:[%s1613_s1 + $0x248] sm:$0xff]  }
  0x18   :  { %1101 = vmatprep.subr.bf16.mxu0 %v1233_v24  ;;  %v1277_v2 = vld [vmem:[%s1613_s1 + $0x1f8] sm:$0xff]   ;;  %v1286_v10 = vld [vmem:[%s1613_s1 + $0x200] sm:$0xff]   ;;  %v1288_v12 = vld [vmem:[%s1613_s1 + $0x208] sm:$0xff]  }
  0x19   :  { %1122 = vmatpush3.bf16.msra.mxu1 %v1232_v23  ;;  %v1278_v3 = vld [vmem:[%s1614_s0 + $0x10] ss:$44 sps:$4 sm:$0xff]   ;;  %v1283_v7 = vld [vmem:[%s1614_s0 + $0x18] ss:$44 sps:$4 sm:$0xff]   ;;  %v1295_v19 = vld [vmem:[%s1613_s1 + $0x268] sm:$0xff]  }
  0x1a   :  { %1123 = vmatprep.subr.bf16.mxu1 %v1235_v26  ;;  %v1281_v5 = vld [vmem:[%s1613_s1 + $0x1b8] sm:$0xff]   ;;  %v1289_v13 = vld [vmem:[%s1613_s1 + $0x250] sm:$0xff]   ;;  %v1293_v17 = vld [vmem:[%s1613_s1 + $0x260] sm:$0xff]  }
  0x1b   :  { %1102 = vmatpush3.bf16.msra.mxu0 %v1234_v25  ;;  %v1285_v8 = vld [vmem:[%s1614_s0 + $0x1c] ss:$44 sps:$4 sm:$0xff]   ;;  %v1290_v14 = vld [vmem:[%s1613_s1 + $0x210] sm:$0xff]   ;;  %v1294_v18 = vld [vmem:[%s1613_s1 + $0x220] sm:$0xff]  }
  0x1c   :  { %1103 = vmatprep.subr.bf16.mxu0 %v1237_v28  ;;  %v1291_v15 = vld [vmem:[%s1613_s1 + $0x258] sm:$0xff]   ;;  %v1301_v20 = vld [vmem:[%s1613_s1 + $0x280] sm:$0xff]   ;;  %v1305_v22 = vld [vmem:[%s1614_s0 + $0x28] ss:$44 sps:$4 sm:$0xff]  }
  0x1d   :  { %1124 = vmatpush3.bf16.msra.mxu1 %v1236_v27  ;;  %v1292_v16 = vld [vmem:[%s1613_s1 + $0x218] sm:$0xff]   ;;  %v1304_v21 = vld [vmem:[%s1614_s0 + $0x24] ss:$44 sps:$4 sm:$0xff]   ;;  %v1296_v23 = vld [vmem:[%s1613_s1 + $0x228] sm:$0xff]  }
  0x1e   :  { %1125 = vmatprep.subr.bf16.mxu1 %v1239_v30  ;;  %v1297_v24 = vld [vmem:[%s1613_s1 + $0x270] sm:$0xff]   ;;  %v1299_v26 = vld [vmem:[%s1613_s1 + $0x278] sm:$0xff]   ;;  %v1302_v28 = vld [vmem:[%s1614_s0 + $0x20] ss:$44 sps:$4 sm:$0xff]  }
  0x1f   :  { %1104 = vmatpush3.bf16.msra.mxu0 %v1238_v29  ;;  %v1298_v25 = vld [vmem:[%s1613_s1 + $0x230] sm:$0xff]   ;;  %v1300_v27 = vld [vmem:[%s1613_s1 + $0x238] sm:$0xff]   ;;  %v995_v30 = vld [vmem:[%s1615_s2] ss:$0 sm:$0xff] }
  0x20   :  { %1133 = vmatprep.subr.bf16.mxu0 %v1244_v34 }
  0x21   :  { %1126 = vmatpush3.bf16.msra.mxu1 %v1243_v33 }
  0x22   :  { %774 = vmatmul.mubr.bf16.vlgmr.msra.gmra.mrb[0].mxu0 %v1240_v31  ;;  %1155 = vmatprep.subr.bf16.mxu1 %v1249_v38 }
  0x23   :  { %1134 = vmatpush3.bf16.msra.mxu0 %v1248_v37  ;;  %855 = vmatprep.mubr.bf16.mxu0 %v1280_v4 }
  0x24   :  { %815 = vmatmul.mubr.bf16.vlgmr.msra.gmra.mrb[0].mxu1 %v1245_v35  ;;  %1135 = vmatprep.subr.bf16.mxu0 %v1251_v40 }
  0x25   :  { %1156 = vmatpush3.bf16.msra.mxu1 %v1250_v39  ;;  %896 = vmatprep.mubr.bf16.mxu1 %v1285_v8 }
  0x26   :  { %1157 = vmatprep.subr.bf16.mxu1 %v1253_v42 }
  0x27   :  { %1136 = vmatpush3.bf16.msra.mxu0 %v1252_v41 }
  0x28   :  { %1137 = vmatprep.subr.bf16.mxu0 %v1255_v44 }
  0x29   :  { %1158 = vmatpush3.bf16.msra.mxu1 %v1254_v43 }
  0x2a   :  { %1159 = vmatprep.subr.bf16.mxu1 %v1257_v46 }
  0x2b   :  { %1138 = vmatpush3.bf16.msra.mxu0 %v1256_v45 }
  0x2c   :  { %1139 = vmatprep.subr.bf16.mxu0 %v1259_v48 }
  0x2d   :  { %1160 = vmatpush3.bf16.msra.mxu1 %v1258_v47 }
  0x2e   :  { %1161 = vmatprep.subr.bf16.mxu1 %v1261_v50 }
  0x2f   :  { %1140 = vmatpush3.bf16.msra.mxu0 %v1260_v49 }
  0x30   :  { %1141 = vmatprep.subr.bf16.mxu0 %v1263_v52 }
  0x31   :  { %1162 = vmatpush3.bf16.msra.mxu1 %v1262_v51 }
  0x32   :  { %1163 = vmatprep.subr.bf16.mxu1 %v1265_v54 }
  0x33   :  { %1142 = vmatpush3.bf16.msra.mxu0 %v1264_v53 }
  0x34   :  { %1143 = vmatprep.subr.bf16.mxu0 %v1267_v56 }
  0x35   :  { %1164 = vmatpush3.bf16.msra.mxu1 %v1266_v55 }
  0x36   :  { %1165 = vmatprep.subr.bf16.mxu1 %v1269_v58 }
  0x37   :  { %1144 = vmatpush3.bf16.msra.mxu0 %v1268_v57 }
  0x38   :  { %1145 = vmatprep.subr.bf16.mxu0 %v1271_v60 }
  0x39   :  { %1166 = vmatpush3.bf16.msra.mxu1 %v1270_v59 }
  0x3a   :  { %1167 = vmatprep.subr.bf16.mxu1 %v1273_v62 }
  0x3b   :  { %1146 = vmatpush3.bf16.msra.mxu0 %v1272_v61 }
  0x3c   :  { %1147 = vmatprep.subr.bf16.mxu0 %v1275_v0 }
  0x3d   :  { %1168 = vmatpush3.bf16.msra.mxu1 %v1274_v63 }
  0x3e   :  { %1169 = vmatprep.subr.bf16.mxu1 %v1277_v2 }
  0x3f   :  { %1148 = vmatpush3.bf16.msra.mxu0 %v1276_v1 }
  0x40   :  { %1177 = vmatprep.subr.bf16.mxu0 %v1282_v6 }
  0x41   :  { %1170 = vmatpush3.bf16.msra.mxu1 %v1281_v5 }
  0x42   :  { %856 = vmatmul.mubr.bf16.vlgmr.msra.gmra.mrb[4].mxu0 %v1278_v3  ;;  %1201 = vmatprep.subr.bf16.mxu1 %v1306_v9 }
  0x43   :  { %1178 = vmatpush3.bf16.msra.mxu0 %v1286_v10  ;;  %937 = vmatprep.mubr.bf16.mxu0 %v1304_v21 }
  0x44   :  { %897 = vmatmul.mubr.bf16.vlgmr.msra.gmra.mrb[4].mxu1 %v1283_v7  ;;  %1179 = vmatprep.subr.bf16.mxu0 %v1287_v11 }
  0x45   :  { %1203 = vmatprep.mubr.msk.bf16.mxu1 %vm1307_vm0, %v1306_v9  ;;  %1202 = vmatpush3.bf16.msra.mxu1 %v1301_v20 }
  0x47   :  { %1180 = vmatpush3.bf16.msra.mxu0 %v1288_v12 }
  0x48   :  { %1181 = vmatprep.subr.bf16.mxu0 %v1289_v13 }
  0x4b   :  { %1182 = vmatpush3.bf16.msra.mxu0 %v1290_v14 }
  0x4c   :  { %1183 = vmatprep.subr.bf16.mxu0 %v1291_v15  ;;  %1204 = vmatmul.mubr.msk.bf16.vlgmr.msra.gmra.mrb[8].mxu1 %vm737_vm1, %v1305_v22 }
  0x4f   :  { %1184 = vmatpush3.bf16.msra.mxu0 %v1292_v16 }
  0x50   :  { %1185 = vmatprep.subr.bf16.mxu0 %v1293_v17 }
  0x53   :  { %1186 = vmatpush3.bf16.msra.mxu0 %v1294_v18 }
  0x54   :  { %1187 = vmatprep.subr.bf16.mxu0 %v1295_v19 }
  0x57   :  { %1188 = vmatpush3.bf16.msra.mxu0 %v1296_v23 }
  0x58   :  { %1189 = vmatprep.subr.bf16.mxu0 %v1297_v24 }
  0x5b   :  { %1190 = vmatpush3.bf16.msra.mxu0 %v1298_v25 }
  0x5c   :  { %1191 = vmatprep.subr.bf16.mxu0 %v1299_v26 }
  0x5f   :  { %1192 = vmatpush3.bf16.msra.mxu0 %v1300_v27 }
  0x62   :  { %938 = vmatmul.mubr.bf16.vlgmr.msra.gmra.mrb[8].mxu0 %v1302_v28 }
  0xf5   :  { %v1105_v29 = vpop.f32.mrb[0].mxu0 }
  0xf6   :  { %v1106_v31 = vpop.f32.mrb[1].mxu0 }
  0xf7   :  { %v1107_v32 = vadd.f32 %v1106_v31, %v1105_v29  ;;  %v1108_v33 = vpop.f32.mrb[2].mxu0  ;;  %v1127_v34 = vpop.f32.mrb[0].mxu1 }
  0xf8   :  { %v1109_v35 = vpop.f32.mrb[3].mxu0  ;;  %v1128_v38 = vpop.f32.mrb[1].mxu1 }
  0xf9   :  { %v776_v36 = vadd.f32 %v1107_v32, %v995_v30  ;;  %v1110_v37 = vadd.f32 %v1109_v35, %v1108_v33  ;;  %v1129_v39 = vadd.f32 %v1128_v38, %v1127_v34  ;;  %v1130_v40 = vpop.f32.mrb[2].mxu1 }
  0xfa   :  { %v1131_v42 = vpop.f32.mrb[3].mxu1 }
  0xfb   :  { %v779_v41 = vadd.f32 %v1110_v37, %v995_v30  ;;  %v817_v43 = vadd.f32 %v1129_v39, %v776_v36  ;;  %v1132_v44 = vadd.f32 %v1131_v42, %v1130_v40 }
  0xfd   :  { %v820_v45 = vadd.f32 %v1132_v44, %v779_v41 }
 0x115   :  { %v1149_v46 = vpop.f32.mrb[4].mxu0 }
 0x116   :  { %v1150_v47 = vpop.f32.mrb[5].mxu0 }
 0x117   :  { %v1151_v48 = vadd.f32 %v1150_v47, %v1149_v46  ;;  %v1152_v49 = vpop.f32.mrb[6].mxu0  ;;  %v1171_v52 = vpop.f32.mrb[4].mxu1 }
 0x118   :  { %v1153_v50 = vpop.f32.mrb[7].mxu0  ;;  %v1172_v54 = vpop.f32.mrb[5].mxu1 }
 0x119   :  { %v858_v51 = vadd.f32 %v1151_v48, %v817_v43  ;;  %v1154_v53 = vadd.f32 %v1153_v50, %v1152_v49  ;;  %v1173_v56 = vadd.f32 %v1172_v54, %v1171_v52  ;;  %v1174_v57 = vpop.f32.mrb[6].mxu1 }
 0x11a   :  { %v1175_v58 = vpop.f32.mrb[7].mxu1 }
 0x11b   :  { %v861_v55 = vadd.f32 %v1154_v53, %v820_v45  ;;  %v899_v59 = vadd.f32 %v1173_v56, %v858_v51  ;;  %v1176_v60 = vadd.f32 %v1175_v58, %v1174_v57 }
 0x11d   :  { %v902_v61 = vadd.f32 %v1176_v60, %v861_v55 }
 0x11f   :  { %v980_v62 = vpop.f32.mrb[8].mxu1 }
 0x120   :  { %v1205_v63 = vpop.f32.mrb[9].mxu1 }
 0x121   :  { %v983_v0 = vpop.f32.mrb[10].mxu1 }
 0x122   :  { %v1206_v1 = vpop.f32.mrb[11].mxu1 }
 0x135   :  { %v1193_v2 = vpop.f32.mrb[8].mxu0 }
 0x136   :  { %v1194_v3 = vpop.f32.mrb[9].mxu0 }
 0x137   :  { %v1195_v4 = vadd.f32 %v1194_v3, %v1193_v2  ;;  %v1196_v5 = vpop.f32.mrb[10].mxu0 }
 0x138   :  { %v1197_v6 = vpop.f32.mrb[11].mxu0 }
 0x139   :  { %v940_v7 = vadd.f32 %v1195_v4, %v899_v59  ;;  %v1198_v8 = vadd.f32 %v1197_v6, %v1196_v5 }
 0x13b   :  { %v981_v9 = vadd.f32 %v980_v62, %v940_v7  ;;  %v943_v10 = vadd.f32 %v1198_v8, %v902_v61 }
 0x13d   :  { %v987_v11 = vmax.f32 %v981_v9, 0.0  ;;  %v984_v12 = vadd.f32 %v983_v0, %v943_v10 }
 0x13f   :  { %989 = vst [vmem:[%s1616_s3] sm:$0xff] %v987_v11  ;;  %v988_v13 = vmax.f32 %v984_v12, 0.0 }
 0x141   :  { %990 = vst [vmem:[%s1616_s3 + $0x8] sm:$0xff] %v988_v13 }

// kernel: model_fwd.183
= control target key start
LH: loop header
LB: loop body
LE: loop exit
PB: predicated region body
PF: predicated region fallthrough
CT: control target
= control target key end

     0   :  { %v192_v0 = vmov 0   ;;  %vm113_vm0 = vcmask 261120   ;;  %s258_s1 = inlined_call_operand.vmem [shape: bf16[160,128], index: 1, kind: input, shape index: {}]   ;;  %s259_s0 = inlined_call_operand.vmem [shape: bf16[16,160], index: 0, kind: input, shape index: {}]   ;;  %s260_s2 = inlined_call_operand.vmem [shape: f32[1,128], index: 2, kind: input, shape index: {}]   ;;  %s261_s3 = inlined_call_operand.vmem [shape: f32[16,128], index: 3, kind: output, shape index: {}]  }
   0x1   :  { %117 = vmatprep.subr.bf16.mxu0 %v192_v0  ;;  %v179_v1 = vld [vmem:[%s258_s1] sm:$0xff]   ;;  %v180_v2 = vld [vmem:[%s258_s1 + $0x8] sm:$0xff]   ;;  %v181_v3 = vld [vmem:[%s258_s1 + $0x10] sm:$0xff]  }
   0x2   :  { %118 = vmatpush1.bf16.msra.mxu0 %v179_v1  ;;  %v182_v4 = vld [vmem:[%s258_s1 + $0x18] sm:$0xff]   ;;  %v191_v5 = vld [vmem:[%s259_s0 + $0x4] ss:$8 sps:$4 sm:$0xff]   ;;  %v185_v8 = vld [vmem:[%s258_s1 + $0x30] sm:$0xff]  }
   0x3   :  { %119 = vmatprep.subr.bf16.mxu0 %v192_v0  ;;  %177 = vmatprep.mubr.msk.bf16.mxu0 %vm113_vm0, %v191_v5  ;;  %v183_v6 = vld [vmem:[%s258_s1 + $0x20] sm:$0xff]   ;;  %v184_v7 = vld [vmem:[%s258_s1 + $0x28] sm:$0xff]   ;;  %v186_v9 = vld [vmem:[%s258_s1 + $0x38] sm:$0xff]  }
   0x4   :  { %v187_v10 = vld [vmem:[%s258_s1 + $0x40] sm:$0xff]   ;;  %v188_v11 = vld [vmem:[%s258_s1 + $0x48] sm:$0xff]  }
   0x5   :  { %v189_v12 = vld [vmem:[%s259_s0] ss:$8 sps:$4 sm:$0xff]  }
   0x6   :  { %120 = vmatpush1.bf16.msra.mxu0 %v180_v2  ;;  %v164_v13 = vld [vmem:[%s260_s2] ss:$0 sm:$0xff] }
   0x7   :  { %121 = vmatprep.subr.bf16.mxu0 %v192_v0 }
   0xa   :  { %122 = vmatpush1.bf16.msra.mxu0 %v181_v3 }
   0xb   :  { %123 = vmatprep.subr.bf16.mxu0 %v192_v0 }
   0xe   :  { %124 = vmatpush1.bf16.msra.mxu0 %v182_v4 }
   0xf   :  { %125 = vmatprep.subr.bf16.mxu0 %v192_v0 }
  0x12   :  { %126 = vmatpush1.bf16.msra.mxu0 %v183_v6 }
  0x13   :  { %127 = vmatprep.subr.bf16.mxu0 %v192_v0 }
  0x16   :  { %128 = vmatpush1.bf16.msra.mxu0 %v184_v7 }
  0x17   :  { %129 = vmatprep.subr.bf16.mxu0 %v192_v0 }
  0x1a   :  { %130 = vmatpush1.bf16.msra.mxu0 %v185_v8 }
  0x1b   :  { %131 = vmatprep.subr.bf16.mxu0 %v192_v0 }
  0x1e   :  { %132 = vmatpush1.bf16.msra.mxu0 %v186_v9 }
  0x1f   :  { %133 = vmatprep.subr.bf16.mxu0 %v192_v0 }
  0x22   :  { %134 = vmatpush1.bf16.msra.mxu0 %v187_v10 }
  0x23   :  { %135 = vmatprep.subr.bf16.mxu0 %v192_v0 }
  0x26   :  { %136 = vmatpush1.bf16.msra.mxu0 %v188_v11 }
  0x29   :  { %150 = vmatmul.mubr.bf16.vlgmr.msra.gmra.mrb[0].mxu0 %v189_v12 }
  0xfc   :  { %v151_v14 = vpop.f32.mrb[0].mxu0 }
  0xfd   :  { %v152_v15 = vadd.f32 %v164_v13, %v151_v14  ;;  %v153_v16 = vpop.f32.mrb[1].mxu0 }
  0xfe   :  { %v154_v17 = vpop.f32.mrb[2].mxu0 }
  0xff   :  { %158 = vst [vmem:[%s261_s3] sm:$0xff] %v152_v15  ;;  %v155_v18 = vadd.f32 %v164_v13, %v154_v17  ;;  %v156_v19 = vpop.f32.mrb[3].mxu0 }
 0x101   :  { %159 = vst [vmem:[%s261_s3 + $0x8] sm:$0xff] %v155_v18 }

// kernel: model_fwd.184
= control target key start
LH: loop header
LB: loop body
LE: loop exit
PB: predicated region body
PF: predicated region fallthrough
CT: control target
= control target key end

     0   :  { %v702_v1 = vmov 0   ;;  %vm417_vm0 = vcmask 654336   ;;  %s898_s1 = inlined_call_operand.vmem [shape: bf16[720,128], index: 1, kind: input, shape index: {}]   ;;  %s899_s0 = inlined_call_operand.vmem [shape: bf16[16,720], index: 0, kind: input, shape index: {}]   ;;  %s900_s2 = inlined_call_operand.vmem [shape: f32[1,128], index: 2, kind: input, shape index: {}]   ;;  %s901_s3 = inlined_call_operand.vmem [shape: f32[16,128], index: 3, kind: output, shape index: {}]  }
   0x1   :  { %v648_v0 = vld [vmem:[%s898_s1 + $0x40] sm:$0xff]   ;;  %503 = vmatprep.subr.bf16.mxu0 %v702_v1  ;;  %v650_v3 = vld [vmem:[%s898_s1 + $0x48] sm:$0xff]   ;;  %v652_v5 = vld [vmem:[%s898_s1 + $0x50] sm:$0xff]  }
   0x2   :  { %v649_v2 = vld [vmem:[%s898_s1] sm:$0xff]   ;;  %603 = vmatprep.subr.bf16.mxu1 %v648_v0  ;;  %v651_v4 = vld [vmem:[%s898_s1 + $0x8] sm:$0xff]   ;;  %v653_v6 = vld [vmem:[%s898_s1 + $0x10] sm:$0xff]  }
   0x3   :  { %604 = vmatpush3.bf16.msra.mxu1 %v649_v2  ;;  %v654_v7 = vld [vmem:[%s898_s1 + $0x58] sm:$0xff]   ;;  %v656_v8 = vld [vmem:[%s898_s1 + $0x100] sm:$0xff]   ;;  %v659_v10 = vld [vmem:[%s898_s1 + $0x108] sm:$0xff]  }
   0x4   :  { %605 = vmatprep.subr.bf16.mxu1 %v650_v3  ;;  %v655_v9 = vld [vmem:[%s898_s1 + $0x18] sm:$0xff]   ;;  %504 = vmatpush1.bf16.msra.mxu0 %v656_v8  ;;  %v657_v11 = vld [vmem:[%s898_s1 + $0x60] sm:$0xff]   ;;  %v662_v12 = vld [vmem:[%s898_s1 + $0x110] sm:$0xff]  }
   0x5   :  { %505 = vmatprep.subr.bf16.mxu0 %v702_v1  ;;  %v658_v13 = vld [vmem:[%s898_s1 + $0x20] sm:$0xff]   ;;  %v660_v14 = vld [vmem:[%s898_s1 + $0x68] sm:$0xff]   ;;  %v665_v15 = vld [vmem:[%s898_s1 + $0x118] sm:$0xff]  }
   0x6   :  { %v661_v16 = vld [vmem:[%s898_s1 + $0x28] sm:$0xff]   ;;  %v663_v17 = vld [vmem:[%s898_s1 + $0x70] sm:$0xff]   ;;  %v670_v18 = vld [vmem:[%s899_s0 + $0x4] ss:$24 sps:$4 sm:$0xff]  }
   0x7   :  { %606 = vmatpush3.bf16.msra.mxu1 %v651_v4  ;;  %v671_v19 = vld [vmem:[%s898_s1 + $0x120] sm:$0xff]   ;;  %v664_v20 = vld [vmem:[%s898_s1 + $0x30] sm:$0xff]   ;;  %v666_v21 = vld [vmem:[%s898_s1 + $0x78] sm:$0xff]   ;;  %453 = vmatprep.mubr.bf16.mxu1 %v670_v18 }
   0x8   :  { %607 = vmatprep.subr.bf16.mxu1 %v652_v5  ;;  %506 = vmatpush1.bf16.msra.mxu0 %v659_v10  ;;  %v674_v22 = vld [vmem:[%s898_s1 + $0x128] sm:$0xff]   ;;  %v667_v23 = vld [vmem:[%s898_s1 + $0x38] sm:$0xff]   ;;  %v672_v24 = vld [vmem:[%s898_s1 + $0xc0] sm:$0xff]  }
   0x9   :  { %507 = vmatprep.subr.bf16.mxu0 %v702_v1  ;;  %v668_v25 = vld [vmem:[%s899_s0] ss:$24 sps:$4 sm:$0xff]   ;;  %v677_v26 = vld [vmem:[%s898_s1 + $0x130] sm:$0xff]   ;;  %v675_v28 = vld [vmem:[%s898_s1 + $0xc8] sm:$0xff]  }
   0xa   :  { %v673_v27 = vld [vmem:[%s898_s1 + $0x80] sm:$0xff]   ;;  %v680_v29 = vld [vmem:[%s898_s1 + $0x138] sm:$0xff]   ;;  %v676_v30 = vld [vmem:[%s898_s1 + $0x88] sm:$0xff]  }
   0xb   :  { %608 = vmatpush3.bf16.msra.mxu1 %v653_v6  ;;  %v678_v31 = vld [vmem:[%s898_s1 + $0xd0] sm:$0xff]   ;;  %v683_v32 = vld [vmem:[%s898_s1 + $0x140] sm:$0xff]   ;;  %v681_v34 = vld [vmem:[%s898_s1 + $0xd8] sm:$0xff]  }
   0xc   :  { %609 = vmatprep.subr.bf16.mxu1 %v654_v7  ;;  %508 = vmatpush1.bf16.msra.mxu0 %v662_v12  ;;  %v679_v33 = vld [vmem:[%s898_s1 + $0x90] sm:$0xff]   ;;  %v686_v35 = vld [vmem:[%s898_s1 + $0x148] sm:$0xff]   ;;  %v682_v36 = vld [vmem:[%s898_s1 + $0x98] sm:$0xff]  }
   0xd   :  { %509 = vmatprep.subr.bf16.mxu0 %v702_v1  ;;  %v684_v37 = vld [vmem:[%s898_s1 + $0xe0] sm:$0xff]   ;;  %v689_v38 = vld [vmem:[%s898_s1 + $0x150] sm:$0xff]   ;;  %v687_v41 = vld [vmem:[%s898_s1 + $0xe8] sm:$0xff]  }
   0xe   :  { %v697_v39 = vld [vmem:[%s899_s0 + $0xc] ss:$24 sps:$4 sm:$0xff]   ;;  %v692_v43 = vld [vmem:[%s898_s1 + $0x158] sm:$0xff]   ;;  %v690_v45 = vld [vmem:[%s898_s1 + $0xf0] sm:$0xff]  }
   0xf   :  { %610 = vmatpush3.bf16.msra.mxu1 %v655_v9  ;;  %v685_v40 = vld [vmem:[%s898_s1 + $0xa0] sm:$0xff]   ;;  %v701_v42 = vld [vmem:[%s899_s0 + $0x14] ss:$24 sps:$4 sm:$0xff]   ;;  %v693_v48 = vld [vmem:[%s898_s1 + $0xf8] sm:$0xff]  }
  0x10   :  { %611 = vmatprep.subr.bf16.mxu1 %v657_v11  ;;  %510 = vmatpush1.bf16.msra.mxu0 %v665_v15  ;;  %v688_v44 = vld [vmem:[%s898_s1 + $0xa8] sm:$0xff]   ;;  %v698_v46 = vld [vmem:[%s898_s1 + $0x160] sm:$0xff]   ;;  %v691_v47 = vld [vmem:[%s898_s1 + $0xb0] sm:$0xff]  }
  0x11   :  { %511 = vmatprep.subr.bf16.mxu0 %v702_v1  ;;  %602 = vmatprep.mubr.msk.bf16.mxu0 %vm417_vm0, %v701_v42  ;;  %v699_v49 = vld [vmem:[%s899_s0 + $0x10] ss:$24 sps:$4 sm:$0xff]   ;;  %v694_v50 = vld [vmem:[%s898_s1 + $0xb8] sm:$0xff]   ;;  %v550_v62 = vld [vmem:[%s900_s2] ss:$0 sm:$0xff] }
  0x12   :  { %v695_v51 = vld [vmem:[%s899_s0 + $0x8] ss:$24 sps:$4 sm:$0xff]  }
  0x13   :  { %612 = vmatpush3.bf16.msra.mxu1 %v658_v13 }
  0x14   :  { %613 = vmatprep.subr.bf16.mxu1 %v660_v14  ;;  %512 = vmatpush1.bf16.msra.mxu0 %v671_v19 }
  0x15   :  { %513 = vmatprep.subr.bf16.mxu0 %v702_v1 }
  0x17   :  { %614 = vmatpush3.bf16.msra.mxu1 %v661_v16 }
  0x18   :  { %615 = vmatprep.subr.bf16.mxu1 %v663_v17  ;;  %514 = vmatpush1.bf16.msra.mxu0 %v674_v22 }
  0x19   :  { %515 = vmatprep.subr.bf16.mxu0 %v702_v1 }
  0x1b   :  { %616 = vmatpush3.bf16.msra.mxu1 %v664_v20 }
  0x1c   :  { %617 = vmatprep.subr.bf16.mxu1 %v666_v21  ;;  %516 = vmatpush1.bf16.msra.mxu0 %v677_v26 }
  0x1d   :  { %517 = vmatprep.subr.bf16.mxu0 %v702_v1 }
  0x1f   :  { %618 = vmatpush3.bf16.msra.mxu1 %v667_v23 }
  0x20   :  { %625 = vmatprep.subr.bf16.mxu1 %v672_v24  ;;  %518 = vmatpush1.bf16.msra.mxu0 %v680_v29 }
  0x21   :  { %519 = vmatprep.subr.bf16.mxu0 %v702_v1 }
  0x22   :  { %454 = vmatmul.mubr.bf16.vlgmr.msra.gmra.mrb[0].mxu1 %v668_v25 }
  0x23   :  { %626 = vmatpush3.bf16.msra.mxu1 %v673_v27  ;;  %494 = vmatprep.mubr.bf16.mxu1 %v697_v39 }
  0x24   :  { %627 = vmatprep.subr.bf16.mxu1 %v675_v28  ;;  %520 = vmatpush1.bf16.msra.mxu0 %v683_v32 }
  0x25   :  { %521 = vmatprep.subr.bf16.mxu0 %v702_v1 }
  0x27   :  { %628 = vmatpush3.bf16.msra.mxu1 %v676_v30 }
  0x28   :  { %629 = vmatprep.subr.bf16.mxu1 %v678_v31  ;;  %522 = vmatpush1.bf16.msra.mxu0 %v686_v35 }
  0x29   :  { %523 = vmatprep.subr.bf16.mxu0 %v702_v1 }
  0x2b   :  { %630 = vmatpush3.bf16.msra.mxu1 %v679_v33 }
  0x2c   :  { %631 = vmatprep.subr.bf16.mxu1 %v681_v34  ;;  %524 = vmatpush1.bf16.msra.mxu0 %v689_v38 }
  0x2d   :  { %525 = vmatprep.subr.bf16.mxu0 %v702_v1 }
  0x2f   :  { %632 = vmatpush3.bf16.msra.mxu1 %v682_v36 }
  0x30   :  { %633 = vmatprep.subr.bf16.mxu1 %v684_v37  ;;  %526 = vmatpush1.bf16.msra.mxu0 %v692_v43 }
  0x31   :  { %527 = vmatprep.subr.bf16.mxu0 %v702_v1 }
  0x33   :  { %634 = vmatpush3.bf16.msra.mxu1 %v685_v40 }
  0x34   :  { %635 = vmatprep.subr.bf16.mxu1 %v687_v41  ;;  %528 = vmatpush1.bf16.msra.mxu0 %v698_v46 }
  0x37   :  { %636 = vmatpush3.bf16.msra.mxu1 %v688_v44  ;;  %536 = vmatmul.mubr.bf16.vlgmr.msra.gmra.mrb[0].mxu0 %v699_v49 }
  0x38   :  { %637 = vmatprep.subr.bf16.mxu1 %v690_v45 }
  0x3b   :  { %638 = vmatpush3.bf16.msra.mxu1 %v691_v47 }
  0x3c   :  { %639 = vmatprep.subr.bf16.mxu1 %v693_v48 }
  0x3f   :  { %640 = vmatpush3.bf16.msra.mxu1 %v694_v50 }
  0x42   :  { %495 = vmatmul.mubr.bf16.vlgmr.msra.gmra.mrb[4].mxu1 %v695_v51 }
  0xf5   :  { %v619_v52 = vpop.f32.mrb[0].mxu1 }
  0xf6   :  { %v620_v53 = vpop.f32.mrb[1].mxu1 }
  0xf7   :  { %v621_v54 = vadd.f32 %v620_v53, %v619_v52  ;;  %v622_v55 = vpop.f32.mrb[2].mxu1 }
  0xf8   :  { %v623_v56 = vpop.f32.mrb[3].mxu1 }
  0xf9   :  { %v624_v57 = vadd.f32 %v623_v56, %v622_v55  ;;  %v456_v1 = vadd.f32 %v621_v54, %v550_v62 }
  0xfb   :  { %v459_v5 = vadd.f32 %v624_v57, %v550_v62 }
 0x10a   :  { %v537_v58 = vpop.f32.mrb[0].mxu0 }
 0x10b   :  { %v539_v59 = vpop.f32.mrb[1].mxu0 }
 0x10c   :  { %v540_v60 = vpop.f32.mrb[2].mxu0 }
 0x10d   :  { %v542_v61 = vpop.f32.mrb[3].mxu0 }
 0x115   :  { %v641_v63 = vpop.f32.mrb[4].mxu1 }
 0x116   :  { %v642_v0 = vpop.f32.mrb[5].mxu1 }
 0x117   :  { %v643_v2 = vadd.f32 %v642_v0, %v641_v63  ;;  %v644_v3 = vpop.f32.mrb[6].mxu1 }
 0x118   :  { %v645_v4 = vpop.f32.mrb[7].mxu1 }
 0x119   :  { %v497_v6 = vadd.f32 %v643_v2, %v456_v1  ;;  %v646_v7 = vadd.f32 %v645_v4, %v644_v3 }
 0x11b   :  { %v538_v8 = vadd.f32 %v537_v58, %v497_v6  ;;  %v500_v9 = vadd.f32 %v646_v7, %v459_v5 }
 0x11d   :  { %544 = vst [vmem:[%s901_s3] sm:$0xff] %v538_v8  ;;  %v541_v10 = vadd.f32 %v540_v60, %v500_v9 }
 0x11f   :  { %545 = vst [vmem:[%s901_s3 + $0x8] sm:$0xff] %v541_v10 }

// kernel: model_fwd.185
= control target key start
LH: loop header
LB: loop body
LE: loop exit
PB: predicated region body
PF: predicated region fallthrough
CT: control target
= control target key end

     0   :  { %v702_v1 = vmov 0   ;;  %vm417_vm0 = vcmask 654336   ;;  %s898_s1 = inlined_call_operand.vmem [shape: bf16[720,128], index: 1, kind: input, shape index: {}]   ;;  %s899_s0 = inlined_call_operand.vmem [shape: bf16[16,720], index: 0, kind: input, shape index: {}]   ;;  %s900_s2 = inlined_call_operand.vmem [shape: f32[1,128], index: 2, kind: input, shape index: {}]   ;;  %s901_s3 = inlined_call_operand.vmem [shape: f32[16,128], index: 3, kind: output, shape index: {}]  }
   0x1   :  { %v648_v0 = vld [vmem:[%s898_s1 + $0x40] sm:$0xff]   ;;  %503 = vmatprep.subr.bf16.mxu0 %v702_v1  ;;  %v650_v3 = vld [vmem:[%s898_s1 + $0x48] sm:$0xff]   ;;  %v652_v5 = vld [vmem:[%s898_s1 + $0x50] sm:$0xff]  }
   0x2   :  { %v649_v2 = vld [vmem:[%s898_s1] sm:$0xff]   ;;  %603 = vmatprep.subr.bf16.mxu1 %v648_v0  ;;  %v651_v4 = vld [vmem:[%s898_s1 + $0x8] sm:$0xff]   ;;  %v653_v6 = vld [vmem:[%s898_s1 + $0x10] sm:$0xff]  }
   0x3   :  { %604 = vmatpush3.bf16.msra.mxu1 %v649_v2  ;;  %v654_v7 = vld [vmem:[%s898_s1 + $0x58] sm:$0xff]   ;;  %v656_v8 = vld [vmem:[%s898_s1 + $0x100] sm:$0xff]   ;;  %v659_v10 = vld [vmem:[%s898_s1 + $0x108] sm:$0xff]  }
   0x4   :  { %605 = vmatprep.subr.bf16.mxu1 %v650_v3  ;;  %v655_v9 = vld [vmem:[%s898_s1 + $0x18] sm:$0xff]   ;;  %504 = vmatpush1.bf16.msra.mxu0 %v656_v8  ;;  %v657_v11 = vld [vmem:[%s898_s1 + $0x60] sm:$0xff]   ;;  %v662_v12 = vld [vmem:[%s898_s1 + $0x110] sm:$0xff]  }
   0x5   :  { %505 = vmatprep.subr.bf16.mxu0 %v702_v1  ;;  %v658_v13 = vld [vmem:[%s898_s1 + $0x20] sm:$0xff]   ;;  %v660_v14 = vld [vmem:[%s898_s1 + $0x68] sm:$0xff]   ;;  %v665_v15 = vld [vmem:[%s898_s1 + $0x118] sm:$0xff]  }
   0x6   :  { %v661_v16 = vld [vmem:[%s898_s1 + $0x28] sm:$0xff]   ;;  %v663_v17 = vld [vmem:[%s898_s1 + $0x70] sm:$0xff]   ;;  %v670_v18 = vld [vmem:[%s899_s0 + $0x4] ss:$24 sps:$4 sm:$0xff]  }
   0x7   :  { %606 = vmatpush3.bf16.msra.mxu1 %v651_v4  ;;  %v671_v19 = vld [vmem:[%s898_s1 + $0x120] sm:$0xff]   ;;  %v664_v20 = vld [vmem:[%s898_s1 + $0x30] sm:$0xff]   ;;  %v666_v21 = vld [vmem:[%s898_s1 + $0x78] sm:$0xff]   ;;  %453 = vmatprep.mubr.bf16.mxu1 %v670_v18 }
   0x8   :  { %607 = vmatprep.subr.bf16.mxu1 %v652_v5  ;;  %506 = vmatpush1.bf16.msra.mxu0 %v659_v10  ;;  %v674_v22 = vld [vmem:[%s898_s1 + $0x128] sm:$0xff]   ;;  %v667_v23 = vld [vmem:[%s898_s1 + $0x38] sm:$0xff]   ;;  %v672_v24 = vld [vmem:[%s898_s1 + $0xc0] sm:$0xff]  }
   0x9   :  { %507 = vmatprep.subr.bf16.mxu0 %v702_v1  ;;  %v668_v25 = vld [vmem:[%s899_s0] ss:$24 sps:$4 sm:$0xff]   ;;  %v677_v26 = vld [vmem:[%s898_s1 + $0x130] sm:$0xff]   ;;  %v675_v28 = vld [vmem:[%s898_s1 + $0xc8] sm:$0xff]  }
   0xa   :  { %v673_v27 = vld [vmem:[%s898_s1 + $0x80] sm:$0xff]   ;;  %v680_v29 = vld [vmem:[%s898_s1 + $0x138] sm:$0xff]   ;;  %v676_v30 = vld [vmem:[%s898_s1 + $0x88] sm:$0xff]  }
   0xb   :  { %608 = vmatpush3.bf16.msra.mxu1 %v653_v6  ;;  %v678_v31 = vld [vmem:[%s898_s1 + $0xd0] sm:$0xff]   ;;  %v683_v32 = vld [vmem:[%s898_s1 + $0x140] sm:$0xff]   ;;  %v681_v34 = vld [vmem:[%s898_s1 + $0xd8] sm:$0xff]  }
   0xc   :  { %609 = vmatprep.subr.bf16.mxu1 %v654_v7  ;;  %508 = vmatpush1.bf16.msra.mxu0 %v662_v12  ;;  %v679_v33 = vld [vmem:[%s898_s1 + $0x90] sm:$0xff]   ;;  %v686_v35 = vld [vmem:[%s898_s1 + $0x148] sm:$0xff]   ;;  %v682_v36 = vld [vmem:[%s898_s1 + $0x98] sm:$0xff]  }
   0xd   :  { %509 = vmatprep.subr.bf16.mxu0 %v702_v1  ;;  %v684_v37 = vld [vmem:[%s898_s1 + $0xe0] sm:$0xff]   ;;  %v689_v38 = vld [vmem:[%s898_s1 + $0x150] sm:$0xff]   ;;  %v687_v41 = vld [vmem:[%s898_s1 + $0xe8] sm:$0xff]  }
   0xe   :  { %v697_v39 = vld [vmem:[%s899_s0 + $0xc] ss:$24 sps:$4 sm:$0xff]   ;;  %v692_v43 = vld [vmem:[%s898_s1 + $0x158] sm:$0xff]   ;;  %v690_v45 = vld [vmem:[%s898_s1 + $0xf0] sm:$0xff]  }
   0xf   :  { %610 = vmatpush3.bf16.msra.mxu1 %v655_v9  ;;  %v685_v40 = vld [vmem:[%s898_s1 + $0xa0] sm:$0xff]   ;;  %v701_v42 = vld [vmem:[%s899_s0 + $0x14] ss:$24 sps:$4 sm:$0xff]   ;;  %v693_v48 = vld [vmem:[%s898_s1 + $0xf8] sm:$0xff]  }
  0x10   :  { %611 = vmatprep.subr.bf16.mxu1 %v657_v11  ;;  %510 = vmatpush1.bf16.msra.mxu0 %v665_v15  ;;  %v688_v44 = vld [vmem:[%s898_s1 + $0xa8] sm:$0xff]   ;;  %v698_v46 = vld [vmem:[%s898_s1 + $0x160] sm:$0xff]   ;;  %v691_v47 = vld [vmem:[%s898_s1 + $0xb0] sm:$0xff]  }
  0x11   :  { %511 = vmatprep.subr.bf16.mxu0 %v702_v1  ;;  %602 = vmatprep.mubr.msk.bf16.mxu0 %vm417_vm0, %v701_v42  ;;  %v699_v49 = vld [vmem:[%s899_s0 + $0x10] ss:$24 sps:$4 sm:$0xff]   ;;  %v694_v50 = vld [vmem:[%s898_s1 + $0xb8] sm:$0xff]   ;;  %v550_v62 = vld [vmem:[%s900_s2] ss:$0 sm:$0xff] }
  0x12   :  { %v695_v51 = vld [vmem:[%s899_s0 + $0x8] ss:$24 sps:$4 sm:$0xff]  }
  0x13   :  { %612 = vmatpush3.bf16.msra.mxu1 %v658_v13 }
  0x14   :  { %613 = vmatprep.subr.bf16.mxu1 %v660_v14  ;;  %512 = vmatpush1.bf16.msra.mxu0 %v671_v19 }
  0x15   :  { %513 = vmatprep.subr.bf16.mxu0 %v702_v1 }
  0x17   :  { %614 = vmatpush3.bf16.msra.mxu1 %v661_v16 }
  0x18   :  { %615 = vmatprep.subr.bf16.mxu1 %v663_v17  ;;  %514 = vmatpush1.bf16.msra.mxu0 %v674_v22 }
  0x19   :  { %515 = vmatprep.subr.bf16.mxu0 %v702_v1 }
  0x1b   :  { %616 = vmatpush3.bf16.msra.mxu1 %v664_v20 }
  0x1c   :  { %617 = vmatprep.subr.bf16.mxu1 %v666_v21  ;;  %516 = vmatpush1.bf16.msra.mxu0 %v677_v26 }
  0x1d   :  { %517 = vmatprep.subr.bf16.mxu0 %v702_v1 }
  0x1f   :  { %618 = vmatpush3.bf16.msra.mxu1 %v667_v23 }
  0x20   :  { %625 = vmatprep.subr.bf16.mxu1 %v672_v24  ;;  %518 = vmatpush1.bf16.msra.mxu0 %v680_v29 }
  0x21   :  { %519 = vmatprep.subr.bf16.mxu0 %v702_v1 }
  0x22   :  { %454 = vmatmul.mubr.bf16.vlgmr.msra.gmra.mrb[0].mxu1 %v668_v25 }
  0x23   :  { %626 = vmatpush3.bf16.msra.mxu1 %v673_v27  ;;  %494 = vmatprep.mubr.bf16.mxu1 %v697_v39 }
  0x24   :  { %627 = vmatprep.subr.bf16.mxu1 %v675_v28  ;;  %520 = vmatpush1.bf16.msra.mxu0 %v683_v32 }
  0x25   :  { %521 = vmatprep.subr.bf16.mxu0 %v702_v1 }
  0x27   :  { %628 = vmatpush3.bf16.msra.mxu1 %v676_v30 }
  0x28   :  { %629 = vmatprep.subr.bf16.mxu1 %v678_v31  ;;  %522 = vmatpush1.bf16.msra.mxu0 %v686_v35 }
  0x29   :  { %523 = vmatprep.subr.bf16.mxu0 %v702_v1 }
  0x2b   :  { %630 = vmatpush3.bf16.msra.mxu1 %v679_v33 }
  0x2c   :  { %631 = vmatprep.subr.bf16.mxu1 %v681_v34  ;;  %524 = vmatpush1.bf16.msra.mxu0 %v689_v38 }
  0x2d   :  { %525 = vmatprep.subr.bf16.mxu0 %v702_v1 }
  0x2f   :  { %632 = vmatpush3.bf16.msra.mxu1 %v682_v36 }
  0x30   :  { %633 = vmatprep.subr.bf16.mxu1 %v684_v37  ;;  %526 = vmatpush1.bf16.msra.mxu0 %v692_v43 }
  0x31   :  { %527 = vmatprep.subr.bf16.mxu0 %v702_v1 }
  0x33   :  { %634 = vmatpush3.bf16.msra.mxu1 %v685_v40 }
  0x34   :  { %635 = vmatprep.subr.bf16.mxu1 %v687_v41  ;;  %528 = vmatpush1.bf16.msra.mxu0 %v698_v46 }
  0x37   :  { %636 = vmatpush3.bf16.msra.mxu1 %v688_v44  ;;  %536 = vmatmul.mubr.bf16.vlgmr.msra.gmra.mrb[0].mxu0 %v699_v49 }
  0x38   :  { %637 = vmatprep.subr.bf16.mxu1 %v690_v45 }
  0x3b   :  { %638 = vmatpush3.bf16.msra.mxu1 %v691_v47 }
  0x3c   :  { %639 = vmatprep.subr.bf16.mxu1 %v693_v48 }
  0x3f   :  { %640 = vmatpush3.bf16.msra.mxu1 %v694_v50 }
  0x42   :  { %495 = vmatmul.mubr.bf16.vlgmr.msra.gmra.mrb[4].mxu1 %v695_v51 }
  0xf5   :  { %v619_v52 = vpop.f32.mrb[0].mxu1 }
  0xf6   :  { %v620_v53 = vpop.f32.mrb[1].mxu1 }
  0xf7   :  { %v621_v54 = vadd.f32 %v620_v53, %v619_v52  ;;  %v622_v55 = vpop.f32.mrb[2].mxu1 }
  0xf8   :  { %v623_v56 = vpop.f32.mrb[3].mxu1 }
  0xf9   :  { %v624_v57 = vadd.f32 %v623_v56, %v622_v55  ;;  %v456_v1 = vadd.f32 %v621_v54, %v550_v62 }
  0xfb   :  { %v459_v5 = vadd.f32 %v624_v57, %v550_v62 }
 0x10a   :  { %v537_v58 = vpop.f32.mrb[0].mxu0 }
 0x10b   :  { %v539_v59 = vpop.f32.mrb[1].mxu0 }
 0x10c   :  { %v540_v60 = vpop.f32.mrb[2].mxu0 }
 0x10d   :  { %v542_v61 = vpop.f32.mrb[3].mxu0 }
 0x115   :  { %v641_v63 = vpop.f32.mrb[4].mxu1 }
 0x116   :  { %v642_v0 = vpop.f32.mrb[5].mxu1 }
 0x117   :  { %v643_v2 = vadd.f32 %v642_v0, %v641_v63  ;;  %v644_v3 = vpop.f32.mrb[6].mxu1 }
 0x118   :  { %v645_v4 = vpop.f32.mrb[7].mxu1 }
 0x119   :  { %v497_v6 = vadd.f32 %v643_v2, %v456_v1  ;;  %v646_v7 = vadd.f32 %v645_v4, %v644_v3 }
 0x11b   :  { %v538_v8 = vadd.f32 %v537_v58, %v497_v6  ;;  %v500_v9 = vadd.f32 %v646_v7, %v459_v5 }
 0x11d   :  { %544 = vst [vmem:[%s901_s3] sm:$0xff] %v538_v8  ;;  %v541_v10 = vadd.f32 %v540_v60, %v500_v9 }
 0x11f   :  { %545 = vst [vmem:[%s901_s3 + $0x8] sm:$0xff] %v541_v10 }

// kernel: model_fwd.186
= control target key start
LH: loop header
LB: loop body
LE: loop exit
PB: predicated region body
PF: predicated region fallthrough
CT: control target
= control target key end

     0   :  { %v184_v0 = vmov 0   ;;  %vm105_vm0 = vcmask 130048   ;;  %s247_s1 = inlined_call_operand.vmem [shape: bf16[144,128], index: 1, kind: input, shape index: {}]   ;;  %s248_s0 = inlined_call_operand.vmem [shape: bf16[16,144], index: 0, kind: input, shape index: {}]   ;;  %s249_s2 = inlined_call_operand.vmem [shape: f32[1,128], index: 2, kind: input, shape index: {}]   ;;  %s250_s3 = inlined_call_operand.vmem [shape: f32[16,128], index: 3, kind: output, shape index: {}]  }
   0x1   :  { %109 = vmatprep.subr.bf16.mxu0 %v184_v0  ;;  %v172_v1 = vld [vmem:[%s247_s1] sm:$0xff]   ;;  %v173_v2 = vld [vmem:[%s247_s1 + $0x8] sm:$0xff]   ;;  %v174_v3 = vld [vmem:[%s247_s1 + $0x10] sm:$0xff]  }
   0x2   :  { %110 = vmatpush1.bf16.msra.mxu0 %v172_v1  ;;  %v175_v4 = vld [vmem:[%s247_s1 + $0x18] sm:$0xff]   ;;  %v183_v5 = vld [vmem:[%s248_s0 + $0x4] ss:$8 sps:$4 sm:$0xff]   ;;  %v178_v8 = vld [vmem:[%s247_s1 + $0x30] sm:$0xff]  }
   0x3   :  { %111 = vmatprep.subr.bf16.mxu0 %v184_v0  ;;  %170 = vmatprep.mubr.msk.bf16.mxu0 %vm105_vm0, %v183_v5  ;;  %v176_v6 = vld [vmem:[%s247_s1 + $0x20] sm:$0xff]   ;;  %v177_v7 = vld [vmem:[%s247_s1 + $0x28] sm:$0xff]   ;;  %v179_v9 = vld [vmem:[%s247_s1 + $0x38] sm:$0xff]  }
   0x4   :  { %v180_v10 = vld [vmem:[%s247_s1 + $0x40] sm:$0xff]  }
   0x5   :  { %v181_v11 = vld [vmem:[%s248_s0] ss:$8 sps:$4 sm:$0xff]  }
   0x6   :  { %112 = vmatpush1.bf16.msra.mxu0 %v173_v2  ;;  %v158_v12 = vld [vmem:[%s249_s2] ss:$0 sm:$0xff] }
   0x7   :  { %113 = vmatprep.subr.bf16.mxu0 %v184_v0 }
   0xa   :  { %114 = vmatpush1.bf16.msra.mxu0 %v174_v3 }
   0xb   :  { %115 = vmatprep.subr.bf16.mxu0 %v184_v0 }
   0xe   :  { %116 = vmatpush1.bf16.msra.mxu0 %v175_v4 }
   0xf   :  { %117 = vmatprep.subr.bf16.mxu0 %v184_v0 }
  0x12   :  { %118 = vmatpush1.bf16.msra.mxu0 %v176_v6 }
  0x13   :  { %119 = vmatprep.subr.bf16.mxu0 %v184_v0 }
  0x16   :  { %120 = vmatpush1.bf16.msra.mxu0 %v177_v7 }
  0x17   :  { %121 = vmatprep.subr.bf16.mxu0 %v184_v0 }
  0x1a   :  { %122 = vmatpush1.bf16.msra.mxu0 %v178_v8 }
  0x1b   :  { %123 = vmatprep.subr.bf16.mxu0 %v184_v0 }
  0x1e   :  { %124 = vmatpush1.bf16.msra.mxu0 %v179_v9 }
  0x1f   :  { %125 = vmatprep.subr.bf16.mxu0 %v184_v0 }
  0x22   :  { %126 = vmatpush1.bf16.msra.mxu0 %v180_v10 }
  0x25   :  { %142 = vmatmul.mubr.bf16.vlgmr.msra.gmra.mrb[0].mxu0 %v181_v11 }
  0xf8   :  { %v143_v13 = vpop.f32.mrb[0].mxu0 }
  0xf9   :  { %v144_v14 = vadd.f32 %v158_v12, %v143_v13  ;;  %v145_v15 = vpop.f32.mrb[1].mxu0 }
  0xfa   :  { %v146_v16 = vpop.f32.mrb[2].mxu0 }
  0xfb   :  { %v150_v17 = vmax.f32 %v144_v14, 0.0  ;;  %v147_v18 = vadd.f32 %v158_v12, %v146_v16  ;;  %v148_v19 = vpop.f32.mrb[3].mxu0 }
  0xfd   :  { %152 = vst [vmem:[%s250_s3] sm:$0xff] %v150_v17  ;;  %v151_v20 = vmax.f32 %v147_v18, 0.0 }
  0xff   :  { %153 = vst [vmem:[%s250_s3 + $0x8] sm:$0xff] %v151_v20 }

// kernel: model_fwd.187
= control target key start
LH: loop header
LB: loop body
LE: loop exit
PB: predicated region body
PF: predicated region fallthrough
CT: control target
= control target key end

     0   :  { %v359_v1 = vmov 0.0   ;;  %vm360_vm0 = vmmov 0   ;;  %vm185_vm1 = vcmask 261120   ;;  %s453_s1 = inlined_call_operand.vmem [shape: bf16[288,128], index: 1, kind: input, shape index: {}]   ;;  %s454_s0 = inlined_call_operand.vmem [shape: bf16[16,288], index: 0, kind: input, shape index: {}]   ;;  %s455_s2 = inlined_call_operand.vmem [shape: f32[1,128], index: 2, kind: input, shape index: {}]   ;;  %s456_s3 = inlined_call_operand.vmem [shape: f32[16,128], index: 3, kind: output, shape index: {}]  }
   0x1   :  { %v337_v0 = vld [vmem:[%s453_s1 + $0x40] sm:$0xff]   ;;  %327 = vmatprep.subr.bf16.mxu1 %v359_v1  ;;  %331 = vmatprep.mubr.msk.bf16.mxu1 %vm360_vm0, %v359_v1  ;;  %v339_v3 = vld [vmem:[%s453_s1 + $0x48] sm:$0xff]   ;;  %v341_v5 = vld [vmem:[%s453_s1 + $0x50] sm:$0xff]  }
   0x2   :  { %v338_v2 = vld [vmem:[%s453_s1] sm:$0xff]   ;;  %302 = vmatprep.subr.bf16.mxu0 %v337_v0  ;;  %v340_v4 = vld [vmem:[%s453_s1 + $0x8] sm:$0xff]   ;;  %v342_v6 = vld [vmem:[%s453_s1 + $0x10] sm:$0xff]  }
   0x3   :  { %303 = vmatpush3.bf16.msra.mxu0 %v338_v2  ;;  %v343_v7 = vld [vmem:[%s453_s1 + $0x58] sm:$0xff]   ;;  %v345_v9 = vld [vmem:[%s453_s1 + $0x60] sm:$0xff]   ;;  %v347_v12 = vld [vmem:[%s453_s1 + $0x68] sm:$0xff]  }
   0x4   :  { %304 = vmatprep.subr.bf16.mxu0 %v339_v3  ;;  %v344_v8 = vld [vmem:[%s453_s1 + $0x18] sm:$0xff]   ;;  %v351_v10 = vld [vmem:[%s453_s1 + $0x80] sm:$0xff]   ;;  %v348_v13 = vld [vmem:[%s453_s1 + $0x28] sm:$0xff]  }
   0x5   :  { %v346_v11 = vld [vmem:[%s453_s1 + $0x20] sm:$0xff]   ;;  %328 = vmatpush3.bf16.msra.mxu1 %v351_v10  ;;  %v357_v15 = vld [vmem:[%s453_s1 + $0x88] sm:$0xff]   ;;  %v349_v16 = vld [vmem:[%s453_s1 + $0x70] sm:$0xff]  }
   0x6   :  { %329 = vmatprep.subr.bf16.mxu1 %v359_v1  ;;  %v356_v14 = vld [vmem:[%s454_s0 + $0x4] ss:$12 sps:$4 sm:$0xff]   ;;  %v358_v17 = vld [vmem:[%s454_s0 + $0x8] ss:$12 sps:$4 sm:$0xff]   ;;  %v352_v19 = vld [vmem:[%s453_s1 + $0x78] sm:$0xff]  }
   0x7   :  { %305 = vmatpush3.bf16.msra.mxu0 %v340_v4  ;;  %221 = vmatprep.mubr.bf16.mxu0 %v356_v14  ;;  %v350_v18 = vld [vmem:[%s453_s1 + $0x30] sm:$0xff]   ;;  %v353_v20 = vld [vmem:[%s453_s1 + $0x38] sm:$0xff]   ;;  %v354_v21 = vld [vmem:[%s454_s0] ss:$12 sps:$4 sm:$0xff]  }
   0x8   :  { %306 = vmatprep.subr.bf16.mxu0 %v341_v5  ;;  %v279_v28 = vld [vmem:[%s455_s2] ss:$0 sm:$0xff] }
   0x9   :  { %330 = vmatpush3.bf16.msra.mxu1 %v357_v15 }
   0xb   :  { %307 = vmatpush3.bf16.msra.mxu0 %v342_v6 }
   0xc   :  { %308 = vmatprep.subr.bf16.mxu0 %v343_v7  ;;  %332 = vmatmul.mubr.msk.bf16.vlgmr.msra.gmra.mrb[0].mxu1 %vm185_vm1, %v358_v17 }
   0xf   :  { %309 = vmatpush3.bf16.msra.mxu0 %v344_v8 }
  0x10   :  { %310 = vmatprep.subr.bf16.mxu0 %v345_v9 }
  0x13   :  { %311 = vmatpush3.bf16.msra.mxu0 %v346_v11 }
  0x14   :  { %312 = vmatprep.subr.bf16.mxu0 %v347_v12 }
  0x17   :  { %313 = vmatpush3.bf16.msra.mxu0 %v348_v13 }
  0x18   :  { %314 = vmatprep.subr.bf16.mxu0 %v349_v16 }
  0x1b   :  { %315 = vmatpush3.bf16.msra.mxu0 %v350_v18 }
  0x1c   :  { %316 = vmatprep.subr.bf16.mxu0 %v352_v19 }
  0x1f   :  { %317 = vmatpush3.bf16.msra.mxu0 %v353_v20 }
  0x22   :  { %222 = vmatmul.mubr.bf16.vlgmr.msra.gmra.mrb[0].mxu0 %v354_v21 }
  0xdf   :  { %v264_v22 = vpop.f32.mrb[0].mxu1 }
  0xe0   :  { %v333_v23 = vpop.f32.mrb[1].mxu1 }
  0xe1   :  { %v267_v24 = vpop.f32.mrb[2].mxu1 }
  0xe2   :  { %v334_v25 = vpop.f32.mrb[3].mxu1 }
  0xf5   :  { %v318_v26 = vpop.f32.mrb[0].mxu0 }
  0xf6   :  { %v319_v27 = vpop.f32.mrb[1].mxu0 }
  0xf7   :  { %v320_v29 = vadd.f32 %v319_v27, %v318_v26  ;;  %v321_v30 = vpop.f32.mrb[2].mxu0 }
  0xf8   :  { %v322_v31 = vpop.f32.mrb[3].mxu0 }
  0xf9   :  { %v224_v32 = vadd.f32 %v320_v29, %v279_v28  ;;  %v323_v33 = vadd.f32 %v322_v31, %v321_v30 }
  0xfb   :  { %v265_v34 = vadd.f32 %v264_v22, %v224_v32  ;;  %v227_v35 = vadd.f32 %v323_v33, %v279_v28 }
  0xfd   :  { %v271_v36 = vmax.f32 %v265_v34, 0.0  ;;  %v268_v37 = vadd.f32 %v267_v24, %v227_v35 }
  0xff   :  { %273 = vst [vmem:[%s456_s3] sm:$0xff] %v271_v36  ;;  %v272_v38 = vmax.f32 %v268_v37, 0.0 }
 0x101   :  { %274 = vst [vmem:[%s456_s3 + $0x8] sm:$0xff] %v272_v38 }

// kernel: model_fwd.189
= control target key start
LH: loop header
LB: loop body
LE: loop exit
PB: predicated region body
PF: predicated region fallthrough
CT: control target
= control target key end

     0   :  { %v143_v0 = vmov 0.0   ;;  %vm144_vm0 = vmmov 0   ;;  %vm61_vm1 = vcmask 523264   ;;  %s189_s1 = inlined_call_operand.vmem [shape: bf16[64,128], index: 1, kind: input, shape index: {}]   ;;  %s190_s0 = inlined_call_operand.vmem [shape: bf16[16,64], index: 0, kind: input, shape index: {}]   ;;  %s191_s2 = inlined_call_operand.vmem [shape: f32[1,128], index: 2, kind: input, shape index: {}]   ;;  %s192_s3 = inlined_call_operand.vmem [shape: f32[16,128], index: 3, kind: output, shape index: {}]  }
   0x1   :  { %124 = vmatprep.subr.bf16.mxu0 %v143_v0  ;;  %v138_v1 = vld [vmem:[%s189_s1] sm:$0xff]   ;;  %132 = vmatprep.mubr.msk.bf16.mxu0 %vm144_vm0, %v143_v0  ;;  %v139_v2 = vld [vmem:[%s189_s1 + $0x8] sm:$0xff]   ;;  %v140_v3 = vld [vmem:[%s189_s1 + $0x10] sm:$0xff]  }
   0x2   :  { %125 = vmatpush3.bf16.msra.mxu0 %v138_v1  ;;  %v141_v4 = vld [vmem:[%s189_s1 + $0x18] sm:$0xff]   ;;  %v142_v5 = vld [vmem:[%s190_s0] sm:$0xff]  }
   0x3   :  { %126 = vmatprep.subr.bf16.mxu0 %v143_v0  ;;  %v112_v6 = vld [vmem:[%s191_s2] ss:$0 sm:$0xff] }
   0x6   :  { %127 = vmatpush3.bf16.msra.mxu0 %v139_v2 }
   0x7   :  { %128 = vmatprep.subr.bf16.mxu0 %v143_v0 }
   0xa   :  { %129 = vmatpush3.bf16.msra.mxu0 %v140_v3 }
   0xb   :  { %130 = vmatprep.subr.bf16.mxu0 %v143_v0 }
   0xe   :  { %131 = vmatpush3.bf16.msra.mxu0 %v141_v4 }
  0x11   :  { %133 = vmatmul.mubr.msk.bf16.vlgmr.msra.gmra.mrb[0].mxu0 %vm61_vm1, %v142_v5 }
  0xe4   :  { %v99_v7 = vpop.f32.mrb[0].mxu0 }
  0xe5   :  { %v100_v8 = vadd.f32 %v112_v6, %v99_v7  ;;  %v134_v9 = vpop.f32.mrb[1].mxu0 }
  0xe6   :  { %v102_v10 = vpop.f32.mrb[2].mxu0 }
  0xe7   :  { %106 = vst [vmem:[%s192_s3] sm:$0xff] %v100_v8  ;;  %v103_v11 = vadd.f32 %v112_v6, %v102_v10  ;;  %v135_v12 = vpop.f32.mrb[3].mxu0 }
  0xe9   :  { %107 = vst [vmem:[%s192_s3 + $0x8] sm:$0xff] %v103_v11 }

// kernel: model_fwd.188
= control target key start
LH: loop header
LB: loop body
LE: loop exit
PB: predicated region body
PF: predicated region fallthrough
CT: control target
= control target key end

     0   :  { %v444_v0 = vmov 0   ;;  %vm261_vm0 = vcmask 392192   ;;  %s578_s1 = inlined_call_operand.vmem [shape: bf16[432,128], index: 1, kind: input, shape index: {}]   ;;  %s579_s0 = inlined_call_operand.vmem [shape: bf16[16,432], index: 0, kind: input, shape index: {}]   ;;  %s580_s2 = inlined_call_operand.vmem [shape: f32[1,128], index: 2, kind: input, shape index: {}]   ;;  %s581_s3 = inlined_call_operand.vmem [shape: f32[16,128], index: 3, kind: output, shape index: {}]  }
   0x1   :  { %306 = vmatprep.subr.bf16.mxu1 %v444_v0  ;;  %v411_v1 = vld [vmem:[%s578_s1 + $0x80] sm:$0xff]   ;;  %v414_v4 = vld [vmem:[%s578_s1 + $0x88] sm:$0xff]   ;;  %v417_v7 = vld [vmem:[%s578_s1 + $0x90] sm:$0xff]  }
   0x2   :  { %v412_v2 = vld [vmem:[%s578_s1 + $0x40] sm:$0xff]   ;;  %307 = vmatpush1.bf16.msra.mxu1 %v411_v1  ;;  %v415_v5 = vld [vmem:[%s578_s1 + $0x48] sm:$0xff]   ;;  %v418_v8 = vld [vmem:[%s578_s1 + $0x50] sm:$0xff]  }
   0x3   :  { %v413_v3 = vld [vmem:[%s578_s1] sm:$0xff]   ;;  %388 = vmatprep.subr.bf16.mxu0 %v412_v2  ;;  %308 = vmatprep.subr.bf16.mxu1 %v444_v0  ;;  %v416_v6 = vld [vmem:[%s578_s1 + $0x8] sm:$0xff]   ;;  %v419_v9 = vld [vmem:[%s578_s1 + $0x10] sm:$0xff]  }
   0x4   :  { %389 = vmatpush3.bf16.msra.mxu0 %v413_v3  ;;  %v420_v10 = vld [vmem:[%s578_s1 + $0x98] sm:$0xff]   ;;  %v424_v13 = vld [vmem:[%s578_s1 + $0x60] sm:$0xff]   ;;  %v427_v16 = vld [vmem:[%s578_s1 + $0x68] sm:$0xff]  }
   0x5   :  { %390 = vmatprep.subr.bf16.mxu0 %v415_v5  ;;  %v421_v11 = vld [vmem:[%s578_s1 + $0x58] sm:$0xff]   ;;  %v423_v14 = vld [vmem:[%s578_s1 + $0xa0] sm:$0xff]   ;;  %v426_v17 = vld [vmem:[%s578_s1 + $0xa8] sm:$0xff]  }
   0x6   :  { %309 = vmatpush1.bf16.msra.mxu1 %v414_v4  ;;  %v422_v12 = vld [vmem:[%s578_s1 + $0x18] sm:$0xff]   ;;  %v425_v15 = vld [vmem:[%s578_s1 + $0x20] sm:$0xff]   ;;  %v428_v18 = vld [vmem:[%s578_s1 + $0x28] sm:$0xff]  }
   0x7   :  { %310 = vmatprep.subr.bf16.mxu1 %v444_v0  ;;  %v430_v19 = vld [vmem:[%s578_s1 + $0x70] sm:$0xff]   ;;  %v432_v22 = vld [vmem:[%s578_s1 + $0xb8] sm:$0xff]   ;;  %v435_v27 = vld [vmem:[%s578_s1 + $0xc0] sm:$0xff]  }
   0x8   :  { %391 = vmatpush3.bf16.msra.mxu0 %v416_v6  ;;  %v429_v20 = vld [vmem:[%s578_s1 + $0xb0] sm:$0xff]   ;;  %v433_v23 = vld [vmem:[%s578_s1 + $0x78] sm:$0xff]   ;;  %v439_v29 = vld [vmem:[%s578_s1 + $0xc8] sm:$0xff]  }
   0x9   :  { %392 = vmatprep.subr.bf16.mxu0 %v418_v8  ;;  %v431_v21 = vld [vmem:[%s578_s1 + $0x30] sm:$0xff]   ;;  %v434_v25 = vld [vmem:[%s578_s1 + $0x38] sm:$0xff]   ;;  %v355_v38 = vld [vmem:[%s580_s2] ss:$0 sm:$0xff] }
   0xa   :  { %311 = vmatpush1.bf16.msra.mxu1 %v417_v7  ;;  %v438_v24 = vld [vmem:[%s579_s0 + $0x4] ss:$16 sps:$4 sm:$0xff]   ;;  %v443_v26 = vld [vmem:[%s579_s0 + $0xc] ss:$16 sps:$4 sm:$0xff]   ;;  %v436_v28 = vld [vmem:[%s579_s0] ss:$16 sps:$4 sm:$0xff]  }
   0xb   :  { %312 = vmatprep.subr.bf16.mxu1 %v444_v0  ;;  %297 = vmatprep.mubr.bf16.mxu0 %v438_v24  ;;  %v440_v30 = vld [vmem:[%s578_s1 + $0xd0] sm:$0xff]   ;;  %v441_v31 = vld [vmem:[%s579_s0 + $0x8] ss:$16 sps:$4 sm:$0xff]  }
   0xc   :  { %393 = vmatpush3.bf16.msra.mxu0 %v419_v9  ;;  %387 = vmatprep.mubr.msk.bf16.mxu1 %vm261_vm0, %v443_v26 }
   0xd   :  { %394 = vmatprep.subr.bf16.mxu0 %v421_v11 }
   0xe   :  { %313 = vmatpush1.bf16.msra.mxu1 %v420_v10 }
   0xf   :  { %314 = vmatprep.subr.bf16.mxu1 %v444_v0 }
  0x10   :  { %395 = vmatpush3.bf16.msra.mxu0 %v422_v12 }
  0x11   :  { %396 = vmatprep.subr.bf16.mxu0 %v424_v13 }
  0x12   :  { %315 = vmatpush1.bf16.msra.mxu1 %v423_v14 }
  0x13   :  { %316 = vmatprep.subr.bf16.mxu1 %v444_v0 }
  0x14   :  { %397 = vmatpush3.bf16.msra.mxu0 %v425_v15 }
  0x15   :  { %398 = vmatprep.subr.bf16.mxu0 %v427_v16 }
  0x16   :  { %317 = vmatpush1.bf16.msra.mxu1 %v426_v17 }
  0x17   :  { %318 = vmatprep.subr.bf16.mxu1 %v444_v0 }
  0x18   :  { %399 = vmatpush3.bf16.msra.mxu0 %v428_v18 }
  0x19   :  { %400 = vmatprep.subr.bf16.mxu0 %v430_v19 }
  0x1a   :  { %319 = vmatpush1.bf16.msra.mxu1 %v429_v20 }
  0x1b   :  { %320 = vmatprep.subr.bf16.mxu1 %v444_v0 }
  0x1c   :  { %401 = vmatpush3.bf16.msra.mxu0 %v431_v21 }
  0x1d   :  { %402 = vmatprep.subr.bf16.mxu0 %v433_v23 }
  0x1e   :  { %321 = vmatpush1.bf16.msra.mxu1 %v432_v22 }
  0x1f   :  { %322 = vmatprep.subr.bf16.mxu1 %v444_v0 }
  0x20   :  { %403 = vmatpush3.bf16.msra.mxu0 %v434_v25 }
  0x22   :  { %323 = vmatpush1.bf16.msra.mxu1 %v435_v27 }
  0x23   :  { %298 = vmatmul.mubr.bf16.vlgmr.msra.gmra.mrb[0].mxu0 %v436_v28  ;;  %324 = vmatprep.subr.bf16.mxu1 %v444_v0 }
  0x26   :  { %325 = vmatpush1.bf16.msra.mxu1 %v439_v29 }
  0x27   :  { %326 = vmatprep.subr.bf16.mxu1 %v444_v0 }
  0x2a   :  { %327 = vmatpush1.bf16.msra.mxu1 %v440_v30 }
  0x2d   :  { %339 = vmatmul.mubr.bf16.vlgmr.msra.gmra.mrb[0].mxu1 %v441_v31 }
  0xf6   :  { %v404_v32 = vpop.f32.mrb[0].mxu0 }
  0xf7   :  { %v405_v33 = vpop.f32.mrb[1].mxu0 }
  0xf8   :  { %v406_v34 = vadd.f32 %v405_v33, %v404_v32  ;;  %v407_v35 = vpop.f32.mrb[2].mxu0 }
  0xf9   :  { %v408_v36 = vpop.f32.mrb[3].mxu0 }
  0xfa   :  { %v409_v37 = vadd.f32 %v408_v36, %v407_v35  ;;  %v300_v39 = vadd.f32 %v406_v34, %v355_v38 }
  0xfc   :  { %v303_v43 = vadd.f32 %v409_v37, %v355_v38 }
 0x100   :  { %v340_v40 = vpop.f32.mrb[0].mxu1 }
 0x101   :  { %v341_v41 = vadd.f32 %v340_v40, %v300_v39  ;;  %v342_v42 = vpop.f32.mrb[1].mxu1 }
 0x102   :  { %v343_v44 = vpop.f32.mrb[2].mxu1 }
 0x103   :  { %v347_v45 = vmax.f32 %v341_v41, 0.0  ;;  %v344_v46 = vadd.f32 %v343_v44, %v303_v43  ;;  %v345_v47 = vpop.f32.mrb[3].mxu1 }
 0x105   :  { %349 = vst [vmem:[%s581_s3] sm:$0xff] %v347_v45  ;;  %v348_v48 = vmax.f32 %v344_v46, 0.0 }
 0x107   :  { %350 = vst [vmem:[%s581_s3 + $0x8] sm:$0xff] %v348_v48 }

// kernel: model_fwd.190
= control target key start
LH: loop header
LB: loop body
LE: loop exit
PB: predicated region body
PF: predicated region fallthrough
CT: control target
= control target key end

     0   :  { %v182_v0 = vmov 0   ;;  %vm105_vm0 = vcmask 130048   ;;  %s245_s1 = inlined_call_operand.vmem [shape: bf16[144,128], index: 1, kind: input, shape index: {}]   ;;  %s246_s0 = inlined_call_operand.vmem [shape: bf16[16,144], index: 0, kind: input, shape index: {}]   ;;  %s247_s2 = inlined_call_operand.vmem [shape: f32[1,128], index: 2, kind: input, shape index: {}]   ;;  %s248_s3 = inlined_call_operand.vmem [shape: f32[16,128], index: 3, kind: output, shape index: {}]  }
   0x1   :  { %109 = vmatprep.subr.bf16.mxu0 %v182_v0  ;;  %v170_v1 = vld [vmem:[%s245_s1] sm:$0xff]   ;;  %v171_v2 = vld [vmem:[%s245_s1 + $0x8] sm:$0xff]   ;;  %v172_v3 = vld [vmem:[%s245_s1 + $0x10] sm:$0xff]  }
   0x2   :  { %110 = vmatpush1.bf16.msra.mxu0 %v170_v1  ;;  %v173_v4 = vld [vmem:[%s245_s1 + $0x18] sm:$0xff]   ;;  %v181_v5 = vld [vmem:[%s246_s0 + $0x4] ss:$8 sps:$4 sm:$0xff]   ;;  %v176_v8 = vld [vmem:[%s245_s1 + $0x30] sm:$0xff]  }
   0x3   :  { %111 = vmatprep.subr.bf16.mxu0 %v182_v0  ;;  %168 = vmatprep.mubr.msk.bf16.mxu0 %vm105_vm0, %v181_v5  ;;  %v174_v6 = vld [vmem:[%s245_s1 + $0x20] sm:$0xff]   ;;  %v175_v7 = vld [vmem:[%s245_s1 + $0x28] sm:$0xff]   ;;  %v177_v9 = vld [vmem:[%s245_s1 + $0x38] sm:$0xff]  }
   0x4   :  { %v178_v10 = vld [vmem:[%s245_s1 + $0x40] sm:$0xff]  }
   0x5   :  { %v179_v11 = vld [vmem:[%s246_s0] ss:$8 sps:$4 sm:$0xff]  }
   0x6   :  { %112 = vmatpush1.bf16.msra.mxu0 %v171_v2  ;;  %v156_v12 = vld [vmem:[%s247_s2] ss:$0 sm:$0xff] }
   0x7   :  { %113 = vmatprep.subr.bf16.mxu0 %v182_v0 }
   0xa   :  { %114 = vmatpush1.bf16.msra.mxu0 %v172_v3 }
   0xb   :  { %115 = vmatprep.subr.bf16.mxu0 %v182_v0 }
   0xe   :  { %116 = vmatpush1.bf16.msra.mxu0 %v173_v4 }
   0xf   :  { %117 = vmatprep.subr.bf16.mxu0 %v182_v0 }
  0x12   :  { %118 = vmatpush1.bf16.msra.mxu0 %v174_v6 }
  0x13   :  { %119 = vmatprep.subr.bf16.mxu0 %v182_v0 }
  0x16   :  { %120 = vmatpush1.bf16.msra.mxu0 %v175_v7 }
  0x17   :  { %121 = vmatprep.subr.bf16.mxu0 %v182_v0 }
  0x1a   :  { %122 = vmatpush1.bf16.msra.mxu0 %v176_v8 }
  0x1b   :  { %123 = vmatprep.subr.bf16.mxu0 %v182_v0 }
  0x1e   :  { %124 = vmatpush1.bf16.msra.mxu0 %v177_v9 }
  0x1f   :  { %125 = vmatprep.subr.bf16.mxu0 %v182_v0 }
  0x22   :  { %126 = vmatpush1.bf16.msra.mxu0 %v178_v10 }
  0x25   :  { %142 = vmatmul.mubr.bf16.vlgmr.msra.gmra.mrb[0].mxu0 %v179_v11 }
  0xf8   :  { %v143_v13 = vpop.f32.mrb[0].mxu0 }
  0xf9   :  { %v144_v14 = vadd.f32 %v156_v12, %v143_v13  ;;  %v145_v15 = vpop.f32.mrb[1].mxu0 }
  0xfa   :  { %v146_v16 = vpop.f32.mrb[2].mxu0 }
  0xfb   :  { %150 = vst [vmem:[%s248_s3] sm:$0xff] %v144_v14  ;;  %v147_v17 = vadd.f32 %v156_v12, %v146_v16  ;;  %v148_v18 = vpop.f32.mrb[3].mxu0 }
  0xfd   :  { %151 = vst [vmem:[%s248_s3 + $0x8] sm:$0xff] %v147_v17 }

// kernel: split.13
= control target key start
LH: loop header
LB: loop body
LE: loop exit
PB: predicated region body
PF: predicated region fallthrough
CT: control target
= control target key end

     0   :  { %v34_v3 = vmov 0.0   ;;  %s69_s0 = inlined_call_operand.vmem [shape: f32[3,80,4,4], index: 0, kind: input, shape index: {}]   ;;  %s70_s1 = inlined_call_operand.vmem [shape: bf16[1,80,4,4], index: 1, kind: output, shape index: {}]  }
   0x1   :  { %v26_v0 = vld [vmem:[%s69_s0 + $0x10] sm:$0xf]  ;;  %v27_v1 = vld [vmem:[%s69_s0 + $0x14] sm:$0xf]  ;;  %v29_v2 = vld [vmem:[%s69_s0 + $0x18] sm:$0xf] }
   0x2   :  { %v6_v4 = vpack.c.bf16 %v34_v3, %v26_v0  ;;  %v11_v5 = vpack.c.bf16 %v34_v3, %v27_v1  ;;  %v16_v6 = vpack.c.bf16 %v34_v3, %v29_v2  ;;  %v31_v7 = vld [vmem:[%s69_s0 + $0x1c] sm:$0xf] }
   0x3   :  { %v21_v8 = vpack.c.bf16 %v34_v3, %v31_v7 }
   0x4   :  { %7 = vst [vmem:[%s70_s1] sm:$0x3] %v6_v4  ;;  %28 = vst [vmem:[%s70_s1 + $0x2] sm:$0x3] %v11_v5 }
   0x5   :  { %30 = vst [vmem:[%s70_s1 + $0x4] sm:$0x3] %v16_v6  ;;  %32 = vst [vmem:[%s70_s1 + $0x6] sm:$0x3] %v21_v8 }

// kernel: reverse
= control target key start
LH: loop header
LB: loop body
LE: loop exit
PB: predicated region body
PF: predicated region fallthrough
CT: control target
= control target key end

     0   :  { %v2_v0 = vlaneseq  ;;  %s264_s0 = inlined_call_operand.vmem [shape: f32[1,2,7,7], index: 0, kind: input, shape index: {}]   ;;  %s265_s1 = inlined_call_operand.vmem [shape: bf16[1,2,7,7], index: 1, kind: output, shape index: {}]  }
   0x2   :  { %v3_v1 = vsub.s32 6, %v2_v0 }
   0x4   :  { %4 = vset.pattern.permute.xlu0 %v3_v1 }
   0x5   :  { %240 = vset.pattern.permute.xlu1 %v3_v1  ;;  %v32_v2 = vld [vmem:[%s264_s0 + $0xc] sm:$0x3]  ;;  %v28_v3 = vld [vmem:[%s264_s0 + $0x4] sm:$0xff]   ;;  %v22_v4 = vld [vmem:[%s264_s0] sm:$0xf]   ;;  %v241_v27 = vmov 0.0  }
   0x6   :  { %33 = vst [vmem:[#allocation1 + $0xc] sm:$0x3] %v32_v2  ;;  %29 = vst [vmem:[#allocation1 + $0x4] sm:$0xff] %v28_v3  }
   0x7   :  { %23 = vst [vmem:[#allocation1] sm:$0xf] %v22_v4  }
   0xd   :  { %v72_v5 = vld [vmem:[#allocation1 + $0xc] sm:$0x3]  ;;  %v82_v6 = vld [vmem:[#allocation1 + $0x8] sm:$0x3]  ;;  %v77_v7 = vld [vmem:[#allocation1 + $0xa] sm:$0x3] }
   0xe   :  { %74 = vst [vmem:[#allocation0 + $0x30] sm:$0x3] %v72_v5  ;;  %84 = vst [vmem:[#allocation0 + $0x20] sm:$0x3] %v82_v6  ;;  %v87_v8 = vld [vmem:[#allocation1 + $0x6] sm:$0x3] }
   0xf   :  { %79 = vst [vmem:[#allocation0 + $0x28] sm:$0x3] %v77_v7  ;;  %v92_v9 = vld [vmem:[#allocation1 + $0x4] sm:$0x3]  ;;  %v96_v10 = vld [vmem:[#allocation1 + $0x2] sm:$0x3] }
  0x10   :  { %89 = vst [vmem:[#allocation0 + $0x18] sm:$0x3] %v87_v8  ;;  %94 = vst [vmem:[#allocation0 + $0x10] sm:$0x3] %v92_v9  ;;  %v99_v11 = vld [vmem:[#allocation1] sm:$0x3] }
  0x11   :  { %98 = vst [vmem:[#allocation0 + $0x8] sm:$0x3] %v96_v10  ;;  %100 = vst [vmem:[#allocation0] sm:$0x3] %v99_v11 }
  0x15   :  { %v102_v12 = vld [vmem:[#allocation0 + $0x30] sm:$0xff]  ;;  %v114_v13 = vld [vmem:[#allocation0 + $0x20] sm:$0xff] }
  0x16   :  { %103 = vperm.xlu0 %4, %v102_v12   ;;  %115 = vperm.xlu1 %240, %v114_v13   ;;  %v108_v14 = vld [vmem:[#allocation0 + $0x28] sm:$0xff] }
  0x17   :  { %v120_v15 = vld [vmem:[#allocation0 + $0x18] sm:$0xff]  ;;  %v126_v16 = vld [vmem:[#allocation0 + $0x10] sm:$0xff] }
  0x18   :  { %v132_v17 = vld [vmem:[#allocation0 + $0x8] sm:$0xff]  ;;  %v137_v18 = vld [vmem:[#allocation0] sm:$0xff] }
  0x1a   :  { %109 = vperm.xlu0 %4, %v108_v14   ;;  %121 = vperm.xlu1 %240, %v120_v15  }
  0x1e   :  { %127 = vperm.xlu0 %4, %v126_v16   ;;  %133 = vperm.xlu1 %240, %v132_v17  }
  0x22   :  { %138 = vperm.xlu0 %4, %v137_v18  }
  0x95   :  { %v104_v19 = vpop.permute.xlu0 %103  ;;  %v116_v20 = vpop.permute.xlu1 %115 }
  0x96   :  { %105 = vst [vmem:[#allocation2] sm:$0xff] %v104_v19  ;;  %117 = vst [vmem:[#allocation2 + $0x10] sm:$0xff] %v116_v20 }
  0x99   :  { %v110_v21 = vpop.permute.xlu0 %109  ;;  %v122_v22 = vpop.permute.xlu1 %121 }
  0x9a   :  { %111 = vst [vmem:[#allocation2 + $0x8] sm:$0xff] %v110_v21  ;;  %123 = vst [vmem:[#allocation2 + $0x18] sm:$0xff] %v122_v22 }
  0x9d   :  { %v145_v23 = vld [vmem:[#allocation2] sm:$0x3]  ;;  %v156_v24 = vld [vmem:[#allocation2 + $0x10] sm:$0x3]  ;;  %v128_v25 = vpop.permute.xlu0 %127  ;;  %v134_v26 = vpop.permute.xlu1 %133 }
  0x9e   :  { %v146_v28 = vpack.c.bf16 %v241_v27, %v145_v23  ;;  %v157_v29 = vpack.c.bf16 %v241_v27, %v156_v24  ;;  %129 = vst [vmem:[#allocation2 + $0x20] sm:$0xff] %v128_v25  ;;  %135 = vst [vmem:[#allocation2 + $0x28] sm:$0xff] %v134_v26 }
  0xa0   :  { %148 = vst [vmem:[#allocation3] sm:$0x1] %v146_v28  ;;  %161 = vst [vmem:[#allocation3 + $0x2] sm:$0x1] %v157_v29 }
  0xa1   :  { %v150_v30 = vld [vmem:[#allocation2 + $0x8] sm:$0x3]  ;;  %v163_v31 = vld [vmem:[#allocation2 + $0x18] sm:$0x3]  ;;  %v139_v32 = vpop.permute.xlu0 %138 }
  0xa2   :  { %v151_v33 = vpack.c.bf16 %v241_v27, %v150_v30  ;;  %v164_v34 = vpack.c.bf16 %v241_v27, %v163_v31  ;;  %140 = vst [vmem:[#allocation2 + $0x30] sm:$0xff] %v139_v32 }
  0xa4   :  { %154 = vst [vmem:[#allocation3 + $0x1] sm:$0x1] %v151_v33  ;;  %168 = vst [vmem:[#allocation3 + $0x3] sm:$0x1] %v164_v34 }
  0xa5   :  { %v170_v35 = vld [vmem:[#allocation2 + $0x20] sm:$0x3]  ;;  %v177_v36 = vld [vmem:[#allocation2 + $0x28] sm:$0x3] }
  0xa6   :  { %v171_v37 = vpack.c.bf16 %v241_v27, %v170_v35  ;;  %v178_v38 = vpack.c.bf16 %v241_v27, %v177_v36 }
  0xa8   :  { %175 = vst [vmem:[#allocation3 + $0x4] sm:$0x1] %v171_v37  ;;  %182 = vst [vmem:[#allocation3 + $0x5] sm:$0x1] %v178_v38 }
  0xa9   :  { %v184_v39 = vld [vmem:[#allocation2 + $0x30] sm:$0x3] }
  0xaa   :  { %v185_v40 = vpack.c.bf16 %v241_v27, %v184_v39 }
  0xac   :  { %189 = vst [vmem:[#allocation3 + $0x6] sm:$0x1] %v185_v40 }
  0xb3   :  { %v205_v41 = vld [vmem:[#allocation3] sm:$0x7f] }
  0xb4   :  { %206 = vst [vmem:[%s265_s1] sm:$0x7f] %v205_v41 }

// kernel: model_fwd.314
= control target key start
LH: loop header
LB: loop body
LE: loop exit
PB: predicated region body
PF: predicated region fallthrough
CT: control target
= control target key end

     0   :  { %v272_v0 = vmov 0   ;;  %vm135_vm0 = vcmask 261120   ;;  %s365_s1 = inlined_call_operand.vmem [shape: bf16[160,128], index: 1, kind: input, shape index: {}]   ;;  %s366_s0 = inlined_call_operand.vmem [shape: bf16[48,160], index: 0, kind: input, shape index: {}]   ;;  %s367_s2 = inlined_call_operand.vmem [shape: f32[1,128], index: 2, kind: input, shape index: {}]   ;;  %s368_s3 = inlined_call_operand.vmem [shape: f32[48,128], index: 3, kind: output, shape index: {}]  }
   0x1   :  { %232 = vmatprep.subr.bf16.mxu1 %v272_v0  ;;  %v253_v1 = vld [vmem:[%s365_s1] sm:$0xff]   ;;  %145 = vmatprep.subr.bf16.mxu0 %v272_v0  ;;  %v254_v2 = vld [vmem:[%s365_s1 + $0x8] sm:$0xff]   ;;  %v255_v3 = vld [vmem:[%s365_s1 + $0x10] sm:$0xff]  }
   0x2   :  { %242 = vmatpush1.bf16.msra.mxu1 %v253_v1  ;;  %146 = vmatpush1.bf16.msra.mxu0 %v253_v1  ;;  %v256_v4 = vld [vmem:[%s365_s1 + $0x18] sm:$0xff]   ;;  %v268_v6 = vld [vmem:[%s366_s0 + $0x4] ss:$8 sps:$4 sm:$0xff]   ;;  %v259_v9 = vld [vmem:[%s365_s1 + $0x30] sm:$0xff]  }
   0x3   :  { %233 = vmatprep.subr.bf16.mxu1 %v272_v0  ;;  %147 = vmatprep.subr.bf16.mxu0 %v272_v0  ;;  %v265_v5 = vld [vmem:[%s366_s0 + $0x14] ss:$8 sps:$4 sm:$0xff]   ;;  %v257_v7 = vld [vmem:[%s365_s1 + $0x20] sm:$0xff]   ;;  %v258_v8 = vld [vmem:[%s365_s1 + $0x28] sm:$0xff]  }
   0x4   :  { %230 = vmatprep.mubr.msk.bf16.mxu1 %vm135_vm0, %v265_v5  ;;  %229 = vmatprep.mubr.msk.bf16.mxu0 %vm135_vm0, %v268_v6  ;;  %v260_v10 = vld [vmem:[%s365_s1 + $0x38] sm:$0xff]   ;;  %v261_v11 = vld [vmem:[%s365_s1 + $0x40] sm:$0xff]   ;;  %v262_v12 = vld [vmem:[%s365_s1 + $0x48] sm:$0xff]  }
   0x5   :  { %v263_v13 = vld [vmem:[%s366_s0 + $0x10] ss:$8 sps:$4 sm:$0xff]   ;;  %v266_v14 = vld [vmem:[%s366_s0] ss:$8 sps:$4 sm:$0xff]   ;;  %v269_v15 = vld [vmem:[%s366_s0 + $0x24] ss:$8 sps:$4 sm:$0xff]  }
   0x6   :  { %243 = vmatpush1.bf16.msra.mxu1 %v254_v2  ;;  %148 = vmatpush1.bf16.msra.mxu0 %v254_v2  ;;  %v271_v16 = vld [vmem:[%s366_s0 + $0x20] ss:$8 sps:$4 sm:$0xff]  }
   0x7   :  { %234 = vmatprep.subr.bf16.mxu1 %v272_v0  ;;  %149 = vmatprep.subr.bf16.mxu0 %v272_v0  ;;  %v212_v17 = vld [vmem:[%s367_s2] ss:$0 sm:$0xff] }
   0xa   :  { %244 = vmatpush1.bf16.msra.mxu1 %v255_v3  ;;  %150 = vmatpush1.bf16.msra.mxu0 %v255_v3 }
   0xb   :  { %235 = vmatprep.subr.bf16.mxu1 %v272_v0  ;;  %151 = vmatprep.subr.bf16.mxu0 %v272_v0 }
   0xe   :  { %245 = vmatpush1.bf16.msra.mxu1 %v256_v4  ;;  %152 = vmatpush1.bf16.msra.mxu0 %v256_v4 }
   0xf   :  { %236 = vmatprep.subr.bf16.mxu1 %v272_v0  ;;  %153 = vmatprep.subr.bf16.mxu0 %v272_v0 }
  0x12   :  { %246 = vmatpush1.bf16.msra.mxu1 %v257_v7  ;;  %154 = vmatpush1.bf16.msra.mxu0 %v257_v7 }
  0x13   :  { %237 = vmatprep.subr.bf16.mxu1 %v272_v0  ;;  %155 = vmatprep.subr.bf16.mxu0 %v272_v0 }
  0x16   :  { %247 = vmatpush1.bf16.msra.mxu1 %v258_v8  ;;  %156 = vmatpush1.bf16.msra.mxu0 %v258_v8 }
  0x17   :  { %238 = vmatprep.subr.bf16.mxu1 %v272_v0  ;;  %157 = vmatprep.subr.bf16.mxu0 %v272_v0 }
  0x1a   :  { %248 = vmatpush1.bf16.msra.mxu1 %v259_v9  ;;  %158 = vmatpush1.bf16.msra.mxu0 %v259_v9 }
  0x1b   :  { %239 = vmatprep.subr.bf16.mxu1 %v272_v0  ;;  %159 = vmatprep.subr.bf16.mxu0 %v272_v0 }
  0x1e   :  { %249 = vmatpush1.bf16.msra.mxu1 %v260_v10  ;;  %160 = vmatpush1.bf16.msra.mxu0 %v260_v10 }
  0x1f   :  { %240 = vmatprep.subr.bf16.mxu1 %v272_v0  ;;  %161 = vmatprep.subr.bf16.mxu0 %v272_v0 }
  0x22   :  { %250 = vmatpush1.bf16.msra.mxu1 %v261_v11  ;;  %162 = vmatpush1.bf16.msra.mxu0 %v261_v11 }
  0x23   :  { %241 = vmatprep.subr.bf16.mxu1 %v272_v0  ;;  %163 = vmatprep.subr.bf16.mxu0 %v272_v0 }
  0x26   :  { %251 = vmatpush1.bf16.msra.mxu1 %v262_v12  ;;  %164 = vmatpush1.bf16.msra.mxu0 %v262_v12 }
  0x29   :  { %186 = vmatmul.mubr.bf16.vlgmr.msra.gmra.mrb[0].mxu1 %v263_v13  ;;  %178 = vmatmul.mubr.bf16.vlgmr.msra.gmra.mrb[0].mxu0 %v266_v14 }
  0x2a   :  { %231 = vmatprep.mubr.msk.bf16.mxu1 %vm135_vm0, %v269_v15 }
  0x31   :  { %194 = vmatmul.mubr.bf16.gmra.mrb[4].mxu1 %v271_v16 }
  0xfc   :  { %v187_v18 = vpop.f32.mrb[0].mxu1  ;;  %v179_v19 = vpop.f32.mrb[0].mxu0 }
  0xfd   :  { %v188_v20 = vadd.f32 %v212_v17, %v187_v18  ;;  %v189_v21 = vpop.f32.mrb[1].mxu1  ;;  %v180_v22 = vadd.f32 %v212_v17, %v179_v19  ;;  %v181_v23 = vpop.f32.mrb[1].mxu0 }
  0xfe   :  { %v190_v24 = vpop.f32.mrb[2].mxu1  ;;  %v182_v25 = vpop.f32.mrb[2].mxu0 }
  0xff   :  { %204 = vst [vmem:[%s368_s3 + $0x10] sm:$0xff] %v188_v20  ;;  %v191_v26 = vadd.f32 %v212_v17, %v190_v24  ;;  %v192_v27 = vpop.f32.mrb[3].mxu1  ;;  %202 = vst [vmem:[%s368_s3] sm:$0xff] %v180_v22  ;;  %v183_v28 = vadd.f32 %v212_v17, %v182_v25  ;;  %v184_v29 = vpop.f32.mrb[3].mxu0 }
 0x101   :  { %205 = vst [vmem:[%s368_s3 + $0x18] sm:$0xff] %v191_v26  ;;  %203 = vst [vmem:[%s368_s3 + $0x8] sm:$0xff] %v183_v28 }
 0x104   :  { %v195_v30 = vpop.f32.mrb[4].mxu1 }
 0x105   :  { %v196_v31 = vadd.f32 %v212_v17, %v195_v30  ;;  %v197_v32 = vpop.f32.mrb[5].mxu1 }
 0x106   :  { %v198_v33 = vpop.f32.mrb[6].mxu1 }
 0x107   :  { %206 = vst [vmem:[%s368_s3 + $0x20] sm:$0xff] %v196_v31  ;;  %v199_v34 = vadd.f32 %v212_v17, %v198_v33  ;;  %v200_v35 = vpop.f32.mrb[7].mxu1 }
 0x109   :  { %207 = vst [vmem:[%s368_s3 + $0x28] sm:$0xff] %v199_v34 }

// kernel: model_fwd.315
= control target key start
LH: loop header
LB: loop body
LE: loop exit
PB: predicated region body
PF: predicated region fallthrough
CT: control target
= control target key end

     0   :  { %v242_v0 = vmov 0   ;;  %vm124_vm0 = vcmask 261120   ;;  %s320_s1 = inlined_call_operand.vmem [shape: bf16[160,128], index: 1, kind: input, shape index: {}]   ;;  %s321_s0 = inlined_call_operand.vmem [shape: bf16[32,160], index: 0, kind: input, shape index: {}]   ;;  %s322_s2 = inlined_call_operand.vmem [shape: f32[1,128], index: 2, kind: input, shape index: {}]   ;;  %s323_s3 = inlined_call_operand.vmem [shape: f32[32,128], index: 3, kind: output, shape index: {}]  }
   0x1   :  { %131 = vmatprep.subr.bf16.mxu0 %v242_v0  ;;  %205 = vmatprep.subr.bf16.mxu1 %v242_v0  ;;  %v226_v1 = vld [vmem:[%s320_s1] sm:$0xff]   ;;  %v227_v2 = vld [vmem:[%s320_s1 + $0x8] sm:$0xff]   ;;  %v228_v3 = vld [vmem:[%s320_s1 + $0x10] sm:$0xff]  }
   0x2   :  { %132 = vmatpush1.bf16.msra.mxu0 %v226_v1  ;;  %215 = vmatpush1.bf16.msra.mxu1 %v226_v1  ;;  %v229_v4 = vld [vmem:[%s320_s1 + $0x18] sm:$0xff]   ;;  %v238_v5 = vld [vmem:[%s321_s0 + $0x4] ss:$8 sps:$4 sm:$0xff]   ;;  %v232_v9 = vld [vmem:[%s320_s1 + $0x30] sm:$0xff]  }
   0x3   :  { %133 = vmatprep.subr.bf16.mxu0 %v242_v0  ;;  %206 = vmatprep.subr.bf16.mxu1 %v242_v0  ;;  %v241_v6 = vld [vmem:[%s321_s0 + $0x14] ss:$8 sps:$4 sm:$0xff]   ;;  %v230_v7 = vld [vmem:[%s320_s1 + $0x20] sm:$0xff]   ;;  %v231_v8 = vld [vmem:[%s320_s1 + $0x28] sm:$0xff]  }
   0x4   :  { %203 = vmatprep.mubr.msk.bf16.mxu0 %vm124_vm0, %v238_v5  ;;  %204 = vmatprep.mubr.msk.bf16.mxu1 %vm124_vm0, %v241_v6  ;;  %v233_v10 = vld [vmem:[%s320_s1 + $0x38] sm:$0xff]   ;;  %v234_v11 = vld [vmem:[%s320_s1 + $0x40] sm:$0xff]   ;;  %v235_v12 = vld [vmem:[%s320_s1 + $0x48] sm:$0xff]  }
   0x5   :  { %v236_v13 = vld [vmem:[%s321_s0] ss:$8 sps:$4 sm:$0xff]   ;;  %v239_v14 = vld [vmem:[%s321_s0 + $0x10] ss:$8 sps:$4 sm:$0xff]  }
   0x6   :  { %134 = vmatpush1.bf16.msra.mxu0 %v227_v2  ;;  %216 = vmatpush1.bf16.msra.mxu1 %v227_v2  ;;  %v188_v15 = vld [vmem:[%s322_s2] ss:$0 sm:$0xff] }
   0x7   :  { %135 = vmatprep.subr.bf16.mxu0 %v242_v0  ;;  %207 = vmatprep.subr.bf16.mxu1 %v242_v0 }
   0xa   :  { %136 = vmatpush1.bf16.msra.mxu0 %v228_v3  ;;  %217 = vmatpush1.bf16.msra.mxu1 %v228_v3 }
   0xb   :  { %137 = vmatprep.subr.bf16.mxu0 %v242_v0  ;;  %208 = vmatprep.subr.bf16.mxu1 %v242_v0 }
   0xe   :  { %138 = vmatpush1.bf16.msra.mxu0 %v229_v4  ;;  %218 = vmatpush1.bf16.msra.mxu1 %v229_v4 }
   0xf   :  { %139 = vmatprep.subr.bf16.mxu0 %v242_v0  ;;  %209 = vmatprep.subr.bf16.mxu1 %v242_v0 }
  0x12   :  { %140 = vmatpush1.bf16.msra.mxu0 %v230_v7  ;;  %219 = vmatpush1.bf16.msra.mxu1 %v230_v7 }
  0x13   :  { %141 = vmatprep.subr.bf16.mxu0 %v242_v0  ;;  %210 = vmatprep.subr.bf16.mxu1 %v242_v0 }
  0x16   :  { %142 = vmatpush1.bf16.msra.mxu0 %v231_v8  ;;  %220 = vmatpush1.bf16.msra.mxu1 %v231_v8 }
  0x17   :  { %143 = vmatprep.subr.bf16.mxu0 %v242_v0  ;;  %211 = vmatprep.subr.bf16.mxu1 %v242_v0 }
  0x1a   :  { %144 = vmatpush1.bf16.msra.mxu0 %v232_v9  ;;  %221 = vmatpush1.bf16.msra.mxu1 %v232_v9 }
  0x1b   :  { %145 = vmatprep.subr.bf16.mxu0 %v242_v0  ;;  %212 = vmatprep.subr.bf16.mxu1 %v242_v0 }
  0x1e   :  { %146 = vmatpush1.bf16.msra.mxu0 %v233_v10  ;;  %222 = vmatpush1.bf16.msra.mxu1 %v233_v10 }
  0x1f   :  { %147 = vmatprep.subr.bf16.mxu0 %v242_v0  ;;  %213 = vmatprep.subr.bf16.mxu1 %v242_v0 }
  0x22   :  { %148 = vmatpush1.bf16.msra.mxu0 %v234_v11  ;;  %223 = vmatpush1.bf16.msra.mxu1 %v234_v11 }
  0x23   :  { %149 = vmatprep.subr.bf16.mxu0 %v242_v0  ;;  %214 = vmatprep.subr.bf16.mxu1 %v242_v0 }
  0x26   :  { %150 = vmatpush1.bf16.msra.mxu0 %v235_v12  ;;  %224 = vmatpush1.bf16.msra.mxu1 %v235_v12 }
  0x29   :  { %164 = vmatmul.mubr.bf16.vlgmr.msra.gmra.mrb[0].mxu0 %v236_v13  ;;  %172 = vmatmul.mubr.bf16.vlgmr.msra.gmra.mrb[0].mxu1 %v239_v14 }
  0xfc   :  { %v165_v16 = vpop.f32.mrb[0].mxu0  ;;  %v173_v17 = vpop.f32.mrb[0].mxu1 }
  0xfd   :  { %v166_v18 = vadd.f32 %v188_v15, %v165_v16  ;;  %v174_v19 = vadd.f32 %v188_v15, %v173_v17  ;;  %v167_v20 = vpop.f32.mrb[1].mxu0  ;;  %v175_v21 = vpop.f32.mrb[1].mxu1 }
  0xfe   :  { %v168_v22 = vpop.f32.mrb[2].mxu0  ;;  %v176_v23 = vpop.f32.mrb[2].mxu1 }
  0xff   :  { %180 = vst [vmem:[%s323_s3] sm:$0xff] %v166_v18  ;;  %182 = vst [vmem:[%s323_s3 + $0x10] sm:$0xff] %v174_v19  ;;  %v169_v24 = vadd.f32 %v188_v15, %v168_v22  ;;  %v177_v25 = vadd.f32 %v188_v15, %v176_v23  ;;  %v170_v26 = vpop.f32.mrb[3].mxu0  ;;  %v178_v27 = vpop.f32.mrb[3].mxu1 }
 0x101   :  { %181 = vst [vmem:[%s323_s3 + $0x8] sm:$0xff] %v169_v24  ;;  %183 = vst [vmem:[%s323_s3 + $0x18] sm:$0xff] %v177_v25 }

// kernel: model_fwd.316
= control target key start
LH: loop header
LB: loop body
LE: loop exit
PB: predicated region body
PF: predicated region fallthrough
CT: control target
= control target key end

     0   :  { %s854_s12 = smov 0   ;;  %s856_s13 = smov 0   ;;  %s1022_s0 = inlined_call_operand.vmem [shape: bf16[16,240], index: 0, kind: input, shape index: {}]   ;;  %s1023_s1 = inlined_call_operand.vmem [shape: bf16[240,256], index: 1, kind: input, shape index: {}]   ;;  %s1024_s2 = inlined_call_operand.vmem [shape: f32[1,256], index: 2, kind: input, shape index: {}]   ;;  %s1025_s3 = inlined_call_operand.vmem [shape: f32[16,256], index: 3, kind: output, shape index: {}]  }
   0x1   :  { %s858_s14 = smov 0   ;;  %s860_s15 = smov 0  }
   0x2   :  { %s862_s16 = smov 0  }
   0x3 LB: > { %s22_s17 = sadd.s32 1, %s827_s15  ;;  %s701_s18 = sadd.s32 4294967295, %s831_s16   ;;  %s831_s16 = sphi %s862_s16, %s13_s16   ;;  %s827_s15 = sphi %s860_s15, %s1030_s15   ;;  %s823_s14 = sphi %s858_s14, %s1029_s14   ;;  %s819_s13 = sphi %s856_s13, %s1028_s13   ;;  %s815_s12 = sphi %s854_s12, %s1027_s12  }
   0x4   : > { %p23_p0 = scmp.ge.s32.totalorder %s22_s17, 2  ;;  %p65_p1 = scmp.ne.s32.totalorder %s819_s13, %s815_s12 }
   0x5   : > { %p66_p2 = scmp.eq.s32.totalorder %s831_s16, 0  ;;  %p123_p4 = scmp.eq.s32.totalorder %s701_s18, 1 }
   0x6   : > { %s1032_s17 = smov (%p23_p0, %s22_s17), 0  ;;  %s58_s20 = sadd.s32 1, %s819_s13 }
   0x7   : > { %p67_p3 = por %p66_p2, %p65_p1  ;;  %s55_s19 = ssub.s32 %s827_s15, %s1032_s17 }
   0x8   : > { %p56_p5 = scmp.eq.s32.totalorder %s55_s19, 0  ;;  %p889_p6 = por %p123_p4, %p65_p1 }
   0x9   : > { %p705_p7 = scmp.ge.s32.totalorder %s831_s16, 2 }
   0xa   : > { %s894_s22 = scalar_select %p56_p5, %s819_s13, %s58_s20  }
   0xb   : > { %155 = sbr.rel (%p705_p7) target bundleno = 42 (0x2a), region = 20 }
  0x12   : > { %158 = sbr.rel (!%p67_p3) target bundleno = 42 (0x2a), region = 24  ;;  %s160_s23 = sand.u32 (%p67_p3), 1, %s819_s13  }
  0x13   : > { %s706_s24 = sshll.u32 (%p67_p3), %s827_s15, 2  ;;  %s732_s25 = smul.u32 (%p67_p3), 120, %s160_s23 }
  0x14   : > { %s902_s28 = scalar_lea.vmem (%p67_p3), %s1023_s1, %s706_s24 }
  0x15   : > { %v180_v0 = vld [vmem:[%s902_s28] sm:$0xf] (%p67_p3)  ;;  %v182_v1 = vld [vmem:[%s902_s28 + $0x8] sm:$0xf] (%p67_p3)  ;;  %v184_v2 = vld [vmem:[%s902_s28 + $0x10] sm:$0xf] (%p67_p3) }
  0x16   : > { %v186_v3 = vld [vmem:[%s902_s28 + $0x18] sm:$0xf] (%p67_p3)  ;;  %v188_v4 = vld [vmem:[%s902_s28 + $0x20] sm:$0xf] (%p67_p3)  ;;  %s909_s29 = scalar_lea.vmem (%p67_p3), [#allocation2], %s732_s25 }
  0x17   : > { %181 = vst [vmem:[%s909_s29] sm:$0xf] (%p67_p3), %v180_v0  ;;  %183 = vst [vmem:[%s909_s29 + $0x4] sm:$0xf] (%p67_p3), %v182_v1  ;;  %v190_v5 = vld [vmem:[%s902_s28 + $0x28] sm:$0xf] (%p67_p3) }
  0x18   : > { %185 = vst [vmem:[%s909_s29 + $0x8] sm:$0xf] (%p67_p3), %v184_v2  ;;  %187 = vst [vmem:[%s909_s29 + $0xc] sm:$0xf] (%p67_p3), %v186_v3  ;;  %v192_v6 = vld [vmem:[%s902_s28 + $0x30] sm:$0xf] (%p67_p3) }
  0x19   : > { %189 = vst [vmem:[%s909_s29 + $0x10] sm:$0xf] %v188_v4  ;;  %v194_v7 = vld [vmem:[%s902_s28 + $0x38] sm:$0xf]  ;;  %191 = vst [vmem:[%s909_s29 + $0x14] sm:$0xf] %v190_v5 }
  0x1a   : > { %193 = vst [vmem:[%s909_s29 + $0x18] sm:$0xf] %v192_v6  ;;  %195 = vst [vmem:[%s909_s29 + $0x1c] sm:$0xf] %v194_v7  ;;  %v196_v8 = vld [vmem:[%s902_s28 + $0x40] sm:$0xf] }
  0x1b   : > { %v198_v9 = vld [vmem:[%s902_s28 + $0x48] sm:$0xf]  ;;  %v200_v10 = vld [vmem:[%s902_s28 + $0x50] sm:$0xf]  ;;  %197 = vst [vmem:[%s909_s29 + $0x20] sm:$0xf] %v196_v8 }
  0x1c   : > { %199 = vst [vmem:[%s909_s29 + $0x24] sm:$0xf] %v198_v9  ;;  %201 = vst [vmem:[%s909_s29 + $0x28] sm:$0xf] %v200_v10  ;;  %v202_v11 = vld [vmem:[%s902_s28 + $0x58] sm:$0xf] }
  0x1d   : > { %v204_v12 = vld [vmem:[%s902_s28 + $0x60] sm:$0xf]  ;;  %v206_v13 = vld [vmem:[%s902_s28 + $0x68] sm:$0xf]  ;;  %203 = vst [vmem:[%s909_s29 + $0x2c] sm:$0xf] %v202_v11 }
  0x1e   : > { %205 = vst [vmem:[%s909_s29 + $0x30] sm:$0xf] %v204_v12  ;;  %207 = vst [vmem:[%s909_s29 + $0x34] sm:$0xf] %v206_v13  ;;  %v208_v14 = vld [vmem:[%s902_s28 + $0x70] sm:$0xf] }
  0x1f   : > { %v210_v15 = vld [vmem:[%s902_s28 + $0x78] sm:$0xf]  ;;  %v212_v16 = vld [vmem:[%s902_s28 + $0x80] sm:$0xf]  ;;  %209 = vst [vmem:[%s909_s29 + $0x38] sm:$0xf] %v208_v14 }
  0x20   : > { %211 = vst [vmem:[%s909_s29 + $0x3c] sm:$0xf] %v210_v15  ;;  %213 = vst [vmem:[%s909_s29 + $0x40] sm:$0xf] %v212_v16  ;;  %v214_v17 = vld [vmem:[%s902_s28 + $0x88] sm:$0xf] }
  0x21   : > { %v216_v18 = vld [vmem:[%s902_s28 + $0x90] sm:$0xf]  ;;  %v218_v19 = vld [vmem:[%s902_s28 + $0x98] sm:$0xf]  ;;  %215 = vst [vmem:[%s909_s29 + $0x44] sm:$0xf] %v214_v17 }
  0x22   : > { %217 = vst [vmem:[%s909_s29 + $0x48] sm:$0xf] %v216_v18  ;;  %219 = vst [vmem:[%s909_s29 + $0x4c] sm:$0xf] %v218_v19  ;;  %v220_v20 = vld [vmem:[%s902_s28 + $0xa0] sm:$0xf] }
  0x23   : > { %v222_v21 = vld [vmem:[%s902_s28 + $0xa8] sm:$0xf]  ;;  %v224_v22 = vld [vmem:[%s902_s28 + $0xb0] sm:$0xf]  ;;  %221 = vst [vmem:[%s909_s29 + $0x50] sm:$0xf] %v220_v20 }
  0x24   : > { %223 = vst [vmem:[%s909_s29 + $0x54] sm:$0xf] %v222_v21  ;;  %225 = vst [vmem:[%s909_s29 + $0x58] sm:$0xf] %v224_v22  ;;  %v226_v23 = vld [vmem:[%s902_s28 + $0xb8] sm:$0xf] }
  0x25   : > { %v228_v24 = vld [vmem:[%s902_s28 + $0xc0] sm:$0xf]  ;;  %v230_v25 = vld [vmem:[%s902_s28 + $0xc8] sm:$0xf]  ;;  %227 = vst [vmem:[%s909_s29 + $0x5c] sm:$0xf] %v226_v23 }
  0x26   : > { %229 = vst [vmem:[%s909_s29 + $0x60] sm:$0xf] %v228_v24  ;;  %231 = vst [vmem:[%s909_s29 + $0x64] sm:$0xf] %v230_v25  ;;  %v232_v26 = vld [vmem:[%s902_s28 + $0xd0] sm:$0xf] }
  0x27   : > { %v234_v27 = vld [vmem:[%s902_s28 + $0xd8] sm:$0xf]  ;;  %v236_v28 = vld [vmem:[%s902_s28 + $0xe0] sm:$0xf]  ;;  %233 = vst [vmem:[%s909_s29 + $0x68] sm:$0xf] %v232_v26 }
  0x28   : > { %235 = vst [vmem:[%s909_s29 + $0x6c] sm:$0xf] %v234_v27  ;;  %237 = vst [vmem:[%s909_s29 + $0x70] sm:$0xf] %v236_v28  ;;  %v238_v29 = vld [vmem:[%s902_s28 + $0xe8] sm:$0xf] }
  0x29   : > { %239 = vst [vmem:[%s909_s29 + $0x74] sm:$0xf] %v238_v29 }
  0x2a PF: > { %p707_p8 = scmp.ge.s32.totalorder %s831_s16, 1  ;;  %p327_p9 = scmp.lt.s32.totalorder %s831_s16, 3 }
  0x2c   : > { %p328_p10 = pnand %p707_p8, %p327_p9 }
  0x2d   : > { %s334_s30 = sand.u32 (!%p328_p10), 1, %s815_s12   ;;  %v833_v30 = vmov (!%p328_p10), 0   ;;  %v792_v31 = vld [vmem:[%s1022_s0 + $0x4] ss:$8 sps:$4 sm:$0xff] (!%p328_p10)   ;;  %vm515_vm0 = vcmask (!%p328_p10), 916480   ;;  %p372_p11 = scmp.lt.s32.totalorder (!%p328_p10), %s823_s14, 1 }
  0x2e   : > { %331 = sbr.rel (%p328_p10) target bundleno = 335 (0x14f), region = 69  ;;  %519 = vmatprep.subr.bf16.mxu0 (!%p328_p10), %v833_v30  ;;  %727 = vmatprep.mubr.msk.bf16.mxu0 (!%p328_p10), %vm515_vm0, %v792_v31  ;;  %v790_v47 = vld [vmem:[%s1022_s0] ss:$8 sps:$4 sm:$0xff] (!%p328_p10)   ;;  %s708_s20 = sshll.u32 (!%p328_p10), %s334_s30, 4 }
  0x2f   : > { %s733_s4 = smul.u32 (!%p328_p10), 120, %s334_s30  ;;  %s364_s23 = scalar_lea.vmem (!%p328_p10), [#allocation3], %s708_s20 }
  0x31   : > { %s974_s7 = scalar_lea.vmem (!%p328_p10), [#allocation2], %s733_s4 }
  0x32   : > { %v775_v32 = vld [vmem:[%s974_s7] sm:$0xff] (!%p328_p10)   ;;  %v776_v33 = vld [vmem:[%s974_s7 + $0x8] sm:$0xff] (!%p328_p10)   ;;  %v777_v34 = vld [vmem:[%s974_s7 + $0x10] sm:$0xff] (!%p328_p10)  }
  0x33   : > { %520 = vmatpush1.bf16.msra.mxu0 (!%p328_p10), %v775_v32  ;;  %v778_v35 = vld [vmem:[%s974_s7 + $0x18] sm:$0xff] (!%p328_p10)   ;;  %v779_v36 = vld [vmem:[%s974_s7 + $0x20] sm:$0xff] (!%p328_p10)   ;;  %v780_v37 = vld [vmem:[%s974_s7 + $0x28] sm:$0xff] (!%p328_p10)  }
  0x34   : > { %521 = vmatprep.subr.bf16.mxu0 (!%p328_p10), %v833_v30  ;;  %v781_v38 = vld [vmem:[%s974_s7 + $0x30] sm:$0xff] (!%p328_p10)   ;;  %v782_v39 = vld [vmem:[%s974_s7 + $0x38] sm:$0xff] (!%p328_p10)   ;;  %v783_v40 = vld [vmem:[%s974_s7 + $0x40] sm:$0xff] (!%p328_p10)  }
  0x35   : > { %v784_v41 = vld [vmem:[%s974_s7 + $0x48] sm:$0xff]   ;;  %v785_v42 = vld [vmem:[%s974_s7 + $0x50] sm:$0xff]   ;;  %v786_v43 = vld [vmem:[%s974_s7 + $0x58] sm:$0xff]   ;;  %s373_s10 = scalar_select %p372_p11, %s823_s14, 1 }
  0x36   : > { %v787_v44 = vld [vmem:[%s974_s7 + $0x60] sm:$0xff]   ;;  %v788_v45 = vld [vmem:[%s974_s7 + $0x68] sm:$0xff]   ;;  %v789_v46 = vld [vmem:[%s974_s7 + $0x70] sm:$0xff]   ;;  %s729_s24 = sshll.u32 (%p889_p6), %s823_s14, 3 }
  0x37   : > { %522 = vmatpush1.bf16.msra.mxu0 %v776_v33  ;;  %s374_s19 = scalar_lea.vmem %s1024_s2, %s373_s10  ;;  %s573_s26 = scalar_lea.vmem (%p889_p6), %s1025_s3, %s729_s24 }
  0x38   : > { %523 = vmatprep.subr.bf16.mxu0 %v833_v30  ;;  %v709_v48 = vld [vmem:[%s374_s19] ss:$0 sm:$0xff] }
  0x3b   : > { %524 = vmatpush1.bf16.msra.mxu0 %v777_v34 }
  0x3c   : > { %525 = vmatprep.subr.bf16.mxu0 %v833_v30 }
  0x3f   : > { %526 = vmatpush1.bf16.msra.mxu0 %v778_v35 }
  0x40   : > { %527 = vmatprep.subr.bf16.mxu0 %v833_v30 }
  0x43   : > { %528 = vmatpush1.bf16.msra.mxu0 %v779_v36 }
  0x44   : > { %529 = vmatprep.subr.bf16.mxu0 %v833_v30 }
  0x47   : > { %530 = vmatpush1.bf16.msra.mxu0 %v780_v37 }
  0x48   : > { %531 = vmatprep.subr.bf16.mxu0 %v833_v30 }
  0x4b   : > { %532 = vmatpush1.bf16.msra.mxu0 %v781_v38 }
  0x4c   : > { %533 = vmatprep.subr.bf16.mxu0 %v833_v30 }
  0x4f   : > { %534 = vmatpush1.bf16.msra.mxu0 %v782_v39 }
  0x50   : > { %535 = vmatprep.subr.bf16.mxu0 %v833_v30 }
  0x53   : > { %536 = vmatpush1.bf16.msra.mxu0 %v783_v40 }
  0x54   : > { %537 = vmatprep.subr.bf16.mxu0 %v833_v30 }
  0x57   : > { %538 = vmatpush1.bf16.msra.mxu0 %v784_v41 }
  0x58   : > { %539 = vmatprep.subr.bf16.mxu0 %v833_v30 }
  0x5b   : > { %540 = vmatpush1.bf16.msra.mxu0 %v785_v42 }
  0x5c   : > { %541 = vmatprep.subr.bf16.mxu0 %v833_v30 }
  0x5f   : > { %542 = vmatpush1.bf16.msra.mxu0 %v786_v43 }
  0x60   : > { %543 = vmatprep.subr.bf16.mxu0 %v833_v30 }
  0x63   : > { %544 = vmatpush1.bf16.msra.mxu0 %v787_v44 }
  0x64   : > { %545 = vmatprep.subr.bf16.mxu0 %v833_v30 }
  0x67   : > { %546 = vmatpush1.bf16.msra.mxu0 %v788_v45 }
  0x68   : > { %547 = vmatprep.subr.bf16.mxu0 %v833_v30 }
  0x6b   : > { %548 = vmatpush1.bf16.msra.mxu0 %v789_v46 }
  0x6e   : > { %552 = vmatmul.mubr.bf16.vlgmr.msra.gmra.mrb[0].mxu0 %v790_v47 }
 0x140   : > { %568 = sbr.rel (!%p889_p6) target bundleno = 335 (0x14f), region = 77 }
 0x141   : > { %v553_v49 = vpop.f32.mrb[0].mxu0 }
 0x142   : > { %v554_v50 = vadd.f32 %v709_v48, %v553_v49  ;;  %v555_v51 = vpop.f32.mrb[1].mxu0 }
 0x143   : > { %v556_v52 = vpop.f32.mrb[2].mxu0 }
 0x144   : > { %560 = vst [vmem:[%s364_s23] sm:$0xff] %v554_v50  ;;  %v557_v53 = vadd.f32 %v709_v48, %v556_v52  ;;  %v558_v54 = vpop.f32.mrb[3].mxu0 }
 0x146   : > { %561 = vst [vmem:[%s364_s23 + $0x8] sm:$0xff] %v557_v53 }
 0x14b   : > { %v603_v55 = vld [vmem:[%s364_s23] sm:$0xff] }
 0x14c   : > { %604 = vst [vmem:[%s573_s26] sm:$0xff] %v603_v55 }
 0x14d   : > { %v605_v56 = vld [vmem:[%s364_s23 + $0x8] sm:$0xff] }
 0x14e   : > { %606 = vst [vmem:[%s573_s26 + $0x10] sm:$0xff] %v605_v56 }
 0x14f PF: > { %s13_s16 = sadd.s32 1, %s831_s16   ;;  %s1027_s12 = smov %s819_s13 }
 0x150   : > { %p10_p12 = scmp.ge.s32.totalorder %s13_s16, 4   ;;  %s1028_s13 = smov %s894_s22 }
 0x151   : > { %s1029_s14 = smov %s827_s15  ;;  %s1030_s15 = smov %s1032_s17 }
 0x152   :  { %12 = sbr.rel (!%p10_p12) target bundleno = 3 (0x3), region = 152 }

// kernel: model_fwd.317
= control target key start
LH: loop header
LB: loop body
LE: loop exit
PB: predicated region body
PF: predicated region fallthrough
CT: control target
= control target key end

     0   :  { %s854_s12 = smov 0   ;;  %s856_s13 = smov 0   ;;  %s1022_s0 = inlined_call_operand.vmem [shape: bf16[16,240], index: 0, kind: input, shape index: {}]   ;;  %s1023_s1 = inlined_call_operand.vmem [shape: bf16[240,384], index: 1, kind: input, shape index: {}]   ;;  %s1024_s2 = inlined_call_operand.vmem [shape: f32[1,384], index: 2, kind: input, shape index: {}]   ;;  %s1025_s3 = inlined_call_operand.vmem [shape: f32[16,384], index: 3, kind: output, shape index: {}]  }
   0x1   :  { %s858_s14 = smov 0   ;;  %s860_s15 = smov 0  }
   0x2   :  { %s862_s16 = smov 0  }
   0x3 LB: > { %s22_s17 = sadd.s32 1, %s827_s15  ;;  %s701_s18 = sadd.s32 4294967295, %s831_s16   ;;  %s831_s16 = sphi %s862_s16, %s13_s16   ;;  %s827_s15 = sphi %s860_s15, %s1030_s15   ;;  %s823_s14 = sphi %s858_s14, %s1029_s14   ;;  %s819_s13 = sphi %s856_s13, %s1028_s13   ;;  %s815_s12 = sphi %s854_s12, %s1027_s12  }
   0x4   : > { %p23_p0 = scmp.ge.s32.totalorder %s22_s17, 3  ;;  %p65_p1 = scmp.ne.s32.totalorder %s819_s13, %s815_s12 }
   0x5   : > { %p66_p2 = scmp.eq.s32.totalorder %s831_s16, 0  ;;  %p123_p4 = scmp.eq.s32.totalorder %s701_s18, 2 }
   0x6   : > { %s1032_s17 = smov (%p23_p0, %s22_s17), 0  ;;  %s58_s20 = sadd.s32 1, %s819_s13 }
   0x7   : > { %p67_p3 = por %p66_p2, %p65_p1  ;;  %s55_s19 = ssub.s32 %s827_s15, %s1032_s17 }
   0x8   : > { %p56_p5 = scmp.eq.s32.totalorder %s55_s19, 0  ;;  %p889_p6 = por %p123_p4, %p65_p1 }
   0x9   : > { %p705_p7 = scmp.ge.s32.totalorder %s831_s16, 3 }
   0xa   : > { %s894_s22 = scalar_select %p56_p5, %s819_s13, %s58_s20  }
   0xb   : > { %155 = sbr.rel (%p705_p7) target bundleno = 42 (0x2a), region = 20 }
  0x12   : > { %158 = sbr.rel (!%p67_p3) target bundleno = 42 (0x2a), region = 24  ;;  %s160_s23 = sand.u32 (%p67_p3), 1, %s819_s13  }
  0x13   : > { %s706_s24 = sshll.u32 (%p67_p3), %s827_s15, 2  ;;  %s732_s25 = smul.u32 (%p67_p3), 120, %s160_s23 }
  0x14   : > { %s902_s28 = scalar_lea.vmem (%p67_p3), %s1023_s1, %s706_s24 }
  0x15   : > { %v180_v0 = vld [vmem:[%s902_s28] sm:$0xf] (%p67_p3)  ;;  %v182_v1 = vld [vmem:[%s902_s28 + $0xc] sm:$0xf] (%p67_p3)  ;;  %v184_v2 = vld [vmem:[%s902_s28 + $0x18] sm:$0xf] (%p67_p3) }
  0x16   : > { %v186_v3 = vld [vmem:[%s902_s28 + $0x24] sm:$0xf] (%p67_p3)  ;;  %v188_v4 = vld [vmem:[%s902_s28 + $0x30] sm:$0xf] (%p67_p3)  ;;  %s909_s29 = scalar_lea.vmem (%p67_p3), [#allocation2], %s732_s25 }
  0x17   : > { %181 = vst [vmem:[%s909_s29] sm:$0xf] (%p67_p3), %v180_v0  ;;  %183 = vst [vmem:[%s909_s29 + $0x4] sm:$0xf] (%p67_p3), %v182_v1  ;;  %v190_v5 = vld [vmem:[%s902_s28 + $0x3c] sm:$0xf] (%p67_p3) }
  0x18   : > { %185 = vst [vmem:[%s909_s29 + $0x8] sm:$0xf] (%p67_p3), %v184_v2  ;;  %187 = vst [vmem:[%s909_s29 + $0xc] sm:$0xf] (%p67_p3), %v186_v3  ;;  %v192_v6 = vld [vmem:[%s902_s28 + $0x48] sm:$0xf] (%p67_p3) }
  0x19   : > { %189 = vst [vmem:[%s909_s29 + $0x10] sm:$0xf] %v188_v4  ;;  %v194_v7 = vld [vmem:[%s902_s28 + $0x54] sm:$0xf]  ;;  %191 = vst [vmem:[%s909_s29 + $0x14] sm:$0xf] %v190_v5 }
  0x1a   : > { %193 = vst [vmem:[%s909_s29 + $0x18] sm:$0xf] %v192_v6  ;;  %195 = vst [vmem:[%s909_s29 + $0x1c] sm:$0xf] %v194_v7  ;;  %v196_v8 = vld [vmem:[%s902_s28 + $0x60] sm:$0xf] }
  0x1b   : > { %v198_v9 = vld [vmem:[%s902_s28 + $0x6c] sm:$0xf]  ;;  %v200_v10 = vld [vmem:[%s902_s28 + $0x78] sm:$0xf]  ;;  %197 = vst [vmem:[%s909_s29 + $0x20] sm:$0xf] %v196_v8 }
  0x1c   : > { %199 = vst [vmem:[%s909_s29 + $0x24] sm:$0xf] %v198_v9  ;;  %201 = vst [vmem:[%s909_s29 + $0x28] sm:$0xf] %v200_v10  ;;  %v202_v11 = vld [vmem:[%s902_s28 + $0x84] sm:$0xf] }
  0x1d   : > { %v204_v12 = vld [vmem:[%s902_s28 + $0x90] sm:$0xf]  ;;  %v206_v13 = vld [vmem:[%s902_s28 + $0x9c] sm:$0xf]  ;;  %203 = vst [vmem:[%s909_s29 + $0x2c] sm:$0xf] %v202_v11 }
  0x1e   : > { %205 = vst [vmem:[%s909_s29 + $0x30] sm:$0xf] %v204_v12  ;;  %207 = vst [vmem:[%s909_s29 + $0x34] sm:$0xf] %v206_v13  ;;  %v208_v14 = vld [vmem:[%s902_s28 + $0xa8] sm:$0xf] }
  0x1f   : > { %v210_v15 = vld [vmem:[%s902_s28 + $0xb4] sm:$0xf]  ;;  %v212_v16 = vld [vmem:[%s902_s28 + $0xc0] sm:$0xf]  ;;  %209 = vst [vmem:[%s909_s29 + $0x38] sm:$0xf] %v208_v14 }
  0x20   : > { %211 = vst [vmem:[%s909_s29 + $0x3c] sm:$0xf] %v210_v15  ;;  %213 = vst [vmem:[%s909_s29 + $0x40] sm:$0xf] %v212_v16  ;;  %v214_v17 = vld [vmem:[%s902_s28 + $0xcc] sm:$0xf] }
  0x21   : > { %v216_v18 = vld [vmem:[%s902_s28 + $0xd8] sm:$0xf]  ;;  %v218_v19 = vld [vmem:[%s902_s28 + $0xe4] sm:$0xf]  ;;  %215 = vst [vmem:[%s909_s29 + $0x44] sm:$0xf] %v214_v17 }
  0x22   : > { %217 = vst [vmem:[%s909_s29 + $0x48] sm:$0xf] %v216_v18  ;;  %219 = vst [vmem:[%s909_s29 + $0x4c] sm:$0xf] %v218_v19  ;;  %v220_v20 = vld [vmem:[%s902_s28 + $0xf0] sm:$0xf] }
  0x23   : > { %v222_v21 = vld [vmem:[%s902_s28 + $0xfc] sm:$0xf]  ;;  %v224_v22 = vld [vmem:[%s902_s28 + $0x108] sm:$0xf]  ;;  %221 = vst [vmem:[%s909_s29 + $0x50] sm:$0xf] %v220_v20 }
  0x24   : > { %223 = vst [vmem:[%s909_s29 + $0x54] sm:$0xf] %v222_v21  ;;  %225 = vst [vmem:[%s909_s29 + $0x58] sm:$0xf] %v224_v22  ;;  %v226_v23 = vld [vmem:[%s902_s28 + $0x114] sm:$0xf] }
  0x25   : > { %v228_v24 = vld [vmem:[%s902_s28 + $0x120] sm:$0xf]  ;;  %v230_v25 = vld [vmem:[%s902_s28 + $0x12c] sm:$0xf]  ;;  %227 = vst [vmem:[%s909_s29 + $0x5c] sm:$0xf] %v226_v23 }
  0x26   : > { %229 = vst [vmem:[%s909_s29 + $0x60] sm:$0xf] %v228_v24  ;;  %231 = vst [vmem:[%s909_s29 + $0x64] sm:$0xf] %v230_v25  ;;  %v232_v26 = vld [vmem:[%s902_s28 + $0x138] sm:$0xf] }
  0x27   : > { %v234_v27 = vld [vmem:[%s902_s28 + $0x144] sm:$0xf]  ;;  %v236_v28 = vld [vmem:[%s902_s28 + $0x150] sm:$0xf]  ;;  %233 = vst [vmem:[%s909_s29 + $0x68] sm:$0xf] %v232_v26 }
  0x28   : > { %235 = vst [vmem:[%s909_s29 + $0x6c] sm:$0xf] %v234_v27  ;;  %237 = vst [vmem:[%s909_s29 + $0x70] sm:$0xf] %v236_v28  ;;  %v238_v29 = vld [vmem:[%s902_s28 + $0x15c] sm:$0xf] }
  0x29   : > { %239 = vst [vmem:[%s909_s29 + $0x74] sm:$0xf] %v238_v29 }
  0x2a PF: > { %p707_p8 = scmp.ge.s32.totalorder %s831_s16, 1  ;;  %p327_p9 = scmp.lt.s32.totalorder %s831_s16, 4 }
  0x2c   : > { %p328_p10 = pnand %p707_p8, %p327_p9 }
  0x2d   : > { %s334_s30 = sand.u32 (!%p328_p10), 1, %s815_s12   ;;  %v833_v30 = vmov (!%p328_p10), 0   ;;  %v792_v31 = vld [vmem:[%s1022_s0 + $0x4] ss:$8 sps:$4 sm:$0xff] (!%p328_p10)   ;;  %vm515_vm0 = vcmask (!%p328_p10), 916480   ;;  %p372_p11 = scmp.lt.s32.totalorder (!%p328_p10), %s823_s14, 2 }
  0x2e   : > { %331 = sbr.rel (%p328_p10) target bundleno = 335 (0x14f), region = 69  ;;  %519 = vmatprep.subr.bf16.mxu0 (!%p328_p10), %v833_v30  ;;  %727 = vmatprep.mubr.msk.bf16.mxu0 (!%p328_p10), %vm515_vm0, %v792_v31  ;;  %v790_v47 = vld [vmem:[%s1022_s0] ss:$8 sps:$4 sm:$0xff] (!%p328_p10)   ;;  %s708_s20 = sshll.u32 (!%p328_p10), %s334_s30, 4 }
  0x2f   : > { %s733_s4 = smul.u32 (!%p328_p10), 120, %s334_s30  ;;  %s364_s23 = scalar_lea.vmem (!%p328_p10), [#allocation3], %s708_s20 }
  0x31   : > { %s974_s7 = scalar_lea.vmem (!%p328_p10), [#allocation2], %s733_s4 }
  0x32   : > { %v775_v32 = vld [vmem:[%s974_s7] sm:$0xff] (!%p328_p10)   ;;  %v776_v33 = vld [vmem:[%s974_s7 + $0x8] sm:$0xff] (!%p328_p10)   ;;  %v777_v34 = vld [vmem:[%s974_s7 + $0x10] sm:$0xff] (!%p328_p10)  }
  0x33   : > { %520 = vmatpush1.bf16.msra.mxu0 (!%p328_p10), %v775_v32  ;;  %v778_v35 = vld [vmem:[%s974_s7 + $0x18] sm:$0xff] (!%p328_p10)   ;;  %v779_v36 = vld [vmem:[%s974_s7 + $0x20] sm:$0xff] (!%p328_p10)   ;;  %v780_v37 = vld [vmem:[%s974_s7 + $0x28] sm:$0xff] (!%p328_p10)  }
  0x34   : > { %521 = vmatprep.subr.bf16.mxu0 (!%p328_p10), %v833_v30  ;;  %v781_v38 = vld [vmem:[%s974_s7 + $0x30] sm:$0xff] (!%p328_p10)   ;;  %v782_v39 = vld [vmem:[%s974_s7 + $0x38] sm:$0xff] (!%p328_p10)   ;;  %v783_v40 = vld [vmem:[%s974_s7 + $0x40] sm:$0xff] (!%p328_p10)  }
  0x35   : > { %v784_v41 = vld [vmem:[%s974_s7 + $0x48] sm:$0xff]   ;;  %v785_v42 = vld [vmem:[%s974_s7 + $0x50] sm:$0xff]   ;;  %v786_v43 = vld [vmem:[%s974_s7 + $0x58] sm:$0xff]   ;;  %s373_s10 = scalar_select %p372_p11, %s823_s14, 2 }
  0x36   : > { %v787_v44 = vld [vmem:[%s974_s7 + $0x60] sm:$0xff]   ;;  %v788_v45 = vld [vmem:[%s974_s7 + $0x68] sm:$0xff]   ;;  %v789_v46 = vld [vmem:[%s974_s7 + $0x70] sm:$0xff]   ;;  %s729_s24 = sshll.u32 (%p889_p6), %s823_s14, 3 }
  0x37   : > { %522 = vmatpush1.bf16.msra.mxu0 %v776_v33  ;;  %s374_s19 = scalar_lea.vmem %s1024_s2, %s373_s10  ;;  %s573_s26 = scalar_lea.vmem (%p889_p6), %s1025_s3, %s729_s24 }
  0x38   : > { %523 = vmatprep.subr.bf16.mxu0 %v833_v30  ;;  %v709_v48 = vld [vmem:[%s374_s19] ss:$0 sm:$0xff] }
  0x3b   : > { %524 = vmatpush1.bf16.msra.mxu0 %v777_v34 }
  0x3c   : > { %525 = vmatprep.subr.bf16.mxu0 %v833_v30 }
  0x3f   : > { %526 = vmatpush1.bf16.msra.mxu0 %v778_v35 }
  0x40   : > { %527 = vmatprep.subr.bf16.mxu0 %v833_v30 }
  0x43   : > { %528 = vmatpush1.bf16.msra.mxu0 %v779_v36 }
  0x44   : > { %529 = vmatprep.subr.bf16.mxu0 %v833_v30 }
  0x47   : > { %530 = vmatpush1.bf16.msra.mxu0 %v780_v37 }
  0x48   : > { %531 = vmatprep.subr.bf16.mxu0 %v833_v30 }
  0x4b   : > { %532 = vmatpush1.bf16.msra.mxu0 %v781_v38 }
  0x4c   : > { %533 = vmatprep.subr.bf16.mxu0 %v833_v30 }
  0x4f   : > { %534 = vmatpush1.bf16.msra.mxu0 %v782_v39 }
  0x50   : > { %535 = vmatprep.subr.bf16.mxu0 %v833_v30 }
  0x53   : > { %536 = vmatpush1.bf16.msra.mxu0 %v783_v40 }
  0x54   : > { %537 = vmatprep.subr.bf16.mxu0 %v833_v30 }
  0x57   : > { %538 = vmatpush1.bf16.msra.mxu0 %v784_v41 }
  0x58   : > { %539 = vmatprep.subr.bf16.mxu0 %v833_v30 }
  0x5b   : > { %540 = vmatpush1.bf16.msra.mxu0 %v785_v42 }
  0x5c   : > { %541 = vmatprep.subr.bf16.mxu0 %v833_v30 }
  0x5f   : > { %542 = vmatpush1.bf16.msra.mxu0 %v786_v43 }
  0x60   : > { %543 = vmatprep.subr.bf16.mxu0 %v833_v30 }
  0x63   : > { %544 = vmatpush1.bf16.msra.mxu0 %v787_v44 }
  0x64   : > { %545 = vmatprep.subr.bf16.mxu0 %v833_v30 }
  0x67   : > { %546 = vmatpush1.bf16.msra.mxu0 %v788_v45 }
  0x68   : > { %547 = vmatprep.subr.bf16.mxu0 %v833_v30 }
  0x6b   : > { %548 = vmatpush1.bf16.msra.mxu0 %v789_v46 }
  0x6e   : > { %552 = vmatmul.mubr.bf16.vlgmr.msra.gmra.mrb[0].mxu0 %v790_v47 }
 0x140   : > { %568 = sbr.rel (!%p889_p6) target bundleno = 335 (0x14f), region = 77 }
 0x141   : > { %v553_v49 = vpop.f32.mrb[0].mxu0 }
 0x142   : > { %v554_v50 = vadd.f32 %v709_v48, %v553_v49  ;;  %v555_v51 = vpop.f32.mrb[1].mxu0 }
 0x143   : > { %v556_v52 = vpop.f32.mrb[2].mxu0 }
 0x144   : > { %560 = vst [vmem:[%s364_s23] sm:$0xff] %v554_v50  ;;  %v557_v53 = vadd.f32 %v709_v48, %v556_v52  ;;  %v558_v54 = vpop.f32.mrb[3].mxu0 }
 0x146   : > { %561 = vst [vmem:[%s364_s23 + $0x8] sm:$0xff] %v557_v53 }
 0x14b   : > { %v603_v55 = vld [vmem:[%s364_s23] sm:$0xff] }
 0x14c   : > { %604 = vst [vmem:[%s573_s26] sm:$0xff] %v603_v55 }
 0x14d   : > { %v605_v56 = vld [vmem:[%s364_s23 + $0x8] sm:$0xff] }
 0x14e   : > { %606 = vst [vmem:[%s573_s26 + $0x18] sm:$0xff] %v605_v56 }
 0x14f PF: > { %s13_s16 = sadd.s32 1, %s831_s16   ;;  %s1027_s12 = smov %s819_s13 }
 0x150   : > { %p10_p12 = scmp.ge.s32.totalorder %s13_s16, 5   ;;  %s1028_s13 = smov %s894_s22 }
 0x151   : > { %s1029_s14 = smov %s827_s15  ;;  %s1030_s15 = smov %s1032_s17 }
 0x152   :  { %12 = sbr.rel (!%p10_p12) target bundleno = 3 (0x3), region = 152 }

// kernel: model_fwd.318
= control target key start
LH: loop header
LB: loop body
LE: loop exit
PB: predicated region body
PF: predicated region fallthrough
CT: control target
= control target key end

     0   :  { %vm242_vm0 = vcmask 261120   ;;  %s689_s1 = inlined_call_operand.vmem [shape: bf16[288,128], index: 1, kind: input, shape index: {}]   ;;  %s690_s0 = inlined_call_operand.vmem [shape: bf16[64,288], index: 0, kind: input, shape index: {}]   ;;  %s691_s2 = inlined_call_operand.vmem [shape: f32[1,128], index: 2, kind: input, shape index: {}]   ;;  %s692_s3 = inlined_call_operand.vmem [shape: f32[64,128], index: 3, kind: output, shape index: {}]  }
   0x1   :  { %v514_v0 = vld [vmem:[%s689_s1 + $0x40] sm:$0xff]   ;;  %v516_v2 = vld [vmem:[%s689_s1 + $0x48] sm:$0xff]   ;;  %v518_v4 = vld [vmem:[%s689_s1 + $0x50] sm:$0xff]  }
   0x2   :  { %v515_v1 = vld [vmem:[%s689_s1] sm:$0xff]   ;;  %440 = vmatprep.subr.bf16.mxu0 %v514_v0  ;;  %498 = vmatprep.subr.bf16.mxu1 %v514_v0  ;;  %v517_v3 = vld [vmem:[%s689_s1 + $0x8] sm:$0xff]   ;;  %v519_v5 = vld [vmem:[%s689_s1 + $0x10] sm:$0xff]  }
   0x3   :  { %441 = vmatpush3.bf16.msra.mxu0 %v515_v1  ;;  %506 = vmatpush3.bf16.msra.mxu1 %v515_v1  ;;  %v520_v6 = vld [vmem:[%s689_s1 + $0x58] sm:$0xff]   ;;  %v522_v8 = vld [vmem:[%s689_s1 + $0x60] sm:$0xff]   ;;  %v524_v10 = vld [vmem:[%s689_s1 + $0x68] sm:$0xff]  }
   0x4   :  { %442 = vmatprep.subr.bf16.mxu0 %v516_v2  ;;  %499 = vmatprep.subr.bf16.mxu1 %v516_v2  ;;  %v521_v7 = vld [vmem:[%s689_s1 + $0x18] sm:$0xff]   ;;  %v523_v9 = vld [vmem:[%s689_s1 + $0x20] sm:$0xff]   ;;  %v525_v13 = vld [vmem:[%s689_s1 + $0x28] sm:$0xff]  }
   0x5   :  { %v532_v11 = vld [vmem:[%s690_s0 + $0x4] ss:$12 sps:$4 sm:$0xff]   ;;  %v535_v12 = vld [vmem:[%s690_s0 + $0x4c] ss:$12 sps:$4 sm:$0xff]   ;;  %v533_v20 = vld [vmem:[%s690_s0 + $0x48] ss:$12 sps:$4 sm:$0xff]  }
   0x6   :  { %v526_v14 = vld [vmem:[%s689_s1 + $0x70] sm:$0xff]   ;;  %287 = vmatprep.mubr.bf16.mxu0 %v532_v11  ;;  %311 = vmatprep.mubr.bf16.mxu1 %v535_v12  ;;  %v528_v16 = vld [vmem:[%s689_s1 + $0x78] sm:$0xff]   ;;  %v536_v18 = vld [vmem:[%s689_s1 + $0x80] sm:$0xff]  }
   0x7   :  { %443 = vmatpush3.bf16.msra.mxu0 %v517_v3  ;;  %507 = vmatpush3.bf16.msra.mxu1 %v517_v3  ;;  %v527_v15 = vld [vmem:[%s689_s1 + $0x30] sm:$0xff]   ;;  %v529_v17 = vld [vmem:[%s689_s1 + $0x38] sm:$0xff]   ;;  %v530_v19 = vld [vmem:[%s690_s0] ss:$12 sps:$4 sm:$0xff]  }
   0x8   :  { %444 = vmatprep.subr.bf16.mxu0 %v518_v4  ;;  %500 = vmatprep.subr.bf16.mxu1 %v518_v4  ;;  %v538_v21 = vld [vmem:[%s690_s0 + $0x1c] ss:$12 sps:$4 sm:$0xff]   ;;  %v541_v24 = vld [vmem:[%s690_s0 + $0x18] ss:$12 sps:$4 sm:$0xff]   ;;  %v542_v25 = vld [vmem:[%s690_s0 + $0x20] ss:$12 sps:$4 sm:$0xff]  }
   0x9   :  { %v537_v22 = vld [vmem:[%s689_s1 + $0x88] sm:$0xff]   ;;  %v543_v26 = vld [vmem:[%s690_s0 + $0x34] ss:$12 sps:$4 sm:$0xff]   ;;  %v545_v27 = vld [vmem:[%s690_s0 + $0x38] ss:$12 sps:$4 sm:$0xff]  }
   0xa   :  { %v540_v23 = vld [vmem:[%s690_s0 + $0x8] ss:$12 sps:$4 sm:$0xff]   ;;  %v546_v28 = vld [vmem:[%s690_s0 + $0x30] ss:$12 sps:$4 sm:$0xff]   ;;  %v405_v42 = vld [vmem:[%s691_s2] ss:$0 sm:$0xff] }
   0xb   :  { %445 = vmatpush3.bf16.msra.mxu0 %v519_v5  ;;  %508 = vmatpush3.bf16.msra.mxu1 %v519_v5  ;;  %v547_v29 = vld [vmem:[%s690_s0 + $0x50] ss:$12 sps:$4 sm:$0xff]  }
   0xc   :  { %446 = vmatprep.subr.bf16.mxu0 %v520_v6  ;;  %501 = vmatprep.subr.bf16.mxu1 %v520_v6 }
   0xf   :  { %447 = vmatpush3.bf16.msra.mxu0 %v521_v7  ;;  %509 = vmatpush3.bf16.msra.mxu1 %v521_v7 }
  0x10   :  { %448 = vmatprep.subr.bf16.mxu0 %v522_v8  ;;  %502 = vmatprep.subr.bf16.mxu1 %v522_v8 }
  0x13   :  { %449 = vmatpush3.bf16.msra.mxu0 %v523_v9  ;;  %510 = vmatpush3.bf16.msra.mxu1 %v523_v9 }
  0x14   :  { %450 = vmatprep.subr.bf16.mxu0 %v524_v10  ;;  %503 = vmatprep.subr.bf16.mxu1 %v524_v10 }
  0x17   :  { %451 = vmatpush3.bf16.msra.mxu0 %v525_v13  ;;  %511 = vmatpush3.bf16.msra.mxu1 %v525_v13 }
  0x18   :  { %452 = vmatprep.subr.bf16.mxu0 %v526_v14  ;;  %504 = vmatprep.subr.bf16.mxu1 %v526_v14 }
  0x1b   :  { %453 = vmatpush3.bf16.msra.mxu0 %v527_v15  ;;  %512 = vmatpush3.bf16.msra.mxu1 %v527_v15 }
  0x1c   :  { %454 = vmatprep.subr.bf16.mxu0 %v528_v16  ;;  %505 = vmatprep.subr.bf16.mxu1 %v528_v16 }
  0x1f   :  { %455 = vmatpush3.bf16.msra.mxu0 %v529_v17  ;;  %513 = vmatpush3.bf16.msra.mxu1 %v529_v17 }
  0x20   :  { %486 = vmatprep.subr.bf16.mxu1 %v536_v18 }
  0x22   :  { %288 = vmatmul.mubr.bf16.vlgmr.msra.gmra.mrb[0].mxu0 %v530_v19  ;;  %312 = vmatmul.mubr.bf16.vlgmr.msra.gmra.mrb[0].mxu1 %v533_v20 }
  0x23   :  { %487 = vmatpush3.bf16.msra.mxu1 %v536_v18  ;;  %295 = vmatprep.mubr.bf16.mxu0 %v538_v21 }
  0x24   :  { %488 = vmatprep.subr.bf16.mxu1 %v537_v22  ;;  %490 = vmatprep.mubr.msk.bf16.mxu1 %vm242_vm0, %v540_v23 }
  0x27   :  { %489 = vmatpush3.bf16.msra.mxu1 %v537_v22 }
  0x2a   :  { %296 = vmatmul.mubr.bf16.gmra.mrb[4].mxu0 %v541_v24  ;;  %491 = vmatmul.mubr.msk.bf16.vlgmr.msra.gmra.mrb[4].mxu1 %vm242_vm0, %v542_v25 }
  0x2b   :  { %303 = vmatprep.mubr.bf16.mxu0 %v543_v26  ;;  %494 = vmatprep.mubr.msk.bf16.mxu1 %vm242_vm0, %v545_v27 }
  0x32   :  { %304 = vmatmul.mubr.bf16.gmra.mrb[8].mxu0 %v546_v28  ;;  %495 = vmatmul.mubr.msk.bf16.gmra.mrb[8].mxu1 %vm242_vm0, %v547_v29 }
  0xf5   :  { %v456_v30 = vpop.f32.mrb[0].mxu0  ;;  %v474_v31 = vpop.f32.mrb[0].mxu1 }
  0xf6   :  { %v457_v32 = vpop.f32.mrb[1].mxu0  ;;  %v475_v33 = vpop.f32.mrb[1].mxu1 }
  0xf7   :  { %v458_v34 = vadd.f32 %v457_v32, %v456_v30  ;;  %v459_v35 = vpop.f32.mrb[2].mxu0  ;;  %v476_v36 = vadd.f32 %v475_v33, %v474_v31  ;;  %v477_v37 = vpop.f32.mrb[2].mxu1 }
  0xf8   :  { %v460_v38 = vpop.f32.mrb[3].mxu0  ;;  %v478_v39 = vpop.f32.mrb[3].mxu1 }
  0xf9   :  { %v461_v40 = vadd.f32 %v460_v38, %v459_v35  ;;  %v479_v41 = vadd.f32 %v478_v39, %v477_v37  ;;  %v290_v45 = vadd.f32 %v458_v34, %v405_v42  ;;  %v314_v62 = vadd.f32 %v476_v36, %v405_v42 }
  0xfb   :  { %v293_v52 = vadd.f32 %v461_v40, %v405_v42  ;;  %v317_v6 = vadd.f32 %v479_v41, %v405_v42 }
  0xfd   :  { %v462_v43 = vpop.f32.mrb[4].mxu0  ;;  %v492_v44 = vpop.f32.mrb[4].mxu1 }
  0xfe   :  { %v463_v46 = vpop.f32.mrb[5].mxu0  ;;  %v354_v47 = vpop.f32.mrb[5].mxu1 }
  0xff   :  { %v464_v48 = vadd.f32 %v463_v46, %v462_v43  ;;  %v355_v49 = vadd.f32 %v354_v47, %v290_v45  ;;  %v465_v50 = vpop.f32.mrb[6].mxu0  ;;  %v493_v51 = vpop.f32.mrb[6].mxu1 }
 0x100   :  { %v466_v53 = vpop.f32.mrb[7].mxu0  ;;  %v357_v54 = vpop.f32.mrb[7].mxu1 }
 0x101   :  { %v298_v55 = vadd.f32 %v464_v48, %v405_v42  ;;  %v385_v56 = vmax.f32 %v355_v49, 0.0  ;;  %v467_v57 = vadd.f32 %v466_v53, %v465_v50  ;;  %v358_v58 = vadd.f32 %v357_v54, %v293_v52 }
 0x103   :  { %v363_v59 = vadd.f32 %v492_v44, %v298_v55  ;;  %393 = vst [vmem:[%s692_s3] sm:$0xff] %v385_v56  ;;  %v301_v60 = vadd.f32 %v467_v57, %v405_v42  ;;  %v386_v61 = vmax.f32 %v358_v58, 0.0 }
 0x105   :  { %v387_v63 = vmax.f32 %v363_v59, 0.0  ;;  %v366_v0 = vadd.f32 %v493_v51, %v301_v60  ;;  %394 = vst [vmem:[%s692_s3 + $0x8] sm:$0xff] %v386_v61  ;;  %v468_v1 = vpop.f32.mrb[8].mxu0  ;;  %v496_v2 = vpop.f32.mrb[8].mxu1 }
 0x106   :  { %v379_v3 = vadd.f32 %v496_v2, %v314_v62  ;;  %v469_v4 = vpop.f32.mrb[9].mxu0  ;;  %v370_v5 = vpop.f32.mrb[9].mxu1 }
 0x107   :  { %395 = vst [vmem:[%s692_s3 + $0x10] sm:$0xff] %v387_v63  ;;  %v388_v7 = vmax.f32 %v366_v0, 0.0  ;;  %v470_v8 = vadd.f32 %v469_v4, %v468_v1  ;;  %v471_v9 = vpop.f32.mrb[10].mxu0  ;;  %v497_v10 = vpop.f32.mrb[10].mxu1 }
 0x108   :  { %v391_v11 = vmax.f32 %v379_v3, 0.0  ;;  %v382_v12 = vadd.f32 %v497_v10, %v317_v6  ;;  %v472_v13 = vpop.f32.mrb[11].mxu0  ;;  %v373_v14 = vpop.f32.mrb[11].mxu1 }
 0x109   :  { %396 = vst [vmem:[%s692_s3 + $0x18] sm:$0xff] %v388_v7  ;;  %v306_v15 = vadd.f32 %v470_v8, %v405_v42  ;;  %v473_v16 = vadd.f32 %v472_v13, %v471_v9 }
 0x10a   :  { %399 = vst [vmem:[%s692_s3 + $0x30] sm:$0xff] %v391_v11  ;;  %v392_v17 = vmax.f32 %v382_v12, 0.0 }
 0x10b   :  { %v371_v18 = vadd.f32 %v370_v5, %v306_v15  ;;  %v309_v19 = vadd.f32 %v473_v16, %v405_v42 }
 0x10c   :  { %400 = vst [vmem:[%s692_s3 + $0x38] sm:$0xff] %v392_v17 }
 0x10d   :  { %v389_v20 = vmax.f32 %v371_v18, 0.0  ;;  %v374_v21 = vadd.f32 %v373_v14, %v309_v19 }
 0x10f   :  { %397 = vst [vmem:[%s692_s3 + $0x20] sm:$0xff] %v389_v20  ;;  %v390_v22 = vmax.f32 %v374_v21, 0.0 }
 0x111   :  { %398 = vst [vmem:[%s692_s3 + $0x28] sm:$0xff] %v390_v22 }

// kernel: model_fwd.319
= control target key start
LH: loop header
LB: loop body
LE: loop exit
PB: predicated region body
PF: predicated region fallthrough
CT: control target
= control target key end

     0   :  { %v633_v0 = vmov 0   ;;  %vm330_vm0 = vcmask 392192   ;;  %s825_s1 = inlined_call_operand.vmem [shape: bf16[432,128], index: 1, kind: input, shape index: {}]   ;;  %s826_s0 = inlined_call_operand.vmem [shape: bf16[64,432], index: 0, kind: input, shape index: {}]   ;;  %s827_s2 = inlined_call_operand.vmem [shape: f32[1,128], index: 2, kind: input, shape index: {}]   ;;  %s828_s3 = inlined_call_operand.vmem [shape: f32[64,128], index: 3, kind: output, shape index: {}]  }
   0x1   :  { %408 = vmatprep.subr.bf16.mxu1 %v633_v0  ;;  %v582_v1 = vld [vmem:[%s825_s1 + $0x80] sm:$0xff]   ;;  %v585_v4 = vld [vmem:[%s825_s1 + $0x88] sm:$0xff]   ;;  %v588_v7 = vld [vmem:[%s825_s1 + $0x90] sm:$0xff]  }
   0x2   :  { %v583_v2 = vld [vmem:[%s825_s1 + $0x40] sm:$0xff]   ;;  %409 = vmatpush1.bf16.msra.mxu1 %v582_v1  ;;  %v586_v5 = vld [vmem:[%s825_s1 + $0x48] sm:$0xff]   ;;  %v589_v8 = vld [vmem:[%s825_s1 + $0x50] sm:$0xff]  }
   0x3   :  { %v584_v3 = vld [vmem:[%s825_s1] sm:$0xff]   ;;  %541 = vmatprep.subr.bf16.mxu0 %v583_v2  ;;  %410 = vmatprep.subr.bf16.mxu1 %v633_v0  ;;  %v587_v6 = vld [vmem:[%s825_s1 + $0x8] sm:$0xff]   ;;  %v590_v9 = vld [vmem:[%s825_s1 + $0x10] sm:$0xff]  }
   0x4   :  { %542 = vmatpush3.bf16.msra.mxu0 %v584_v3  ;;  %v591_v10 = vld [vmem:[%s825_s1 + $0x98] sm:$0xff]   ;;  %v595_v13 = vld [vmem:[%s825_s1 + $0x60] sm:$0xff]   ;;  %v598_v16 = vld [vmem:[%s825_s1 + $0x68] sm:$0xff]  }
   0x5   :  { %543 = vmatprep.subr.bf16.mxu0 %v586_v5  ;;  %v592_v11 = vld [vmem:[%s825_s1 + $0x58] sm:$0xff]   ;;  %v594_v14 = vld [vmem:[%s825_s1 + $0xa0] sm:$0xff]   ;;  %v597_v17 = vld [vmem:[%s825_s1 + $0xa8] sm:$0xff]  }
   0x6   :  { %411 = vmatpush1.bf16.msra.mxu1 %v585_v4  ;;  %v593_v12 = vld [vmem:[%s825_s1 + $0x18] sm:$0xff]   ;;  %v596_v15 = vld [vmem:[%s825_s1 + $0x20] sm:$0xff]   ;;  %v599_v18 = vld [vmem:[%s825_s1 + $0x28] sm:$0xff]  }
   0x7   :  { %412 = vmatprep.subr.bf16.mxu1 %v633_v0  ;;  %v601_v19 = vld [vmem:[%s825_s1 + $0x70] sm:$0xff]   ;;  %v603_v22 = vld [vmem:[%s825_s1 + $0xb8] sm:$0xff]   ;;  %v606_v26 = vld [vmem:[%s825_s1 + $0xc0] sm:$0xff]  }
   0x8   :  { %544 = vmatpush3.bf16.msra.mxu0 %v587_v6  ;;  %v600_v20 = vld [vmem:[%s825_s1 + $0xb0] sm:$0xff]   ;;  %v604_v23 = vld [vmem:[%s825_s1 + $0x78] sm:$0xff]   ;;  %v610_v30 = vld [vmem:[%s825_s1 + $0xc8] sm:$0xff]  }
   0x9   :  { %545 = vmatprep.subr.bf16.mxu0 %v589_v8  ;;  %v602_v21 = vld [vmem:[%s825_s1 + $0x30] sm:$0xff]   ;;  %v605_v25 = vld [vmem:[%s825_s1 + $0x38] sm:$0xff]   ;;  %v493_v50 = vld [vmem:[%s827_s2] ss:$0 sm:$0xff] }
   0xa   :  { %413 = vmatpush1.bf16.msra.mxu1 %v588_v7  ;;  %v609_v24 = vld [vmem:[%s826_s0 + $0x4] ss:$16 sps:$4 sm:$0xff]   ;;  %v616_v27 = vld [vmem:[%s826_s0 + $0xc] ss:$16 sps:$4 sm:$0xff]   ;;  %v607_v28 = vld [vmem:[%s826_s0] ss:$16 sps:$4 sm:$0xff]  }
   0xb   :  { %414 = vmatprep.subr.bf16.mxu1 %v633_v0  ;;  %375 = vmatprep.mubr.bf16.mxu0 %v609_v24  ;;  %v612_v29 = vld [vmem:[%s826_s0 + $0x24] ss:$16 sps:$4 sm:$0xff]   ;;  %v617_v32 = vld [vmem:[%s826_s0 + $0x20] ss:$16 sps:$4 sm:$0xff]   ;;  %v614_v34 = vld [vmem:[%s826_s0 + $0x8] ss:$16 sps:$4 sm:$0xff]  }
   0xc   :  { %546 = vmatpush3.bf16.msra.mxu0 %v590_v9  ;;  %537 = vmatprep.mubr.msk.bf16.mxu1 %vm330_vm0, %v616_v27  ;;  %v611_v31 = vld [vmem:[%s825_s1 + $0xd0] sm:$0xff]   ;;  %v620_v35 = vld [vmem:[%s826_s0 + $0x2c] ss:$16 sps:$4 sm:$0xff]   ;;  %v623_v38 = vld [vmem:[%s826_s0 + $0x28] ss:$16 sps:$4 sm:$0xff]  }
   0xd   :  { %547 = vmatprep.subr.bf16.mxu0 %v592_v11  ;;  %v618_v33 = vld [vmem:[%s826_s0 + $0x44] ss:$16 sps:$4 sm:$0xff]   ;;  %v622_v36 = vld [vmem:[%s826_s0 + $0x40] ss:$16 sps:$4 sm:$0xff]   ;;  %v626_v39 = vld [vmem:[%s826_s0 + $0x4c] ss:$16 sps:$4 sm:$0xff]  }
   0xe   :  { %415 = vmatpush1.bf16.msra.mxu1 %v591_v10  ;;  %v624_v37 = vld [vmem:[%s826_s0 + $0x64] ss:$16 sps:$4 sm:$0xff]   ;;  %v628_v40 = vld [vmem:[%s826_s0 + $0x60] ss:$16 sps:$4 sm:$0xff]   ;;  %v629_v41 = vld [vmem:[%s826_s0 + $0x48] ss:$16 sps:$4 sm:$0xff]  }
   0xf   :  { %416 = vmatprep.subr.bf16.mxu1 %v633_v0  ;;  %v630_v42 = vld [vmem:[%s826_s0 + $0x6c] ss:$16 sps:$4 sm:$0xff]   ;;  %v632_v43 = vld [vmem:[%s826_s0 + $0x68] ss:$16 sps:$4 sm:$0xff]  }
  0x10   :  { %548 = vmatpush3.bf16.msra.mxu0 %v593_v12 }
  0x11   :  { %549 = vmatprep.subr.bf16.mxu0 %v595_v13 }
  0x12   :  { %417 = vmatpush1.bf16.msra.mxu1 %v594_v14 }
  0x13   :  { %418 = vmatprep.subr.bf16.mxu1 %v633_v0 }
  0x14   :  { %550 = vmatpush3.bf16.msra.mxu0 %v596_v15 }
  0x15   :  { %551 = vmatprep.subr.bf16.mxu0 %v598_v16 }
  0x16   :  { %419 = vmatpush1.bf16.msra.mxu1 %v597_v17 }
  0x17   :  { %420 = vmatprep.subr.bf16.mxu1 %v633_v0 }
  0x18   :  { %552 = vmatpush3.bf16.msra.mxu0 %v599_v18 }
  0x19   :  { %553 = vmatprep.subr.bf16.mxu0 %v601_v19 }
  0x1a   :  { %421 = vmatpush1.bf16.msra.mxu1 %v600_v20 }
  0x1b   :  { %422 = vmatprep.subr.bf16.mxu1 %v633_v0 }
  0x1c   :  { %554 = vmatpush3.bf16.msra.mxu0 %v602_v21 }
  0x1d   :  { %555 = vmatprep.subr.bf16.mxu0 %v604_v23 }
  0x1e   :  { %423 = vmatpush1.bf16.msra.mxu1 %v603_v22 }
  0x1f   :  { %424 = vmatprep.subr.bf16.mxu1 %v633_v0 }
  0x20   :  { %556 = vmatpush3.bf16.msra.mxu0 %v605_v25 }
  0x22   :  { %425 = vmatpush1.bf16.msra.mxu1 %v606_v26 }
  0x23   :  { %376 = vmatmul.mubr.bf16.vlgmr.msra.gmra.mrb[0].mxu0 %v607_v28  ;;  %426 = vmatprep.subr.bf16.mxu1 %v633_v0 }
  0x24   :  { %383 = vmatprep.mubr.bf16.mxu0 %v612_v29 }
  0x26   :  { %427 = vmatpush1.bf16.msra.mxu1 %v610_v30 }
  0x27   :  { %428 = vmatprep.subr.bf16.mxu1 %v633_v0 }
  0x2a   :  { %429 = vmatpush1.bf16.msra.mxu1 %v611_v31 }
  0x2b   :  { %384 = vmatmul.mubr.bf16.gmra.mrb[4].mxu0 %v617_v32 }
  0x2c   :  { %391 = vmatprep.mubr.bf16.mxu0 %v618_v33 }
  0x2d   :  { %441 = vmatmul.mubr.bf16.vlgmr.msra.gmra.mrb[0].mxu1 %v614_v34 }
  0x2e   :  { %538 = vmatprep.mubr.msk.bf16.mxu1 %vm330_vm0, %v620_v35 }
  0x33   :  { %392 = vmatmul.mubr.bf16.gmra.mrb[8].mxu0 %v622_v36 }
  0x34   :  { %399 = vmatprep.mubr.bf16.mxu0 %v624_v37 }
  0x35   :  { %449 = vmatmul.mubr.bf16.gmra.mrb[4].mxu1 %v623_v38 }
  0x36   :  { %539 = vmatprep.mubr.msk.bf16.mxu1 %vm330_vm0, %v626_v39 }
  0x3b   :  { %400 = vmatmul.mubr.bf16.gmra.mrb[12].mxu0 %v628_v40 }
  0x3d   :  { %457 = vmatmul.mubr.bf16.gmra.mrb[8].mxu1 %v629_v41 }
  0x3e   :  { %540 = vmatprep.mubr.msk.bf16.mxu1 %vm330_vm0, %v630_v42 }
  0x45   :  { %465 = vmatmul.mubr.bf16.gmra.mrb[12].mxu1 %v632_v43 }
  0xf6   :  { %v557_v44 = vpop.f32.mrb[0].mxu0 }
  0xf7   :  { %v558_v45 = vpop.f32.mrb[1].mxu0 }
  0xf8   :  { %v559_v46 = vadd.f32 %v558_v45, %v557_v44  ;;  %v560_v47 = vpop.f32.mrb[2].mxu0 }
  0xf9   :  { %v561_v48 = vpop.f32.mrb[3].mxu0 }
  0xfa   :  { %v562_v49 = vadd.f32 %v561_v48, %v560_v47  ;;  %v378_v51 = vadd.f32 %v559_v46, %v493_v50 }
  0xfc   :  { %v381_v59 = vadd.f32 %v562_v49, %v493_v50 }
  0xfe   :  { %v563_v52 = vpop.f32.mrb[4].mxu0 }
  0xff   :  { %v564_v53 = vpop.f32.mrb[5].mxu0 }
 0x100   :  { %v442_v54 = vpop.f32.mrb[0].mxu1  ;;  %v565_v55 = vadd.f32 %v564_v53, %v563_v52  ;;  %v566_v56 = vpop.f32.mrb[6].mxu0 }
 0x101   :  { %v443_v57 = vadd.f32 %v442_v54, %v378_v51  ;;  %v444_v58 = vpop.f32.mrb[1].mxu1  ;;  %v567_v60 = vpop.f32.mrb[7].mxu0 }
 0x102   :  { %v445_v61 = vpop.f32.mrb[2].mxu1  ;;  %v568_v62 = vadd.f32 %v567_v60, %v566_v56  ;;  %v386_v3 = vadd.f32 %v565_v55, %v493_v50 }
 0x103   :  { %v473_v63 = vmax.f32 %v443_v57, 0.0  ;;  %v446_v0 = vadd.f32 %v445_v61, %v381_v59  ;;  %v447_v1 = vpop.f32.mrb[3].mxu1 }
 0x104   :  { %v389_v11 = vadd.f32 %v568_v62, %v493_v50 }
 0x105   :  { %481 = vst [vmem:[%s828_s3] sm:$0xff] %v473_v63  ;;  %v474_v2 = vmax.f32 %v446_v0, 0.0 }
 0x106   :  { %v569_v4 = vpop.f32.mrb[8].mxu0 }
 0x107   :  { %482 = vst [vmem:[%s828_s3 + $0x8] sm:$0xff] %v474_v2  ;;  %v570_v5 = vpop.f32.mrb[9].mxu0 }
 0x108   :  { %v450_v6 = vpop.f32.mrb[4].mxu1  ;;  %v571_v7 = vadd.f32 %v570_v5, %v569_v4  ;;  %v572_v8 = vpop.f32.mrb[10].mxu0 }
 0x109   :  { %v451_v9 = vadd.f32 %v450_v6, %v386_v3  ;;  %v452_v10 = vpop.f32.mrb[5].mxu1  ;;  %v573_v12 = vpop.f32.mrb[11].mxu0 }
 0x10a   :  { %v453_v13 = vpop.f32.mrb[6].mxu1  ;;  %v574_v14 = vadd.f32 %v573_v12, %v572_v8  ;;  %v394_v19 = vadd.f32 %v571_v7, %v493_v50 }
 0x10b   :  { %v475_v15 = vmax.f32 %v451_v9, 0.0  ;;  %v454_v16 = vadd.f32 %v453_v13, %v389_v11  ;;  %v455_v17 = vpop.f32.mrb[7].mxu1 }
 0x10c   :  { %v397_v27 = vadd.f32 %v574_v14, %v493_v50 }
 0x10d   :  { %483 = vst [vmem:[%s828_s3 + $0x10] sm:$0xff] %v475_v15  ;;  %v476_v18 = vmax.f32 %v454_v16, 0.0 }
 0x10e   :  { %v575_v20 = vpop.f32.mrb[12].mxu0 }
 0x10f   :  { %484 = vst [vmem:[%s828_s3 + $0x18] sm:$0xff] %v476_v18  ;;  %v576_v21 = vpop.f32.mrb[13].mxu0 }
 0x110   :  { %v458_v22 = vpop.f32.mrb[8].mxu1  ;;  %v577_v23 = vadd.f32 %v576_v21, %v575_v20  ;;  %v578_v24 = vpop.f32.mrb[14].mxu0 }
 0x111   :  { %v459_v25 = vadd.f32 %v458_v22, %v394_v19  ;;  %v460_v26 = vpop.f32.mrb[9].mxu1  ;;  %v579_v28 = vpop.f32.mrb[15].mxu0 }
 0x112   :  { %v461_v29 = vpop.f32.mrb[10].mxu1  ;;  %v580_v30 = vadd.f32 %v579_v28, %v578_v24  ;;  %v402_v35 = vadd.f32 %v577_v23, %v493_v50 }
 0x113   :  { %v477_v31 = vmax.f32 %v459_v25, 0.0  ;;  %v462_v32 = vadd.f32 %v461_v29, %v397_v27  ;;  %v463_v33 = vpop.f32.mrb[11].mxu1 }
 0x114   :  { %v405_v39 = vadd.f32 %v580_v30, %v493_v50 }
 0x115   :  { %485 = vst [vmem:[%s828_s3 + $0x20] sm:$0xff] %v477_v31  ;;  %v478_v34 = vmax.f32 %v462_v32, 0.0 }
 0x117   :  { %486 = vst [vmem:[%s828_s3 + $0x28] sm:$0xff] %v478_v34 }
 0x118   :  { %v466_v36 = vpop.f32.mrb[12].mxu1 }
 0x119   :  { %v467_v37 = vadd.f32 %v466_v36, %v402_v35  ;;  %v468_v38 = vpop.f32.mrb[13].mxu1 }
 0x11a   :  { %v469_v40 = vpop.f32.mrb[14].mxu1 }
 0x11b   :  { %v479_v41 = vmax.f32 %v467_v37, 0.0  ;;  %v470_v42 = vadd.f32 %v469_v40, %v405_v39  ;;  %v471_v43 = vpop.f32.mrb[15].mxu1 }
 0x11d   :  { %487 = vst [vmem:[%s828_s3 + $0x30] sm:$0xff] %v479_v41  ;;  %v480_v44 = vmax.f32 %v470_v42, 0.0 }
 0x11f   :  { %488 = vst [vmem:[%s828_s3 + $0x38] sm:$0xff] %v480_v44 }

// kernel: model_fwd.320
= control target key start
LH: loop header
LB: loop body
LE: loop exit
PB: predicated region body
PF: predicated region fallthrough
CT: control target
= control target key end

     0   :  { %vm434_vm0 = vcmask 523264   ;;  %s1117_s1 = inlined_call_operand.vmem [shape: bf16[576,128], index: 1, kind: input, shape index: {}]   ;;  %s1118_s0 = inlined_call_operand.vmem [shape: bf16[64,576], index: 0, kind: input, shape index: {}]   ;;  %s1119_s2 = inlined_call_operand.vmem [shape: f32[1,128], index: 2, kind: input, shape index: {}]   ;;  %s1120_s3 = inlined_call_operand.vmem [shape: f32[64,128], index: 3, kind: output, shape index: {}]  }
   0x1   :  { %v835_v0 = vld [vmem:[%s1117_s1 + $0x40] sm:$0xff]   ;;  %v839_v4 = vld [vmem:[%s1117_s1 + $0x48] sm:$0xff]   ;;  %v843_v8 = vld [vmem:[%s1117_s1 + $0x50] sm:$0xff]  }
   0x2   :  { %v836_v1 = vld [vmem:[%s1117_s1 + $0xc0] sm:$0xff]   ;;  %723 = vmatprep.subr.bf16.mxu0 %v835_v0  ;;  %v840_v5 = vld [vmem:[%s1117_s1 + $0xc8] sm:$0xff]   ;;  %v844_v9 = vld [vmem:[%s1117_s1 + $0xd0] sm:$0xff]  }
   0x3   :  { %v837_v2 = vld [vmem:[%s1117_s1] sm:$0xff]   ;;  %763 = vmatprep.subr.bf16.mxu1 %v836_v1  ;;  %v841_v6 = vld [vmem:[%s1117_s1 + $0x8] sm:$0xff]   ;;  %v845_v10 = vld [vmem:[%s1117_s1 + $0x10] sm:$0xff]  }
   0x4   :  { %v838_v3 = vld [vmem:[%s1117_s1 + $0x80] sm:$0xff]   ;;  %724 = vmatpush3.bf16.msra.mxu0 %v837_v2  ;;  %v842_v7 = vld [vmem:[%s1117_s1 + $0x88] sm:$0xff]   ;;  %v846_v11 = vld [vmem:[%s1117_s1 + $0x90] sm:$0xff]  }
   0x5   :  { %764 = vmatpush3.bf16.msra.mxu1 %v838_v3  ;;  %725 = vmatprep.subr.bf16.mxu0 %v839_v4  ;;  %v847_v12 = vld [vmem:[%s1117_s1 + $0x58] sm:$0xff]   ;;  %v851_v16 = vld [vmem:[%s1117_s1 + $0x60] sm:$0xff]   ;;  %v855_v20 = vld [vmem:[%s1117_s1 + $0x68] sm:$0xff]  }
   0x6   :  { %765 = vmatprep.subr.bf16.mxu1 %v840_v5  ;;  %v848_v13 = vld [vmem:[%s1117_s1 + $0xd8] sm:$0xff]   ;;  %v852_v17 = vld [vmem:[%s1117_s1 + $0xe0] sm:$0xff]   ;;  %v856_v21 = vld [vmem:[%s1117_s1 + $0xe8] sm:$0xff]  }
   0x7   :  { %v849_v14 = vld [vmem:[%s1117_s1 + $0x18] sm:$0xff]   ;;  %v853_v18 = vld [vmem:[%s1117_s1 + $0x20] sm:$0xff]   ;;  %v857_v22 = vld [vmem:[%s1117_s1 + $0x28] sm:$0xff]  }
   0x8   :  { %726 = vmatpush3.bf16.msra.mxu0 %v841_v6  ;;  %v850_v15 = vld [vmem:[%s1117_s1 + $0x98] sm:$0xff]   ;;  %v854_v19 = vld [vmem:[%s1117_s1 + $0xa0] sm:$0xff]   ;;  %v858_v23 = vld [vmem:[%s1117_s1 + $0xa8] sm:$0xff]  }
   0x9   :  { %766 = vmatpush3.bf16.msra.mxu1 %v842_v7  ;;  %727 = vmatprep.subr.bf16.mxu0 %v843_v8  ;;  %v859_v24 = vld [vmem:[%s1117_s1 + $0x70] sm:$0xff]   ;;  %v863_v28 = vld [vmem:[%s1117_s1 + $0x78] sm:$0xff]   ;;  %v872_v35 = vld [vmem:[%s1118_s0 + $0xc] ss:$20 sps:$4 sm:$0xff]  }
   0xa   :  { %767 = vmatprep.subr.bf16.mxu1 %v844_v9  ;;  %v860_v25 = vld [vmem:[%s1117_s1 + $0xf0] sm:$0xff]   ;;  %v864_v29 = vld [vmem:[%s1117_s1 + $0xf8] sm:$0xff]   ;;  %v873_v36 = vld [vmem:[%s1117_s1 + $0x100] sm:$0xff]   ;;  %544 = vmatprep.mubr.bf16.mxu1 %v872_v35 }
   0xb   :  { %v861_v26 = vld [vmem:[%s1117_s1 + $0x30] sm:$0xff]   ;;  %v865_v30 = vld [vmem:[%s1117_s1 + $0x38] sm:$0xff]   ;;  %v874_v37 = vld [vmem:[%s1118_s0 + $0x2c] ss:$20 sps:$4 sm:$0xff]  }
   0xc   :  { %728 = vmatpush3.bf16.msra.mxu0 %v845_v10  ;;  %v862_v27 = vld [vmem:[%s1117_s1 + $0xb0] sm:$0xff]   ;;  %v866_v31 = vld [vmem:[%s1117_s1 + $0xb8] sm:$0xff]   ;;  %v880_v39 = vld [vmem:[%s1117_s1 + $0x108] sm:$0xff]  }
   0xd   :  { %768 = vmatpush3.bf16.msra.mxu1 %v846_v11  ;;  %729 = vmatprep.subr.bf16.mxu0 %v847_v12  ;;  %v867_v32 = vld [vmem:[%s1118_s0] ss:$20 sps:$4 sm:$0xff]   ;;  %v869_v33 = vld [vmem:[%s1118_s0 + $0x4] ss:$20 sps:$4 sm:$0xff]   ;;  %v870_v34 = vld [vmem:[%s1118_s0 + $0x8] ss:$20 sps:$4 sm:$0xff]  }
   0xe   :  { %769 = vmatprep.subr.bf16.mxu1 %v848_v13  ;;  %479 = vmatprep.mubr.bf16.mxu0 %v869_v33  ;;  %v876_v38 = vld [vmem:[%s1118_s0 + $0x34] ss:$20 sps:$4 sm:$0xff]   ;;  %v879_v41 = vld [vmem:[%s1118_s0 + $0x30] ss:$20 sps:$4 sm:$0xff]   ;;  %v894_v45 = vld [vmem:[%s1117_s1 + $0x118] sm:$0xff]  }
   0xf   :  { %v878_v40 = vld [vmem:[%s1118_s0 + $0x28] ss:$20 sps:$4 sm:$0xff]   ;;  %v887_v44 = vld [vmem:[%s1117_s1 + $0x110] sm:$0xff]   ;;  %v886_v47 = vld [vmem:[%s1118_s0 + $0x58] ss:$20 sps:$4 sm:$0xff]  }
  0x10   :  { %730 = vmatpush3.bf16.msra.mxu0 %v849_v14  ;;  %v881_v42 = vld [vmem:[%s1118_s0 + $0x54] ss:$20 sps:$4 sm:$0xff]   ;;  %v883_v43 = vld [vmem:[%s1118_s0 + $0x5c] ss:$20 sps:$4 sm:$0xff]   ;;  %v890_v49 = vld [vmem:[%s1118_s0 + $0x84] ss:$20 sps:$4 sm:$0xff]  }
  0x11   :  { %770 = vmatpush3.bf16.msra.mxu1 %v850_v15  ;;  %731 = vmatprep.subr.bf16.mxu0 %v851_v16  ;;  %v885_v46 = vld [vmem:[%s1118_s0 + $0x50] ss:$20 sps:$4 sm:$0xff]   ;;  %v892_v50 = vld [vmem:[%s1118_s0 + $0x78] ss:$20 sps:$4 sm:$0xff]   ;;  %v893_v51 = vld [vmem:[%s1118_s0 + $0x80] ss:$20 sps:$4 sm:$0xff]  }
  0x12   :  { %771 = vmatprep.subr.bf16.mxu1 %v852_v17  ;;  %v888_v48 = vld [vmem:[%s1118_s0 + $0x7c] ss:$20 sps:$4 sm:$0xff]   ;;  %v896_v53 = vld [vmem:[%s1118_s0 + $0x60] ss:$20 sps:$4 sm:$0xff]   ;;  %v897_v54 = vld [vmem:[%s1118_s0 + $0x38] ss:$20 sps:$4 sm:$0xff]  }
  0x13   :  { %v895_v52 = vld [vmem:[%s1118_s0 + $0x10] ss:$20 sps:$4 sm:$0xff]   ;;  %v898_v55 = vld [vmem:[%s1118_s0 + $0x88] ss:$20 sps:$4 sm:$0xff]   ;;  %v662_v58 = vld [vmem:[%s1119_s2] ss:$0 sm:$0xff] }
  0x14   :  { %732 = vmatpush3.bf16.msra.mxu0 %v853_v18 }
  0x15   :  { %772 = vmatpush3.bf16.msra.mxu1 %v854_v19  ;;  %733 = vmatprep.subr.bf16.mxu0 %v855_v20 }
  0x16   :  { %773 = vmatprep.subr.bf16.mxu1 %v856_v21 }
  0x18   :  { %734 = vmatpush3.bf16.msra.mxu0 %v857_v22 }
  0x19   :  { %774 = vmatpush3.bf16.msra.mxu1 %v858_v23  ;;  %735 = vmatprep.subr.bf16.mxu0 %v859_v24 }
  0x1a   :  { %775 = vmatprep.subr.bf16.mxu1 %v860_v25 }
  0x1c   :  { %736 = vmatpush3.bf16.msra.mxu0 %v861_v26 }
  0x1d   :  { %776 = vmatpush3.bf16.msra.mxu1 %v862_v27  ;;  %737 = vmatprep.subr.bf16.mxu0 %v863_v28 }
  0x1e   :  { %777 = vmatprep.subr.bf16.mxu1 %v864_v29 }
  0x20   :  { %738 = vmatpush3.bf16.msra.mxu0 %v865_v30 }
  0x21   :  { %778 = vmatpush3.bf16.msra.mxu1 %v866_v31  ;;  %811 = vmatprep.subr.bf16.mxu0 %v873_v36 }
  0x22   :  { %827 = vmatprep.subr.bf16.mxu1 %v873_v36 }
  0x23   :  { %480 = vmatmul.mubr.bf16.vlgmr.msra.gmra.mrb[0].mxu0 %v867_v32 }
  0x24   :  { %545 = vmatmul.mubr.bf16.vlgmr.msra.gmra.mrb[0].mxu1 %v870_v34  ;;  %812 = vmatpush3.bf16.msra.mxu0 %v873_v36 }
  0x25   :  { %831 = vmatpush3.bf16.msra.mxu1 %v873_v36  ;;  %487 = vmatprep.mubr.bf16.mxu0 %v874_v37 }
  0x26   :  { %552 = vmatprep.mubr.bf16.mxu1 %v876_v38  ;;  %813 = vmatprep.subr.bf16.mxu0 %v880_v39 }
  0x27   :  { %828 = vmatprep.subr.bf16.mxu1 %v880_v39 }
  0x28   :  { %814 = vmatpush3.bf16.msra.mxu0 %v880_v39 }
  0x29   :  { %832 = vmatpush3.bf16.msra.mxu1 %v880_v39  ;;  %815 = vmatprep.subr.bf16.mxu0 %v887_v44 }
  0x2a   :  { %829 = vmatprep.subr.bf16.mxu1 %v887_v44 }
  0x2b   :  { %488 = vmatmul.mubr.bf16.gmra.mrb[4].mxu0 %v878_v40 }
  0x2c   :  { %553 = vmatmul.mubr.bf16.gmra.mrb[4].mxu1 %v879_v41  ;;  %495 = vmatprep.mubr.bf16.mxu0 %v881_v42 }
  0x2d   :  { %560 = vmatprep.mubr.bf16.mxu1 %v883_v43  ;;  %816 = vmatpush3.bf16.msra.mxu0 %v887_v44 }
  0x2e   :  { %833 = vmatpush3.bf16.msra.mxu1 %v887_v44  ;;  %817 = vmatprep.subr.bf16.mxu0 %v894_v45 }
  0x2f   :  { %830 = vmatprep.subr.bf16.mxu1 %v894_v45 }
  0x31   :  { %818 = vmatpush3.bf16.msra.mxu0 %v894_v45 }
  0x32   :  { %834 = vmatpush3.bf16.msra.mxu1 %v894_v45 }
  0x33   :  { %496 = vmatmul.mubr.bf16.gmra.mrb[8].mxu0 %v885_v46 }
  0x34   :  { %561 = vmatmul.mubr.bf16.gmra.mrb[8].mxu1 %v886_v47  ;;  %503 = vmatprep.mubr.bf16.mxu0 %v888_v48 }
  0x35   :  { %568 = vmatprep.mubr.bf16.mxu1 %v890_v49 }
  0x3b   :  { %504 = vmatmul.mubr.bf16.gmra.mrb[12].mxu0 %v892_v50 }
  0x3c   :  { %569 = vmatmul.mubr.bf16.gmra.mrb[12].mxu1 %v893_v51  ;;  %819 = vmatprep.mubr.msk.bf16.mxu0 %vm434_vm0, %v895_v52 }
  0x3d   :  { %823 = vmatprep.mubr.msk.bf16.mxu1 %vm434_vm0, %v896_v53 }
  0x43   :  { %820 = vmatmul.mubr.msk.bf16.vlgmr.msra.gmra.mrb[16].mxu0 %vm434_vm0, %v897_v54 }
  0x44   :  { %824 = vmatmul.mubr.msk.bf16.vlgmr.msra.gmra.mrb[16].mxu1 %vm434_vm0, %v898_v55 }
  0xf6   :  { %v739_v56 = vpop.f32.mrb[0].mxu0 }
  0xf7   :  { %v779_v57 = vpop.f32.mrb[0].mxu1  ;;  %v740_v59 = vpop.f32.mrb[1].mxu0 }
  0xf8   :  { %v741_v60 = vadd.f32 %v740_v59, %v739_v56  ;;  %v780_v61 = vpop.f32.mrb[1].mxu1  ;;  %v742_v62 = vpop.f32.mrb[2].mxu0 }
  0xf9   :  { %v781_v63 = vadd.f32 %v780_v61, %v779_v57  ;;  %v782_v0 = vpop.f32.mrb[2].mxu1  ;;  %v743_v1 = vpop.f32.mrb[3].mxu0 }
  0xfa   :  { %v482_v2 = vadd.f32 %v741_v60, %v662_v58  ;;  %v744_v3 = vadd.f32 %v743_v1, %v742_v62  ;;  %v783_v4 = vpop.f32.mrb[3].mxu1 }
  0xfb   :  { %v784_v5 = vadd.f32 %v783_v4, %v782_v0 }
  0xfc   :  { %v485_v6 = vadd.f32 %v744_v3, %v662_v58  ;;  %v547_v7 = vadd.f32 %v781_v63, %v482_v2 }
  0xfe   :  { %v745_v8 = vpop.f32.mrb[4].mxu0  ;;  %v1090_v9 = vadd.f32 %v784_v5, %v485_v6 }
  0xff   :  { %v785_v10 = vpop.f32.mrb[4].mxu1  ;;  %v746_v11 = vpop.f32.mrb[5].mxu0 }
 0x100   :  { %v747_v12 = vadd.f32 %v746_v11, %v745_v8  ;;  %v786_v13 = vpop.f32.mrb[5].mxu1  ;;  %v748_v14 = vpop.f32.mrb[6].mxu0 }
 0x101   :  { %v787_v15 = vadd.f32 %v786_v13, %v785_v10  ;;  %v788_v16 = vpop.f32.mrb[6].mxu1  ;;  %v749_v17 = vpop.f32.mrb[7].mxu0 }
 0x102   :  { %v490_v18 = vadd.f32 %v747_v12, %v662_v58  ;;  %v750_v19 = vadd.f32 %v749_v17, %v748_v14  ;;  %v789_v20 = vpop.f32.mrb[7].mxu1 }
 0x103   :  { %v790_v21 = vadd.f32 %v789_v20, %v788_v16 }
 0x104   :  { %v493_v22 = vadd.f32 %v750_v19, %v662_v58  ;;  %v555_v23 = vadd.f32 %v787_v15, %v490_v18 }
 0x106   :  { %v751_v24 = vpop.f32.mrb[8].mxu0  ;;  %v558_v25 = vadd.f32 %v790_v21, %v493_v22 }
 0x107   :  { %v791_v26 = vpop.f32.mrb[8].mxu1  ;;  %v752_v27 = vpop.f32.mrb[9].mxu0 }
 0x108   :  { %v753_v28 = vadd.f32 %v752_v27, %v751_v24  ;;  %v792_v29 = vpop.f32.mrb[9].mxu1  ;;  %v754_v30 = vpop.f32.mrb[10].mxu0 }
 0x109   :  { %v793_v31 = vadd.f32 %v792_v29, %v791_v26  ;;  %v794_v32 = vpop.f32.mrb[10].mxu1  ;;  %v755_v33 = vpop.f32.mrb[11].mxu0 }
 0x10a   :  { %v498_v34 = vadd.f32 %v753_v28, %v662_v58  ;;  %v756_v35 = vadd.f32 %v755_v33, %v754_v30  ;;  %v795_v36 = vpop.f32.mrb[11].mxu1 }
 0x10b   :  { %v796_v37 = vadd.f32 %v795_v36, %v794_v32 }
 0x10c   :  { %v501_v38 = vadd.f32 %v756_v35, %v662_v58  ;;  %v563_v39 = vadd.f32 %v793_v31, %v498_v34 }
 0x10e   :  { %v757_v40 = vpop.f32.mrb[12].mxu0  ;;  %v566_v41 = vadd.f32 %v796_v37, %v501_v38 }
 0x10f   :  { %v797_v42 = vpop.f32.mrb[12].mxu1  ;;  %v758_v43 = vpop.f32.mrb[13].mxu0 }
 0x110   :  { %v759_v44 = vadd.f32 %v758_v43, %v757_v40  ;;  %v798_v45 = vpop.f32.mrb[13].mxu1  ;;  %v760_v46 = vpop.f32.mrb[14].mxu0 }
 0x111   :  { %v799_v47 = vadd.f32 %v798_v45, %v797_v42  ;;  %v800_v48 = vpop.f32.mrb[14].mxu1  ;;  %v761_v49 = vpop.f32.mrb[15].mxu0 }
 0x112   :  { %v506_v50 = vadd.f32 %v759_v44, %v662_v58  ;;  %v762_v51 = vadd.f32 %v761_v49, %v760_v46  ;;  %v801_v52 = vpop.f32.mrb[15].mxu1 }
 0x113   :  { %v802_v53 = vadd.f32 %v801_v52, %v800_v48 }
 0x114   :  { %v509_v54 = vadd.f32 %v762_v51, %v662_v58  ;;  %v571_v55 = vadd.f32 %v799_v47, %v506_v50 }
 0x116   :  { %v821_v56 = vpop.f32.mrb[16].mxu0  ;;  %v574_v57 = vadd.f32 %v802_v53, %v509_v54 }
 0x117   :  { %v620_v59 = vadd.f32 %v821_v56, %v555_v23  ;;  %v825_v60 = vpop.f32.mrb[16].mxu1  ;;  %v611_v61 = vpop.f32.mrb[17].mxu0 }
 0x118   :  { %v636_v62 = vadd.f32 %v825_v60, %v571_v55  ;;  %v612_v63 = vadd.f32 %v611_v61, %v547_v7  ;;  %v627_v0 = vpop.f32.mrb[17].mxu1  ;;  %v822_v1 = vpop.f32.mrb[18].mxu0 }
 0x119   :  { %v644_v2 = vmax.f32 %v620_v59, 0.0  ;;  %v628_v3 = vadd.f32 %v627_v0, %v563_v39  ;;  %v623_v4 = vadd.f32 %v822_v1, %v558_v25  ;;  %v826_v5 = vpop.f32.mrb[18].mxu1  ;;  %v614_v6 = vpop.f32.mrb[19].mxu0 }
 0x11a   :  { %v648_v8 = vmax.f32 %v636_v62, 0.0  ;;  %v642_v10 = vmax.f32 %v612_v63, 0.0  ;;  %v639_v11 = vadd.f32 %v826_v5, %v574_v57  ;;  %v615_v58 = vadd.f32 %v614_v6, %v1090_v9  ;;  %v630_v12 = vpop.f32.mrb[19].mxu1 }
 0x11b   :  { %652 = vst [vmem:[%s1120_s3 + $0x10] sm:$0xff] %v644_v2  ;;  %v646_v13 = vmax.f32 %v628_v3, 0.0  ;;  %v645_v14 = vmax.f32 %v623_v4, 0.0  ;;  %v631_v7 = vadd.f32 %v630_v12, %v566_v41 }
 0x11c   :  { %656 = vst [vmem:[%s1120_s3 + $0x30] sm:$0xff] %v648_v8  ;;  %650 = vst [vmem:[%s1120_s3] sm:$0xff] %v642_v10  ;;  %v649_v15 = vmax.f32 %v639_v11, 0.0  ;;  %v643_v16 = vmax.f32 %v615_v58, 0.0 }
 0x11d   :  { %654 = vst [vmem:[%s1120_s3 + $0x20] sm:$0xff] %v646_v13  ;;  %653 = vst [vmem:[%s1120_s3 + $0x18] sm:$0xff] %v645_v14  ;;  %v647_v9 = vmax.f32 %v631_v7, 0.0 }
 0x11e   :  { %657 = vst [vmem:[%s1120_s3 + $0x38] sm:$0xff] %v649_v15  ;;  %651 = vst [vmem:[%s1120_s3 + $0x8] sm:$0xff] %v643_v16 }
 0x11f   :  { %655 = vst [vmem:[%s1120_s3 + $0x28] sm:$0xff] %v647_v9 }

// kernel: model_fwd.321
= control target key start
LH: loop header
LB: loop body
LE: loop exit
PB: predicated region body
PF: predicated region fallthrough
CT: control target
= control target key end

     0   :  { %vm90_vm0 = vcmask 654336   ;;  %s318_s1 = inlined_call_operand.vmem [shape: bf16[80,128], index: 1, kind: input, shape index: {}]   ;;  %s319_s0 = inlined_call_operand.vmem [shape: bf16[64,80], index: 0, kind: input, shape index: {}]   ;;  %s320_s2 = inlined_call_operand.vmem [shape: f32[1,128], index: 2, kind: input, shape index: {}]   ;;  %s321_s3 = inlined_call_operand.vmem [shape: f32[64,128], index: 3, kind: output, shape index: {}]  }
   0x1   :  { %v231_v0 = vld [vmem:[%s318_s1] sm:$0xff]   ;;  %v232_v1 = vld [vmem:[%s318_s1 + $0x8] sm:$0xff]   ;;  %v233_v2 = vld [vmem:[%s318_s1 + $0x10] sm:$0xff]  }
   0x2   :  { %203 = vmatprep.subr.bf16.mxu0 %v231_v0  ;;  %221 = vmatprep.subr.bf16.mxu1 %v231_v0  ;;  %v236_v3 = vld [vmem:[%s319_s0] sm:$0xff]   ;;  %v237_v4 = vld [vmem:[%s319_s0 + $0x10] sm:$0xff]   ;;  %v234_v5 = vld [vmem:[%s318_s1 + $0x18] sm:$0xff]  }
   0x3   :  { %204 = vmatpush3.bf16.msra.mxu0 %v231_v0  ;;  %226 = vmatpush3.bf16.msra.mxu1 %v231_v0  ;;  %v235_v6 = vld [vmem:[%s318_s1 + $0x20] sm:$0xff]   ;;  %v238_v7 = vld [vmem:[%s319_s0 + $0x8] sm:$0xff]   ;;  %v239_v8 = vld [vmem:[%s319_s0 + $0x18] sm:$0xff]  }
   0x4   :  { %205 = vmatprep.subr.bf16.mxu0 %v232_v1  ;;  %222 = vmatprep.subr.bf16.mxu1 %v232_v1  ;;  %v180_v9 = vld [vmem:[%s320_s2] ss:$0 sm:$0xff] }
   0x5   :  { %213 = vmatprep.mubr.msk.bf16.mxu0 %vm90_vm0, %v236_v3  ;;  %217 = vmatprep.mubr.msk.bf16.mxu1 %vm90_vm0, %v237_v4 }
   0x7   :  { %206 = vmatpush3.bf16.msra.mxu0 %v232_v1  ;;  %227 = vmatpush3.bf16.msra.mxu1 %v232_v1 }
   0x8   :  { %207 = vmatprep.subr.bf16.mxu0 %v233_v2  ;;  %223 = vmatprep.subr.bf16.mxu1 %v233_v2 }
   0xb   :  { %208 = vmatpush3.bf16.msra.mxu0 %v233_v2  ;;  %228 = vmatpush3.bf16.msra.mxu1 %v233_v2 }
   0xc   :  { %209 = vmatprep.subr.bf16.mxu0 %v234_v5  ;;  %224 = vmatprep.subr.bf16.mxu1 %v234_v5 }
   0xf   :  { %210 = vmatpush3.bf16.msra.mxu0 %v234_v5  ;;  %229 = vmatpush3.bf16.msra.mxu1 %v234_v5 }
  0x10   :  { %211 = vmatprep.subr.bf16.mxu0 %v235_v6  ;;  %225 = vmatprep.subr.bf16.mxu1 %v235_v6 }
  0x13   :  { %212 = vmatpush3.bf16.msra.mxu0 %v235_v6  ;;  %230 = vmatpush3.bf16.msra.mxu1 %v235_v6 }
  0x16   :  { %214 = vmatmul.mubr.msk.bf16.vlgmr.msra.gmra.mrb[0].mxu0 %vm90_vm0, %v238_v7  ;;  %218 = vmatmul.mubr.msk.bf16.vlgmr.msra.gmra.mrb[0].mxu1 %vm90_vm0, %v239_v8 }
  0xe9   :  { %v215_v10 = vpop.f32.mrb[0].mxu0  ;;  %v219_v11 = vpop.f32.mrb[0].mxu1 }
  0xea   :  { %v146_v12 = vadd.f32 %v215_v10, %v180_v9  ;;  %v162_v13 = vadd.f32 %v219_v11, %v180_v9  ;;  %v137_v14 = vpop.f32.mrb[1].mxu0  ;;  %v153_v15 = vpop.f32.mrb[1].mxu1 }
  0xeb   :  { %v138_v16 = vadd.f32 %v180_v9, %v137_v14  ;;  %v154_v17 = vadd.f32 %v180_v9, %v153_v15  ;;  %v216_v18 = vpop.f32.mrb[2].mxu0  ;;  %v220_v19 = vpop.f32.mrb[2].mxu1 }
  0xec   :  { %170 = vst [vmem:[%s321_s3 + $0x10] sm:$0xff] %v146_v12  ;;  %174 = vst [vmem:[%s321_s3 + $0x30] sm:$0xff] %v162_v13  ;;  %v149_v20 = vadd.f32 %v216_v18, %v180_v9  ;;  %v165_v21 = vadd.f32 %v220_v19, %v180_v9  ;;  %v140_v22 = vpop.f32.mrb[3].mxu0  ;;  %v156_v23 = vpop.f32.mrb[3].mxu1 }
  0xed   :  { %168 = vst [vmem:[%s321_s3] sm:$0xff] %v138_v16  ;;  %172 = vst [vmem:[%s321_s3 + $0x20] sm:$0xff] %v154_v17  ;;  %v141_v24 = vadd.f32 %v180_v9, %v140_v22  ;;  %v157_v25 = vadd.f32 %v180_v9, %v156_v23 }
  0xee   :  { %171 = vst [vmem:[%s321_s3 + $0x18] sm:$0xff] %v149_v20  ;;  %175 = vst [vmem:[%s321_s3 + $0x38] sm:$0xff] %v165_v21 }
  0xef   :  { %169 = vst [vmem:[%s321_s3 + $0x8] sm:$0xff] %v141_v24  ;;  %173 = vst [vmem:[%s321_s3 + $0x28] sm:$0xff] %v157_v25 }

// kernel: model_fwd.322
= control target key start
LH: loop header
LB: loop body
LE: loop exit
PB: predicated region body
PF: predicated region fallthrough
CT: control target
= control target key end

     0   :  { %s723_s12 = smov 0   ;;  %s725_s13 = smov 0   ;;  %s834_s0 = inlined_call_operand.vmem [shape: bf16[64,32], index: 0, kind: input, shape index: {}]   ;;  %s835_s1 = inlined_call_operand.vmem [shape: bf16[32,256], index: 1, kind: input, shape index: {}]   ;;  %s836_s2 = inlined_call_operand.vmem [shape: f32[1,256], index: 2, kind: input, shape index: {}]   ;;  %s837_s3 = inlined_call_operand.vmem [shape: f32[64,256], index: 3, kind: output, shape index: {}]  }
   0x1   :  { %s727_s14 = smov 0   ;;  %s729_s15 = smov 0  }
   0x2   :  { %s731_s16 = smov 0  }
   0x3 LB: > { %s22_s17 = sadd.s32 1, %s697_s15  ;;  %s570_s18 = sadd.s32 4294967295, %s701_s16   ;;  %s701_s16 = sphi %s731_s16, %s13_s16   ;;  %s697_s15 = sphi %s729_s15, %s842_s15   ;;  %s693_s14 = sphi %s727_s14, %s841_s14   ;;  %s689_s13 = sphi %s725_s13, %s840_s13   ;;  %s685_s12 = sphi %s723_s12, %s839_s12  }
   0x4   : > { %p23_p0 = scmp.ge.s32.totalorder %s22_s17, 2  ;;  %p65_p1 = scmp.ne.s32.totalorder %s689_s13, %s685_s12 }
   0x5   : > { %p66_p2 = scmp.eq.s32.totalorder %s701_s16, 0  ;;  %p123_p4 = scmp.eq.s32.totalorder %s570_s18, 1 }
   0x6   : > { %s844_s17 = smov (%p23_p0, %s22_s17), 0  ;;  %s58_s20 = sadd.s32 1, %s689_s13 }
   0x7   : > { %p67_p3 = por %p66_p2, %p65_p1  ;;  %s55_s19 = ssub.s32 %s697_s15, %s844_s17 }
   0x8   : > { %p56_p5 = scmp.eq.s32.totalorder %s55_s19, 0  ;;  %p758_p6 = por %p123_p4, %p65_p1 }
   0x9   : > { %p574_p7 = scmp.ge.s32.totalorder %s701_s16, 2 }
   0xa   : > { %s763_s22 = scalar_select %p56_p5, %s689_s13, %s58_s20  }
   0xb   : > { %154 = sbr.rel (%p574_p7) target bundleno = 25 (0x19), region = 20 }
  0x12   : > { %157 = sbr.rel (!%p67_p3) target bundleno = 25 (0x19), region = 24  ;;  %s159_s23 = sand.u32 (%p67_p3), 1, %s689_s13  }
  0x13   : > { %s576_s24 = sshll.u32 (%p67_p3), %s697_s15, 2  ;;  %s575_s25 = sshll.u32 (%p67_p3), %s159_s23, 4 }
  0x14   : > { %s163_s28 = scalar_lea.vmem (%p67_p3), %s835_s1, %s576_s24  ;;  %s161_s29 = scalar_lea.vmem (%p67_p3), [#allocation2], %s575_s25 }
  0x15   : > { %v179_v0 = vld [vmem:[%s163_s28] sm:$0xf] (%p67_p3)  ;;  %v181_v1 = vld [vmem:[%s163_s28 + $0x8] sm:$0xf] (%p67_p3)  ;;  %v183_v2 = vld [vmem:[%s163_s28 + $0x10] sm:$0xf] (%p67_p3) }
  0x16   : > { %180 = vst [vmem:[%s161_s29] sm:$0xf] (%p67_p3), %v179_v0  ;;  %182 = vst [vmem:[%s161_s29 + $0x4] sm:$0xf] (%p67_p3), %v181_v1  ;;  %v185_v3 = vld [vmem:[%s163_s28 + $0x18] sm:$0xf] (%p67_p3) }
  0x17   : > { %184 = vst [vmem:[%s161_s29 + $0x8] sm:$0xf] (%p67_p3), %v183_v2  ;;  %186 = vst [vmem:[%s161_s29 + $0xc] sm:$0xf] (%p67_p3), %v185_v3 }
  0x19 PF: > { %p577_p8 = scmp.ge.s32.totalorder %s701_s16, 1  ;;  %p222_p9 = scmp.lt.s32.totalorder %s701_s16, 3 }
  0x1b   : > { %p223_p10 = pnand %p577_p8, %p222_p9 }
  0x1c   : > { %s229_s30 = sand.u32 (!%p223_p10), 1, %s685_s12   ;;  %v659_v4 = vld [vmem:[%s834_s0] sm:$0xff] (!%p223_p10)   ;;  %vm321_vm0 = vcmask (!%p223_p10), 261120   ;;  %v660_v5 = vld [vmem:[%s834_s0 + $0x10] sm:$0xff] (!%p223_p10)   ;;  %v661_v8 = vld [vmem:[%s834_s0 + $0x8] sm:$0xff] (!%p223_p10)   ;;  %p265_p11 = scmp.lt.s32.totalorder (!%p223_p10), %s693_s14, 1 }
  0x1d   : > { %226 = sbr.rel (%p223_p10) target bundleno = 267 (0x10b), region = 69  ;;  %s578_s6 = sshll.u32 (!%p223_p10), %s229_s30, 4  ;;  %605 = vmatprep.mubr.msk.bf16.mxu0 (!%p223_p10), %vm321_vm0, %v659_v4  ;;  %609 = vmatprep.mubr.msk.bf16.mxu1 (!%p223_p10), %vm321_vm0, %v660_v5  ;;  %v662_v9 = vld [vmem:[%s834_s0 + $0x18] sm:$0xff] (!%p223_p10)  }
  0x1e   : > { %s231_s9 = scalar_lea.vmem (!%p223_p10), [#allocation2], %s578_s6  ;;  %s579_s25 = sshll.u32 (!%p223_p10), %s229_s30, 6 }
  0x1f   : > { %v657_v6 = vld [vmem:[%s231_s9] sm:$0xff] (!%p223_p10)   ;;  %v658_v7 = vld [vmem:[%s231_s9 + $0x8] sm:$0xff] (!%p223_p10)   ;;  %s795_s26 = scalar_lea.vmem (!%p223_p10), [#allocation3], %s579_s25 }
  0x20   : > { %601 = vmatprep.subr.bf16.mxu0 (!%p223_p10), %v657_v6  ;;  %613 = vmatprep.subr.bf16.mxu1 (!%p223_p10), %v657_v6 }
  0x21   : > { %602 = vmatpush3.bf16.msra.mxu0 (!%p223_p10), %v657_v6  ;;  %615 = vmatpush3.bf16.msra.mxu1 (!%p223_p10), %v657_v6 }
  0x22   : > { %603 = vmatprep.subr.bf16.mxu0 (!%p223_p10), %v658_v7  ;;  %614 = vmatprep.subr.bf16.mxu1 (!%p223_p10), %v658_v7 }
  0x24   : > { %s266_s19 = scalar_select %p265_p11, %s693_s14, 1 }
  0x25   : > { %604 = vmatpush3.bf16.msra.mxu0 %v658_v7  ;;  %616 = vmatpush3.bf16.msra.mxu1 %v658_v7  ;;  %s592_s27 = sshll.u32 (%p758_p6), %s693_s14, 3 }
  0x26   : > { %s267_s24 = scalar_lea.vmem %s836_s2, %s266_s19  ;;  %s418_s30 = scalar_lea.vmem (%p758_p6), %s837_s3, %s592_s27 }
  0x27   : > { %v580_v10 = vld [vmem:[%s267_s24] ss:$0 sm:$0xff] }
  0x28   : > { %606 = vmatmul.mubr.msk.bf16.vlgmr.msra.gmra.mrb[0].mxu0 %vm321_vm0, %v661_v8  ;;  %610 = vmatmul.mubr.msk.bf16.vlgmr.msra.gmra.mrb[0].mxu1 %vm321_vm0, %v662_v9 }
  0xfb   : > { %v607_v11 = vpop.f32.mrb[0].mxu0  ;;  %v611_v12 = vpop.f32.mrb[0].mxu1  ;;  %413 = sbr.rel (!%p758_p6) target bundleno = 267 (0x10b), region = 77 }
  0xfc   : > { %v377_v13 = vadd.f32 %v607_v11, %v580_v10  ;;  %v393_v14 = vadd.f32 %v611_v12, %v580_v10  ;;  %v368_v15 = vpop.f32.mrb[1].mxu0  ;;  %v384_v16 = vpop.f32.mrb[1].mxu1 }
  0xfd   : > { %v369_v17 = vadd.f32 %v580_v10, %v368_v15  ;;  %v385_v18 = vadd.f32 %v580_v10, %v384_v16  ;;  %v608_v19 = vpop.f32.mrb[2].mxu0  ;;  %v612_v20 = vpop.f32.mrb[2].mxu1 }
  0xfe   : > { %401 = vst [vmem:[%s795_s26 + $0x10] sm:$0xff] %v377_v13  ;;  %405 = vst [vmem:[%s795_s26 + $0x30] sm:$0xff] %v393_v14  ;;  %v380_v21 = vadd.f32 %v608_v19, %v580_v10  ;;  %v396_v22 = vadd.f32 %v612_v20, %v580_v10  ;;  %v371_v23 = vpop.f32.mrb[3].mxu0  ;;  %v387_v24 = vpop.f32.mrb[3].mxu1 }
  0xff   : > { %399 = vst [vmem:[%s795_s26] sm:$0xff] %v369_v17  ;;  %403 = vst [vmem:[%s795_s26 + $0x20] sm:$0xff] %v385_v18  ;;  %v372_v25 = vadd.f32 %v580_v10, %v371_v23  ;;  %v388_v26 = vadd.f32 %v580_v10, %v387_v24 }
 0x100   : > { %402 = vst [vmem:[%s795_s26 + $0x18] sm:$0xff] %v380_v21  ;;  %406 = vst [vmem:[%s795_s26 + $0x38] sm:$0xff] %v396_v22 }
 0x101   : > { %400 = vst [vmem:[%s795_s26 + $0x8] sm:$0xff] %v372_v25  ;;  %404 = vst [vmem:[%s795_s26 + $0x28] sm:$0xff] %v388_v26 }
 0x105   : > { %v464_v29 = vld [vmem:[%s795_s26 + $0x10] sm:$0xff] }
 0x106   : > { %v460_v27 = vld [vmem:[%s795_s26] sm:$0xff]  ;;  %465 = vst [vmem:[%s418_s30 + $0x20] sm:$0xff] %v464_v29  ;;  %v472_v33 = vld [vmem:[%s795_s26 + $0x30] sm:$0xff] }
 0x107   : > { %v466_v30 = vld [vmem:[%s795_s26 + $0x18] sm:$0xff]  ;;  %v468_v31 = vld [vmem:[%s795_s26 + $0x20] sm:$0xff]  ;;  %461 = vst [vmem:[%s418_s30] sm:$0xff] %v460_v27  ;;  %473 = vst [vmem:[%s418_s30 + $0x60] sm:$0xff] %v472_v33 }
 0x108   : > { %v462_v28 = vld [vmem:[%s795_s26 + $0x8] sm:$0xff]  ;;  %467 = vst [vmem:[%s418_s30 + $0x30] sm:$0xff] %v466_v30  ;;  %469 = vst [vmem:[%s418_s30 + $0x40] sm:$0xff] %v468_v31  ;;  %v474_v34 = vld [vmem:[%s795_s26 + $0x38] sm:$0xff] }
 0x109   : > { %v470_v32 = vld [vmem:[%s795_s26 + $0x28] sm:$0xff]  ;;  %463 = vst [vmem:[%s418_s30 + $0x10] sm:$0xff] %v462_v28  ;;  %475 = vst [vmem:[%s418_s30 + $0x70] sm:$0xff] %v474_v34 }
 0x10a   : > { %471 = vst [vmem:[%s418_s30 + $0x50] sm:$0xff] %v470_v32 }
 0x10b PF: > { %s13_s16 = sadd.s32 1, %s701_s16   ;;  %s839_s12 = smov %s689_s13 }
 0x10c   : > { %p10_p12 = scmp.ge.s32.totalorder %s13_s16, 4   ;;  %s840_s13 = smov %s763_s22 }
 0x10d   : > { %s841_s14 = smov %s697_s15  ;;  %s842_s15 = smov %s844_s17 }
 0x10e   :  { %12 = sbr.rel (!%p10_p12) target bundleno = 3 (0x3), region = 152 }

// kernel: model_fwd.327
= control target key start
LH: loop header
LB: loop body
LE: loop exit
PB: predicated region body
PF: predicated region fallthrough
CT: control target
= control target key end

     0   :  { %s1245_s12 = smov 0   ;;  %s1247_s13 = smov 0   ;;  %s1450_s0 = inlined_call_operand.vmem [shape: bf16[256,400], index: 0, kind: input, shape index: {}]   ;;  %s1451_s1 = inlined_call_operand.vmem [shape: bf16[400,128], index: 1, kind: input, shape index: {}]   ;;  %s1452_s2 = inlined_call_operand.vmem [shape: f32[1,128], index: 2, kind: input, shape index: {}]   ;;  %s1453_s3 = inlined_call_operand.vmem [shape: f32[256,128], index: 3, kind: output, shape index: {}]  }
   0x1   :  { %s1249_s14 = smov 0  }
   0x2 LB: > { %s25_s15 = sadd.s32 1, %s1218_s13  ;;  %p963_p0 = scmp.ge.s32.totalorder %s1222_s14, 1  ;;  %s1222_s14 = sphi %s1249_s14, %s13_s14   ;;  %s1218_s13 = sphi %s1247_s13, %s1455_s13   ;;  %s1214_s12 = sphi %s1245_s12, %s1454_s12  }
   0x3   : > { %p27_p1 = scmp.ge.s32.totalorder %s25_s15, 2  ;;  %p170_p2 = scmp.lt.s32.totalorder %s1222_s14, 3 }
   0x5   : > { %s1457_s15 = smov (%p27_p1, %s25_s15), 0  ;;  %p171_p3 = pnand %p963_p0, %p170_p2 }
   0x6   : > { %v1127_v0 = vld [vmem:[%s1451_s1 + $0x40] sm:$0xff] (!%p171_p3)   ;;  %v1224_v1 = vmov (!%p171_p3), 0   ;;  %v1130_v4 = vld [vmem:[%s1451_s1 + $0x48] sm:$0xff] (!%p171_p3)   ;;  %v1133_v7 = vld [vmem:[%s1451_s1 + $0x50] sm:$0xff] (!%p171_p3)   ;;  %s964_s7 = sshll.u32 (!%p171_p3), %s1214_s12, 4  ;;  %vm620_vm0 = vcmask (!%p171_p3), 130048  }
   0x7   : > { %174 = sbr.rel (%p171_p3) target bundleno = 318 (0x13e), region = 32  ;;  %742 = vmatprep.subr.bf16.mxu1 (!%p171_p3), %v1224_v1  ;;  %v1128_v2 = vld [vmem:[%s1451_s1 + $0x80] sm:$0xff] (!%p171_p3)   ;;  %1038 = vmatprep.subr.bf16.mxu0 (!%p171_p3), %v1127_v0  ;;  %v1131_v5 = vld [vmem:[%s1451_s1 + $0x88] sm:$0xff] (!%p171_p3)   ;;  %v1134_v8 = vld [vmem:[%s1451_s1 + $0x90] sm:$0xff] (!%p171_p3)   ;;  %p206_p4 = scmp.lt.s32.totalorder (!%p171_p3), %s964_s7, 31 }
   0x8   : > { %v1129_v3 = vld [vmem:[%s1451_s1] sm:$0xff] (!%p171_p3)   ;;  %743 = vmatpush1.bf16.msra.mxu1 (!%p171_p3), %v1128_v2  ;;  %v1132_v6 = vld [vmem:[%s1451_s1 + $0x8] sm:$0xff] (!%p171_p3)   ;;  %v1135_v9 = vld [vmem:[%s1451_s1 + $0x10] sm:$0xff] (!%p171_p3)  }
   0x9   : > { %1039 = vmatpush3.bf16.msra.mxu0 (!%p171_p3), %v1129_v3  ;;  %744 = vmatprep.subr.bf16.mxu1 (!%p171_p3), %v1224_v1  ;;  %v1136_v10 = vld [vmem:[%s1451_s1 + $0x58] sm:$0xff] (!%p171_p3)   ;;  %v1139_v13 = vld [vmem:[%s1451_s1 + $0x60] sm:$0xff] (!%p171_p3)   ;;  %v1142_v16 = vld [vmem:[%s1451_s1 + $0x68] sm:$0xff] (!%p171_p3)  }
   0xa   : > { %1040 = vmatprep.subr.bf16.mxu0 (!%p171_p3), %v1130_v4  ;;  %v1137_v11 = vld [vmem:[%s1451_s1 + $0x98] sm:$0xff] (!%p171_p3)   ;;  %v1140_v14 = vld [vmem:[%s1451_s1 + $0xa0] sm:$0xff] (!%p171_p3)   ;;  %v1143_v17 = vld [vmem:[%s1451_s1 + $0xa8] sm:$0xff] (!%p171_p3)  }
   0xb   : > { %v1138_v12 = vld [vmem:[%s1451_s1 + $0x18] sm:$0xff] (!%p171_p3)   ;;  %v1141_v15 = vld [vmem:[%s1451_s1 + $0x20] sm:$0xff] (!%p171_p3)   ;;  %v1144_v18 = vld [vmem:[%s1451_s1 + $0x28] sm:$0xff] (!%p171_p3)  }
   0xc   : > { %745 = vmatpush1.bf16.msra.mxu1 (!%p171_p3), %v1131_v5  ;;  %v1145_v19 = vld [vmem:[%s1451_s1 + $0x70] sm:$0xff] (!%p171_p3)   ;;  %v1148_v22 = vld [vmem:[%s1451_s1 + $0x78] sm:$0xff] (!%p171_p3)   ;;  %v1154_v28 = vld [vmem:[%s1451_s1 + $0xc0] sm:$0xff] (!%p171_p3)  }
   0xd   : > { %1041 = vmatpush3.bf16.msra.mxu0 (!%p171_p3), %v1132_v6  ;;  %746 = vmatprep.subr.bf16.mxu1 (!%p171_p3), %v1224_v1  ;;  %v1146_v20 = vld [vmem:[%s1451_s1 + $0xb0] sm:$0xff] (!%p171_p3)   ;;  %v1149_v24 = vld [vmem:[%s1451_s1 + $0xb8] sm:$0xff] (!%p171_p3)   ;;  %v1401_v60 = vld [vmem:[%s1452_s2] ss:$0 sm:$0xff] (!%p171_p3) }
   0xe   : > { %1042 = vmatprep.subr.bf16.mxu0 %v1133_v7  ;;  %s1459_s7 = smov (!%p206_p4, %s964_s7), 31  ;;  %v1147_v21 = vld [vmem:[%s1451_s1 + $0x30] sm:$0xff]   ;;  %v1150_v26 = vld [vmem:[%s1451_s1 + $0x38] sm:$0xff]  }
   0xf   : > { %s1037_s27 = sshll.u32 %s1459_s7, 4  ;;  %s968_s26 = sshll.u32 %s1459_s7, 3 }
  0x10   : > { %747 = vmatpush1.bf16.msra.mxu1 %v1134_v8  ;;  %s1338_s10 = scalar_lea.vmem %s1450_s0, %s1037_s27  ;;  %s1408_s29 = scalar_lea.vmem %s1453_s3, %s968_s26 }
  0x11   : > { %1043 = vmatpush3.bf16.msra.mxu0 %v1135_v9  ;;  %748 = vmatprep.subr.bf16.mxu1 %v1224_v1  ;;  %v1153_v23 = vld [vmem:[%s1338_s10 + $0x4] ss:$16 sps:$4 sm:$0xff]   ;;  %v1157_v25 = vld [vmem:[%s1338_s10 + $0xc] ss:$16 sps:$4 sm:$0xff]   ;;  %v1151_v27 = vld [vmem:[%s1338_s10] ss:$16 sps:$4 sm:$0xff]  }
  0x12   : > { %1044 = vmatprep.subr.bf16.mxu0 %v1136_v10  ;;  %677 = vmatprep.mubr.bf16.mxu0 %v1153_v23  ;;  %v1158_v29 = vld [vmem:[%s1338_s10 + $0x24] ss:$16 sps:$4 sm:$0xff]   ;;  %v1155_v30 = vld [vmem:[%s1338_s10 + $0x8] ss:$16 sps:$4 sm:$0xff]   ;;  %v1161_v31 = vld [vmem:[%s1338_s10 + $0x2c] ss:$16 sps:$4 sm:$0xff]  }
  0x13   : > { %1027 = vmatprep.mubr.msk.bf16.mxu1 %vm620_vm0, %v1157_v25  ;;  %v1160_v32 = vld [vmem:[%s1338_s10 + $0x20] ss:$16 sps:$4 sm:$0xff]   ;;  %v1164_v33 = vld [vmem:[%s1338_s10 + $0x44] ss:$16 sps:$4 sm:$0xff]   ;;  %v1163_v34 = vld [vmem:[%s1338_s10 + $0x28] ss:$16 sps:$4 sm:$0xff]  }
  0x14   : > { %749 = vmatpush1.bf16.msra.mxu1 %v1137_v11  ;;  %v1167_v35 = vld [vmem:[%s1338_s10 + $0x4c] ss:$16 sps:$4 sm:$0xff]   ;;  %v1166_v36 = vld [vmem:[%s1338_s10 + $0x40] ss:$16 sps:$4 sm:$0xff]   ;;  %v1170_v37 = vld [vmem:[%s1338_s10 + $0x64] ss:$16 sps:$4 sm:$0xff]  }
  0x15   : > { %1045 = vmatpush3.bf16.msra.mxu0 %v1138_v12  ;;  %750 = vmatprep.subr.bf16.mxu1 %v1224_v1  ;;  %v1169_v38 = vld [vmem:[%s1338_s10 + $0x48] ss:$16 sps:$4 sm:$0xff]   ;;  %v1173_v39 = vld [vmem:[%s1338_s10 + $0x6c] ss:$16 sps:$4 sm:$0xff]   ;;  %v1172_v40 = vld [vmem:[%s1338_s10 + $0x60] ss:$16 sps:$4 sm:$0xff]  }
  0x16   : > { %1046 = vmatprep.subr.bf16.mxu0 %v1139_v13  ;;  %v1176_v41 = vld [vmem:[%s1338_s10 + $0x84] ss:$16 sps:$4 sm:$0xff]   ;;  %v1175_v42 = vld [vmem:[%s1338_s10 + $0x68] ss:$16 sps:$4 sm:$0xff]   ;;  %v1179_v43 = vld [vmem:[%s1338_s10 + $0x8c] ss:$16 sps:$4 sm:$0xff]  }
  0x17   : > { %v1178_v44 = vld [vmem:[%s1338_s10 + $0x80] ss:$16 sps:$4 sm:$0xff]   ;;  %v1182_v45 = vld [vmem:[%s1338_s10 + $0xa4] ss:$16 sps:$4 sm:$0xff]   ;;  %v1181_v46 = vld [vmem:[%s1338_s10 + $0x88] ss:$16 sps:$4 sm:$0xff]  }
  0x18   : > { %751 = vmatpush1.bf16.msra.mxu1 %v1140_v14  ;;  %v1185_v47 = vld [vmem:[%s1338_s10 + $0xac] ss:$16 sps:$4 sm:$0xff]   ;;  %v1184_v48 = vld [vmem:[%s1338_s10 + $0xa0] ss:$16 sps:$4 sm:$0xff]   ;;  %v1188_v49 = vld [vmem:[%s1338_s10 + $0xc4] ss:$16 sps:$4 sm:$0xff]  }
  0x19   : > { %1047 = vmatpush3.bf16.msra.mxu0 %v1141_v15  ;;  %752 = vmatprep.subr.bf16.mxu1 %v1224_v1  ;;  %v1187_v50 = vld [vmem:[%s1338_s10 + $0xa8] ss:$16 sps:$4 sm:$0xff]   ;;  %v1191_v51 = vld [vmem:[%s1338_s10 + $0xcc] ss:$16 sps:$4 sm:$0xff]   ;;  %v1190_v52 = vld [vmem:[%s1338_s10 + $0xc0] ss:$16 sps:$4 sm:$0xff]  }
  0x1a   : > { %1048 = vmatprep.subr.bf16.mxu0 %v1142_v16  ;;  %v1194_v53 = vld [vmem:[%s1338_s10 + $0xe4] ss:$16 sps:$4 sm:$0xff]   ;;  %v1193_v54 = vld [vmem:[%s1338_s10 + $0xc8] ss:$16 sps:$4 sm:$0xff]   ;;  %v1197_v55 = vld [vmem:[%s1338_s10 + $0xec] ss:$16 sps:$4 sm:$0xff]  }
  0x1b   : > { %v1196_v56 = vld [vmem:[%s1338_s10 + $0xe0] ss:$16 sps:$4 sm:$0xff]   ;;  %v1199_v57 = vld [vmem:[%s1338_s10 + $0xe8] ss:$16 sps:$4 sm:$0xff]  }
  0x1c   : > { %753 = vmatpush1.bf16.msra.mxu1 %v1143_v17 }
  0x1d   : > { %1049 = vmatpush3.bf16.msra.mxu0 %v1144_v18  ;;  %754 = vmatprep.subr.bf16.mxu1 %v1224_v1 }
  0x1e   : > { %1050 = vmatprep.subr.bf16.mxu0 %v1145_v19 }
  0x20   : > { %755 = vmatpush1.bf16.msra.mxu1 %v1146_v20 }
  0x21   : > { %1051 = vmatpush3.bf16.msra.mxu0 %v1147_v21  ;;  %756 = vmatprep.subr.bf16.mxu1 %v1224_v1 }
  0x22   : > { %1052 = vmatprep.subr.bf16.mxu0 %v1148_v22 }
  0x24   : > { %757 = vmatpush1.bf16.msra.mxu1 %v1149_v24 }
  0x25   : > { %1053 = vmatpush3.bf16.msra.mxu0 %v1150_v26  ;;  %758 = vmatprep.subr.bf16.mxu1 %v1224_v1 }
  0x28   : > { %678 = vmatmul.mubr.bf16.vlgmr.msra.gmra.mrb[0].mxu0 %v1151_v27  ;;  %759 = vmatpush1.bf16.msra.mxu1 %v1154_v28 }
  0x29   : > { %685 = vmatprep.mubr.bf16.mxu0 %v1158_v29 }
  0x2b   : > { %775 = vmatmul.mubr.bf16.vlgmr.msra.gmra.mrb[0].mxu1 %v1155_v30 }
  0x2c   : > { %1028 = vmatprep.mubr.msk.bf16.mxu1 %vm620_vm0, %v1161_v31 }
  0x30   : > { %686 = vmatmul.mubr.bf16.gmra.mrb[4].mxu0 %v1160_v32 }
  0x31   : > { %693 = vmatprep.mubr.bf16.mxu0 %v1164_v33 }
  0x33   : > { %783 = vmatmul.mubr.bf16.gmra.mrb[4].mxu1 %v1163_v34 }
  0x34   : > { %1029 = vmatprep.mubr.msk.bf16.mxu1 %vm620_vm0, %v1167_v35 }
  0x38   : > { %694 = vmatmul.mubr.bf16.gmra.mrb[8].mxu0 %v1166_v36 }
  0x39   : > { %701 = vmatprep.mubr.bf16.mxu0 %v1170_v37 }
  0x3b   : > { %791 = vmatmul.mubr.bf16.gmra.mrb[8].mxu1 %v1169_v38 }
  0x3c   : > { %1030 = vmatprep.mubr.msk.bf16.mxu1 %vm620_vm0, %v1173_v39 }
  0x40   : > { %702 = vmatmul.mubr.bf16.gmra.mrb[12].mxu0 %v1172_v40 }
  0x41   : > { %709 = vmatprep.mubr.bf16.mxu0 %v1176_v41 }
  0x43   : > { %799 = vmatmul.mubr.bf16.gmra.mrb[12].mxu1 %v1175_v42 }
  0x44   : > { %1031 = vmatprep.mubr.msk.bf16.mxu1 %vm620_vm0, %v1179_v43 }
  0x48   : > { %710 = vmatmul.mubr.bf16.gmra.mrb[16].mxu0 %v1178_v44 }
  0x49   : > { %717 = vmatprep.mubr.bf16.mxu0 %v1182_v45 }
  0x4b   : > { %807 = vmatmul.mubr.bf16.gmra.mrb[16].mxu1 %v1181_v46 }
  0x4c   : > { %1032 = vmatprep.mubr.msk.bf16.mxu1 %vm620_vm0, %v1185_v47 }
  0x50   : > { %718 = vmatmul.mubr.bf16.gmra.mrb[20].mxu0 %v1184_v48 }
  0x51   : > { %725 = vmatprep.mubr.bf16.mxu0 %v1188_v49 }
  0x53   : > { %815 = vmatmul.mubr.bf16.gmra.mrb[20].mxu1 %v1187_v50 }
  0x54   : > { %1033 = vmatprep.mubr.msk.bf16.mxu1 %vm620_vm0, %v1191_v51 }
  0x58   : > { %726 = vmatmul.mubr.bf16.gmra.mrb[24].mxu0 %v1190_v52 }
  0x59   : > { %733 = vmatprep.mubr.bf16.mxu0 %v1194_v53 }
  0x5b   : > { %823 = vmatmul.mubr.bf16.gmra.mrb[24].mxu1 %v1193_v54 }
  0x5c   : > { %1034 = vmatprep.mubr.msk.bf16.mxu1 %vm620_vm0, %v1197_v55 }
  0x60   : > { %734 = vmatmul.mubr.bf16.gmra.mrb[28].mxu0 %v1196_v56 }
  0x63   : > { %831 = vmatmul.mubr.bf16.gmra.mrb[28].mxu1 %v1199_v57 }
  0xfb   : > { %v1054_v58 = vpop.f32.mrb[0].mxu0 }
  0xfc   : > { %v1055_v59 = vpop.f32.mrb[1].mxu0 }
  0xfd   : > { %v1056_v61 = vadd.f32 %v1055_v59, %v1054_v58  ;;  %v1057_v62 = vpop.f32.mrb[2].mxu0 }
  0xfe   : > { %v1058_v63 = vpop.f32.mrb[3].mxu0  ;;  %v776_v0 = vpop.f32.mrb[0].mxu1 }
  0xff   : > { %v1059_v1 = vadd.f32 %v1058_v63, %v1057_v62  ;;  %v680_v2 = vadd.f32 %v1056_v61, %v1401_v60  ;;  %v778_v3 = vpop.f32.mrb[1].mxu1 }
 0x100   : > { %v779_v4 = vpop.f32.mrb[2].mxu1 }
 0x101   : > { %v777_v5 = vadd.f32 %v776_v0, %v680_v2  ;;  %v683_v6 = vadd.f32 %v1059_v1, %v1401_v60  ;;  %v781_v7 = vpop.f32.mrb[3].mxu1 }
 0x103   : > { %839 = vst [vmem:[%s1408_s29] sm:$0xff] %v777_v5  ;;  %v780_v8 = vadd.f32 %v779_v4, %v683_v6  ;;  %v1060_v9 = vpop.f32.mrb[4].mxu0 }
 0x104   : > { %v1061_v10 = vpop.f32.mrb[5].mxu0 }
 0x105   : > { %840 = vst [vmem:[%s1408_s29 + $0x8] sm:$0xff] %v780_v8  ;;  %v1062_v11 = vadd.f32 %v1061_v10, %v1060_v9  ;;  %v1063_v12 = vpop.f32.mrb[6].mxu0 }
 0x106   : > { %v1064_v13 = vpop.f32.mrb[7].mxu0  ;;  %v784_v14 = vpop.f32.mrb[4].mxu1 }
 0x107   : > { %v1065_v15 = vadd.f32 %v1064_v13, %v1063_v12  ;;  %v688_v16 = vadd.f32 %v1062_v11, %v1401_v60  ;;  %v786_v17 = vpop.f32.mrb[5].mxu1 }
 0x108   : > { %v787_v18 = vpop.f32.mrb[6].mxu1 }
 0x109   : > { %v785_v19 = vadd.f32 %v784_v14, %v688_v16  ;;  %v691_v20 = vadd.f32 %v1065_v15, %v1401_v60  ;;  %v789_v21 = vpop.f32.mrb[7].mxu1 }
 0x10b   : > { %841 = vst [vmem:[%s1408_s29 + $0x10] sm:$0xff] %v785_v19  ;;  %v788_v22 = vadd.f32 %v787_v18, %v691_v20  ;;  %v1066_v23 = vpop.f32.mrb[8].mxu0 }
 0x10c   : > { %v1067_v24 = vpop.f32.mrb[9].mxu0 }
 0x10d   : > { %842 = vst [vmem:[%s1408_s29 + $0x18] sm:$0xff] %v788_v22  ;;  %v1068_v25 = vadd.f32 %v1067_v24, %v1066_v23  ;;  %v1069_v26 = vpop.f32.mrb[10].mxu0 }
 0x10e   : > { %v1070_v27 = vpop.f32.mrb[11].mxu0  ;;  %v792_v28 = vpop.f32.mrb[8].mxu1 }
 0x10f   : > { %v1071_v29 = vadd.f32 %v1070_v27, %v1069_v26  ;;  %v696_v30 = vadd.f32 %v1068_v25, %v1401_v60  ;;  %v794_v31 = vpop.f32.mrb[9].mxu1 }
 0x110   : > { %v795_v32 = vpop.f32.mrb[10].mxu1 }
 0x111   : > { %v793_v33 = vadd.f32 %v792_v28, %v696_v30  ;;  %v699_v34 = vadd.f32 %v1071_v29, %v1401_v60  ;;  %v797_v35 = vpop.f32.mrb[11].mxu1 }
 0x113   : > { %843 = vst [vmem:[%s1408_s29 + $0x20] sm:$0xff] %v793_v33  ;;  %v796_v36 = vadd.f32 %v795_v32, %v699_v34  ;;  %v1072_v37 = vpop.f32.mrb[12].mxu0 }
 0x114   : > { %v1073_v38 = vpop.f32.mrb[13].mxu0 }
 0x115   : > { %844 = vst [vmem:[%s1408_s29 + $0x28] sm:$0xff] %v796_v36  ;;  %v1074_v39 = vadd.f32 %v1073_v38, %v1072_v37  ;;  %v1075_v40 = vpop.f32.mrb[14].mxu0 }
 0x116   : > { %v1076_v41 = vpop.f32.mrb[15].mxu0  ;;  %v800_v42 = vpop.f32.mrb[12].mxu1 }
 0x117   : > { %v1077_v43 = vadd.f32 %v1076_v41, %v1075_v40  ;;  %v704_v44 = vadd.f32 %v1074_v39, %v1401_v60  ;;  %v802_v45 = vpop.f32.mrb[13].mxu1 }
 0x118   : > { %v803_v46 = vpop.f32.mrb[14].mxu1 }
 0x119   : > { %v801_v47 = vadd.f32 %v800_v42, %v704_v44  ;;  %v707_v48 = vadd.f32 %v1077_v43, %v1401_v60  ;;  %v805_v49 = vpop.f32.mrb[15].mxu1 }
 0x11b   : > { %845 = vst [vmem:[%s1408_s29 + $0x30] sm:$0xff] %v801_v47  ;;  %v804_v50 = vadd.f32 %v803_v46, %v707_v48  ;;  %v1078_v51 = vpop.f32.mrb[16].mxu0 }
 0x11c   : > { %v1079_v52 = vpop.f32.mrb[17].mxu0 }
 0x11d   : > { %846 = vst [vmem:[%s1408_s29 + $0x38] sm:$0xff] %v804_v50  ;;  %v1080_v53 = vadd.f32 %v1079_v52, %v1078_v51  ;;  %v1081_v54 = vpop.f32.mrb[18].mxu0 }
 0x11e   : > { %v1082_v55 = vpop.f32.mrb[19].mxu0  ;;  %v808_v56 = vpop.f32.mrb[16].mxu1 }
 0x11f   : > { %v1083_v57 = vadd.f32 %v1082_v55, %v1081_v54  ;;  %v712_v58 = vadd.f32 %v1080_v53, %v1401_v60  ;;  %v810_v59 = vpop.f32.mrb[17].mxu1 }
 0x120   : > { %v811_v61 = vpop.f32.mrb[18].mxu1 }
 0x121   : > { %v809_v62 = vadd.f32 %v808_v56, %v712_v58  ;;  %v715_v63 = vadd.f32 %v1083_v57, %v1401_v60  ;;  %v813_v0 = vpop.f32.mrb[19].mxu1 }
 0x123   : > { %847 = vst [vmem:[%s1408_s29 + $0x40] sm:$0xff] %v809_v62  ;;  %v812_v1 = vadd.f32 %v811_v61, %v715_v63  ;;  %v1084_v2 = vpop.f32.mrb[20].mxu0 }
 0x124   : > { %v1085_v3 = vpop.f32.mrb[21].mxu0 }
 0x125   : > { %848 = vst [vmem:[%s1408_s29 + $0x48] sm:$0xff] %v812_v1  ;;  %v1086_v4 = vadd.f32 %v1085_v3, %v1084_v2  ;;  %v1087_v5 = vpop.f32.mrb[22].mxu0 }
 0x126   : > { %v1088_v6 = vpop.f32.mrb[23].mxu0  ;;  %v816_v7 = vpop.f32.mrb[20].mxu1 }
 0x127   : > { %v1089_v8 = vadd.f32 %v1088_v6, %v1087_v5  ;;  %v720_v9 = vadd.f32 %v1086_v4, %v1401_v60  ;;  %v818_v10 = vpop.f32.mrb[21].mxu1 }
 0x128   : > { %v819_v11 = vpop.f32.mrb[22].mxu1 }
 0x129   : > { %v817_v12 = vadd.f32 %v816_v7, %v720_v9  ;;  %v723_v13 = vadd.f32 %v1089_v8, %v1401_v60  ;;  %v821_v14 = vpop.f32.mrb[23].mxu1 }
 0x12b   : > { %849 = vst [vmem:[%s1408_s29 + $0x50] sm:$0xff] %v817_v12  ;;  %v820_v15 = vadd.f32 %v819_v11, %v723_v13  ;;  %v1090_v16 = vpop.f32.mrb[24].mxu0 }
 0x12c   : > { %v1091_v17 = vpop.f32.mrb[25].mxu0 }
 0x12d   : > { %850 = vst [vmem:[%s1408_s29 + $0x58] sm:$0xff] %v820_v15  ;;  %v1092_v18 = vadd.f32 %v1091_v17, %v1090_v16  ;;  %v1093_v19 = vpop.f32.mrb[26].mxu0 }
 0x12e   : > { %v1094_v20 = vpop.f32.mrb[27].mxu0  ;;  %v824_v21 = vpop.f32.mrb[24].mxu1 }
 0x12f   : > { %v1095_v22 = vadd.f32 %v1094_v20, %v1093_v19  ;;  %v728_v23 = vadd.f32 %v1092_v18, %v1401_v60  ;;  %v826_v24 = vpop.f32.mrb[25].mxu1 }
 0x130   : > { %v827_v25 = vpop.f32.mrb[26].mxu1 }
 0x131   : > { %v825_v26 = vadd.f32 %v824_v21, %v728_v23  ;;  %v731_v27 = vadd.f32 %v1095_v22, %v1401_v60  ;;  %v829_v28 = vpop.f32.mrb[27].mxu1 }
 0x133   : > { %851 = vst [vmem:[%s1408_s29 + $0x60] sm:$0xff] %v825_v26  ;;  %v828_v29 = vadd.f32 %v827_v25, %v731_v27  ;;  %v1096_v30 = vpop.f32.mrb[28].mxu0 }
 0x134   : > { %v1097_v31 = vpop.f32.mrb[29].mxu0 }
 0x135   : > { %852 = vst [vmem:[%s1408_s29 + $0x68] sm:$0xff] %v828_v29  ;;  %v1098_v32 = vadd.f32 %v1097_v31, %v1096_v30  ;;  %v1099_v33 = vpop.f32.mrb[30].mxu0 }
 0x136   : > { %v1100_v34 = vpop.f32.mrb[31].mxu0  ;;  %v832_v35 = vpop.f32.mrb[28].mxu1 }
 0x137   : > { %v1101_v36 = vadd.f32 %v1100_v34, %v1099_v33  ;;  %v736_v37 = vadd.f32 %v1098_v32, %v1401_v60  ;;  %v834_v38 = vpop.f32.mrb[29].mxu1 }
 0x138   : > { %v835_v39 = vpop.f32.mrb[30].mxu1 }
 0x139   : > { %v833_v40 = vadd.f32 %v832_v35, %v736_v37  ;;  %v739_v41 = vadd.f32 %v1101_v36, %v1401_v60  ;;  %v837_v42 = vpop.f32.mrb[31].mxu1 }
 0x13b   : > { %853 = vst [vmem:[%s1408_s29 + $0x70] sm:$0xff] %v833_v40  ;;  %v836_v43 = vadd.f32 %v835_v39, %v739_v41 }
 0x13d   : > { %854 = vst [vmem:[%s1408_s29 + $0x78] sm:$0xff] %v836_v43 }
 0x13e PF: > { %s13_s14 = sadd.s32 1, %s1222_s14   ;;  %s1454_s12 = smov %s1218_s13 }
 0x13f   : > { %p10_p5 = scmp.ge.s32.totalorder %s13_s14, 4   ;;  %s1455_s13 = smov %s1457_s15 }
 0x141   :  { %12 = sbr.rel (!%p10_p5) target bundleno = 2 (0x2), region = 68 }

</bundles_post_ra>
